<compile_context>
chip_gen: v5e
topology: v5e:2x2
jax: 0.10.0
libtpu: 0.0.40
codegen_flags: <defaults>
</compile_context>

<pallas_src>
import functools
import math

import jax
import jax.numpy as jnp
from jax.experimental import pallas as pl
from jax.experimental.pallas import tpu as pltpu

# ----------------------------- small config ---------------------------------
B = 2            # batch
C_IN = 3         # input channels (RGB)
IMG = 64         # input spatial size (module default 448, scaled down)
PATCH = 8        # embedder stand-in stride (out_indices=[2] ~ stride-8 features)
C_FEAT = 48      # embedder feature channels (folded away at prepare time)
EMBED = 128      # HybridEmbed embed_dim (matches module's embed_dim=128)
HEADS = 4
HEAD_DIM = EMBED // HEADS
MLP = 4 * EMBED
DEPTH = 2        # transformer blocks
CLASSES = 1      # module default classes=1
GRID = IMG // PATCH
N_TOK = GRID * GRID
K_PATCH = C_IN * PATCH * PATCH
EPS = 1e-5


# ----------------------------- in-kernel helpers -----------------------------
def _ln_f32(x, g, b, eps):
    mu = jnp.mean(x, axis=-1, keepdims=True)
    var = jnp.mean(jnp.square(x - mu), axis=-1, keepdims=True)
    return (x - mu) * jax.lax.rsqrt(var + eps) * g + b


# ----------------------------- the fused kernel ------------------------------
def _fused_kernel(patch_ref, sw_ref, sb_ref,
                  ln1g_ref, ln1b_ref,
                  qw_ref, qb_ref, kw_ref, kb_ref, vw_ref, vb_ref,
                  bias_ref, pw_ref, pb_ref,
                  ln2g_ref, ln2b_ref,
                  f1w_ref, f1b_ref, f2w_ref, f2b_ref,
                  ng_ref, nbv_ref, hw_ref, hb_ref,
                  o_ref,
                  tok_ref,
                  *, batch, n_tok, heads, head_dim, eps, depth):
    d = pl.program_id(0)

    # ---- depth step 0: fused stem (patchify conv folded with 1x1 proj -> one matmul) ----
    @pl.when(d == 0)
    def _():
        tok_ref[...] = (jnp.dot(patch_ref[...], sw_ref[...],
                                preferred_element_type=jnp.float32) + sb_ref[...])

    tok = tok_ref[...]                                                  # (B*N, E) f32

    # ---- attention branch: LN1 -> per-head QKV -> attention (+rel bias) -> proj ----
    y = _ln_f32(tok, ln1g_ref[...], ln1b_ref[...], eps).astype(jnp.bfloat16)
    attn = None
    for h in range(heads):                 # static unroll; per-head weights pre-split in wrapper
        # attention scale already folded into q weights/bias at prepare time
        q = (jnp.dot(y, qw_ref[h], preferred_element_type=jnp.float32)
             + qb_ref[h]).astype(jnp.bfloat16)                          # (B*N, d)
        k = (jnp.dot(y, kw_ref[h], preferred_element_type=jnp.float32)
             + kb_ref[h]).astype(jnp.bfloat16)
        v = (jnp.dot(y, vw_ref[h], preferred_element_type=jnp.float32)
             + vb_ref[h]).astype(jnp.bfloat16)
        o_parts = []
        for b in range(batch):             # static unroll; row slices are sublane-aligned
            r0 = b * n_tok
            q_b = q[r0:r0 + n_tok, :]
            k_b = k[r0:r0 + n_tok, :]
            v_b = v[r0:r0 + n_tok, :]
            s = jnp.dot(q_b, k_b.T, preferred_element_type=jnp.float32) + bias_ref[h]
            m = jnp.max(s, axis=-1, keepdims=True)
            ex = jnp.exp(s - m)
            pr = ex * pl.reciprocal(jnp.sum(ex, axis=-1, keepdims=True), approx=True)
            o_parts.append(jnp.dot(pr.astype(jnp.bfloat16), v_b,
                                   preferred_element_type=jnp.float32))
        o_h = jnp.concatenate(o_parts, axis=0) if batch > 1 else o_parts[0]   # (B*N, d)
        # concat_h(o_h) @ Wp  ==  sum_h o_h @ Wp[h]  -> no lane-dim concatenation needed
        ph = jnp.dot(o_h.astype(jnp.bfloat16), pw_ref[h],
                     preferred_element_type=jnp.float32)
        attn = ph if attn is None else attn + ph
    tok = tok + attn + pb_ref[...]

    # ---- MLP branch: LN2 -> fc1 + GELU -> fc2 ----
    y2 = _ln_f32(tok, ln2g_ref[...], ln2b_ref[...], eps).astype(jnp.bfloat16)
    h1 = jnp.dot(y2, f1w_ref[...], preferred_element_type=jnp.float32) + f1b_ref[...]
    # TODO(synk): PyTorch nn.GELU default is exact erf GELU; tanh approximation used here.
    h1 = jax.nn.gelu(h1, approximate=True)
    tok = tok + jnp.dot(h1.astype(jnp.bfloat16), f2w_ref[...],
                        preferred_element_type=jnp.float32) + f2b_ref[...]
    tok_ref[...] = tok                                                  # residual stays in VMEM

    # ---- last depth step: final LN -> token mean-pool -> vit.head Linear ----
    @pl.when(d == depth - 1)
    def _():
        yf = _ln_f32(tok, ng_ref[...], nbv_ref[...], eps)
        feats = jnp.concatenate(
            [jnp.mean(yf[b * n_tok:(b + 1) * n_tok, :], axis=0, keepdims=True)
             for b in range(batch)], axis=0)                           # (B, E)
        # TODO(synk): if CLASSES is scaled up, pad head_w columns to a multiple of 128 to
        #             keep the logits store lane-dense.
        o_ref[...] = (jnp.dot(feats, hw_ref[...], preferred_element_type=jnp.float32)
                      + hb_ref[...]).astype(o_ref.dtype)


# ----------------------------- forward wrapper --------------------------------
def hybrid_forward(prep, images):
    """images: NCHW (B, C_IN, IMG, IMG) -> logits (B, CLASSES)."""
    Bb, Cin, Hh, Ww = images.shape
    gh, gw = Hh // PATCH, Ww // PATCH
    N = gh * gw

    # im2col patch extraction (XLA glue, fused under jit).
    x = images.reshape(Bb, Cin, gh, PATCH, gw, PATCH)
    x = x.transpose(0, 2, 4, 1, 3, 5).reshape(Bb * N, Cin * PATCH * PATCH)
    x = x.astype(jnp.bfloat16)

    kernel = functools.partial(_fused_kernel, batch=Bb, n_tok=N, heads=HEADS,
                               head_dim=HEAD_DIM, eps=EPS, depth=DEPTH)

    cst = lambda d: (0, 0)
    d3 = lambda d: (d, 0, 0)
    d4 = lambda d: (d, 0, 0, 0)
    E, H, Dh, M = EMBED, HEADS, HEAD_DIM, MLP

    return pl.pallas_call(
        kernel,
        out_shape=jax.ShapeDtypeStruct((Bb, CLASSES), jnp.float32),
        grid=(DEPTH,),
        in_specs=[
            pl.BlockSpec((Bb * N, K_PATCH), cst),        # patches (loaded once)
            pl.BlockSpec((K_PATCH, E), cst),             # stem_w (conv @ proj, precomputed)
            pl.BlockSpec((1, E), cst),                   # stem_b
            pl.BlockSpec((None, 1, E), d3),              # ln1_g
            pl.BlockSpec((None, 1, E), d3),              # ln1_b
            pl.BlockSpec((None, H, E, Dh), d4),          # q_w (scale folded, per-head)
            pl.BlockSpec((None, H, 1, Dh), d4),          # q_b
            pl.BlockSpec((None, H, E, Dh), d4),          # k_w
            pl.BlockSpec((None, H, 1, Dh), d4),          # k_b
            pl.BlockSpec((None, H, E, Dh), d4),          # v_w
            pl.BlockSpec((None, H, 1, Dh), d4),          # v_b
            pl.BlockSpec((None, H, N, N), d4),           # relative position bias
            pl.BlockSpec((None, H, Dh, E), d4),          # attn_proj_w (per-head row slices)
            pl.BlockSpec((None, 1, E), d3),              # attn_proj_b
            pl.BlockSpec((None, 1, E), d3),              # ln2_g
            pl.BlockSpec((None, 1, E), d3),              # ln2_b
            pl.BlockSpec((None, E, M), d3),              # fc1_w
            pl.BlockSpec((None, 1, M), d3),              # fc1_b
            pl.BlockSpec((None, M, E), d3),              # fc2_w
            pl.BlockSpec((None, 1, E), d3),              # fc2_b
            pl.BlockSpec((1, E), cst),                   # final norm_g
            pl.BlockSpec((1, E), cst),                   # final norm_b
            pl.BlockSpec((E, CLASSES), cst),             # head_w
            pl.BlockSpec((1, CLASSES), cst),             # head_b
        ],
        out_specs=pl.BlockSpec((Bb, CLASSES), cst),      # logits resident across depth axis
        scratch_shapes=[pltpu.VMEM((Bb * N, E), jnp.float32)],   # residual stream
        compiler_params=pltpu.CompilerParams(dimension_semantics=("arbitrary",)),
    )(x, prep["stem_w"], prep["stem_b"],
      prep["ln1_g"], prep["ln1_b"],
      prep["q_w"], prep["q_b"], prep["k_w"], prep["k_b"], prep["v_w"], prep["v_b"],
      prep["rel_bias"], prep["attn_proj_w"], prep["attn_proj_b"],
      prep["ln2_g"], prep["ln2_b"],
      prep["fc1_w"], prep["fc1_b"], prep["fc2_w"], prep["fc2_b"],
      prep["norm_g"], prep["norm_b"], prep["head_w"], prep["head_b"])


hybrid_forward_jit = jax.jit(hybrid_forward)


# ----------------------------- params ----------------------------------------
def init_params(key):
    def nrm(k, shape, std=0.02):
        return (std * jax.random.normal(k, shape)).astype(jnp.float32)

    keys = iter(jax.random.split(key, 32))
    p = {
        # embedder stand-in: Conv2d(C_IN, C_FEAT, kernel=PATCH, stride=PATCH) as im2col matmul
        "embed_conv_w": nrm(next(keys), (K_PATCH, C_FEAT)),
        "embed_conv_b": jnp.zeros((1, C_FEAT), jnp.float32),
        # HybridEmbed proj: Conv2d(C_FEAT, EMBED, kernel=1) == per-token linear
        "proj_w": nrm(next(keys), (C_FEAT, EMBED)),
        "proj_b": jnp.zeros((1, EMBED), jnp.float32),
        "norm_g": jnp.ones((1, EMBED), jnp.float32),
        "norm_b": jnp.zeros((1, EMBED), jnp.float32),
        # vit.head = nn.Linear(n_features, classes)
        "head_w": nrm(next(keys), (EMBED, CLASSES)),
        "head_b": jnp.zeros((1, CLASSES), jnp.float32),
        "blocks": [],
    }
    for _ in range(DEPTH):
        p["blocks"].append({
            "ln1_g": jnp.ones((1, EMBED), jnp.float32),
            "ln1_b": jnp.zeros((1, EMBED), jnp.float32),
            "qkv_w": nrm(next(keys), (EMBED, 3 * EMBED)),
            "qkv_b": jnp.zeros((1, 3 * EMBED), jnp.float32),
            "rel_bias": nrm(next(keys), (HEADS, N_TOK, N_TOK)),
            "attn_proj_w": nrm(next(keys), (EMBED, EMBED)),
            "attn_proj_b": jnp.zeros((1, EMBED), jnp.float32),
            "ln2_g": jnp.ones((1, EMBED), jnp.float32),
            "ln2_b": jnp.zeros((1, EMBED), jnp.float32),
            "fc1_w": nrm(next(keys), (EMBED, MLP)),
            "fc1_b": jnp.zeros((1, MLP), jnp.float32),
            "fc2_w": nrm(next(keys), (MLP, EMBED)),
            "fc2_b": jnp.zeros((1, EMBED), jnp.float32),
        })
    return p


def prepare_params(p):
    """One-time, exact wrapper-side refactors of the reference parameters."""
    E, H, Dh = EMBED, HEADS, HEAD_DIM
    scale = 1.0 / math.sqrt(Dh)

    # (a) stem fold: no nonlinearity between the patchify conv and the 1x1 proj -> exact.
    stem_w = (p["embed_conv_w"] @ p["proj_w"]).astype(jnp.bfloat16)
    stem_b = (p["embed_conv_b"] @ p["proj_w"] + p["proj_b"]).astype(jnp.float32)

    def stack(name):
        return jnp.stack([blk[name] for blk in p["blocks"]], axis=0)

    qkv_w = stack("qkv_w")                        # (DEPTH, E, 3E)
    qkv_b = stack("qkv_b")                        # (DEPTH, 1, 3E)

    def heads_w(w, scl):                          # (DEPTH, E, E) -> (DEPTH, H, E, Dh)
        return (jnp.transpose(w.reshape(DEPTH, E, H, Dh), (0, 2, 1, 3)) * scl).astype(jnp.bfloat16)

    def heads_b(b_, scl):                         # (DEPTH, 1, E) -> (DEPTH, H, 1, Dh)
        return (jnp.transpose(b_.reshape(DEPTH, 1, H, Dh), (0, 2, 1, 3)) * scl).astype(jnp.float32)

    return {
        "stem_w": stem_w, "stem_b": stem_b,
        "ln1_g": stack("ln1_g"), "ln1_b": stack("ln1_b"),
        # (b) fold 1/sqrt(head_dim) into the Q projection; (c) pre-split per head so the
        #     kernel never slices activations at 32-lane offsets.
        "q_w": heads_w(qkv_w[:, :, :E], scale),
        "k_w": heads_w(qkv_w[:, :, E:2 * E], 1.0),
        "v_w": heads_w(qkv_w[:, :, 2 * E:], 1.0),
        "q_b": heads_b(qkv_b[:, :, :E], scale),
        "k_b": heads_b(qkv_b[:, :, E:2 * E], 1.0),
        "v_b": heads_b(qkv_b[:, :, 2 * E:], 1.0),
        "rel_bias": stack("rel_bias"),
        # per-head row slices of attn_proj_w: concat_h(o_h) @ Wp == sum_h o_h @ Wp[h]
        "attn_proj_w": stack("attn_proj_w").reshape(DEPTH, H, Dh, E).astype(jnp.bfloat16),
        "attn_proj_b": stack("attn_proj_b"),
        "ln2_g": stack("ln2_g"), "ln2_b": stack("ln2_b"),
        "fc1_w": stack("fc1_w").astype(jnp.bfloat16), "fc1_b": stack("fc1_b"),
        "fc2_w": stack("fc2_w").astype(jnp.bfloat16), "fc2_b": stack("fc2_b"),
        "norm_g": p["norm_g"], "norm_b": p["norm_b"],
        "head_w": p["head_w"], "head_b": p["head_b"],
    }


# ----------------------------- main -------------------------------------------
if __name__ == "__main__":
    key = jax.random.PRNGKey(0)
    k_img, k_par = jax.random.split(key)
    images = jax.random.normal(k_img, (B, C_IN, IMG, IMG), dtype=jnp.float32)   # NCHW
    params = init_params(k_par)
    prep = prepare_params(params)                 # one-time exact param refactor

    logits = hybrid_forward_jit(prep, images)
    logits = jax.block_until_ready(logits)
    assert logits.shape == (B, CLASSES), logits.shape
    print("KERNEL_OK")
</pallas_src>

<mosaic_0001>
module attributes {stable_mosaic.version = 11 : i64} {
  func.func @_fused_kernel(%arg0: i32, %arg1: memref<128x192xbf16, #tpu.memory_space<vmem>>, %arg2: memref<192x128xbf16, #tpu.memory_space<vmem>>, %arg3: memref<1x128xf32, #tpu.memory_space<vmem>>, %arg4: memref<1x1x128xf32, #tpu.memory_space<vmem>>, %arg5: memref<1x1x128xf32, #tpu.memory_space<vmem>>, %arg6: memref<1x4x128x32xbf16, #tpu.memory_space<vmem>>, %arg7: memref<1x4x1x32xf32, #tpu.memory_space<vmem>>, %arg8: memref<1x4x128x32xbf16, #tpu.memory_space<vmem>>, %arg9: memref<1x4x1x32xf32, #tpu.memory_space<vmem>>, %arg10: memref<1x4x128x32xbf16, #tpu.memory_space<vmem>>, %arg11: memref<1x4x1x32xf32, #tpu.memory_space<vmem>>, %arg12: memref<1x4x64x64xf32, #tpu.memory_space<vmem>>, %arg13: memref<1x4x32x128xbf16, #tpu.memory_space<vmem>>, %arg14: memref<1x1x128xf32, #tpu.memory_space<vmem>>, %arg15: memref<1x1x128xf32, #tpu.memory_space<vmem>>, %arg16: memref<1x1x128xf32, #tpu.memory_space<vmem>>, %arg17: memref<1x128x512xbf16, #tpu.memory_space<vmem>>, %arg18: memref<1x1x512xf32, #tpu.memory_space<vmem>>, %arg19: memref<1x512x128xbf16, #tpu.memory_space<vmem>>, %arg20: memref<1x1x128xf32, #tpu.memory_space<vmem>>, %arg21: memref<1x128xf32, #tpu.memory_space<vmem>>, %arg22: memref<1x128xf32, #tpu.memory_space<vmem>>, %arg23: memref<128x1xf32, #tpu.memory_space<vmem>>, %arg24: memref<1x1xf32, #tpu.memory_space<vmem>>, %arg25: memref<2x1xf32, #tpu.memory_space<vmem>>, %arg26: memref<128x128xf32, #tpu.memory_space<vmem>>) attributes {dimension_semantics = [#tpu.dimension_semantics<arbitrary>], iteration_bounds = array<i64: 2>, scalar_prefetch = 0 : i64, scratch_operands = 1 : i64, tpu.core_type = #tpu.core_type<tc>, window_params = [{pipeline_mode = #tpu.pipeline_mode<synchronous>, transform_indices = @transform_0, window_bounds = array<i64: 128, 192>}, {pipeline_mode = #tpu.pipeline_mode<synchronous>, transform_indices = @transform_1, window_bounds = array<i64: 192, 128>}, {pipeline_mode = #tpu.pipeline_mode<synchronous>, transform_indices = @transform_2, window_bounds = array<i64: 1, 128>}, {transform_indices = @transform_3, window_bounds = array<i64: 1, 1, 128>}, {transform_indices = @transform_4, window_bounds = array<i64: 1, 1, 128>}, {transform_indices = @transform_5, window_bounds = array<i64: 1, 4, 128, 32>}, {transform_indices = @transform_6, window_bounds = array<i64: 1, 4, 1, 32>}, {transform_indices = @transform_7, window_bounds = array<i64: 1, 4, 128, 32>}, {transform_indices = @transform_8, window_bounds = array<i64: 1, 4, 1, 32>}, {transform_indices = @transform_9, window_bounds = array<i64: 1, 4, 128, 32>}, {transform_indices = @transform_10, window_bounds = array<i64: 1, 4, 1, 32>}, {transform_indices = @transform_11, window_bounds = array<i64: 1, 4, 64, 64>}, {transform_indices = @transform_12, window_bounds = array<i64: 1, 4, 32, 128>}, {transform_indices = @transform_13, window_bounds = array<i64: 1, 1, 128>}, {transform_indices = @transform_14, window_bounds = array<i64: 1, 1, 128>}, {transform_indices = @transform_15, window_bounds = array<i64: 1, 1, 128>}, {transform_indices = @transform_16, window_bounds = array<i64: 1, 128, 512>}, {transform_indices = @transform_17, window_bounds = array<i64: 1, 1, 512>}, {transform_indices = @transform_18, window_bounds = array<i64: 1, 512, 128>}, {transform_indices = @transform_19, window_bounds = array<i64: 1, 1, 128>}, {pipeline_mode = #tpu.pipeline_mode<synchronous>, transform_indices = @transform_20, window_bounds = array<i64: 1, 128>}, {pipeline_mode = #tpu.pipeline_mode<synchronous>, transform_indices = @transform_21, window_bounds = array<i64: 1, 128>}, {pipeline_mode = #tpu.pipeline_mode<synchronous>, transform_indices = @transform_22, window_bounds = array<i64: 128, 1>}, {pipeline_mode = #tpu.pipeline_mode<synchronous>, transform_indices = @transform_23, window_bounds = array<i64: 1, 1>}, {pipeline_mode = #tpu.pipeline_mode<synchronous>, transform_indices = @transform_24, window_bounds = array<i64: 2, 1>}]} {
    %c0_i32 = arith.constant 0 : i32
    %0 = arith.cmpi eq, %arg0, %c0_i32 : i32
    %1 = arith.extui %0 : i1 to i32
    %c0_i32_0 = arith.constant 0 : i32
    %2 = arith.cmpi ne, %1, %c0_i32_0 : i32
    scf.if %2 {
      %c0_236 = arith.constant 0 : index
      %c0_237 = arith.constant 0 : index
      %375 = vector.load %arg1[%c0_236, %c0_237] : memref<128x192xbf16, #tpu.memory_space<vmem>>, vector<128x192xbf16>
      %c0_238 = arith.constant 0 : index
      %c0_239 = arith.constant 0 : index
      %376 = vector.load %arg2[%c0_238, %c0_239] : memref<192x128xbf16, #tpu.memory_space<vmem>>, vector<192x128xbf16>
      %cst_240 = arith.constant dense<0.000000e+00> : vector<128x128xf32>
      %377 = tpu.matmul %375, %376, %cst_240 {dimension_numbers = #tpu.dot_dimension_numbers<[1], [0], [0], [1], [0, 0, 1, 1], [], []>} : vector<128x192xbf16>, vector<192x128xbf16>, vector<128x128xf32> -> vector<128x128xf32>
      %c0_241 = arith.constant 0 : index
      %c0_242 = arith.constant 0 : index
      %378 = vector.load %arg3[%c0_241, %c0_242] : memref<1x128xf32, #tpu.memory_space<vmem>>, vector<1x128xf32>
      %379 = vector.broadcast %378 : vector<1x128xf32> to vector<128x128xf32>
      %380 = arith.addf %377, %379 : vector<128x128xf32>
      %c0_243 = arith.constant 0 : index
      %c0_244 = arith.constant 0 : index
      %381 = vector.load %arg26[%c0_243, %c0_244] : memref<128x128xf32, #tpu.memory_space<vmem>>, vector<128x128xf32>
      tpu.vector_store %arg26[%c0_243, %c0_244], %380 {strides = array<i32>} : memref<128x128xf32, #tpu.memory_space<vmem>>, vector<128x128xf32>,
    } else {
    }
    %c0 = arith.constant 0 : index
    %c0_1 = arith.constant 0 : index
    %3 = vector.load %arg26[%c0, %c0_1] : memref<128x128xf32, #tpu.memory_space<vmem>>, vector<128x128xf32>
    %c0_2 = arith.constant 0 : index
    %c0_3 = arith.constant 0 : index
    %c0_4 = arith.constant 0 : index
    %4 = vector.load %arg4[%c0_2, %c0_3, %c0_4] : memref<1x1x128xf32, #tpu.memory_space<vmem>>, vector<1x1x128xf32>
    %5 = vector.shape_cast %4 : vector<1x1x128xf32> to vector<1x128xf32>
    %c0_5 = arith.constant 0 : index
    %c0_6 = arith.constant 0 : index
    %c0_7 = arith.constant 0 : index
    %6 = vector.load %arg5[%c0_5, %c0_6, %c0_7] : memref<1x1x128xf32, #tpu.memory_space<vmem>>, vector<1x1x128xf32>
    %7 = vector.shape_cast %6 : vector<1x1x128xf32> to vector<1x128xf32>
    %cst = arith.constant dense<0.000000e+00> : vector<128xf32>
    %8 = vector.multi_reduction <add>, %3, %cst [1] : vector<128x128xf32> to vector<128xf32>
    %9 = vector.shape_cast %8 : vector<128xf32> to vector<128x1xf32>
    %cst_8 = arith.constant 1.280000e+02 : f32
    %10 = vector.broadcast %cst_8 : f32 to vector<128x1xf32>
    %11 = arith.divf %9, %10 : vector<128x1xf32>
    %12 = vector.broadcast %11 : vector<128x1xf32> to vector<128x128xf32>
    %13 = arith.subf %3, %12 : vector<128x128xf32>
    %14 = arith.mulf %13, %13 : vector<128x128xf32>
    %cst_9 = arith.constant dense<0.000000e+00> : vector<128xf32>
    %15 = vector.multi_reduction <add>, %14, %cst_9 [1] : vector<128x128xf32> to vector<128xf32>
    %16 = vector.shape_cast %15 : vector<128xf32> to vector<128x1xf32>
    %cst_10 = arith.constant 1.280000e+02 : f32
    %17 = vector.broadcast %cst_10 : f32 to vector<128x1xf32>
    %18 = arith.divf %16, %17 : vector<128x1xf32>
    %19 = vector.broadcast %11 : vector<128x1xf32> to vector<128x128xf32>
    %20 = arith.subf %3, %19 : vector<128x128xf32>
    %cst_11 = arith.constant 9.99999974E-6 : f32
    %21 = vector.broadcast %cst_11 : f32 to vector<128x1xf32>
    %22 = arith.addf %18, %21 : vector<128x1xf32>
    %23 = math.rsqrt %22 : vector<128x1xf32>
    %24 = vector.broadcast %23 : vector<128x1xf32> to vector<128x128xf32>
    %25 = arith.mulf %20, %24 : vector<128x128xf32>
    %26 = vector.broadcast %5 : vector<1x128xf32> to vector<128x128xf32>
    %27 = arith.mulf %25, %26 : vector<128x128xf32>
    %28 = vector.broadcast %7 : vector<1x128xf32> to vector<128x128xf32>
    %29 = arith.addf %27, %28 : vector<128x128xf32>
    %30 = arith.truncf %29 : vector<128x128xf32> to vector<128x128xbf16>
    %c0_12 = arith.constant 0 : index
    %c0_13 = arith.constant 0 : index
    %c0_14 = arith.constant 0 : index
    %c0_15 = arith.constant 0 : index
    %31 = vector.load %arg6[%c0_12, %c0_13, %c0_14, %c0_15] : memref<1x4x128x32xbf16, #tpu.memory_space<vmem>>, vector<1x1x128x32xbf16>
    %32 = vector.shape_cast %31 : vector<1x1x128x32xbf16> to vector<128x32xbf16>
    %cst_16 = arith.constant dense<0.000000e+00> : vector<128x32xf32>
    %33 = tpu.matmul %30, %32, %cst_16 {dimension_numbers = #tpu.dot_dimension_numbers<[1], [0], [0], [1], [0, 0, 1, 1], [], []>} : vector<128x128xbf16>, vector<128x32xbf16>, vector<128x32xf32> -> vector<128x32xf32>
    %c0_17 = arith.constant 0 : index
    %c0_18 = arith.constant 0 : index
    %c0_19 = arith.constant 0 : index
    %c0_20 = arith.constant 0 : index
    %34 = vector.load %arg7[%c0_17, %c0_18, %c0_19, %c0_20] : memref<1x4x1x32xf32, #tpu.memory_space<vmem>>, vector<1x1x1x32xf32>
    %35 = vector.shape_cast %34 : vector<1x1x1x32xf32> to vector<1x32xf32>
    %36 = vector.broadcast %35 : vector<1x32xf32> to vector<128x32xf32>
    %37 = arith.addf %33, %36 : vector<128x32xf32>
    %38 = arith.truncf %37 : vector<128x32xf32> to vector<128x32xbf16>
    %c0_21 = arith.constant 0 : index
    %c0_22 = arith.constant 0 : index
    %c0_23 = arith.constant 0 : index
    %c0_24 = arith.constant 0 : index
    %39 = vector.load %arg8[%c0_21, %c0_22, %c0_23, %c0_24] : memref<1x4x128x32xbf16, #tpu.memory_space<vmem>>, vector<1x1x128x32xbf16>
    %40 = vector.shape_cast %39 : vector<1x1x128x32xbf16> to vector<128x32xbf16>
    %cst_25 = arith.constant dense<0.000000e+00> : vector<128x32xf32>
    %41 = tpu.matmul %30, %40, %cst_25 {dimension_numbers = #tpu.dot_dimension_numbers<[1], [0], [0], [1], [0, 0, 1, 1], [], []>} : vector<128x128xbf16>, vector<128x32xbf16>, vector<128x32xf32> -> vector<128x32xf32>
    %c0_26 = arith.constant 0 : index
    %c0_27 = arith.constant 0 : index
    %c0_28 = arith.constant 0 : index
    %c0_29 = arith.constant 0 : index
    %42 = vector.load %arg9[%c0_26, %c0_27, %c0_28, %c0_29] : memref<1x4x1x32xf32, #tpu.memory_space<vmem>>, vector<1x1x1x32xf32>
    %43 = vector.shape_cast %42 : vector<1x1x1x32xf32> to vector<1x32xf32>
    %44 = vector.broadcast %43 : vector<1x32xf32> to vector<128x32xf32>
    %45 = arith.addf %41, %44 : vector<128x32xf32>
    %46 = arith.truncf %45 : vector<128x32xf32> to vector<128x32xbf16>
    %c0_30 = arith.constant 0 : index
    %c0_31 = arith.constant 0 : index
    %c0_32 = arith.constant 0 : index
    %c0_33 = arith.constant 0 : index
    %47 = vector.load %arg10[%c0_30, %c0_31, %c0_32, %c0_33] : memref<1x4x128x32xbf16, #tpu.memory_space<vmem>>, vector<1x1x128x32xbf16>
    %48 = vector.shape_cast %47 : vector<1x1x128x32xbf16> to vector<128x32xbf16>
    %cst_34 = arith.constant dense<0.000000e+00> : vector<128x32xf32>
    %49 = tpu.matmul %30, %48, %cst_34 {dimension_numbers = #tpu.dot_dimension_numbers<[1], [0], [0], [1], [0, 0, 1, 1], [], []>} : vector<128x128xbf16>, vector<128x32xbf16>, vector<128x32xf32> -> vector<128x32xf32>
    %c0_35 = arith.constant 0 : index
    %c0_36 = arith.constant 0 : index
    %c0_37 = arith.constant 0 : index
    %c0_38 = arith.constant 0 : index
    %50 = vector.load %arg11[%c0_35, %c0_36, %c0_37, %c0_38] : memref<1x4x1x32xf32, #tpu.memory_space<vmem>>, vector<1x1x1x32xf32>
    %51 = vector.shape_cast %50 : vector<1x1x1x32xf32> to vector<1x32xf32>
    %52 = vector.broadcast %51 : vector<1x32xf32> to vector<128x32xf32>
    %53 = arith.addf %49, %52 : vector<128x32xf32>
    %54 = arith.truncf %53 : vector<128x32xf32> to vector<128x32xbf16>
    %55 = vector.extract_strided_slice %38 {offsets = [0, 0], sizes = [64, 32], strides = [1, 1]} : vector<128x32xbf16> to vector<64x32xbf16>
    %56 = vector.extract_strided_slice %46 {offsets = [0, 0], sizes = [64, 32], strides = [1, 1]} : vector<128x32xbf16> to vector<64x32xbf16>
    %57 = vector.extract_strided_slice %54 {offsets = [0, 0], sizes = [64, 32], strides = [1, 1]} : vector<128x32xbf16> to vector<64x32xbf16>
    %58 = tpu.transpose %56, [1, 0] : vector<64x32xbf16> -> vector<32x64xbf16>
    %cst_39 = arith.constant dense<0.000000e+00> : vector<64x64xf32>
    %59 = tpu.matmul %55, %58, %cst_39 {dimension_numbers = #tpu.dot_dimension_numbers<[1], [0], [0], [1], [0, 0, 1, 1], [], []>} : vector<64x32xbf16>, vector<32x64xbf16>, vector<64x64xf32> -> vector<64x64xf32>
    %c0_40 = arith.constant 0 : index
    %c0_41 = arith.constant 0 : index
    %c0_42 = arith.constant 0 : index
    %c0_43 = arith.constant 0 : index
    %60 = vector.load %arg12[%c0_40, %c0_41, %c0_42, %c0_43] : memref<1x4x64x64xf32, #tpu.memory_space<vmem>>, vector<1x1x64x64xf32>
    %61 = vector.shape_cast %60 : vector<1x1x64x64xf32> to vector<64x64xf32>
    %62 = arith.addf %59, %61 : vector<64x64xf32>
    %cst_44 = arith.constant dense<0xFF800000> : vector<64xf32>
    %63 = vector.multi_reduction <maximumf>, %62, %cst_44 [1] : vector<64x64xf32> to vector<64xf32>
    %64 = vector.shape_cast %63 : vector<64xf32> to vector<64x1xf32>
    %65 = vector.broadcast %64 : vector<64x1xf32> to vector<64x64xf32>
    %66 = arith.subf %62, %65 : vector<64x64xf32>
    %67 = math.exp %66 : vector<64x64xf32>
    %cst_45 = arith.constant dense<0.000000e+00> : vector<64xf32>
    %68 = vector.multi_reduction <add>, %67, %cst_45 [1] : vector<64x64xf32> to vector<64xf32>
    %69 = vector.shape_cast %68 : vector<64xf32> to vector<64x1xf32>
    %70 = tpu.reciprocal %69 {approx = true} : vector<64x1xf32> -> vector<64x1xf32>
    %71 = vector.broadcast %70 : vector<64x1xf32> to vector<64x64xf32>
    %72 = arith.mulf %67, %71 : vector<64x64xf32>
    %73 = arith.truncf %72 : vector<64x64xf32> to vector<64x64xbf16>
    %cst_46 = arith.constant dense<0.000000e+00> : vector<64x32xf32>
    %74 = tpu.matmul %73, %57, %cst_46 {dimension_numbers = #tpu.dot_dimension_numbers<[1], [0], [0], [1], [0, 0, 1, 1], [], []>} : vector<64x64xbf16>, vector<64x32xbf16>, vector<64x32xf32> -> vector<64x32xf32>
    %75 = vector.extract_strided_slice %38 {offsets = [64, 0], sizes = [64, 32], strides = [1, 1]} : vector<128x32xbf16> to vector<64x32xbf16>
    %76 = vector.extract_strided_slice %46 {offsets = [64, 0], sizes = [64, 32], strides = [1, 1]} : vector<128x32xbf16> to vector<64x32xbf16>
    %77 = vector.extract_strided_slice %54 {offsets = [64, 0], sizes = [64, 32], strides = [1, 1]} : vector<128x32xbf16> to vector<64x32xbf16>
    %78 = tpu.transpose %76, [1, 0] : vector<64x32xbf16> -> vector<32x64xbf16>
    %cst_47 = arith.constant dense<0.000000e+00> : vector<64x64xf32>
    %79 = tpu.matmul %75, %78, %cst_47 {dimension_numbers = #tpu.dot_dimension_numbers<[1], [0], [0], [1], [0, 0, 1, 1], [], []>} : vector<64x32xbf16>, vector<32x64xbf16>, vector<64x64xf32> -> vector<64x64xf32>
    %c0_48 = arith.constant 0 : index
    %c0_49 = arith.constant 0 : index
    %c0_50 = arith.constant 0 : index
    %c0_51 = arith.constant 0 : index
    %80 = vector.load %arg12[%c0_48, %c0_49, %c0_50, %c0_51] : memref<1x4x64x64xf32, #tpu.memory_space<vmem>>, vector<1x1x64x64xf32>
    %81 = vector.shape_cast %80 : vector<1x1x64x64xf32> to vector<64x64xf32>
    %82 = arith.addf %79, %81 : vector<64x64xf32>
    %cst_52 = arith.constant dense<0xFF800000> : vector<64xf32>
    %83 = vector.multi_reduction <maximumf>, %82, %cst_52 [1] : vector<64x64xf32> to vector<64xf32>
    %84 = vector.shape_cast %83 : vector<64xf32> to vector<64x1xf32>
    %85 = vector.broadcast %84 : vector<64x1xf32> to vector<64x64xf32>
    %86 = arith.subf %82, %85 : vector<64x64xf32>
    %87 = math.exp %86 : vector<64x64xf32>
    %cst_53 = arith.constant dense<0.000000e+00> : vector<64xf32>
    %88 = vector.multi_reduction <add>, %87, %cst_53 [1] : vector<64x64xf32> to vector<64xf32>
    %89 = vector.shape_cast %88 : vector<64xf32> to vector<64x1xf32>
    %90 = tpu.reciprocal %89 {approx = true} : vector<64x1xf32> -> vector<64x1xf32>
    %91 = vector.broadcast %90 : vector<64x1xf32> to vector<64x64xf32>
    %92 = arith.mulf %87, %91 : vector<64x64xf32>
    %93 = arith.truncf %92 : vector<64x64xf32> to vector<64x64xbf16>
    %cst_54 = arith.constant dense<0.000000e+00> : vector<64x32xf32>
    %94 = tpu.matmul %93, %77, %cst_54 {dimension_numbers = #tpu.dot_dimension_numbers<[1], [0], [0], [1], [0, 0, 1, 1], [], []>} : vector<64x64xbf16>, vector<64x32xbf16>, vector<64x32xf32> -> vector<64x32xf32>
    %95 = tpu.concatenate %74, %94 in 0 : vector<64x32xf32>, vector<64x32xf32> -> vector<128x32xf32>
    %96 = arith.truncf %95 : vector<128x32xf32> to vector<128x32xbf16>
    %c0_55 = arith.constant 0 : index
    %c0_56 = arith.constant 0 : index
    %c0_57 = arith.constant 0 : index
    %c0_58 = arith.constant 0 : index
    %97 = vector.load %arg13[%c0_55, %c0_56, %c0_57, %c0_58] : memref<1x4x32x128xbf16, #tpu.memory_space<vmem>>, vector<1x1x32x128xbf16>
    %98 = vector.shape_cast %97 : vector<1x1x32x128xbf16> to vector<32x128xbf16>
    %cst_59 = arith.constant dense<0.000000e+00> : vector<128x128xf32>
    %99 = tpu.matmul %96, %98, %cst_59 {dimension_numbers = #tpu.dot_dimension_numbers<[1], [0], [0], [1], [0, 0, 1, 1], [], []>} : vector<128x32xbf16>, vector<32x128xbf16>, vector<128x128xf32> -> vector<128x128xf32>
    %c0_60 = arith.constant 0 : index
    %c1 = arith.constant 1 : index
    %c0_61 = arith.constant 0 : index
    %c0_62 = arith.constant 0 : index
    %100 = vector.load %arg6[%c0_60, %c1, %c0_61, %c0_62] : memref<1x4x128x32xbf16, #tpu.memory_space<vmem>>, vector<1x1x128x32xbf16>
    %101 = vector.shape_cast %100 : vector<1x1x128x32xbf16> to vector<128x32xbf16>
    %cst_63 = arith.constant dense<0.000000e+00> : vector<128x32xf32>
    %102 = tpu.matmul %30, %101, %cst_63 {dimension_numbers = #tpu.dot_dimension_numbers<[1], [0], [0], [1], [0, 0, 1, 1], [], []>} : vector<128x128xbf16>, vector<128x32xbf16>, vector<128x32xf32> -> vector<128x32xf32>
    %c0_64 = arith.constant 0 : index
    %c1_65 = arith.constant 1 : index
    %c0_66 = arith.constant 0 : index
    %c0_67 = arith.constant 0 : index
    %103 = vector.load %arg7[%c0_64, %c1_65, %c0_66, %c0_67] : memref<1x4x1x32xf32, #tpu.memory_space<vmem>>, vector<1x1x1x32xf32>
    %104 = vector.shape_cast %103 : vector<1x1x1x32xf32> to vector<1x32xf32>
    %105 = vector.broadcast %104 : vector<1x32xf32> to vector<128x32xf32>
    %106 = arith.addf %102, %105 : vector<128x32xf32>
    %107 = arith.truncf %106 : vector<128x32xf32> to vector<128x32xbf16>
    %c0_68 = arith.constant 0 : index
    %c1_69 = arith.constant 1 : index
    %c0_70 = arith.constant 0 : index
    %c0_71 = arith.constant 0 : index
    %108 = vector.load %arg8[%c0_68, %c1_69, %c0_70, %c0_71] : memref<1x4x128x32xbf16, #tpu.memory_space<vmem>>, vector<1x1x128x32xbf16>
    %109 = vector.shape_cast %108 : vector<1x1x128x32xbf16> to vector<128x32xbf16>
    %cst_72 = arith.constant dense<0.000000e+00> : vector<128x32xf32>
    %110 = tpu.matmul %30, %109, %cst_72 {dimension_numbers = #tpu.dot_dimension_numbers<[1], [0], [0], [1], [0, 0, 1, 1], [], []>} : vector<128x128xbf16>, vector<128x32xbf16>, vector<128x32xf32> -> vector<128x32xf32>
    %c0_73 = arith.constant 0 : index
    %c1_74 = arith.constant 1 : index
    %c0_75 = arith.constant 0 : index
    %c0_76 = arith.constant 0 : index
    %111 = vector.load %arg9[%c0_73, %c1_74, %c0_75, %c0_76] : memref<1x4x1x32xf32, #tpu.memory_space<vmem>>, vector<1x1x1x32xf32>
    %112 = vector.shape_cast %111 : vector<1x1x1x32xf32> to vector<1x32xf32>
    %113 = vector.broadcast %112 : vector<1x32xf32> to vector<128x32xf32>
    %114 = arith.addf %110, %113 : vector<128x32xf32>
    %115 = arith.truncf %114 : vector<128x32xf32> to vector<128x32xbf16>
    %c0_77 = arith.constant 0 : index
    %c1_78 = arith.constant 1 : index
    %c0_79 = arith.constant 0 : index
    %c0_80 = arith.constant 0 : index
    %116 = vector.load %arg10[%c0_77, %c1_78, %c0_79, %c0_80] : memref<1x4x128x32xbf16, #tpu.memory_space<vmem>>, vector<1x1x128x32xbf16>
    %117 = vector.shape_cast %116 : vector<1x1x128x32xbf16> to vector<128x32xbf16>
    %cst_81 = arith.constant dense<0.000000e+00> : vector<128x32xf32>
    %118 = tpu.matmul %30, %117, %cst_81 {dimension_numbers = #tpu.dot_dimension_numbers<[1], [0], [0], [1], [0, 0, 1, 1], [], []>} : vector<128x128xbf16>, vector<128x32xbf16>, vector<128x32xf32> -> vector<128x32xf32>
    %c0_82 = arith.constant 0 : index
    %c1_83 = arith.constant 1 : index
    %c0_84 = arith.constant 0 : index
    %c0_85 = arith.constant 0 : index
    %119 = vector.load %arg11[%c0_82, %c1_83, %c0_84, %c0_85] : memref<1x4x1x32xf32, #tpu.memory_space<vmem>>, vector<1x1x1x32xf32>
    %120 = vector.shape_cast %119 : vector<1x1x1x32xf32> to vector<1x32xf32>
    %121 = vector.broadcast %120 : vector<1x32xf32> to vector<128x32xf32>
    %122 = arith.addf %118, %121 : vector<128x32xf32>
    %123 = arith.truncf %122 : vector<128x32xf32> to vector<128x32xbf16>
    %124 = vector.extract_strided_slice %107 {offsets = [0, 0], sizes = [64, 32], strides = [1, 1]} : vector<128x32xbf16> to vector<64x32xbf16>
    %125 = vector.extract_strided_slice %115 {offsets = [0, 0], sizes = [64, 32], strides = [1, 1]} : vector<128x32xbf16> to vector<64x32xbf16>
    %126 = vector.extract_strided_slice %123 {offsets = [0, 0], sizes = [64, 32], strides = [1, 1]} : vector<128x32xbf16> to vector<64x32xbf16>
    %127 = tpu.transpose %125, [1, 0] : vector<64x32xbf16> -> vector<32x64xbf16>
    %cst_86 = arith.constant dense<0.000000e+00> : vector<64x64xf32>
    %128 = tpu.matmul %124, %127, %cst_86 {dimension_numbers = #tpu.dot_dimension_numbers<[1], [0], [0], [1], [0, 0, 1, 1], [], []>} : vector<64x32xbf16>, vector<32x64xbf16>, vector<64x64xf32> -> vector<64x64xf32>
    %c0_87 = arith.constant 0 : index
    %c1_88 = arith.constant 1 : index
    %c0_89 = arith.constant 0 : index
    %c0_90 = arith.constant 0 : index
    %129 = vector.load %arg12[%c0_87, %c1_88, %c0_89, %c0_90] : memref<1x4x64x64xf32, #tpu.memory_space<vmem>>, vector<1x1x64x64xf32>
    %130 = vector.shape_cast %129 : vector<1x1x64x64xf32> to vector<64x64xf32>
    %131 = arith.addf %128, %130 : vector<64x64xf32>
    %cst_91 = arith.constant dense<0xFF800000> : vector<64xf32>
    %132 = vector.multi_reduction <maximumf>, %131, %cst_91 [1] : vector<64x64xf32> to vector<64xf32>
    %133 = vector.shape_cast %132 : vector<64xf32> to vector<64x1xf32>
    %134 = vector.broadcast %133 : vector<64x1xf32> to vector<64x64xf32>
    %135 = arith.subf %131, %134 : vector<64x64xf32>
    %136 = math.exp %135 : vector<64x64xf32>
    %cst_92 = arith.constant dense<0.000000e+00> : vector<64xf32>
    %137 = vector.multi_reduction <add>, %136, %cst_92 [1] : vector<64x64xf32> to vector<64xf32>
    %138 = vector.shape_cast %137 : vector<64xf32> to vector<64x1xf32>
    %139 = tpu.reciprocal %138 {approx = true} : vector<64x1xf32> -> vector<64x1xf32>
    %140 = vector.broadcast %139 : vector<64x1xf32> to vector<64x64xf32>
    %141 = arith.mulf %136, %140 : vector<64x64xf32>
    %142 = arith.truncf %141 : vector<64x64xf32> to vector<64x64xbf16>
    %cst_93 = arith.constant dense<0.000000e+00> : vector<64x32xf32>
    %143 = tpu.matmul %142, %126, %cst_93 {dimension_numbers = #tpu.dot_dimension_numbers<[1], [0], [0], [1], [0, 0, 1, 1], [], []>} : vector<64x64xbf16>, vector<64x32xbf16>, vector<64x32xf32> -> vector<64x32xf32>
    %144 = vector.extract_strided_slice %107 {offsets = [64, 0], sizes = [64, 32], strides = [1, 1]} : vector<128x32xbf16> to vector<64x32xbf16>
    %145 = vector.extract_strided_slice %115 {offsets = [64, 0], sizes = [64, 32], strides = [1, 1]} : vector<128x32xbf16> to vector<64x32xbf16>
    %146 = vector.extract_strided_slice %123 {offsets = [64, 0], sizes = [64, 32], strides = [1, 1]} : vector<128x32xbf16> to vector<64x32xbf16>
    %147 = tpu.transpose %145, [1, 0] : vector<64x32xbf16> -> vector<32x64xbf16>
    %cst_94 = arith.constant dense<0.000000e+00> : vector<64x64xf32>
    %148 = tpu.matmul %144, %147, %cst_94 {dimension_numbers = #tpu.dot_dimension_numbers<[1], [0], [0], [1], [0, 0, 1, 1], [], []>} : vector<64x32xbf16>, vector<32x64xbf16>, vector<64x64xf32> -> vector<64x64xf32>
    %c0_95 = arith.constant 0 : index
    %c1_96 = arith.constant 1 : index
    %c0_97 = arith.constant 0 : index
    %c0_98 = arith.constant 0 : index
    %149 = vector.load %arg12[%c0_95, %c1_96, %c0_97, %c0_98] : memref<1x4x64x64xf32, #tpu.memory_space<vmem>>, vector<1x1x64x64xf32>
    %150 = vector.shape_cast %149 : vector<1x1x64x64xf32> to vector<64x64xf32>
    %151 = arith.addf %148, %150 : vector<64x64xf32>
    %cst_99 = arith.constant dense<0xFF800000> : vector<64xf32>
    %152 = vector.multi_reduction <maximumf>, %151, %cst_99 [1] : vector<64x64xf32> to vector<64xf32>
    %153 = vector.shape_cast %152 : vector<64xf32> to vector<64x1xf32>
    %154 = vector.broadcast %153 : vector<64x1xf32> to vector<64x64xf32>
    %155 = arith.subf %151, %154 : vector<64x64xf32>
    %156 = math.exp %155 : vector<64x64xf32>
    %cst_100 = arith.constant dense<0.000000e+00> : vector<64xf32>
    %157 = vector.multi_reduction <add>, %156, %cst_100 [1] : vector<64x64xf32> to vector<64xf32>
    %158 = vector.shape_cast %157 : vector<64xf32> to vector<64x1xf32>
    %159 = tpu.reciprocal %158 {approx = true} : vector<64x1xf32> -> vector<64x1xf32>
    %160 = vector.broadcast %159 : vector<64x1xf32> to vector<64x64xf32>
    %161 = arith.mulf %156, %160 : vector<64x64xf32>
    %162 = arith.truncf %161 : vector<64x64xf32> to vector<64x64xbf16>
    %cst_101 = arith.constant dense<0.000000e+00> : vector<64x32xf32>
    %163 = tpu.matmul %162, %146, %cst_101 {dimension_numbers = #tpu.dot_dimension_numbers<[1], [0], [0], [1], [0, 0, 1, 1], [], []>} : vector<64x64xbf16>, vector<64x32xbf16>, vector<64x32xf32> -> vector<64x32xf32>
    %164 = tpu.concatenate %143, %163 in 0 : vector<64x32xf32>, vector<64x32xf32> -> vector<128x32xf32>
    %165 = arith.truncf %164 : vector<128x32xf32> to vector<128x32xbf16>
    %c0_102 = arith.constant 0 : index
    %c1_103 = arith.constant 1 : index
    %c0_104 = arith.constant 0 : index
    %c0_105 = arith.constant 0 : index
    %166 = vector.load %arg13[%c0_102, %c1_103, %c0_104, %c0_105] : memref<1x4x32x128xbf16, #tpu.memory_space<vmem>>, vector<1x1x32x128xbf16>
    %167 = vector.shape_cast %166 : vector<1x1x32x128xbf16> to vector<32x128xbf16>
    %cst_106 = arith.constant dense<0.000000e+00> : vector<128x128xf32>
    %168 = tpu.matmul %165, %167, %cst_106 {dimension_numbers = #tpu.dot_dimension_numbers<[1], [0], [0], [1], [0, 0, 1, 1], [], []>} : vector<128x32xbf16>, vector<32x128xbf16>, vector<128x128xf32> -> vector<128x128xf32>
    %169 = arith.addf %99, %168 : vector<128x128xf32>
    %c0_107 = arith.constant 0 : index
    %c2 = arith.constant 2 : index
    %c0_108 = arith.constant 0 : index
    %c0_109 = arith.constant 0 : index
    %170 = vector.load %arg6[%c0_107, %c2, %c0_108, %c0_109] : memref<1x4x128x32xbf16, #tpu.memory_space<vmem>>, vector<1x1x128x32xbf16>
    %171 = vector.shape_cast %170 : vector<1x1x128x32xbf16> to vector<128x32xbf16>
    %cst_110 = arith.constant dense<0.000000e+00> : vector<128x32xf32>
    %172 = tpu.matmul %30, %171, %cst_110 {dimension_numbers = #tpu.dot_dimension_numbers<[1], [0], [0], [1], [0, 0, 1, 1], [], []>} : vector<128x128xbf16>, vector<128x32xbf16>, vector<128x32xf32> -> vector<128x32xf32>
    %c0_111 = arith.constant 0 : index
    %c2_112 = arith.constant 2 : index
    %c0_113 = arith.constant 0 : index
    %c0_114 = arith.constant 0 : index
    %173 = vector.load %arg7[%c0_111, %c2_112, %c0_113, %c0_114] : memref<1x4x1x32xf32, #tpu.memory_space<vmem>>, vector<1x1x1x32xf32>
    %174 = vector.shape_cast %173 : vector<1x1x1x32xf32> to vector<1x32xf32>
    %175 = vector.broadcast %174 : vector<1x32xf32> to vector<128x32xf32>
    %176 = arith.addf %172, %175 : vector<128x32xf32>
    %177 = arith.truncf %176 : vector<128x32xf32> to vector<128x32xbf16>
    %c0_115 = arith.constant 0 : index
    %c2_116 = arith.constant 2 : index
    %c0_117 = arith.constant 0 : index
    %c0_118 = arith.constant 0 : index
    %178 = vector.load %arg8[%c0_115, %c2_116, %c0_117, %c0_118] : memref<1x4x128x32xbf16, #tpu.memory_space<vmem>>, vector<1x1x128x32xbf16>
    %179 = vector.shape_cast %178 : vector<1x1x128x32xbf16> to vector<128x32xbf16>
    %cst_119 = arith.constant dense<0.000000e+00> : vector<128x32xf32>
    %180 = tpu.matmul %30, %179, %cst_119 {dimension_numbers = #tpu.dot_dimension_numbers<[1], [0], [0], [1], [0, 0, 1, 1], [], []>} : vector<128x128xbf16>, vector<128x32xbf16>, vector<128x32xf32> -> vector<128x32xf32>
    %c0_120 = arith.constant 0 : index
    %c2_121 = arith.constant 2 : index
    %c0_122 = arith.constant 0 : index
    %c0_123 = arith.constant 0 : index
    %181 = vector.load %arg9[%c0_120, %c2_121, %c0_122, %c0_123] : memref<1x4x1x32xf32, #tpu.memory_space<vmem>>, vector<1x1x1x32xf32>
    %182 = vector.shape_cast %181 : vector<1x1x1x32xf32> to vector<1x32xf32>
    %183 = vector.broadcast %182 : vector<1x32xf32> to vector<128x32xf32>
    %184 = arith.addf %180, %183 : vector<128x32xf32>
    %185 = arith.truncf %184 : vector<128x32xf32> to vector<128x32xbf16>
    %c0_124 = arith.constant 0 : index
    %c2_125 = arith.constant 2 : index
    %c0_126 = arith.constant 0 : index
    %c0_127 = arith.constant 0 : index
    %186 = vector.load %arg10[%c0_124, %c2_125, %c0_126, %c0_127] : memref<1x4x128x32xbf16, #tpu.memory_space<vmem>>, vector<1x1x128x32xbf16>
    %187 = vector.shape_cast %186 : vector<1x1x128x32xbf16> to vector<128x32xbf16>
    %cst_128 = arith.constant dense<0.000000e+00> : vector<128x32xf32>
    %188 = tpu.matmul %30, %187, %cst_128 {dimension_numbers = #tpu.dot_dimension_numbers<[1], [0], [0], [1], [0, 0, 1, 1], [], []>} : vector<128x128xbf16>, vector<128x32xbf16>, vector<128x32xf32> -> vector<128x32xf32>
    %c0_129 = arith.constant 0 : index
    %c2_130 = arith.constant 2 : index
    %c0_131 = arith.constant 0 : index
    %c0_132 = arith.constant 0 : index
    %189 = vector.load %arg11[%c0_129, %c2_130, %c0_131, %c0_132] : memref<1x4x1x32xf32, #tpu.memory_space<vmem>>, vector<1x1x1x32xf32>
    %190 = vector.shape_cast %189 : vector<1x1x1x32xf32> to vector<1x32xf32>
    %191 = vector.broadcast %190 : vector<1x32xf32> to vector<128x32xf32>
    %192 = arith.addf %188, %191 : vector<128x32xf32>
    %193 = arith.truncf %192 : vector<128x32xf32> to vector<128x32xbf16>
    %194 = vector.extract_strided_slice %177 {offsets = [0, 0], sizes = [64, 32], strides = [1, 1]} : vector<128x32xbf16> to vector<64x32xbf16>
    %195 = vector.extract_strided_slice %185 {offsets = [0, 0], sizes = [64, 32], strides = [1, 1]} : vector<128x32xbf16> to vector<64x32xbf16>
    %196 = vector.extract_strided_slice %193 {offsets = [0, 0], sizes = [64, 32], strides = [1, 1]} : vector<128x32xbf16> to vector<64x32xbf16>
    %197 = tpu.transpose %195, [1, 0] : vector<64x32xbf16> -> vector<32x64xbf16>
    %cst_133 = arith.constant dense<0.000000e+00> : vector<64x64xf32>
    %198 = tpu.matmul %194, %197, %cst_133 {dimension_numbers = #tpu.dot_dimension_numbers<[1], [0], [0], [1], [0, 0, 1, 1], [], []>} : vector<64x32xbf16>, vector<32x64xbf16>, vector<64x64xf32> -> vector<64x64xf32>
    %c0_134 = arith.constant 0 : index
    %c2_135 = arith.constant 2 : index
    %c0_136 = arith.constant 0 : index
    %c0_137 = arith.constant 0 : index
    %199 = vector.load %arg12[%c0_134, %c2_135, %c0_136, %c0_137] : memref<1x4x64x64xf32, #tpu.memory_space<vmem>>, vector<1x1x64x64xf32>
    %200 = vector.shape_cast %199 : vector<1x1x64x64xf32> to vector<64x64xf32>
    %201 = arith.addf %198, %200 : vector<64x64xf32>
    %cst_138 = arith.constant dense<0xFF800000> : vector<64xf32>
    %202 = vector.multi_reduction <maximumf>, %201, %cst_138 [1] : vector<64x64xf32> to vector<64xf32>
    %203 = vector.shape_cast %202 : vector<64xf32> to vector<64x1xf32>
    %204 = vector.broadcast %203 : vector<64x1xf32> to vector<64x64xf32>
    %205 = arith.subf %201, %204 : vector<64x64xf32>
    %206 = math.exp %205 : vector<64x64xf32>
    %cst_139 = arith.constant dense<0.000000e+00> : vector<64xf32>
    %207 = vector.multi_reduction <add>, %206, %cst_139 [1] : vector<64x64xf32> to vector<64xf32>
    %208 = vector.shape_cast %207 : vector<64xf32> to vector<64x1xf32>
    %209 = tpu.reciprocal %208 {approx = true} : vector<64x1xf32> -> vector<64x1xf32>
    %210 = vector.broadcast %209 : vector<64x1xf32> to vector<64x64xf32>
    %211 = arith.mulf %206, %210 : vector<64x64xf32>
    %212 = arith.truncf %211 : vector<64x64xf32> to vector<64x64xbf16>
    %cst_140 = arith.constant dense<0.000000e+00> : vector<64x32xf32>
    %213 = tpu.matmul %212, %196, %cst_140 {dimension_numbers = #tpu.dot_dimension_numbers<[1], [0], [0], [1], [0, 0, 1, 1], [], []>} : vector<64x64xbf16>, vector<64x32xbf16>, vector<64x32xf32> -> vector<64x32xf32>
    %214 = vector.extract_strided_slice %177 {offsets = [64, 0], sizes = [64, 32], strides = [1, 1]} : vector<128x32xbf16> to vector<64x32xbf16>
    %215 = vector.extract_strided_slice %185 {offsets = [64, 0], sizes = [64, 32], strides = [1, 1]} : vector<128x32xbf16> to vector<64x32xbf16>
    %216 = vector.extract_strided_slice %193 {offsets = [64, 0], sizes = [64, 32], strides = [1, 1]} : vector<128x32xbf16> to vector<64x32xbf16>
    %217 = tpu.transpose %215, [1, 0] : vector<64x32xbf16> -> vector<32x64xbf16>
    %cst_141 = arith.constant dense<0.000000e+00> : vector<64x64xf32>
    %218 = tpu.matmul %214, %217, %cst_141 {dimension_numbers = #tpu.dot_dimension_numbers<[1], [0], [0], [1], [0, 0, 1, 1], [], []>} : vector<64x32xbf16>, vector<32x64xbf16>, vector<64x64xf32> -> vector<64x64xf32>
    %c0_142 = arith.constant 0 : index
    %c2_143 = arith.constant 2 : index
    %c0_144 = arith.constant 0 : index
    %c0_145 = arith.constant 0 : index
    %219 = vector.load %arg12[%c0_142, %c2_143, %c0_144, %c0_145] : memref<1x4x64x64xf32, #tpu.memory_space<vmem>>, vector<1x1x64x64xf32>
    %220 = vector.shape_cast %219 : vector<1x1x64x64xf32> to vector<64x64xf32>
    %221 = arith.addf %218, %220 : vector<64x64xf32>
    %cst_146 = arith.constant dense<0xFF800000> : vector<64xf32>
    %222 = vector.multi_reduction <maximumf>, %221, %cst_146 [1] : vector<64x64xf32> to vector<64xf32>
    %223 = vector.shape_cast %222 : vector<64xf32> to vector<64x1xf32>
    %224 = vector.broadcast %223 : vector<64x1xf32> to vector<64x64xf32>
    %225 = arith.subf %221, %224 : vector<64x64xf32>
    %226 = math.exp %225 : vector<64x64xf32>
    %cst_147 = arith.constant dense<0.000000e+00> : vector<64xf32>
    %227 = vector.multi_reduction <add>, %226, %cst_147 [1] : vector<64x64xf32> to vector<64xf32>
    %228 = vector.shape_cast %227 : vector<64xf32> to vector<64x1xf32>
    %229 = tpu.reciprocal %228 {approx = true} : vector<64x1xf32> -> vector<64x1xf32>
    %230 = vector.broadcast %229 : vector<64x1xf32> to vector<64x64xf32>
    %231 = arith.mulf %226, %230 : vector<64x64xf32>
    %232 = arith.truncf %231 : vector<64x64xf32> to vector<64x64xbf16>
    %cst_148 = arith.constant dense<0.000000e+00> : vector<64x32xf32>
    %233 = tpu.matmul %232, %216, %cst_148 {dimension_numbers = #tpu.dot_dimension_numbers<[1], [0], [0], [1], [0, 0, 1, 1], [], []>} : vector<64x64xbf16>, vector<64x32xbf16>, vector<64x32xf32> -> vector<64x32xf32>
    %234 = tpu.concatenate %213, %233 in 0 : vector<64x32xf32>, vector<64x32xf32> -> vector<128x32xf32>
    %235 = arith.truncf %234 : vector<128x32xf32> to vector<128x32xbf16>
    %c0_149 = arith.constant 0 : index
    %c2_150 = arith.constant 2 : index
    %c0_151 = arith.constant 0 : index
    %c0_152 = arith.constant 0 : index
    %236 = vector.load %arg13[%c0_149, %c2_150, %c0_151, %c0_152] : memref<1x4x32x128xbf16, #tpu.memory_space<vmem>>, vector<1x1x32x128xbf16>
    %237 = vector.shape_cast %236 : vector<1x1x32x128xbf16> to vector<32x128xbf16>
    %cst_153 = arith.constant dense<0.000000e+00> : vector<128x128xf32>
    %238 = tpu.matmul %235, %237, %cst_153 {dimension_numbers = #tpu.dot_dimension_numbers<[1], [0], [0], [1], [0, 0, 1, 1], [], []>} : vector<128x32xbf16>, vector<32x128xbf16>, vector<128x128xf32> -> vector<128x128xf32>
    %239 = arith.addf %169, %238 : vector<128x128xf32>
    %c0_154 = arith.constant 0 : index
    %c3 = arith.constant 3 : index
    %c0_155 = arith.constant 0 : index
    %c0_156 = arith.constant 0 : index
    %240 = vector.load %arg6[%c0_154, %c3, %c0_155, %c0_156] : memref<1x4x128x32xbf16, #tpu.memory_space<vmem>>, vector<1x1x128x32xbf16>
    %241 = vector.shape_cast %240 : vector<1x1x128x32xbf16> to vector<128x32xbf16>
    %cst_157 = arith.constant dense<0.000000e+00> : vector<128x32xf32>
    %242 = tpu.matmul %30, %241, %cst_157 {dimension_numbers = #tpu.dot_dimension_numbers<[1], [0], [0], [1], [0, 0, 1, 1], [], []>} : vector<128x128xbf16>, vector<128x32xbf16>, vector<128x32xf32> -> vector<128x32xf32>
    %c0_158 = arith.constant 0 : index
    %c3_159 = arith.constant 3 : index
    %c0_160 = arith.constant 0 : index
    %c0_161 = arith.constant 0 : index
    %243 = vector.load %arg7[%c0_158, %c3_159, %c0_160, %c0_161] : memref<1x4x1x32xf32, #tpu.memory_space<vmem>>, vector<1x1x1x32xf32>
    %244 = vector.shape_cast %243 : vector<1x1x1x32xf32> to vector<1x32xf32>
    %245 = vector.broadcast %244 : vector<1x32xf32> to vector<128x32xf32>
    %246 = arith.addf %242, %245 : vector<128x32xf32>
    %247 = arith.truncf %246 : vector<128x32xf32> to vector<128x32xbf16>
    %c0_162 = arith.constant 0 : index
    %c3_163 = arith.constant 3 : index
    %c0_164 = arith.constant 0 : index
    %c0_165 = arith.constant 0 : index
    %248 = vector.load %arg8[%c0_162, %c3_163, %c0_164, %c0_165] : memref<1x4x128x32xbf16, #tpu.memory_space<vmem>>, vector<1x1x128x32xbf16>
    %249 = vector.shape_cast %248 : vector<1x1x128x32xbf16> to vector<128x32xbf16>
    %cst_166 = arith.constant dense<0.000000e+00> : vector<128x32xf32>
    %250 = tpu.matmul %30, %249, %cst_166 {dimension_numbers = #tpu.dot_dimension_numbers<[1], [0], [0], [1], [0, 0, 1, 1], [], []>} : vector<128x128xbf16>, vector<128x32xbf16>, vector<128x32xf32> -> vector<128x32xf32>
    %c0_167 = arith.constant 0 : index
    %c3_168 = arith.constant 3 : index
    %c0_169 = arith.constant 0 : index
    %c0_170 = arith.constant 0 : index
    %251 = vector.load %arg9[%c0_167, %c3_168, %c0_169, %c0_170] : memref<1x4x1x32xf32, #tpu.memory_space<vmem>>, vector<1x1x1x32xf32>
    %252 = vector.shape_cast %251 : vector<1x1x1x32xf32> to vector<1x32xf32>
    %253 = vector.broadcast %252 : vector<1x32xf32> to vector<128x32xf32>
    %254 = arith.addf %250, %253 : vector<128x32xf32>
    %255 = arith.truncf %254 : vector<128x32xf32> to vector<128x32xbf16>
    %c0_171 = arith.constant 0 : index
    %c3_172 = arith.constant 3 : index
    %c0_173 = arith.constant 0 : index
    %c0_174 = arith.constant 0 : index
    %256 = vector.load %arg10[%c0_171, %c3_172, %c0_173, %c0_174] : memref<1x4x128x32xbf16, #tpu.memory_space<vmem>>, vector<1x1x128x32xbf16>
    %257 = vector.shape_cast %256 : vector<1x1x128x32xbf16> to vector<128x32xbf16>
    %cst_175 = arith.constant dense<0.000000e+00> : vector<128x32xf32>
    %258 = tpu.matmul %30, %257, %cst_175 {dimension_numbers = #tpu.dot_dimension_numbers<[1], [0], [0], [1], [0, 0, 1, 1], [], []>} : vector<128x128xbf16>, vector<128x32xbf16>, vector<128x32xf32> -> vector<128x32xf32>
    %c0_176 = arith.constant 0 : index
    %c3_177 = arith.constant 3 : index
    %c0_178 = arith.constant 0 : index
    %c0_179 = arith.constant 0 : index
    %259 = vector.load %arg11[%c0_176, %c3_177, %c0_178, %c0_179] : memref<1x4x1x32xf32, #tpu.memory_space<vmem>>, vector<1x1x1x32xf32>
    %260 = vector.shape_cast %259 : vector<1x1x1x32xf32> to vector<1x32xf32>
    %261 = vector.broadcast %260 : vector<1x32xf32> to vector<128x32xf32>
    %262 = arith.addf %258, %261 : vector<128x32xf32>
    %263 = arith.truncf %262 : vector<128x32xf32> to vector<128x32xbf16>
    %264 = vector.extract_strided_slice %247 {offsets = [0, 0], sizes = [64, 32], strides = [1, 1]} : vector<128x32xbf16> to vector<64x32xbf16>
    %265 = vector.extract_strided_slice %255 {offsets = [0, 0], sizes = [64, 32], strides = [1, 1]} : vector<128x32xbf16> to vector<64x32xbf16>
    %266 = vector.extract_strided_slice %263 {offsets = [0, 0], sizes = [64, 32], strides = [1, 1]} : vector<128x32xbf16> to vector<64x32xbf16>
    %267 = tpu.transpose %265, [1, 0] : vector<64x32xbf16> -> vector<32x64xbf16>
    %cst_180 = arith.constant dense<0.000000e+00> : vector<64x64xf32>
    %268 = tpu.matmul %264, %267, %cst_180 {dimension_numbers = #tpu.dot_dimension_numbers<[1], [0], [0], [1], [0, 0, 1, 1], [], []>} : vector<64x32xbf16>, vector<32x64xbf16>, vector<64x64xf32> -> vector<64x64xf32>
    %c0_181 = arith.constant 0 : index
    %c3_182 = arith.constant 3 : index
    %c0_183 = arith.constant 0 : index
    %c0_184 = arith.constant 0 : index
    %269 = vector.load %arg12[%c0_181, %c3_182, %c0_183, %c0_184] : memref<1x4x64x64xf32, #tpu.memory_space<vmem>>, vector<1x1x64x64xf32>
    %270 = vector.shape_cast %269 : vector<1x1x64x64xf32> to vector<64x64xf32>
    %271 = arith.addf %268, %270 : vector<64x64xf32>
    %cst_185 = arith.constant dense<0xFF800000> : vector<64xf32>
    %272 = vector.multi_reduction <maximumf>, %271, %cst_185 [1] : vector<64x64xf32> to vector<64xf32>
    %273 = vector.shape_cast %272 : vector<64xf32> to vector<64x1xf32>
    %274 = vector.broadcast %273 : vector<64x1xf32> to vector<64x64xf32>
    %275 = arith.subf %271, %274 : vector<64x64xf32>
    %276 = math.exp %275 : vector<64x64xf32>
    %cst_186 = arith.constant dense<0.000000e+00> : vector<64xf32>
    %277 = vector.multi_reduction <add>, %276, %cst_186 [1] : vector<64x64xf32> to vector<64xf32>
    %278 = vector.shape_cast %277 : vector<64xf32> to vector<64x1xf32>
    %279 = tpu.reciprocal %278 {approx = true} : vector<64x1xf32> -> vector<64x1xf32>
    %280 = vector.broadcast %279 : vector<64x1xf32> to vector<64x64xf32>
    %281 = arith.mulf %276, %280 : vector<64x64xf32>
    %282 = arith.truncf %281 : vector<64x64xf32> to vector<64x64xbf16>
    %cst_187 = arith.constant dense<0.000000e+00> : vector<64x32xf32>
    %283 = tpu.matmul %282, %266, %cst_187 {dimension_numbers = #tpu.dot_dimension_numbers<[1], [0], [0], [1], [0, 0, 1, 1], [], []>} : vector<64x64xbf16>, vector<64x32xbf16>, vector<64x32xf32> -> vector<64x32xf32>
    %284 = vector.extract_strided_slice %247 {offsets = [64, 0], sizes = [64, 32], strides = [1, 1]} : vector<128x32xbf16> to vector<64x32xbf16>
    %285 = vector.extract_strided_slice %255 {offsets = [64, 0], sizes = [64, 32], strides = [1, 1]} : vector<128x32xbf16> to vector<64x32xbf16>
    %286 = vector.extract_strided_slice %263 {offsets = [64, 0], sizes = [64, 32], strides = [1, 1]} : vector<128x32xbf16> to vector<64x32xbf16>
    %287 = tpu.transpose %285, [1, 0] : vector<64x32xbf16> -> vector<32x64xbf16>
    %cst_188 = arith.constant dense<0.000000e+00> : vector<64x64xf32>
    %288 = tpu.matmul %284, %287, %cst_188 {dimension_numbers = #tpu.dot_dimension_numbers<[1], [0], [0], [1], [0, 0, 1, 1], [], []>} : vector<64x32xbf16>, vector<32x64xbf16>, vector<64x64xf32> -> vector<64x64xf32>
    %c0_189 = arith.constant 0 : index
    %c3_190 = arith.constant 3 : index
    %c0_191 = arith.constant 0 : index
    %c0_192 = arith.constant 0 : index
    %289 = vector.load %arg12[%c0_189, %c3_190, %c0_191, %c0_192] : memref<1x4x64x64xf32, #tpu.memory_space<vmem>>, vector<1x1x64x64xf32>
    %290 = vector.shape_cast %289 : vector<1x1x64x64xf32> to vector<64x64xf32>
    %291 = arith.addf %288, %290 : vector<64x64xf32>
    %cst_193 = arith.constant dense<0xFF800000> : vector<64xf32>
    %292 = vector.multi_reduction <maximumf>, %291, %cst_193 [1] : vector<64x64xf32> to vector<64xf32>
    %293 = vector.shape_cast %292 : vector<64xf32> to vector<64x1xf32>
    %294 = vector.broadcast %293 : vector<64x1xf32> to vector<64x64xf32>
    %295 = arith.subf %291, %294 : vector<64x64xf32>
    %296 = math.exp %295 : vector<64x64xf32>
    %cst_194 = arith.constant dense<0.000000e+00> : vector<64xf32>
    %297 = vector.multi_reduction <add>, %296, %cst_194 [1] : vector<64x64xf32> to vector<64xf32>
    %298 = vector.shape_cast %297 : vector<64xf32> to vector<64x1xf32>
    %299 = tpu.reciprocal %298 {approx = true} : vector<64x1xf32> -> vector<64x1xf32>
    %300 = vector.broadcast %299 : vector<64x1xf32> to vector<64x64xf32>
    %301 = arith.mulf %296, %300 : vector<64x64xf32>
    %302 = arith.truncf %301 : vector<64x64xf32> to vector<64x64xbf16>
    %cst_195 = arith.constant dense<0.000000e+00> : vector<64x32xf32>
    %303 = tpu.matmul %302, %286, %cst_195 {dimension_numbers = #tpu.dot_dimension_numbers<[1], [0], [0], [1], [0, 0, 1, 1], [], []>} : vector<64x64xbf16>, vector<64x32xbf16>, vector<64x32xf32> -> vector<64x32xf32>
    %304 = tpu.concatenate %283, %303 in 0 : vector<64x32xf32>, vector<64x32xf32> -> vector<128x32xf32>
    %305 = arith.truncf %304 : vector<128x32xf32> to vector<128x32xbf16>
    %c0_196 = arith.constant 0 : index
    %c3_197 = arith.constant 3 : index
    %c0_198 = arith.constant 0 : index
    %c0_199 = arith.constant 0 : index
    %306 = vector.load %arg13[%c0_196, %c3_197, %c0_198, %c0_199] : memref<1x4x32x128xbf16, #tpu.memory_space<vmem>>, vector<1x1x32x128xbf16>
    %307 = vector.shape_cast %306 : vector<1x1x32x128xbf16> to vector<32x128xbf16>
    %cst_200 = arith.constant dense<0.000000e+00> : vector<128x128xf32>
    %308 = tpu.matmul %305, %307, %cst_200 {dimension_numbers = #tpu.dot_dimension_numbers<[1], [0], [0], [1], [0, 0, 1, 1], [], []>} : vector<128x32xbf16>, vector<32x128xbf16>, vector<128x128xf32> -> vector<128x128xf32>
    %309 = arith.addf %239, %308 : vector<128x128xf32>
    %310 = arith.addf %3, %309 : vector<128x128xf32>
    %c0_201 = arith.constant 0 : index
    %c0_202 = arith.constant 0 : index
    %c0_203 = arith.constant 0 : index
    %311 = vector.load %arg14[%c0_201, %c0_202, %c0_203] : memref<1x1x128xf32, #tpu.memory_space<vmem>>, vector<1x1x128xf32>
    %312 = vector.shape_cast %311 : vector<1x1x128xf32> to vector<1x128xf32>
    %313 = vector.broadcast %312 : vector<1x128xf32> to vector<128x128xf32>
    %314 = arith.addf %310, %313 : vector<128x128xf32>
    %c0_204 = arith.constant 0 : index
    %c0_205 = arith.constant 0 : index
    %c0_206 = arith.constant 0 : index
    %315 = vector.load %arg15[%c0_204, %c0_205, %c0_206] : memref<1x1x128xf32, #tpu.memory_space<vmem>>, vector<1x1x128xf32>
    %316 = vector.shape_cast %315 : vector<1x1x128xf32> to vector<1x128xf32>
    %c0_207 = arith.constant 0 : index
    %c0_208 = arith.constant 0 : index
    %c0_209 = arith.constant 0 : index
    %317 = vector.load %arg16[%c0_207, %c0_208, %c0_209] : memref<1x1x128xf32, #tpu.memory_space<vmem>>, vector<1x1x128xf32>
    %318 = vector.shape_cast %317 : vector<1x1x128xf32> to vector<1x128xf32>
    %cst_210 = arith.constant dense<0.000000e+00> : vector<128xf32>
    %319 = vector.multi_reduction <add>, %314, %cst_210 [1] : vector<128x128xf32> to vector<128xf32>
    %320 = vector.shape_cast %319 : vector<128xf32> to vector<128x1xf32>
    %cst_211 = arith.constant 1.280000e+02 : f32
    %321 = vector.broadcast %cst_211 : f32 to vector<128x1xf32>
    %322 = arith.divf %320, %321 : vector<128x1xf32>
    %323 = vector.broadcast %322 : vector<128x1xf32> to vector<128x128xf32>
    %324 = arith.subf %314, %323 : vector<128x128xf32>
    %325 = arith.mulf %324, %324 : vector<128x128xf32>
    %cst_212 = arith.constant dense<0.000000e+00> : vector<128xf32>
    %326 = vector.multi_reduction <add>, %325, %cst_212 [1] : vector<128x128xf32> to vector<128xf32>
    %327 = vector.shape_cast %326 : vector<128xf32> to vector<128x1xf32>
    %cst_213 = arith.constant 1.280000e+02 : f32
    %328 = vector.broadcast %cst_213 : f32 to vector<128x1xf32>
    %329 = arith.divf %327, %328 : vector<128x1xf32>
    %330 = vector.broadcast %322 : vector<128x1xf32> to vector<128x128xf32>
    %331 = arith.subf %314, %330 : vector<128x128xf32>
    %cst_214 = arith.constant 9.99999974E-6 : f32
    %332 = vector.broadcast %cst_214 : f32 to vector<128x1xf32>
    %333 = arith.addf %329, %332 : vector<128x1xf32>
    %334 = math.rsqrt %333 : vector<128x1xf32>
    %335 = vector.broadcast %334 : vector<128x1xf32> to vector<128x128xf32>
    %336 = arith.mulf %331, %335 : vector<128x128xf32>
    %337 = vector.broadcast %316 : vector<1x128xf32> to vector<128x128xf32>
    %338 = arith.mulf %336, %337 : vector<128x128xf32>
    %339 = vector.broadcast %318 : vector<1x128xf32> to vector<128x128xf32>
    %340 = arith.addf %338, %339 : vector<128x128xf32>
    %341 = arith.truncf %340 : vector<128x128xf32> to vector<128x128xbf16>
    %c0_215 = arith.constant 0 : index
    %c0_216 = arith.constant 0 : index
    %c0_217 = arith.constant 0 : index
    %342 = vector.load %arg17[%c0_215, %c0_216, %c0_217] : memref<1x128x512xbf16, #tpu.memory_space<vmem>>, vector<1x128x512xbf16>
    %343 = vector.shape_cast %342 : vector<1x128x512xbf16> to vector<128x512xbf16>
    %cst_218 = arith.constant dense<0.000000e+00> : vector<128x512xf32>
    %344 = tpu.matmul %341, %343, %cst_218 {dimension_numbers = #tpu.dot_dimension_numbers<[1], [0], [0], [1], [0, 0, 1, 1], [], []>} : vector<128x128xbf16>, vector<128x512xbf16>, vector<128x512xf32> -> vector<128x512xf32>
    %c0_219 = arith.constant 0 : index
    %c0_220 = arith.constant 0 : index
    %c0_221 = arith.constant 0 : index
    %345 = vector.load %arg18[%c0_219, %c0_220, %c0_221] : memref<1x1x512xf32, #tpu.memory_space<vmem>>, vector<1x1x512xf32>
    %346 = vector.shape_cast %345 : vector<1x1x512xf32> to vector<1x512xf32>
    %347 = vector.broadcast %346 : vector<1x512xf32> to vector<128x512xf32>
    %348 = arith.addf %344, %347 : vector<128x512xf32>
    %349 = arith.mulf %348, %348 : vector<128x512xf32>
    %350 = arith.mulf %348, %349 : vector<128x512xf32>
    %cst_222 = arith.constant 4.471500e-02 : f32
    %351 = vector.broadcast %cst_222 : f32 to vector<128x512xf32>
    %352 = arith.mulf %351, %350 : vector<128x512xf32>
    %353 = arith.addf %348, %352 : vector<128x512xf32>
    %cst_223 = arith.constant 0.797884583 : f32
    %354 = vector.broadcast %cst_223 : f32 to vector<128x512xf32>
    %355 = arith.mulf %354, %353 : vector<128x512xf32>
    %356 = math.tanh %355 : vector<128x512xf32>
    %cst_224 = arith.constant 1.000000e+00 : f32
    %357 = vector.broadcast %cst_224 : f32 to vector<128x512xf32>
    %358 = arith.addf %357, %356 : vector<128x512xf32>
    %cst_225 = arith.constant 5.000000e-01 : f32
    %359 = vector.broadcast %cst_225 : f32 to vector<128x512xf32>
    %360 = arith.mulf %359, %358 : vector<128x512xf32>
    %361 = arith.mulf %348, %360 : vector<128x512xf32>
    %362 = arith.truncf %361 : vector<128x512xf32> to vector<128x512xbf16>
    %c0_226 = arith.constant 0 : index
    %c0_227 = arith.constant 0 : index
    %c0_228 = arith.constant 0 : index
    %363 = vector.load %arg19[%c0_226, %c0_227, %c0_228] : memref<1x512x128xbf16, #tpu.memory_space<vmem>>, vector<1x512x128xbf16>
    %364 = vector.shape_cast %363 : vector<1x512x128xbf16> to vector<512x128xbf16>
    %cst_229 = arith.constant dense<0.000000e+00> : vector<128x128xf32>
    %365 = tpu.matmul %362, %364, %cst_229 {dimension_numbers = #tpu.dot_dimension_numbers<[1], [0], [0], [1], [0, 0, 1, 1], [], []>} : vector<128x512xbf16>, vector<512x128xbf16>, vector<128x128xf32> -> vector<128x128xf32>
    %366 = arith.addf %314, %365 : vector<128x128xf32>
    %c0_230 = arith.constant 0 : index
    %c0_231 = arith.constant 0 : index
    %c0_232 = arith.constant 0 : index
    %367 = vector.load %arg20[%c0_230, %c0_231, %c0_232] : memref<1x1x128xf32, #tpu.memory_space<vmem>>, vector<1x1x128xf32>
    %368 = vector.shape_cast %367 : vector<1x1x128xf32> to vector<1x128xf32>
    %369 = vector.broadcast %368 : vector<1x128xf32> to vector<128x128xf32>
    %370 = arith.addf %366, %369 : vector<128x128xf32>
    %c0_233 = arith.constant 0 : index
    %c0_234 = arith.constant 0 : index
    %371 = vector.load %arg26[%c0_233, %c0_234] : memref<128x128xf32, #tpu.memory_space<vmem>>, vector<128x128xf32>
    tpu.vector_store %arg26[%c0_233, %c0_234], %370 {strides = array<i32>} : memref<128x128xf32, #tpu.memory_space<vmem>>, vector<128x128xf32>,
    %c1_i32 = arith.constant 1 : i32
    %372 = arith.cmpi eq, %arg0, %c1_i32 : i32
    %373 = arith.extui %372 : i1 to i32
    %c0_i32_235 = arith.constant 0 : i32
    %374 = arith.cmpi ne, %373, %c0_i32_235 : i32
    scf.if %374 {
      %c0_236 = arith.constant 0 : index
      %c0_237 = arith.constant 0 : index
      %375 = vector.load %arg21[%c0_236, %c0_237] : memref<1x128xf32, #tpu.memory_space<vmem>>, vector<1x128xf32>
      %c0_238 = arith.constant 0 : index
      %c0_239 = arith.constant 0 : index
      %376 = vector.load %arg22[%c0_238, %c0_239] : memref<1x128xf32, #tpu.memory_space<vmem>>, vector<1x128xf32>
      %cst_240 = arith.constant dense<0.000000e+00> : vector<128xf32>
      %377 = vector.multi_reduction <add>, %370, %cst_240 [1] : vector<128x128xf32> to vector<128xf32>
      %378 = vector.shape_cast %377 : vector<128xf32> to vector<128x1xf32>
      %cst_241 = arith.constant 1.280000e+02 : f32
      %379 = vector.broadcast %cst_241 : f32 to vector<128x1xf32>
      %380 = arith.divf %378, %379 : vector<128x1xf32>
      %381 = vector.broadcast %380 : vector<128x1xf32> to vector<128x128xf32>
      %382 = arith.subf %370, %381 : vector<128x128xf32>
      %383 = arith.mulf %382, %382 : vector<128x128xf32>
      %cst_242 = arith.constant dense<0.000000e+00> : vector<128xf32>
      %384 = vector.multi_reduction <add>, %383, %cst_242 [1] : vector<128x128xf32> to vector<128xf32>
      %385 = vector.shape_cast %384 : vector<128xf32> to vector<128x1xf32>
      %cst_243 = arith.constant 1.280000e+02 : f32
      %386 = vector.broadcast %cst_243 : f32 to vector<128x1xf32>
      %387 = arith.divf %385, %386 : vector<128x1xf32>
      %388 = vector.broadcast %380 : vector<128x1xf32> to vector<128x128xf32>
      %389 = arith.subf %370, %388 : vector<128x128xf32>
      %cst_244 = arith.constant 9.99999974E-6 : f32
      %390 = vector.broadcast %cst_244 : f32 to vector<128x1xf32>
      %391 = arith.addf %387, %390 : vector<128x1xf32>
      %392 = math.rsqrt %391 : vector<128x1xf32>
      %393 = vector.broadcast %392 : vector<128x1xf32> to vector<128x128xf32>
      %394 = arith.mulf %389, %393 : vector<128x128xf32>
      %395 = vector.broadcast %375 : vector<1x128xf32> to vector<128x128xf32>
      %396 = arith.mulf %394, %395 : vector<128x128xf32>
      %397 = vector.broadcast %376 : vector<1x128xf32> to vector<128x128xf32>
      %398 = arith.addf %396, %397 : vector<128x128xf32>
      %399 = vector.extract_strided_slice %398 {offsets = [0, 0], sizes = [64, 128], strides = [1, 1]} : vector<128x128xf32> to vector<64x128xf32>
      %cst_245 = arith.constant dense<0.000000e+00> : vector<128xf32>
      %400 = vector.multi_reduction <add>, %399, %cst_245 [0] : vector<64x128xf32> to vector<128xf32>
      %401 = vector.shape_cast %400 : vector<128xf32> to vector<1x128xf32>
      %cst_246 = arith.constant 6.400000e+01 : f32
      %402 = vector.broadcast %cst_246 : f32 to vector<1x128xf32>
      %403 = arith.divf %401, %402 : vector<1x128xf32>
      %404 = vector.extract_strided_slice %398 {offsets = [64, 0], sizes = [64, 128], strides = [1, 1]} : vector<128x128xf32> to vector<64x128xf32>
      %cst_247 = arith.constant dense<0.000000e+00> : vector<128xf32>
      %405 = vector.multi_reduction <add>, %404, %cst_247 [0] : vector<64x128xf32> to vector<128xf32>
      %406 = vector.shape_cast %405 : vector<128xf32> to vector<1x128xf32>
      %cst_248 = arith.constant 6.400000e+01 : f32
      %407 = vector.broadcast %cst_248 : f32 to vector<1x128xf32>
      %408 = arith.divf %406, %407 : vector<1x128xf32>
      %409 = tpu.concatenate %403, %408 in 0 : vector<1x128xf32>, vector<1x128xf32> -> vector<2x128xf32>
      %c0_249 = arith.constant 0 : index
      %c0_250 = arith.constant 0 : index
      %410 = vector.load %arg23[%c0_249, %c0_250] : memref<128x1xf32, #tpu.memory_space<vmem>>, vector<128x1xf32>
      %cst_251 = arith.constant dense<0.000000e+00> : vector<2x1xf32>
      %411 = tpu.matmul %409, %410, %cst_251 {dimension_numbers = #tpu.dot_dimension_numbers<[1], [0], [0], [1], [0, 0, 1, 1], [], []>} : vector<2x128xf32>, vector<128x1xf32>, vector<2x1xf32> -> vector<2x1xf32>
      %c0_252 = arith.constant 0 : index
      %c0_253 = arith.constant 0 : index
      %412 = vector.load %arg24[%c0_252, %c0_253] : memref<1x1xf32, #tpu.memory_space<vmem>>, vector<1x1xf32>
      %413 = vector.broadcast %412 : vector<1x1xf32> to vector<2x1xf32>
      %414 = arith.addf %411, %413 : vector<2x1xf32>
      %c0_254 = arith.constant 0 : index
      %c0_255 = arith.constant 0 : index
      %415 = vector.load %arg25[%c0_254, %c0_255] : memref<2x1xf32, #tpu.memory_space<vmem>>, vector<2x1xf32>
      tpu.vector_store %arg25[%c0_254, %c0_255], %414 {strides = array<i32>} : memref<2x1xf32, #tpu.memory_space<vmem>>, vector<2x1xf32>,
    } else {
    }
    return
  }
  func.func @transform_0(%arg0: i32) -> (i32, i32) {
    %c0_i32 = arith.constant 0 : i32
    %c0_i32_0 = arith.constant 0 : i32
    %c0_i32_1 = arith.constant 0 : i32
    return %c0_i32, %c0_i32_0 : i32, i32
  }
  func.func @transform_1(%arg0: i32) -> (i32, i32) {
    %c0_i32 = arith.constant 0 : i32
    %c0_i32_0 = arith.constant 0 : i32
    %c0_i32_1 = arith.constant 0 : i32
    return %c0_i32, %c0_i32_0 : i32, i32
  }
  func.func @transform_2(%arg0: i32) -> (i32, i32) {
    %c0_i32 = arith.constant 0 : i32
    %c0_i32_0 = arith.constant 0 : i32
    %c0_i32_1 = arith.constant 0 : i32
    return %c0_i32, %c0_i32_0 : i32, i32
  }
  func.func @transform_3(%arg0: i32) -> (i32, i32, i32) {
    %c0_i32 = arith.constant 0 : i32
    %c0_i32_0 = arith.constant 0 : i32
    %c0_i32_1 = arith.constant 0 : i32
    return %arg0, %c0_i32, %c0_i32_0 : i32, i32, i32
  }
  func.func @transform_4(%arg0: i32) -> (i32, i32, i32) {
    %c0_i32 = arith.constant 0 : i32
    %c0_i32_0 = arith.constant 0 : i32
    %c0_i32_1 = arith.constant 0 : i32
    return %arg0, %c0_i32, %c0_i32_0 : i32, i32, i32
  }
  func.func @transform_5(%arg0: i32) -> (i32, i32, i32, i32) {
    %c0_i32 = arith.constant 0 : i32
    %c0_i32_0 = arith.constant 0 : i32
    %c0_i32_1 = arith.constant 0 : i32
    %c0_i32_2 = arith.constant 0 : i32
    return %arg0, %c0_i32, %c0_i32_0, %c0_i32_1 : i32, i32, i32, i32
  }
  func.func @transform_6(%arg0: i32) -> (i32, i32, i32, i32) {
    %c0_i32 = arith.constant 0 : i32
    %c0_i32_0 = arith.constant 0 : i32
    %c0_i32_1 = arith.constant 0 : i32
    %c0_i32_2 = arith.constant 0 : i32
    return %arg0, %c0_i32, %c0_i32_0, %c0_i32_1 : i32, i32, i32, i32
  }
  func.func @transform_7(%arg0: i32) -> (i32, i32, i32, i32) {
    %c0_i32 = arith.constant 0 : i32
    %c0_i32_0 = arith.constant 0 : i32
    %c0_i32_1 = arith.constant 0 : i32
    %c0_i32_2 = arith.constant 0 : i32
    return %arg0, %c0_i32, %c0_i32_0, %c0_i32_1 : i32, i32, i32, i32
  }
  func.func @transform_8(%arg0: i32) -> (i32, i32, i32, i32) {
    %c0_i32 = arith.constant 0 : i32
    %c0_i32_0 = arith.constant 0 : i32
    %c0_i32_1 = arith.constant 0 : i32
    %c0_i32_2 = arith.constant 0 : i32
    return %arg0, %c0_i32, %c0_i32_0, %c0_i32_1 : i32, i32, i32, i32
  }
  func.func @transform_9(%arg0: i32) -> (i32, i32, i32, i32) {
    %c0_i32 = arith.constant 0 : i32
    %c0_i32_0 = arith.constant 0 : i32
    %c0_i32_1 = arith.constant 0 : i32
    %c0_i32_2 = arith.constant 0 : i32
    return %arg0, %c0_i32, %c0_i32_0, %c0_i32_1 : i32, i32, i32, i32
  }
  func.func @transform_10(%arg0: i32) -> (i32, i32, i32, i32) {
    %c0_i32 = arith.constant 0 : i32
    %c0_i32_0 = arith.constant 0 : i32
    %c0_i32_1 = arith.constant 0 : i32
    %c0_i32_2 = arith.constant 0 : i32
    return %arg0, %c0_i32, %c0_i32_0, %c0_i32_1 : i32, i32, i32, i32
  }
  func.func @transform_11(%arg0: i32) -> (i32, i32, i32, i32) {
    %c0_i32 = arith.constant 0 : i32
    %c0_i32_0 = arith.constant 0 : i32
    %c0_i32_1 = arith.constant 0 : i32
    %c0_i32_2 = arith.constant 0 : i32
    return %arg0, %c0_i32, %c0_i32_0, %c0_i32_1 : i32, i32, i32, i32
  }
  func.func @transform_12(%arg0: i32) -> (i32, i32, i32, i32) {
    %c0_i32 = arith.constant 0 : i32
    %c0_i32_0 = arith.constant 0 : i32
    %c0_i32_1 = arith.constant 0 : i32
    %c0_i32_2 = arith.constant 0 : i32
    return %arg0, %c0_i32, %c0_i32_0, %c0_i32_1 : i32, i32, i32, i32
  }
  func.func @transform_13(%arg0: i32) -> (i32, i32, i32) {
    %c0_i32 = arith.constant 0 : i32
    %c0_i32_0 = arith.constant 0 : i32
    %c0_i32_1 = arith.constant 0 : i32
    return %arg0, %c0_i32, %c0_i32_0 : i32, i32, i32
  }
  func.func @transform_14(%arg0: i32) -> (i32, i32, i32) {
    %c0_i32 = arith.constant 0 : i32
    %c0_i32_0 = arith.constant 0 : i32
    %c0_i32_1 = arith.constant 0 : i32
    return %arg0, %c0_i32, %c0_i32_0 : i32, i32, i32
  }
  func.func @transform_15(%arg0: i32) -> (i32, i32, i32) {
    %c0_i32 = arith.constant 0 : i32
    %c0_i32_0 = arith.constant 0 : i32
    %c0_i32_1 = arith.constant 0 : i32
    return %arg0, %c0_i32, %c0_i32_0 : i32, i32, i32
  }
  func.func @transform_16(%arg0: i32) -> (i32, i32, i32) {
    %c0_i32 = arith.constant 0 : i32
    %c0_i32_0 = arith.constant 0 : i32
    %c0_i32_1 = arith.constant 0 : i32
    return %arg0, %c0_i32, %c0_i32_0 : i32, i32, i32
  }
  func.func @transform_17(%arg0: i32) -> (i32, i32, i32) {
    %c0_i32 = arith.constant 0 : i32
    %c0_i32_0 = arith.constant 0 : i32
    %c0_i32_1 = arith.constant 0 : i32
    return %arg0, %c0_i32, %c0_i32_0 : i32, i32, i32
  }
  func.func @transform_18(%arg0: i32) -> (i32, i32, i32) {
    %c0_i32 = arith.constant 0 : i32
    %c0_i32_0 = arith.constant 0 : i32
    %c0_i32_1 = arith.constant 0 : i32
    return %arg0, %c0_i32, %c0_i32_0 : i32, i32, i32
  }
  func.func @transform_19(%arg0: i32) -> (i32, i32, i32) {
    %c0_i32 = arith.constant 0 : i32
    %c0_i32_0 = arith.constant 0 : i32
    %c0_i32_1 = arith.constant 0 : i32
    return %arg0, %c0_i32, %c0_i32_0 : i32, i32, i32
  }
  func.func @transform_20(%arg0: i32) -> (i32, i32) {
    %c0_i32 = arith.constant 0 : i32
    %c0_i32_0 = arith.constant 0 : i32
    %c0_i32_1 = arith.constant 0 : i32
    return %c0_i32, %c0_i32_0 : i32, i32
  }
  func.func @transform_21(%arg0: i32) -> (i32, i32) {
    %c0_i32 = arith.constant 0 : i32
    %c0_i32_0 = arith.constant 0 : i32
    %c0_i32_1 = arith.constant 0 : i32
    return %c0_i32, %c0_i32_0 : i32, i32
  }
  func.func @transform_22(%arg0: i32) -> (i32, i32) {
    %c0_i32 = arith.constant 0 : i32
    %c0_i32_0 = arith.constant 0 : i32
    %c0_i32_1 = arith.constant 0 : i32
    return %c0_i32, %c0_i32_0 : i32, i32
  }
  func.func @transform_23(%arg0: i32) -> (i32, i32) {
    %c0_i32 = arith.constant 0 : i32
    %c0_i32_0 = arith.constant 0 : i32
    %c0_i32_1 = arith.constant 0 : i32
    return %c0_i32, %c0_i32_0 : i32, i32
  }
  func.func @transform_24(%arg0: i32) -> (i32, i32) {
    %c0_i32 = arith.constant 0 : i32
    %c0_i32_0 = arith.constant 0 : i32
    %c0_i32_1 = arith.constant 0 : i32
    return %c0_i32, %c0_i32_0 : i32, i32
  }
}

</mosaic_0001>

<bundles_post_ra>
// kernel: hybrid_forward.1
= control target key start
LH: loop header
LB: loop body
LE: loop exit
PB: predicated region body
PF: predicated region fallthrough
CT: control target
= control target key end

     0   :  { %s10351_s27 = smov 0   ;;  %s14249_s0 = inlined_call_operand.vmem [shape: bf16[128,192], index: 0, kind: input, shape index: {}]   ;;  %s14250_s1 = inlined_call_operand.vmem [shape: bf16[192,128], index: 1, kind: input, shape index: {}]   ;;  %s14251_s2 = inlined_call_operand.vmem [shape: f32[1,128], index: 2, kind: input, shape index: {}]   ;;  %s14252_s3 = inlined_call_operand.vmem [shape: f32[2,1,128], index: 3, kind: input, shape index: {}]   ;;  %s14253_s4 = inlined_call_operand.vmem [shape: f32[2,1,128], index: 4, kind: input, shape index: {}]   ;;  %s14254_s5 = inlined_call_operand.vmem [shape: bf16[2,4,128,32], index: 5, kind: input, shape index: {}]   ;;  %s14255_s6 = inlined_call_operand.vmem [shape: f32[2,4,1,32], index: 6, kind: input, shape index: {}]   ;;  %s14256_s7 = inlined_call_operand.vmem [shape: bf16[2,4,128,32], index: 7, kind: input, shape index: {}]   ;;  %s14257_s8 = inlined_call_operand.vmem [shape: f32[2,4,1,32], index: 8, kind: input, shape index: {}]   ;;  %s14258_s9 = inlined_call_operand.vmem [shape: bf16[2,4,128,32], index: 9, kind: input, shape index: {}]   ;;  %s14259_s10 = inlined_call_operand.vmem [shape: f32[2,4,1,32], index: 10, kind: input, shape index: {}]   ;;  %s14260_s11 = inlined_call_operand.vmem [shape: f32[2,4,64,64], index: 11, kind: input, shape index: {}]   ;;  %s14261_s12 = inlined_call_operand.vmem [shape: bf16[2,4,32,128], index: 12, kind: input, shape index: {}]   ;;  %s14262_s13 = inlined_call_operand.vmem [shape: f32[2,1,128], index: 13, kind: input, shape index: {}]   ;;  %s14263_s14 = inlined_call_operand.vmem [shape: f32[2,1,128], index: 14, kind: input, shape index: {}]   ;;  %s14264_s15 = inlined_call_operand.vmem [shape: f32[2,1,128], index: 15, kind: input, shape index: {}]   ;;  %s14265_s16 = inlined_call_operand.vmem [shape: bf16[2,128,512], index: 16, kind: input, shape index: {}]   ;;  %s14266_s17 = inlined_call_operand.vmem [shape: f32[2,1,512], index: 17, kind: input, shape index: {}]   ;;  %s14267_s18 = inlined_call_operand.vmem [shape: bf16[2,512,128], index: 18, kind: input, shape index: {}]   ;;  %s14268_s19 = inlined_call_operand.vmem [shape: f32[2,1,128], index: 19, kind: input, shape index: {}]   ;;  %s14269_s20 = inlined_call_operand.vmem [shape: f32[1,128], index: 20, kind: input, shape index: {}]   ;;  %s14270_s21 = inlined_call_operand.vmem [shape: f32[1,128], index: 21, kind: input, shape index: {}]   ;;  %s14271_s22 = inlined_call_operand.vmem [shape: f32[128,1], index: 22, kind: input, shape index: {}]   ;;  %s14272_s23 = inlined_call_operand.<no memory space> [shape: f32[1,1], index: 23, kind: input, shape index: {}]   ;;  %s14273_s24 = inlined_call_operand.vmem [shape: f32[2,1], index: 24, kind: output, shape index: {}]  }
   0x1   :  { %14301 = sst [smem:[#allocation29_spill]] %s14249_s0  ;;  %v29_v0 = vstv %s14272_s23 }
   0x2   :  { %14302 = sst [smem:[#allocation30_spill]] %s14250_s1  ;;  %30 = vst [vmem:[#allocation3] sm:$0x1] %v29_v0 }
   0x3   :  { %14303 = sst [smem:[#allocation31_spill]] %s14251_s2 }
   0x4   :  { %14304 = sst [smem:[#allocation32_spill]] %s14252_s3 }
   0x5   :  { %14305 = sst [smem:[#allocation33_spill]] %s14253_s4 }
   0x6   :  { %14306 = sst [smem:[#allocation34_spill]] %s14254_s5 }
   0x7   :  { %14307 = sst [smem:[#allocation35_spill]] %s14255_s6 }
   0x8   :  { %14308 = sst [smem:[#allocation36_spill]] %s14256_s7 }
   0x9   :  { %14309 = sst [smem:[#allocation37_spill]] %s14257_s8 }
   0xa   :  { %14310 = sst [smem:[#allocation38_spill]] %s14258_s9 }
   0xb   :  { %14311 = sst [smem:[#allocation39_spill]] %s14259_s10 }
   0xc   :  { %14312 = sst [smem:[#allocation40_spill]] %s14260_s11 }
   0xd   :  { %14313 = sst [smem:[#allocation41_spill]] %s14261_s12 }
   0xe   :  { %14314 = sst [smem:[#allocation42_spill]] %s14263_s14 }
   0xf   :  { %14315 = sst [smem:[#allocation43_spill]] %s14264_s15 }
  0x10   :  { %14316 = sst [smem:[#allocation44_spill]] %s14265_s16 }
  0x11   :  { %14317 = sst [smem:[#allocation45_spill]] %s14269_s20 }
  0x12   :  { %14318 = sst [smem:[#allocation46_spill]] %s14270_s21 }
  0x13   :  { %14319 = sst [smem:[#allocation47_spill]] %s14271_s22 }
  0x14   :  { %14320 = sst [smem:[#allocation48_spill]] %s14273_s24 }
  0x15 LB: > { %14321 = sst [smem:[#allocation4_spill]] %s10219_s27  ;;  %s10357_s28 = sadd.s32 4294967295, %s10219_s27   ;;  %s10219_s27 = sphi %s10351_s27, %s36_s27  }
  0x16   : > { %14322 = sst [smem:[#allocation5_spill]] %s10357_s28  ;;  %p8356_p0 = scmp.ge.s32.totalorder %s10219_s27, 1 }
  0x17   : > { %p803_p1 = scmp.lt.s32.totalorder %s10219_s27, 3 }
  0x19   : > { %p804_p2 = pnand %p8356_p0, %p803_p1 }
  0x1b   : > { %807 = sbr.rel (%p804_p2) target bundleno = 5067 (0x13cb), region = 116 }
  0x20   : > { %p928_p3 = scmp.lt.s32.totalorder %s10357_s28, 1  ;;  %s14325_s26 = sld [smem:[#allocation34_spill]] }
  0x21   : > { %s14327_s29 = sld [smem:[#allocation35_spill]] }
  0x22   : > { %s10363_s23 = scalar_select %p928_p3, %s10357_s28, 1 }
  0x23   : > { %s14329_s3 = sld [smem:[#allocation36_spill]] }
  0x24   : > { %s9456_s8 = sshll.u32 %s10363_s23, 8  ;;  %s10375_s4 = sshll.u32 %s10363_s23, 2 }
  0x25   : > { %s14330_s1 = sld [smem:[#allocation37_spill]]  ;;  %s9460_s30 = sshll.u32 %s10363_s23, 6 }
  0x26   : > { %s10380_s6 = scalar_lea.vmem %s14325_s26, %s9456_s8  ;;  %s14331_s9 = sld [smem:[#allocation38_spill]] }
  0x27   : > { %14326 = sst [smem:[#allocation6_spill]] %s10380_s6  ;;  %s10386_s0 = scalar_lea.vmem %s14327_s29, %s10375_s4 }
  0x28   : > { %14328 = sst [smem:[#allocation7_spill]] %s10386_s0 }
  0x29   : > { %s10391_s25 = scalar_lea.vmem %s14329_s3, %s9456_s8  ;;  %s14332_s10 = sld [smem:[#allocation39_spill]] }
  0x2a   : > { %s14333_s11 = sld [smem:[#allocation40_spill]] }
  0x2b   : > { %s10397_s5 = scalar_lea.vmem %s14330_s1, %s10375_s4  ;;  %s14334_s12 = sld [smem:[#allocation41_spill]] }
  0x2c   : > { %s10402_s26 = scalar_lea.vmem %s14331_s9, %s9456_s8  ;;  %s14335_s14 = sld [smem:[#allocation42_spill]] }
  0x2d   : > { %s14336_s15 = sld [smem:[#allocation43_spill]]  ;;  %s988_s1 = scalar_lea.vmem %s14266_s17, %s10375_s4 }
  0x2e   : > { %s14337_s16 = sld [smem:[#allocation44_spill]]  ;;  %s10449_s9 = scalar_lea.vmem %s14267_s18, %s9456_s8 }
  0x2f   : > { %s10408_s27 = scalar_lea.vmem %s14332_s10, %s10375_s4  ;;  %s14338_s6 = sld [smem:[#allocation5_spill]] }
  0x30   : > { %s10413_s7 = scalar_lea.vmem %s14333_s11, %s9456_s8 }
  0x31   : > { %s10419_s24 = scalar_lea.vmem %s14334_s12, %s9460_s30 }
  0x32   : > { %s10429_s28 = scalar_lea.vmem %s14335_s14, %s10363_s23 }
  0x33   : > { %s10435_s2 = scalar_lea.vmem %s14336_s15, %s10363_s23 }
  0x34   : > { %s10440_s3 = scalar_lea.vmem %s14337_s16, %s9456_s8 }
  0x35   : > { %p8375_p4 = scmp.ne.s32.totalorder %s14338_s6, 0 }
  0x36   : > { %s14339_s29 = sld [smem:[#allocation30_spill]] (!%p8375_p4) }
  0x37   : > { %1001 = sbr.rel (%p8375_p4) target bundleno = 286 (0x11e), region = 120  ;;  %s14340_s12 = sld [smem:[#allocation29_spill]] (!%p8375_p4) }
  0x38   : > { %s14341_s21 = sld [smem:[#allocation31_spill]] (!%p8375_p4) }
  0x3c   : > { %v9486_v1 = vld [vmem:[%s14339_s29 + $0x38] sm:$0xff]  ;;  %v9485_v3 = vld [vmem:[%s14339_s29 + $0x30] sm:$0xff]  ;;  %v9484_v5 = vld [vmem:[%s14339_s29 + $0x28] sm:$0xff]  ;;  %vm1190_vm0 = vcmask 523264  }
  0x3d   : > { %v9490_v2 = vld [vmem:[%s14339_s29 + $0x58] sm:$0xff]  ;;  %1215 = vmatpush.bf16.msra.mxu0 %v9486_v1  ;;  %9659 = vmatpush.bf16.msra.mxu2 %v9486_v1  ;;  %v9489_v4 = vld [vmem:[%s14339_s29 + $0x50] sm:$0xff]  ;;  %v9488_v6 = vld [vmem:[%s14339_s29 + $0x48] sm:$0xff] }
  0x3e   : > { %1268 = vmatpush.bf16.msra.mxu1 %v9490_v2  ;;  %9667 = vmatpush.bf16.msra.mxu3 %v9490_v2  ;;  %v9483_v7 = vld [vmem:[%s14339_s29 + $0x20] sm:$0xff]  ;;  %v8380_v10 = vld [vmem:[%s14340_s12 + $0x8] sm:$0xf0]  ;;  %v9473_v11 = vld [vmem:[%s14340_s12 + $0x54] sm:$0xf] }
  0x3f   : > { %v9487_v8 = vld [vmem:[%s14339_s29 + $0x40] sm:$0xff]  ;;  %v8420_v12 = vld [vmem:[%s14340_s12 + $0x58] sm:$0xf0]  ;;  %v9481_v16 = vld [vmem:[%s14339_s29 + $0x10] sm:$0xff] }
  0x40   : > { %v9463_v9 = vld [vmem:[%s14340_s12 + $0x4] sm:$0xf]  ;;  %v9482_v14 = vld [vmem:[%s14339_s29 + $0x18] sm:$0xff]  ;;  %v8423_v15 = vor.u32 %v9473_v11, %v8420_v12  ;;  %v9480_v17 = vld [vmem:[%s14339_s29 + $0x8] sm:$0xff] }
  0x41   : > { %1216 = vmatpush.bf16.msra.mxu0 %v9485_v3  ;;  %9660 = vmatpush.bf16.msra.mxu2 %v9485_v3  ;;  %v8383_v13 = vor.u32 %v9463_v9, %v8380_v10  ;;  %v9479_v18 = vld [vmem:[%s14339_s29] sm:$0xff]  ;;  %v9464_v20 = vld [vmem:[%s14340_s12 + $0x4] sm:$0xf0]  ;;  %v9465_v23 = vld [vmem:[%s14340_s12 + $0x14] sm:$0xf] }
  0x42   : > { %1269 = vmatpush.bf16.msra.mxu1 %v9489_v4  ;;  %9668 = vmatpush.bf16.msra.mxu3 %v9489_v4  ;;  %v8378_v19 = vld [vmem:[%s14340_s12] sm:$0xf]  ;;  %v9472_v22 = vld [vmem:[%s14340_s12 + $0x44] sm:$0xf0]  ;;  %v8388_v24 = vld [vmem:[%s14340_s12 + $0x18] sm:$0xf0] }
  0x43   : > { %v8410_v21 = vld [vmem:[%s14340_s12 + $0x40] sm:$0xf]  ;;  %v9475_v25 = vld [vmem:[%s14340_s12 + $0x64] sm:$0xf]  ;;  %v8428_v26 = vld [vmem:[%s14340_s12 + $0x68] sm:$0xf0]  ;;  %v8379_v27 = vor.u32 %v9464_v20, %v8378_v19  ;;  %v8391_v29 = vor.u32 %v9465_v23, %v8388_v24 }
  0x44   : > { %v8411_v28 = vor.u32 %v9472_v22, %v8410_v21  ;;  %v8431_v30 = vor.u32 %v9475_v25, %v8428_v26  ;;  %v8386_v31 = vld [vmem:[%s14340_s12 + $0x10] sm:$0xf]  ;;  %v9466_v32 = vld [vmem:[%s14340_s12 + $0x14] sm:$0xf0]  ;;  %v9467_v35 = vld [vmem:[%s14340_s12 + $0x24] sm:$0xf] }
  0x45   : > { %1217 = vmatpush.bf16.msra.mxu0 %v9484_v5  ;;  %9661 = vmatpush.bf16.msra.mxu2 %v9484_v5  ;;  %v8418_v33 = vld [vmem:[%s14340_s12 + $0x50] sm:$0xf]  ;;  %v9474_v34 = vld [vmem:[%s14340_s12 + $0x54] sm:$0xf0]  ;;  %v8396_v36 = vld [vmem:[%s14340_s12 + $0x28] sm:$0xf0]  ;;  %v8387_v39 = vor.u32 %v9466_v32, %v8386_v31 }
  0x46   : > { %1270 = vmatpush.bf16.msra.mxu1 %v9488_v6  ;;  %9669 = vmatpush.bf16.msra.mxu3 %v9488_v6  ;;  %v9477_v37 = vld [vmem:[%s14340_s12 + $0x74] sm:$0xf]  ;;  %v8436_v38 = vld [vmem:[%s14340_s12 + $0x78] sm:$0xf0]  ;;  %v8419_v40 = vor.u32 %v9474_v34, %v8418_v33  ;;  %v8399_v41 = vor.u32 %v9467_v35, %v8396_v36  ;;  %v8394_v43 = vld [vmem:[%s14340_s12 + $0x20] sm:$0xf] }
  0x47   : > { %v8439_v42 = vor.u32 %v9477_v37, %v8436_v38  ;;  %v9468_v44 = vld [vmem:[%s14340_s12 + $0x24] sm:$0xf0]  ;;  %v8426_v45 = vld [vmem:[%s14340_s12 + $0x60] sm:$0xf]  ;;  %v9469_v47 = vld [vmem:[%s14340_s12 + $0x34] sm:$0xf] }
  0x48   : > { %v9476_v46 = vld [vmem:[%s14340_s12 + $0x64] sm:$0xf0]  ;;  %v8404_v48 = vld [vmem:[%s14340_s12 + $0x38] sm:$0xf0]  ;;  %v8395_v49 = vor.u32 %v9468_v44, %v8394_v43  ;;  %v8402_v52 = vld [vmem:[%s14340_s12 + $0x30] sm:$0xf] }
  0x49   : > { %1218 = vmatpush.bf16.msra.mxu0 %v9483_v7  ;;  %9662 = vmatpush.bf16.msra.mxu2 %v9483_v7  ;;  %v8427_v50 = vor.u32 %v9476_v46, %v8426_v45  ;;  %v8407_v51 = vor.u32 %v9469_v47, %v8404_v48  ;;  %v9470_v53 = vld [vmem:[%s14340_s12 + $0x34] sm:$0xf0]  ;;  %v8434_v54 = vld [vmem:[%s14340_s12 + $0x70] sm:$0xf]  ;;  %v9471_v56 = vld [vmem:[%s14340_s12 + $0x44] sm:$0xf] }
  0x4a   : > { %1271 = vmatpush.bf16.msra.mxu1 %v9487_v8  ;;  %9670 = vmatpush.bf16.msra.mxu3 %v9487_v8  ;;  %v9478_v55 = vld [vmem:[%s14340_s12 + $0x74] sm:$0xf0]  ;;  %v8412_v57 = vld [vmem:[%s14340_s12 + $0x48] sm:$0xf0]  ;;  %v8403_v58 = vor.u32 %v9470_v53, %v8402_v52  ;;  %v10599_v63 = vld [vmem:[%s14341_s21] ss:$0 sm:$0xff] }
  0x4b   : > { %v8435_v59 = vor.u32 %v9478_v55, %v8434_v54  ;;  %v8415_v60 = vor.u32 %v9471_v56, %v8412_v57 }
  0x4d   : > { %8488 = vmatmul.msk.bf16.vlgmr.msra.gmra.mxu1 %vm1190_vm0, %v8383_v13  ;;  %1219 = vmatpush.bf16.msra.mxu0 %v9482_v14 }
  0x4e   : > { %9663 = vmatpush.bf16.msra.mxu2 %v9482_v14  ;;  %8493 = vmatmul.msk.bf16.vlgmr.msra.gmra.mxu3 %vm1190_vm0, %v8423_v15 }
  0x51   : > { %1220 = vmatpush.bf16.msra.mxu0 %v9481_v16 }
  0x52   : > { %9664 = vmatpush.bf16.msra.mxu2 %v9481_v16 }
  0x55   : > { %1221 = vmatpush.bf16.msra.mxu0 %v9480_v17 }
  0x56   : > { %9665 = vmatpush.bf16.msra.mxu2 %v9480_v17 }
  0x59   : > { %1222 = vmatpush.bf16.msra.mxu0 %v9479_v18 }
  0x5a   : > { %9666 = vmatpush.bf16.msra.mxu2 %v9479_v18 }
  0x5c   : > { %1223 = vmatmul.bf16.vlgmr.msra.gmra.mxu0 %v8379_v27 }
  0x5d   : > { %1243 = vmatmul.bf16.vlgmr.msra.gmra.mxu2 %v8411_v28  ;;  %8489 = vmatmul.msk.bf16.gmra.mxu1 %vm1190_vm0, %v8391_v29 }
  0x5e   : > { %8494 = vmatmul.msk.bf16.gmra.mxu3 %vm1190_vm0, %v8431_v30 }
  0x6c   : > { %1228 = vmatmul.bf16.gmra.mxu0 %v8387_v39 }
  0x6d   : > { %1248 = vmatmul.bf16.gmra.mxu2 %v8419_v40  ;;  %8490 = vmatmul.msk.bf16.gmra.mxu1 %vm1190_vm0, %v8399_v41 }
  0x6e   : > { %8495 = vmatmul.msk.bf16.gmra.mxu3 %vm1190_vm0, %v8439_v42 }
  0x7c   : > { %1233 = vmatmul.bf16.gmra.mxu0 %v8395_v49 }
  0x7d   : > { %1253 = vmatmul.bf16.gmra.mxu2 %v8427_v50  ;;  %8491 = vmatmul.msk.bf16.gmra.mxu1 %vm1190_vm0, %v8407_v51 }
  0x8c   : > { %1238 = vmatmul.bf16.gmra.mxu0 %v8403_v58 }
  0x8d   : > { %1258 = vmatmul.bf16.gmra.mxu2 %v8435_v59  ;;  %8492 = vmatmul.msk.bf16.gmra.mxu1 %vm1190_vm0, %v8415_v60 }
  0xca   : > { %v1273_v61 = vpop.f32.mrf.mxu1 }
  0xd1   : > { %v1298_v10 = vpop.f32.mrf.mxu3 }
  0xd2   : > { %v1275_v62 = vpop.f32.mrf.mxu1 }
  0xd9   : > { %v1224_v0 = vpop.f32.mrf.mxu0  ;;  %v1300_v20 = vpop.f32.mrf.mxu3 }
  0xda   : > { %v1225_v1 = vadd.f32 %v10599_v63, %v1224_v0  ;;  %v1278_v2 = vpop.f32.mrf.mxu1 }
  0xdc   : > { %v1274_v3 = vadd.f32 %v1273_v61, %v1225_v1 }
  0xde   : > { %1313 = vst [vmem:[#allocation2 + $0x30] sm:$0xff] %v1274_v3 }
  0xe0   : > { %v1244_v4 = vpop.f32.mrf.mxu2 }
  0xe1   : > { %v1226_v5 = vpop.f32.mrf.mxu0  ;;  %v1303_v30 = vpop.f32.mrf.mxu3  ;;  %v1245_v40 = vadd.f32 %v10599_v63, %v1244_v4 }
  0xe2   : > { %v1227_v6 = vadd.f32 %v10599_v63, %v1226_v5  ;;  %v1280_v7 = vpop.f32.mrf.mxu1 }
  0xe4   : > { %v1276_v8 = vadd.f32 %v1275_v62, %v1227_v6 }
  0xe6   : > { %1314 = vst [vmem:[#allocation2] sm:$0xff] %v1276_v8 }
  0xe8   : > { %v1246_v9 = vpop.f32.mrf.mxu2 }
  0xe9   : > { %v1229_v11 = vpop.f32.mrf.mxu0  ;;  %v1305_v38 = vpop.f32.mrf.mxu3  ;;  %v1247_v50 = vadd.f32 %v10599_v63, %v1246_v9 }
  0xea   : > { %v1230_v12 = vadd.f32 %v10599_v63, %v1229_v11  ;;  %v1283_v13 = vpop.f32.mrf.mxu1 }
  0xec   : > { %v1279_v14 = vadd.f32 %v1278_v2, %v1230_v12 }
  0xee   : > { %1315 = vst [vmem:[#allocation2 + $0x58] sm:$0xff] %v1279_v14 }
  0xf0   : > { %v1249_v15 = vpop.f32.mrf.mxu2 }
  0xf1   : > { %v1250_v16 = vadd.f32 %v10599_v63, %v1249_v15  ;;  %v1231_v17 = vpop.f32.mrf.mxu0  ;;  %v1308_v48 = vpop.f32.mrf.mxu3 }
  0xf2   : > { %v1232_v18 = vadd.f32 %v10599_v63, %v1231_v17  ;;  %v1285_v19 = vpop.f32.mrf.mxu1 }
  0xf3   : > { %v1299_v21 = vadd.f32 %v1298_v10, %v1250_v16 }
  0xf4   : > { %v1281_v22 = vadd.f32 %v1280_v7, %v1232_v18 }
  0xf5   : > { %1323 = vst [vmem:[#allocation2 + $0x10] sm:$0xff] %v1299_v21 }
  0xf6   : > { %1316 = vst [vmem:[#allocation2 + $0x18] sm:$0xff] %v1281_v22 }
  0xf8   : > { %v1251_v23 = vpop.f32.mrf.mxu2 }
  0xf9   : > { %v1252_v24 = vadd.f32 %v10599_v63, %v1251_v23  ;;  %v1234_v25 = vpop.f32.mrf.mxu0  ;;  %v1310_v60 = vpop.f32.mrf.mxu3 }
  0xfa   : > { %v1235_v26 = vadd.f32 %v10599_v63, %v1234_v25  ;;  %v1288_v27 = vpop.f32.mrf.mxu1 }
  0xfb   : > { %v1301_v28 = vadd.f32 %v1300_v20, %v1252_v24 }
  0xfc   : > { %v1284_v29 = vadd.f32 %v1283_v13, %v1235_v26 }
  0xfd   : > { %1324 = vst [vmem:[#allocation2 + $0x38] sm:$0xff] %v1301_v28 }
  0xfe   : > { %1317 = vst [vmem:[#allocation2 + $0x50] sm:$0xff] %v1284_v29 }
 0x100   : > { %v1254_v31 = vpop.f32.mrf.mxu2 }
 0x101   : > { %v1255_v32 = vadd.f32 %v10599_v63, %v1254_v31  ;;  %v1236_v33 = vpop.f32.mrf.mxu0 }
 0x102   : > { %v1237_v34 = vadd.f32 %v10599_v63, %v1236_v33  ;;  %v1290_v35 = vpop.f32.mrf.mxu1 }
 0x103   : > { %v1304_v36 = vadd.f32 %v1303_v30, %v1255_v32 }
 0x104   : > { %v1286_v37 = vadd.f32 %v1285_v19, %v1237_v34 }
 0x105   : > { %1325 = vst [vmem:[#allocation2 + $0x60] sm:$0xff] %v1304_v36 }
 0x106   : > { %1318 = vst [vmem:[#allocation2 + $0x68] sm:$0xff] %v1286_v37 }
 0x108   : > { %v1256_v39 = vpop.f32.mrf.mxu2 }
 0x109   : > { %v1257_v41 = vadd.f32 %v10599_v63, %v1256_v39  ;;  %v1239_v42 = vpop.f32.mrf.mxu0 }
 0x10a   : > { %v1240_v43 = vadd.f32 %v10599_v63, %v1239_v42  ;;  %v1293_v44 = vpop.f32.mrf.mxu1 }
 0x10b   : > { %v1306_v45 = vadd.f32 %v1305_v38, %v1257_v41  ;;  %v1294_v46 = vadd.f32 %v1293_v44, %v1245_v40 }
 0x10c   : > { %v1289_v47 = vadd.f32 %v1288_v27, %v1240_v43 }
 0x10d   : > { %1326 = vst [vmem:[#allocation2 + $0x70] sm:$0xff] %v1306_v45 }
 0x10e   : > { %1319 = vst [vmem:[#allocation2 + $0x8] sm:$0xff] %v1289_v47 }
 0x10f   : > { %1321 = vst [vmem:[#allocation2 + $0x40] sm:$0xff] %v1294_v46 }
 0x110   : > { %v1259_v49 = vpop.f32.mrf.mxu2 }
 0x111   : > { %v1260_v51 = vadd.f32 %v10599_v63, %v1259_v49  ;;  %v1241_v52 = vpop.f32.mrf.mxu0 }
 0x112   : > { %v1242_v53 = vadd.f32 %v10599_v63, %v1241_v52  ;;  %v1295_v54 = vpop.f32.mrf.mxu1 }
 0x113   : > { %v1309_v55 = vadd.f32 %v1308_v48, %v1260_v51  ;;  %v1296_v56 = vadd.f32 %v1295_v54, %v1247_v50 }
 0x114   : > { %v1291_v57 = vadd.f32 %v1290_v35, %v1242_v53 }
 0x115   : > { %1327 = vst [vmem:[#allocation2 + $0x78] sm:$0xff] %v1309_v55 }
 0x116   : > { %1320 = vst [vmem:[#allocation2 + $0x48] sm:$0xff] %v1291_v57 }
 0x117   : > { %1322 = vst [vmem:[#allocation2 + $0x20] sm:$0xff] %v1296_v56 }
 0x118   : > { %v1261_v58 = vpop.f32.mrf.mxu2 }
 0x119   : > { %v1262_v59 = vadd.f32 %v10599_v63, %v1261_v58 }
 0x11b   : > { %v1311_v61 = vadd.f32 %v1310_v60, %v1262_v59 }
 0x11d   : > { %1328 = vst [vmem:[#allocation2 + $0x28] sm:$0xff] %v1311_v61 }
 0x11e PF: > { %v1333_v62 = vld [vmem:[#allocation2 + $0x50] sm:$0xff]  ;;  %v1331_v0 = vld [vmem:[#allocation2 + $0x58] sm:$0xff]  ;;  %v1334_v2 = vld [vmem:[#allocation2 + $0x68] sm:$0xff]  ;;  %v10221_v6 = vmov 128.0   ;;  %s14343_s15 = sld [smem:[#allocation6_spill]] }
 0x11f   : > { %v1329_v1 = vld [vmem:[#allocation2 + $0x30] sm:$0xff]  ;;  %1355 = vadd.xlane.f32.xlu2 %v1333_v62  ;;  %1351 = vadd.xlane.f32.xlu1 %v1331_v0  ;;  %v1332_v3 = vld [vmem:[#allocation2 + $0x18] sm:$0xff]  ;;  %v1330_v4 = vld [vmem:[#allocation2] sm:$0xff]  ;;  %9708 = vrcp.f32 %v10221_v6  ;;  %s14344_s0 = sld [smem:[#allocation32_spill]] }
 0x120   : > { %1347 = vadd.xlane.f32.xlu0 %v1329_v1  ;;  %v1335_v5 = vld [vmem:[#allocation2 + $0x8] sm:$0xff]  ;;  %v10655_v40 = vld [vmem:[#allocation2 + $0x20] sm:$0xff]  ;;  %v10666_v44 = vld [vmem:[#allocation2 + $0x38] sm:$0xff]  ;;  %s14346_s8 = sld [smem:[#allocation33_spill]] }
 0x121   : > { %v10634_v28 = vld [vmem:[#allocation2 + $0x48] sm:$0xff]  ;;  %v10660_v42 = vld [vmem:[#allocation2 + $0x60] sm:$0xff]  ;;  %v9506_v46 = vld [vmem:[%s10391_s25 + $0x38] sm:$0xff]  ;;  %s14354_s10 = sld [smem:[#allocation7_spill]] }
 0x122   : > { %v10662_v43 = vld [vmem:[#allocation2 + $0x40] sm:$0xff]  ;;  %v9514_v47 = vld [vmem:[%s10402_s26 + $0x38] sm:$0xff]  ;;  %1921 = vmatpush.bf16.msra.mxu1 %v9506_v46  ;;  %v9505_v49 = vld [vmem:[%s10391_s25 + $0x30] sm:$0xff] }
 0x123   : > { %2054 = vmatpush.bf16.msra.mxu2 %v9514_v47  ;;  %9671 = vmatpush.bf16.msra.mxu3 %v9514_v47  ;;  %v9513_v50 = vld [vmem:[%s10402_s26 + $0x30] sm:$0xff]  ;;  %v9504_v52 = vld [vmem:[%s10391_s25 + $0x28] sm:$0xff]  ;;  %v9503_v55 = vld [vmem:[%s10391_s25 + $0x20] sm:$0xff] }
 0x124   : > { %v9498_v45 = vld [vmem:[%s14343_s15 + $0x38] sm:$0xff]  ;;  %v9497_v48 = vld [vmem:[%s14343_s15 + $0x30] sm:$0xff]  ;;  %v9496_v51 = vld [vmem:[%s14343_s15 + $0x28] sm:$0xff] }
 0x125   : > { %v9709_v63 = vpop.eup %9708  ;;  %1788 = vmatpush.bf16.msra.mxu0 %v9498_v45  ;;  %v9512_v53 = vld [vmem:[%s10402_s26 + $0x28] sm:$0xff]  ;;  %v9495_v54 = vld [vmem:[%s14343_s15 + $0x20] sm:$0xff]  ;;  %v9494_v57 = vld [vmem:[%s14343_s15 + $0x18] sm:$0xff]  ;;  %s14345_s6 = scalar_lea.vmem %s14344_s0, %s10363_s23 }
 0x126   : > { %v1380_v7 = vmul.f32 128.0, %v9709_v63  ;;  %vm1384_vm1 = vweird.f32 %v9709_v63  ;;  %1922 = vmatpush.bf16.msra.mxu1 %v9505_v49  ;;  %v9511_v56 = vld [vmem:[%s10402_s26 + $0x20] sm:$0xff]  ;;  %v9502_v58 = vld [vmem:[%s10391_s25 + $0x18] sm:$0xff]  ;;  %v9493_v60 = vld [vmem:[%s14343_s15 + $0x10] sm:$0xff]  ;;  %s14347_s30 = scalar_lea.vmem %s14346_s8, %s10363_s23 }
 0x127   : > { %1357 = vadd.xlane.f32.xlu2 %v1334_v2  ;;  %1353 = vadd.xlane.f32.xlu1 %v1332_v3  ;;  %v9510_v59 = vld [vmem:[%s10402_s26 + $0x18] sm:$0xff]  ;;  %v9501_v61 = vld [vmem:[%s10391_s25 + $0x10] sm:$0xff]  ;;  %v9491_v6 = vld [vmem:[%s14343_s15] sm:$0xff] }
 0x128   : > { %1349 = vadd.xlane.f32.xlu0 %v1330_v4  ;;  %v1381_v8 = vsub.f32 1.0, %v1380_v7  ;;  %2055 = vmatpush.bf16.msra.mxu2 %v9513_v50  ;;  %v9507_v7 = vld [vmem:[%s10402_s26] sm:$0xff]  ;;  %v10713_v46 = vld [vmem:[#allocation2 + $0x10] sm:$0xff] }
 0x129   : > { %1789 = vmatpush.bf16.msra.mxu0 %v9497_v48  ;;  %9672 = vmatpush.bf16.msra.mxu3 %v9513_v50 }
 0x12a   : > { %v1382_v9 = vmul.f32 %v9709_v63, %v1381_v8  ;;  %1923 = vmatpush.bf16.msra.mxu1 %v9504_v52 }
 0x12c   : > { %v1383_v10 = vadd.f32 %v9709_v63, %v1382_v9  ;;  %2056 = vmatpush.bf16.msra.mxu2 %v9512_v53 }
 0x12d   : > { %1790 = vmatpush.bf16.msra.mxu0 %v9496_v51  ;;  %9673 = vmatpush.bf16.msra.mxu3 %v9512_v53 }
 0x12e   : > { %v10617_v11 = vsel %vm1384_vm1, %v9709_v63, %v1383_v10  ;;  %1924 = vmatpush.bf16.msra.mxu1 %v9503_v55  ;;  %v9499_v63 = vld [vmem:[%s10391_s25] sm:$0xff] }
 0x12f   : > { %1359 = vadd.xlane.f32.xlu2 %v1335_v5  ;;  %14342 = vst [vmem:[#allocation8_spill] sm:$0xff] %v10617_v11 }
 0x130   : > { %2057 = vmatpush.bf16.msra.mxu2 %v9511_v56 }
 0x131   : > { %1791 = vmatpush.bf16.msra.mxu0 %v9495_v54  ;;  %9674 = vmatpush.bf16.msra.mxu3 %v9511_v56 }
 0x132   : > { %1925 = vmatpush.bf16.msra.mxu1 %v9502_v58  ;;  %v10726_v58 = vld [vmem:[%s14345_s6] ss:$0 sm:$0xff] }
 0x134   : > { %2058 = vmatpush.bf16.msra.mxu2 %v9510_v59 }
 0x135   : > { %1792 = vmatpush.bf16.msra.mxu0 %v9494_v57  ;;  %9675 = vmatpush.bf16.msra.mxu3 %v9510_v59 }
 0x136   : > { %1926 = vmatpush.bf16.msra.mxu1 %v9501_v61 }
 0x139   : > { %1793 = vmatpush.bf16.msra.mxu0 %v9493_v60 }
 0x192   : > { %v1356_v12 = vpop.xlane.xlu2 %1355  ;;  %v1352_v13 = vpop.xlane.xlu1 %1351 }
 0x193   : > { %v1348_v14 = vpop.xlane.xlu0 %1347  ;;  %v1390_v24 = vmul.f32 %v10617_v11, %v1356_v12  ;;  %v1388_v25 = vmul.f32 %v10617_v11, %v1352_v13 }
 0x194   : > { %v1386_v15 = vmul.f32 %v10617_v11, %v1348_v14 }
 0x195   : > { %v10639_v31 = vsub.f32 %v1333_v62, %v1390_v24  ;;  %v10641_v32 = vsub.f32 %v1331_v0, %v1388_v25  ;;  %v9509_v62 = vld [vmem:[%s10402_s26 + $0x10] sm:$0xff] }
 0x196   : > { %v10620_v16 = vsub.f32 %v1329_v1, %v1386_v15  ;;  %2059 = vmatpush.bf16.msra.mxu2 %v9509_v62  ;;  %9676 = vmatpush.bf16.msra.mxu3 %v9509_v62 }
 0x197   : > { %v1422_v36 = vmul.f32 %v10639_v31, %v10639_v31  ;;  %v1420_v37 = vmul.f32 %v10641_v32, %v10641_v32 }
 0x198   : > { %v1418_v17 = vmul.f32 %v10620_v16, %v10620_v16 }
 0x19a   : > { %1434 = vadd.xlane.f32.xlu0 %v1418_v17  ;;  %v1358_v18 = vpop.xlane.xlu2 %1357  ;;  %v1354_v19 = vpop.xlane.xlu1 %1353 }
 0x19b   : > { %v1389_v20 = vmul.f32 %v10617_v11, %v1354_v19  ;;  %v1350_v21 = vpop.xlane.xlu0 %1349  ;;  %v1391_v35 = vmul.f32 %v10617_v11, %v1358_v18 }
 0x19c   : > { %v1387_v22 = vmul.f32 %v10617_v11, %v1350_v21 }
 0x19d   : > { %v10626_v23 = vsub.f32 %v1332_v3, %v1389_v20  ;;  %v10653_v39 = vsub.f32 %v1334_v2, %v1391_v35  ;;  %v9492_v2 = vld [vmem:[%s14343_s15 + $0x8] sm:$0xff] }
 0x19e   : > { %v10630_v26 = vsub.f32 %v1330_v4, %v1387_v22  ;;  %v9500_v3 = vld [vmem:[%s10391_s25 + $0x8] sm:$0xff]  ;;  %1794 = vmatpush.bf16.msra.mxu0 %v9492_v2  ;;  %v10735_v2 = vld [vmem:[#allocation2 + $0x70] sm:$0xff] }
 0x19f   : > { %v1421_v27 = vmul.f32 %v10626_v23, %v10626_v23  ;;  %v1423_v41 = vmul.f32 %v10653_v39, %v10653_v39  ;;  %v9508_v4 = vld [vmem:[%s10402_s26 + $0x8] sm:$0xff]  ;;  %1927 = vmatpush.bf16.msra.mxu1 %v9500_v3 }
 0x1a0   : > { %v1419_v29 = vmul.f32 %v10630_v26, %v10630_v26  ;;  %2060 = vmatpush.bf16.msra.mxu2 %v9508_v4  ;;  %9677 = vmatpush.bf16.msra.mxu3 %v9508_v4 }
 0x1a1   : > { %1440 = vadd.xlane.f32.xlu2 %v1421_v27 }
 0x1a2   : > { %1361 = vadd.xlane.f32.xlu0 %v10634_v28  ;;  %1436 = vadd.xlane.f32.xlu1 %v1419_v29  ;;  %v1360_v30 = vpop.xlane.xlu2 %1359 }
 0x1a3   : > { %v1392_v33 = vmul.f32 %v10617_v11, %v1360_v30  ;;  %1795 = vmatpush.bf16.msra.mxu0 %v9491_v6  ;;  %1928 = vmatpush.bf16.msra.mxu1 %v9499_v63 }
 0x1a4   : > { %2061 = vmatpush.bf16.msra.mxu2 %v9507_v7  ;;  %9678 = vmatpush.bf16.msra.mxu3 %v9507_v7 }
 0x1a5   : > { %v10644_v34 = vsub.f32 %v1335_v5, %v1392_v33 }
 0x1a7   : > { %v1424_v38 = vmul.f32 %v10644_v34, %v10644_v34 }
 0x1a9   : > { %1446 = vadd.xlane.f32.xlu2 %v1424_v38 }
 0x1aa   : > { %1442 = vadd.xlane.f32.xlu0 %v1422_v36  ;;  %1438 = vadd.xlane.f32.xlu1 %v1420_v37 }
 0x1b1   : > { %1365 = vadd.xlane.f32.xlu2 %v10655_v40 }
 0x1b2   : > { %1444 = vadd.xlane.f32.xlu1 %v1423_v41 }
 0x1b9   : > { %1371 = vadd.xlane.f32.xlu2 %v10660_v42 }
 0x1ba   : > { %1363 = vadd.xlane.f32.xlu1 %v10662_v43 }
 0x1c2   : > { %1369 = vadd.xlane.f32.xlu1 %v10666_v44 }
 0x20d   : > { %v1435_v0 = vpop.xlane.xlu0 %1434 }
 0x20e   : > { %v1466_v1 = vmul.f32 %v1435_v0, %v10617_v11 }
 0x210   : > { %v1482_v5 = vadd.f32 1e-05, %v1466_v1 }
 0x212   : > { %9710 = vrsqrt.f32 %v1482_v5  ;;  %vm1504_vm3 = vweird.f32 %v1482_v5 }
 0x214   : > { %v1441_v8 = vpop.xlane.xlu2 %1440 }
 0x215   : > { %v1469_v9 = vmul.f32 %v1441_v8, %v10617_v11  ;;  %v1437_v10 = vpop.xlane.xlu1 %1436  ;;  %v1362_v12 = vpop.xlane.xlu0 %1361 }
 0x216   : > { %v1467_v13 = vmul.f32 %v1437_v10, %v10617_v11  ;;  %v1393_v14 = vmul.f32 %v10617_v11, %v1362_v12 }
 0x217   : > { %v10697_v15 = vadd.f32 1e-05, %v1469_v9 }
 0x218   : > { %v9711_v17 = vpop.eup %9710  ;;  %v1483_v18 = vadd.f32 1e-05, %v1467_v13  ;;  %v10700_v19 = vsub.f32 %v10634_v28, %v1393_v14 }
 0x219   : > { %v1499_v20 = vmul.f32 %v9711_v17, %v1482_v5  ;;  %9712 = vrsqrt.f32 %v10697_v15  ;;  %vm1505_vm2 = vweird.f32 %v9711_v17  ;;  %vm1534_vm8 = vweird.f32 %v10697_v15 }
 0x21a   : > { %9714 = vrsqrt.f32 %v1483_v18  ;;  %v1425_v21 = vmul.f32 %v10700_v19, %v10700_v19  ;;  %vm1506_vm4 = vmor %vm1504_vm3, %vm1505_vm2  ;;  %vm1514_vm5 = vweird.f32 %v1483_v18 }
 0x21b   : > { %v1500_v22 = vmul.f32 %v9711_v17, %v1499_v20 }
 0x21c   : > { %1448 = vadd.xlane.f32.xlu0 %v1425_v21  ;;  %v10705_v24 = vpop.xlane.xlu2 %1446 }
 0x21d   : > { %v1501_v25 = vmul.f32 0.5, %v1500_v22  ;;  %v1439_v27 = vpop.xlane.xlu1 %1438  ;;  %v1443_v29 = vpop.xlane.xlu0 %1442 }
 0x21e   : > { %v1468_v30 = vmul.f32 %v1439_v27, %v10617_v11  ;;  %v1470_v38 = vmul.f32 %v1443_v29, %v10617_v11 }
 0x21f   : > { %v10708_v33 = vpop.eup %9712  ;;  %v1502_v28 = vsub.f32 1.5, %v1501_v25 }
 0x220   : > { %v9715_v35 = vpop.eup %9714  ;;  %v1529_v36 = vmul.f32 %v10708_v33, %v10697_v15  ;;  %v1484_v37 = vadd.f32 1e-05, %v1468_v30  ;;  %v10716_v49 = vadd.f32 1e-05, %v1470_v38  ;;  %vm1535_vm9 = vweird.f32 %v10708_v33  ;;  %v10773_v30 = vld [vmem:[#allocation2 + $0x78] sm:$0xff] }
 0x221   : > { %v1503_v41 = vmul.f32 %v9711_v17, %v1502_v28  ;;  %v1509_v45 = vmul.f32 %v9715_v35, %v1483_v18  ;;  %vm1515_vm6 = vweird.f32 %v9715_v35  ;;  %vm10762_vm12 = vmor %vm1534_vm8, %vm1535_vm9 }
 0x222   : > { %9716 = vrsqrt.f32 %v1484_v37  ;;  %v1530_v48 = vmul.f32 %v10708_v33, %v1529_v36  ;;  %vm1516_vm7 = vmor %vm1514_vm5, %vm1515_vm6  ;;  %vm1524_vm10 = vweird.f32 %v1484_v37  ;;  %vm1544_vm0 = vweird.f32 %v10716_v49 }
 0x223   : > { %v1510_v47 = vmul.f32 %v9715_v35, %v1509_v45  ;;  %v1507_v51 = vsel %vm1506_vm4, %v9711_v17, %v1503_v41  ;;  %9718 = vrsqrt.f32 %v10716_v49 }
 0x224   : > { %1367 = vadd.xlane.f32.xlu0 %v10713_v46  ;;  %v1366_v50 = vpop.xlane.xlu2 %1365  ;;  %v1658_v59 = vmul.f32 %v1507_v51, %v10620_v16  ;;  %v1531_v60 = vmul.f32 0.5, %v1530_v48  ;;  %v10743_v16 = vld [vmem:[%s14347_s30] ss:$0 sm:$0xff] }
 0x225   : > { %v1511_v52 = vmul.f32 0.5, %v1510_v47  ;;  %v1395_v53 = vmul.f32 %v10617_v11, %v1366_v50  ;;  %v1445_v54 = vpop.xlane.xlu1 %1444 }
 0x226   : > { %v1471_v55 = vmul.f32 %v1445_v54, %v10617_v11  ;;  %v1677_v5 = vmul.f32 %v10726_v58, %v1658_v59 }
 0x227   : > { %v1512_v56 = vsub.f32 1.5, %v1511_v52  ;;  %v10733_v1 = vsub.f32 %v10655_v40, %v1395_v53  ;;  %v1532_v40 = vsub.f32 1.5, %v1531_v60  ;;  %v10791_v53 = vld [vmem:[#allocation2 + $0x28] sm:$0xff] }
 0x228   : > { %v9717_v57 = vpop.eup %9716  ;;  %v10730_v0 = vadd.f32 1e-05, %v1471_v55 }
 0x229   : > { %v1513_v61 = vmul.f32 %v9715_v35, %v1512_v56  ;;  %v1519_v62 = vmul.f32 %v9717_v57, %v1484_v37  ;;  %v1427_v7 = vmul.f32 %v10733_v1, %v10733_v1  ;;  %v10750_v9 = vpop.eup %9718  ;;  %vm1525_vm11 = vweird.f32 %v9717_v57 }
 0x22a   : > { %9720 = vrsqrt.f32 %v10730_v0  ;;  %v1533_v15 = vmul.f32 %v10708_v33, %v1532_v40  ;;  %v1539_v22 = vmul.f32 %v10750_v9, %v10716_v49  ;;  %vm1526_vm13 = vmor %vm1524_vm10, %vm1525_vm11  ;;  %vm1554_vm14 = vweird.f32 %v10730_v0 }
 0x22b   : > { %v1517_v3 = vsel %vm1516_vm7, %v9715_v35, %v1513_v61  ;;  %v1520_v4 = vmul.f32 %v9717_v57, %v1519_v62  ;;  %1452 = vadd.xlane.f32.xlu2 %v1427_v7  ;;  %vm1545_vm1 = vweird.f32 %v10750_v9  ;;  %v9524_v7 = vld [vmem:[%s14343_s15 + $0x78] sm:$0xff] }
 0x22c   : > { %v1659_v6 = vmul.f32 %v1517_v3, %v10630_v26  ;;  %1373 = vadd.xlane.f32.xlu0 %v10735_v2  ;;  %v1696_v26 = vadd.f32 %v10743_v16, %v1677_v5  ;;  %v1537_v35 = vsel %vm10762_vm12, %v10708_v33, %v1533_v15  ;;  %v1540_v36 = vmul.f32 %v10750_v9, %v1539_v22  ;;  %v1372_v45 = vpop.xlane.xlu2 %1371  ;;  %vm1546_vm3 = vmor %vm1544_vm0, %vm1545_vm1 }
 0x22d   : > { %v1521_v63 = vmul.f32 0.5, %v1520_v4  ;;  %v1364_v8 = vpop.xlane.xlu1 %1363  ;;  %v1661_v48 = vmul.f32 %v1537_v35, %v10626_v23  ;;  %v1398_v51 = vmul.f32 %v10617_v11, %v1372_v45  ;;  %2711 = vmatpush.bf16.msrb.mxu2 %v9524_v7 }
 0x22e   : > { %v1678_v10 = vmul.f32 %v10726_v58, %v1659_v6  ;;  %v1394_v12 = vmul.f32 %v10617_v11, %v1364_v8  ;;  %v1541_v33 = vmul.f32 0.5, %v1540_v36  ;;  %v9523_v8 = vld [vmem:[%s14343_s15 + $0x70] sm:$0xff] }
 0x22f   : > { %v1522_v13 = vsub.f32 1.5, %v1521_v63  ;;  %v1680_v55 = vmul.f32 %v10726_v58, %v1661_v48  ;;  %v10798_v23 = vsub.f32 %v10660_v42, %v1398_v51 }
 0x230   : > { %v1697_v14 = vadd.f32 %v10743_v16, %v1678_v10  ;;  %v10759_v17 = vsub.f32 %v10662_v43, %v1394_v12  ;;  %v9721_v18 = vpop.eup %9720  ;;  %v1542_v56 = vsub.f32 1.5, %v1541_v33  ;;  %v9522_v10 = vld [vmem:[%s14343_s15 + $0x68] sm:$0xff] }
 0x231   : > { %v1523_v21 = vmul.f32 %v9717_v57, %v1522_v13  ;;  %v1549_v27 = vmul.f32 %v9721_v18, %v10730_v0  ;;  %vm1555_vm15 = vweird.f32 %v9721_v18  ;;  %v1699_v59 = vadd.f32 %v10743_v16, %v1680_v55  ;;  %2712 = vmatpush.bf16.msrb.mxu2 %v9523_v8  ;;  %v9521_v13 = vld [vmem:[%s14343_s15 + $0x60] sm:$0xff] }
 0x232   : > { %v10768_v25 = vpack.c.bf16 %v1697_v14, %v1696_v26  ;;  %v1426_v43 = vmul.f32 %v10759_v17, %v10759_v17  ;;  %v1543_v60 = vmul.f32 %v10750_v9, %v1542_v56  ;;  %v1430_v61 = vmul.f32 %v10798_v23, %v10798_v23  ;;  %vm1556_vm2 = vmor %vm1554_vm14, %vm1555_vm15 }
 0x233   : > { %v1527_v29 = vsel %vm1526_vm13, %v9717_v57, %v1523_v21  ;;  %v1550_v28 = vmul.f32 %v9721_v18, %v1549_v27  ;;  %v9519_v21 = vld [vmem:[%s14343_s15 + $0x50] sm:$0xff] }
 0x234   : > { %1796 = vmatmul.bf16.vlgmr.msra.gmra.mxu0 %v10768_v25  ;;  %1929 = vmatmul.bf16.vlgmr.msra.gmra.mxu1 %v10768_v25  ;;  %v1660_v38 = vmul.f32 %v1527_v29, %v10641_v32  ;;  %v1547_v0 = vsel %vm1546_vm3, %v10750_v9, %v1543_v60 }
 0x235   : > { %1450 = vadd.xlane.f32.xlu1 %v1426_v43  ;;  %2062 = vmatmul.bf16.vlgmr.msra.gmra.mxu2 %v10768_v25  ;;  %v1370_v37 = vpop.xlane.xlu1 %1369  ;;  %v1551_v47 = vmul.f32 0.5, %v1550_v28  ;;  %v1662_v3 = vmul.f32 %v1547_v0, %v10639_v31  ;;  %v1472_v31 = vmul.f32 %v10705_v24, %v10617_v11  ;;  %v9520_v24 = vld [vmem:[%s14343_s15 + $0x58] sm:$0xff]  ;;  %v9518_v43 = vld [vmem:[%s14343_s15 + $0x48] sm:$0xff] }
 0x236   : > { %1375 = vadd.xlane.f32.xlu0 %v10773_v30  ;;  %v1397_v41 = vmul.f32 %v10617_v11, %v1370_v37  ;;  %v1679_v52 = vmul.f32 %v10726_v58, %v1660_v38  ;;  %2713 = vmatpush.bf16.msrb.mxu2 %v9522_v10 }
 0x237   : > { %v1552_v54 = vsub.f32 1.5, %v1551_v47  ;;  %v1681_v5 = vmul.f32 %v10726_v58, %v1662_v3 }
 0x238   : > { %v10787_v50 = vsub.f32 %v10666_v44, %v1397_v41  ;;  %v1698_v44 = vadd.f32 %v10743_v16, %v1679_v52  ;;  %v9517_v41 = vld [vmem:[%s14343_s15 + $0x40] sm:$0xff] }
 0x239   : > { %v1553_v57 = vmul.f32 %v9721_v18, %v1552_v54  ;;  %v1700_v40 = vadd.f32 %v10743_v16, %v1681_v5 }
 0x23a   : > { %v1429_v32 = vmul.f32 %v10787_v50, %v10787_v50  ;;  %v10808_v42 = vpack.c.bf16 %v1699_v59, %v1698_v44  ;;  %2714 = vmatpush.bf16.msrb.mxu2 %v9521_v13 }
 0x23b   : > { %v1557_v62 = vsel %vm1556_vm2, %v9721_v18, %v1553_v57 }
 0x23c   : > { %v1663_v49 = vmul.f32 %v1557_v62, %v10653_v39  ;;  %v1488_v39 = vadd.f32 1e-05, %v1472_v31 }
 0x23d   : > { %1377 = vadd.xlane.f32.xlu1 %v10791_v53 }
 0x23e   : > { %1456 = vadd.xlane.f32.xlu0 %v1429_v32  ;;  %v1682_v4 = vmul.f32 %v10726_v58, %v1663_v49  ;;  %9722 = vrsqrt.f32 %v1488_v39  ;;  %2715 = vmatpush.bf16.msrb.mxu2 %v9520_v24  ;;  %vm1564_vm4 = vweird.f32 %v1488_v39 }
 0x240   : > { %v1701_v6 = vadd.f32 %v10743_v16, %v1682_v4 }
 0x242   : > { %v10820_v63 = vpack.c.bf16 %v1701_v6, %v1700_v40  ;;  %2716 = vmatpush.bf16.msrb.mxu2 %v9519_v21 }
 0x244   : > { %1801 = vmatmul.bf16.gmra.mxu0 %v10808_v42  ;;  %1934 = vmatmul.bf16.gmra.mxu1 %v10808_v42  ;;  %v9723_v9 = vpop.eup %9722 }
 0x245   : > { %1458 = vadd.xlane.f32.xlu1 %v1430_v61  ;;  %2067 = vmatmul.bf16.gmra.mxu2 %v10808_v42  ;;  %v1559_v12 = vmul.f32 %v9723_v9, %v1488_v39  ;;  %vm1565_vm5 = vweird.f32 %v9723_v9 }
 0x246   : > { %2717 = vmatpush.bf16.msrb.mxu2 %v9518_v43  ;;  %vm1566_vm6 = vmor %vm1564_vm4, %vm1565_vm5 }
 0x247   : > { %v1560_v26 = vmul.f32 %v9723_v9, %v1559_v12 }
 0x249   : > { %v1561_v20 = vmul.f32 0.5, %v1560_v26 }
 0x24a   : > { %2718 = vmatpush.bf16.msrb.mxu2 %v9517_v41 }
 0x24b   : > { %v1562_v22 = vsub.f32 1.5, %v1561_v20 }
 0x24d   : > { %v1563_v36 = vmul.f32 %v9723_v9, %v1562_v22 }
 0x24f   : > { %v1567_v47 = vsel %vm1566_vm6, %v9723_v9, %v1563_v36 }
 0x254   : > { %1806 = vmatmul.bf16.gmra.mxu0 %v10820_v63  ;;  %1939 = vmatmul.bf16.gmra.mxu1 %v10820_v63 }
 0x255   : > { %2072 = vmatmul.bf16.gmra.mxu2 %v10820_v63 }
 0x28f   : > { %v1449_v14 = vpop.xlane.xlu0 %1448 }
 0x290   : > { %v1473_v18 = vmul.f32 %v1449_v14, %v10617_v11 }
 0x292   : > { %v1489_v15 = vadd.f32 1e-05, %v1473_v18 }
 0x294   : > { %9724 = vrsqrt.f32 %v1489_v15  ;;  %vm1574_vm8 = vweird.f32 %v1489_v15 }
 0x297   : > { %v1368_v27 = vpop.xlane.xlu0 %1367 }
 0x298   : > { %v1396_v29 = vmul.f32 %v10617_v11, %v1368_v27 }
 0x29a   : > { %v9725_v28 = vpop.eup %9724  ;;  %v10837_v35 = vsub.f32 %v10713_v46, %v1396_v29  ;;  %v1664_v46 = vmul.f32 %v1567_v47, %v10644_v34 }
 0x29b   : > { %v1569_v37 = vmul.f32 %v9725_v28, %v1489_v15  ;;  %vm1575_vm7 = vweird.f32 %v9725_v28 }
 0x29c   : > { %v1428_v38 = vmul.f32 %v10837_v35, %v10837_v35  ;;  %vm1576_vm9 = vmor %vm1574_vm8, %vm1575_vm7  ;;  %v1683_v60 = vmul.f32 %v10726_v58, %v1664_v46 }
 0x29d   : > { %v1570_v45 = vmul.f32 %v9725_v28, %v1569_v37 }
 0x29e   : > { %1454 = vadd.xlane.f32.xlu2 %v1428_v38  ;;  %v1453_v32 = vpop.xlane.xlu2 %1452  ;;  %v1702_v49 = vadd.f32 %v10743_v16, %v1683_v60 }
 0x29f   : > { %v1571_v48 = vmul.f32 0.5, %v1570_v45  ;;  %v1374_v33 = vpop.xlane.xlu0 %1373  ;;  %v1475_v56 = vmul.f32 %v1453_v32, %v10617_v11 }
 0x2a0   : > { %v1399_v51 = vmul.f32 %v10617_v11, %v1374_v33 }
 0x2a1   : > { %v1572_v52 = vsub.f32 1.5, %v1571_v48  ;;  %v1491_v59 = vadd.f32 1e-05, %v1475_v56 }
 0x2a2   : > { %v10845_v54 = vsub.f32 %v10735_v2, %v1399_v51 }
 0x2a3   : > { %v1573_v55 = vmul.f32 %v9725_v28, %v1572_v52  ;;  %9726 = vrsqrt.f32 %v1491_v59  ;;  %vm1594_vm10 = vweird.f32 %v1491_v59 }
 0x2a4   : > { %v1431_v44 = vmul.f32 %v10845_v54, %v10845_v54 }
 0x2a5   : > { %v1577_v57 = vsel %vm1576_vm9, %v9725_v28, %v1573_v55 }
 0x2a6   : > { %v1665_v61 = vmul.f32 %v1577_v57, %v10700_v19  ;;  %1460 = vadd.xlane.f32.xlu2 %v1431_v44 }
 0x2a8   : > { %v1684_v34 = vmul.f32 %v10726_v58, %v1665_v61  ;;  %v1451_v2 = vpop.xlane.xlu1 %1450 }
 0x2a9   : > { %v1474_v62 = vmul.f32 %v1451_v2, %v10617_v11  ;;  %v1376_v0 = vpop.xlane.xlu0 %1375  ;;  %v9727_v19 = vpop.eup %9726 }
 0x2aa   : > { %v1703_v3 = vadd.f32 %v10743_v16, %v1684_v34  ;;  %v1400_v4 = vmul.f32 %v10617_v11, %v1376_v0  ;;  %v1589_v31 = vmul.f32 %v9727_v19, %v1491_v59  ;;  %vm1595_vm11 = vweird.f32 %v9727_v19 }
 0x2ab   : > { %v1490_v5 = vadd.f32 1e-05, %v1474_v62  ;;  %vm1596_vm12 = vmor %vm1594_vm10, %vm1595_vm11 }
 0x2ac   : > { %v10857_v6 = vpack.c.bf16 %v1703_v3, %v1702_v49  ;;  %v10860_v40 = vsub.f32 %v10773_v30, %v1400_v4  ;;  %v1590_v7 = vmul.f32 %v9727_v19, %v1589_v31 }
 0x2ad   : > { %9728 = vrsqrt.f32 %v1490_v5  ;;  %vm1584_vm13 = vweird.f32 %v1490_v5 }
 0x2ae   : > { %1811 = vmatmul.bf16.gmra.mxu0 %v10857_v6  ;;  %1944 = vmatmul.bf16.gmra.mxu1 %v10857_v6  ;;  %v1432_v39 = vmul.f32 %v10860_v40, %v10860_v40  ;;  %v1591_v10 = vmul.f32 0.5, %v1590_v7 }
 0x2af   : > { %2077 = vmatmul.bf16.gmra.mxu2 %v10857_v6 }
 0x2b0   : > { %1462 = vadd.xlane.f32.xlu0 %v1432_v39  ;;  %v1378_v8 = vpop.xlane.xlu1 %1377  ;;  %v1592_v13 = vsub.f32 1.5, %v1591_v10 }
 0x2b1   : > { %v1401_v9 = vmul.f32 %v10617_v11, %v1378_v8 }
 0x2b2   : > { %v1593_v18 = vmul.f32 %v9727_v19, %v1592_v13 }
 0x2b3   : > { %v9729_v30 = vpop.eup %9728  ;;  %v10869_v12 = vsub.f32 %v10791_v53, %v1401_v9 }
 0x2b4   : > { %v1579_v26 = vmul.f32 %v9729_v30, %v1490_v5  ;;  %v1597_v15 = vsel %vm1596_vm12, %v9727_v19, %v1593_v18  ;;  %vm1585_vm14 = vweird.f32 %v9729_v30  ;;  %vm2167_vm12 = vcmask 261120  }
 0x2b5   : > { %v1433_v14 = vmul.f32 %v10869_v12, %v10869_v12  ;;  %v1667_v22 = vmul.f32 %v1597_v15, %v10733_v1  ;;  %vm1586_vm15 = vmor %vm1584_vm13, %vm1585_vm14  ;;  %v10888_v1 = vpop.f32.mrf.mxu1 }
 0x2b6   : > { %v1580_v24 = vmul.f32 %v9729_v30, %v1579_v26 }
 0x2b7   : > { %1464 = vadd.xlane.f32.xlu1 %v1433_v14  ;;  %v1686_v29 = vmul.f32 %v10726_v58, %v1667_v22 }
 0x2b8   : > { %v1581_v20 = vmul.f32 0.5, %v1580_v24  ;;  %v10894_v48 = vpop.f32.mrf.mxu2  ;;  %v1459_v51 = vpop.xlane.xlu1 %1458 }
 0x2b9   : > { %v1705_v36 = vadd.f32 %v10743_v16, %v1686_v29  ;;  %v1478_v46 = vmul.f32 %v1459_v51, %v10617_v11 }
 0x2ba   : > { %v1582_v21 = vsub.f32 1.5, %v1581_v20 }
 0x2bb   : > { %v1494_v44 = vadd.f32 1e-05, %v1478_v46 }
 0x2bc   : > { %v1583_v27 = vmul.f32 %v9729_v30, %v1582_v21 }
 0x2bd   : > { %v10890_v41 = vpop.f32.mrf.mxu1  ;;  %vm1624_vm6 = vweird.f32 %v1494_v44 }
 0x2be   : > { %v1587_v53 = vsel %vm1586_vm15, %v9729_v30, %v1583_v27 }
 0x2bf   : > { %v1666_v43 = vmul.f32 %v1587_v53, %v10759_v17  ;;  %2719 = vmatmul.bf16.vlgmr.msrb.gmra.mxu2 %v10768_v25  ;;  %v1457_v17 = vpop.xlane.xlu0 %1456 }
 0x2c0   : > { %v1477_v45 = vmul.f32 %v1457_v17, %v10617_v11  ;;  %v10899_v32 = vpop.f32.mrf.mxu2 }
 0x2c1   : > { %v1685_v28 = vmul.f32 %v10726_v58, %v1666_v43 }
 0x2c2   : > { %v1493_v47 = vadd.f32 1e-05, %v1477_v45 }
 0x2c3   : > { %v1704_v37 = vadd.f32 %v10743_v16, %v1685_v28 }
 0x2c4   : > { %9730 = vrsqrt.f32 %v1493_v47  ;;  %vm1614_vm0 = vweird.f32 %v1493_v47 }
 0x2c5   : > { %v10880_v38 = vpack.c.bf16 %v1705_v36, %v1704_v37  ;;  %v10896_v33 = vpop.f32.mrf.mxu1  ;;  %9732 = vrsqrt.f32 %v1494_v44 }
 0x2c7   : > { %1816 = vmatmul.bf16.gmra.mxu0 %v10880_v38  ;;  %1949 = vmatmul.bf16.gmra.mxu1 %v10880_v38 }
 0x2c8   : > { %2082 = vmatmul.bf16.vlgmr.msra.gmra.mxu3 %v10880_v38  ;;  %v10904_v2 = vpop.f32.mrf.mxu2 }
 0x2ca   : > { %v9731_v52 = vpop.eup %9730 }
 0x2cb   : > { %v1609_v55 = vmul.f32 %v9731_v52, %v1493_v47  ;;  %v10908_v3 = vpop.eup %9732  ;;  %vm1615_vm1 = vweird.f32 %v9731_v52 }
 0x2cc   : > { %v1619_v39 = vmul.f32 %v10908_v3, %v1494_v44  ;;  %vm1616_vm2 = vmor %vm1614_vm0, %vm1615_vm1  ;;  %vm1625_vm7 = vweird.f32 %v10908_v3 }
 0x2cd   : > { %v10901_v56 = vpop.f32.mrf.mxu1  ;;  %v1610_v57 = vmul.f32 %v9731_v52, %v1609_v55  ;;  %vm10930_vm10 = vmor %vm1624_vm6, %vm1625_vm7 }
 0x2ce   : > { %v1620_v30 = vmul.f32 %v10908_v3, %v1619_v39 }
 0x2cf   : > { %2724 = vmatmul.bf16.gmra.mxu2 %v10808_v42  ;;  %v1611_v34 = vmul.f32 0.5, %v1610_v57 }
 0x2d0   : > { %v10912_v9 = vpop.f32.mrf.mxu2  ;;  %v1621_v21 = vmul.f32 0.5, %v1620_v30 }
 0x2d1   : > { %v1612_v62 = vsub.f32 1.5, %v1611_v34 }
 0x2d2   : > { %v1622_v37 = vsub.f32 1.5, %v1621_v21 }
 0x2d3   : > { %v1613_v31 = vmul.f32 %v9731_v52, %v1612_v62  ;;  %v10939_v62 = vld [vmem:[%s10397_s5] ss:$0 sm:$0xff] }
 0x2d4   : > { %v1623_v44 = vmul.f32 %v10908_v3, %v1622_v37  ;;  %v1936_v57 = vadd.f32 %v10939_v62, %v10896_v33 }
 0x2d5   : > { %v10906_v0 = vpop.f32.mrf.mxu1  ;;  %v1617_v10 = vsel %vm1616_vm2, %v9731_v52, %v1613_v31 }
 0x2d6   : > { %v1669_v15 = vmul.f32 %v1617_v10, %v10787_v50 }
 0x2d8   : > { %v1688_v28 = vmul.f32 %v10726_v58, %v1669_v15  ;;  %v10923_v50 = vpop.f32.mrf.mxu2 }
 0x2dd   : > { %v1942_v26 = vpop.f32.mrf.mxu1 }
 0x2df   : > { %2729 = vmatmul.bf16.gmra.mxu2 %v10820_v63 }
 0x2e0   : > { %v10954_v10 = vpop.f32.mrf.mxu2 }
 0x2ef   : > { %2734 = vmatmul.bf16.gmra.mxu2 %v10857_v6 }
 0x2ff   : > { %2739 = vmatmul.bf16.gmra.mxu2 %v10880_v38 }
 0x311   : > { %v1455_v59 = vpop.xlane.xlu2 %1454 }
 0x312   : > { %v1476_v60 = vmul.f32 %v1455_v59, %v10617_v11 }
 0x314   : > { %v1492_v61 = vadd.f32 1e-05, %v1476_v60 }
 0x316   : > { %9734 = vrsqrt.f32 %v1492_v61  ;;  %vm1604_vm4 = vweird.f32 %v1492_v61 }
 0x319   : > { %v1461_v49 = vpop.xlane.xlu2 %1460 }
 0x31a   : > { %v1479_v4 = vmul.f32 %v1461_v49, %v10617_v11 }
 0x31c   : > { %v9735_v5 = vpop.eup %9734  ;;  %v1495_v19 = vadd.f32 1e-05, %v1479_v4 }
 0x31d   : > { %v1599_v7 = vmul.f32 %v9735_v5, %v1492_v61  ;;  %vm1605_vm3 = vweird.f32 %v9735_v5 }
 0x31e   : > { %9736 = vrsqrt.f32 %v1495_v19  ;;  %vm1606_vm5 = vmor %vm1604_vm4, %vm1605_vm3  ;;  %vm1634_vm8 = vweird.f32 %v1495_v19  ;;  %vm2221_vm3 = vcmask 523264  }
 0x31f   : > { %v1600_v8 = vmul.f32 %v9735_v5, %v1599_v7 }
 0x321   : > { %v1601_v13 = vmul.f32 0.5, %v1600_v8 }
 0x323   : > { %v1602_v14 = vsub.f32 1.5, %v1601_v13  ;;  %v1463_v18 = vpop.xlane.xlu0 %1462 }
 0x324   : > { %v9737_v24 = vpop.eup %9736  ;;  %v1480_v20 = vmul.f32 %v1463_v18, %v10617_v11 }
 0x325   : > { %v1603_v22 = vmul.f32 %v9735_v5, %v1602_v14  ;;  %v1629_v27 = vmul.f32 %v9737_v24, %v1495_v19  ;;  %vm1635_vm9 = vweird.f32 %v9737_v24 }
 0x326   : > { %v10917_v53 = vadd.f32 1e-05, %v1480_v20  ;;  %vm1636_vm11 = vmor %vm1634_vm8, %vm1635_vm9  ;;  %v1941_v20 = vadd.f32 %v10939_v62, %v10906_v0 }
 0x327   : > { %v1607_v29 = vsel %vm1606_vm5, %v9735_v5, %v1603_v22  ;;  %v1630_v43 = vmul.f32 %v9737_v24, %v1629_v27  ;;  %v1627_v5 = vsel %vm10930_vm10, %v10908_v3, %v1623_v44  ;;  %v1943_v3 = vadd.f32 %v10939_v62, %v1942_v26 }
 0x328   : > { %v1668_v36 = vmul.f32 %v1607_v29, %v10837_v35  ;;  %9738 = vrsqrt.f32 %v10917_v53  ;;  %v1707_v35 = vadd.f32 %v10743_v16, %v1688_v28  ;;  %v1670_v8 = vmul.f32 %v1627_v5, %v10798_v23 }
 0x329   : > { %v1631_v17 = vmul.f32 0.5, %v1630_v43  ;;  %v1975_v23 = vpack.c.bf16 %v1943_v3, %v1943_v3  ;;  %v1974_v26 = vpack.c.bf16 %v1941_v20, %v1941_v20  ;;  %vm1644_vm13 = vweird.f32 %v10917_v53  ;;  %v10996_v3 = vld [vmem:[%s10408_s27] ss:$0 sm:$0xff] }
 0x32a   : > { %v1687_v45 = vmul.f32 %v10726_v58, %v1668_v36  ;;  %v1465_v47 = vpop.xlane.xlu1 %1464  ;;  %v1972_v5 = vpack.c.bf16 %v1936_v57, %v1936_v57 }
 0x32b   : > { %v1632_v51 = vsub.f32 1.5, %v1631_v17  ;;  %v1481_v52 = vmul.f32 %v1465_v47, %v10617_v11  ;;  %v1945_v46 = vpop.f32.mrf.mxu1  ;;  %v10965_v17 = vpop.f32.mrf.mxu0 }
 0x32c   : > { %v1706_v55 = vadd.f32 %v10743_v16, %v1687_v45  ;;  %v1946_v31 = vadd.f32 %v10939_v62, %v1945_v46 }
 0x32d   : > { %v1633_v59 = vmul.f32 %v9737_v24, %v1632_v51  ;;  %v1497_v60 = vadd.f32 1e-05, %v1481_v52  ;;  %v1938_v51 = vadd.f32 %v10939_v62, %v10901_v56  ;;  %v2160_v52 = vunpack.c.l.b16 %v1975_v23 }
 0x32e   : > { %v10934_v61 = vpop.eup %9738  ;;  %v10936_v34 = vpack.c.bf16 %v1707_v35, %v1706_v55  ;;  %v1976_v18 = vpack.c.bf16 %v1946_v31, %v1946_v31  ;;  %v1933_v31 = vadd.f32 %v10939_v62, %v10890_v41 }
 0x32f   : > { %v1637_v49 = vsel %vm1636_vm11, %v9737_v24, %v1633_v59  ;;  %v1639_v4 = vmul.f32 %v10934_v61, %v10917_v53  ;;  %9740 = vrsqrt.f32 %v1497_v60  ;;  %vm1645_vm14 = vweird.f32 %v10934_v61 }
 0x330   : > { %1821 = vmatmul.bf16.gmra.mxu0 %v10936_v34  ;;  %1954 = vmatmul.bf16.gmra.mxu1 %v10936_v34  ;;  %v1671_v39 = vmul.f32 %v1637_v49, %v10845_v54  ;;  %v1689_v54 = vmul.f32 %v10726_v58, %v1670_v8  ;;  %v2161_v29 = vunpack.c.l.b16 %v1976_v18  ;;  %vm1654_vm15 = vweird.f32 %v1497_v60  ;;  %vm10974_vm1 = vmor %vm1644_vm13, %vm1645_vm14 }
 0x331   : > { %v1640_v19 = vmul.f32 %v10934_v61, %v1639_v4  ;;  %2087 = vmatmul.bf16.gmra.mxu3 %v10936_v34  ;;  %2744 = vmatmul.bf16.gmra.mxu2 %v10936_v34  ;;  %v2159_v59 = vunpack.c.l.b16 %v1974_v26  ;;  %v1973_v56 = vpack.c.bf16 %v1938_v51, %v1938_v51 }
 0x332   : > { %v1690_v24 = vmul.f32 %v10726_v58, %v1671_v39  ;;  %v1708_v0 = vadd.f32 %v10743_v16, %v1689_v54  ;;  %v2078_v47 = vpop.f32.mrf.mxu2 }
 0x333   : > { %v1947_v7 = vpop.f32.mrf.mxu1  ;;  %v1641_v14 = vmul.f32 0.5, %v1640_v19  ;;  %v2165_v4 = vpack.c.b16 %v2160_v52, %v2159_v59  ;;  %v2158_v39 = vunpack.c.l.b16 %v1973_v56  ;;  %v1799_v8 = vpop.f32.mrf.mxu0  ;;  %v2079_v20 = vadd.f32 %v10996_v3, %v2078_v47 }
 0x334   : > { %v1948_v30 = vadd.f32 %v10939_v62, %v1947_v7  ;;  %v1709_v28 = vadd.f32 %v10743_v16, %v1690_v24 }
 0x335   : > { %v9741_v13 = vpop.eup %9740  ;;  %v1642_v27 = vsub.f32 1.5, %v1641_v14  ;;  %v2187_v7 = vsel %vm2167_vm12, %v2165_v4, 0 }
 0x336   : > { %v1649_v15 = vmul.f32 %v9741_v13, %v1497_v60  ;;  %v1977_v21 = vpack.c.bf16 %v1948_v30, %v1948_v30  ;;  %vm1655_vm0 = vweird.f32 %v9741_v13  ;;  %v10972_v53 = vpack.c.bf16 %v1709_v28, %v1708_v0  ;;  %v11011_v28 = vld [vmem:[%s14354_s10] ss:$0 sm:$0xff] }
 0x337   : > { %v1643_v46 = vmul.f32 %v10934_v61, %v1642_v27  ;;  %vm1656_vm2 = vmor %vm1654_vm15, %vm1655_vm0  ;;  %v2069_v0 = vadd.f32 %v10996_v3, %v10904_v2  ;;  %v1798_v51 = vadd.f32 %v11011_v28, %v10965_v17 }
 0x338   : > { %v1650_v22 = vmul.f32 %v9741_v13, %v1649_v15  ;;  %v2162_v43 = vunpack.c.l.b16 %v1977_v21 }
 0x339   : > { %v1647_v49 = vsel %vm10974_vm1, %v10934_v61, %v1643_v46  ;;  %v2105_v59 = vpack.c.bf16 %v2069_v0, %v2069_v0 }
 0x33a   : > { %v1651_v36 = vmul.f32 0.5, %v1650_v22  ;;  %v2166_v37 = vpack.c.b16 %v2162_v43, %v2161_v29  ;;  %v1672_v19 = vmul.f32 %v1647_v49, %v10860_v40  ;;  %v2080_v61 = vpop.f32.mrf.mxu2  ;;  %v1971_v40 = vpack.c.bf16 %v1933_v31, %v1933_v31 }
 0x33b   : > { %v2081_v41 = vadd.f32 %v10996_v3, %v2080_v61  ;;  %v2074_v29 = vadd.f32 %v10996_v3, %v10923_v50  ;;  %v2109_v43 = vpack.c.bf16 %v2079_v20, %v2079_v20  ;;  %v1800_v50 = vadd.f32 %v11011_v28, %v1799_v8 }
 0x33c   : > { %v1652_v45 = vsub.f32 1.5, %v1651_v36  ;;  %v2190_v35 = vsel %vm2167_vm12, %v2166_v37, 0  ;;  %v1691_v14 = vmul.f32 %v10726_v58, %v1672_v19  ;;  %v2156_v54 = vunpack.c.l.b16 %v1971_v40  ;;  %v1802_v36 = vpop.f32.mrf.mxu0 }
 0x33d   : > { %2196 = vmatpush.bf16.xpose.msrb.mxu3 %v2190_v35  ;;  %v2110_v22 = vpack.c.bf16 %v2081_v41, %v2081_v41  ;;  %v2328_v47 = vunpack.c.l.b16 %v2109_v43  ;;  %v1838_v57 = vpack.c.bf16 %v1800_v50, %v1800_v50 }
 0x33e   : > { %v1653_v44 = vmul.f32 %v9741_v13, %v1652_v45  ;;  %v1710_v21 = vadd.f32 %v10743_v16, %v1691_v14  ;;  %v2107_v45 = vpack.c.bf16 %v2074_v29, %v2074_v29 }
 0x33f   : > { %v2329_v26 = vunpack.c.l.b16 %v2110_v22 }
 0x340   : > { %v1657_v60 = vsel %vm1656_vm2, %v9741_v13, %v1653_v44  ;;  %1826 = vmatmul.bf16.gmra.mxu0 %v10972_v53  ;;  %1959 = vmatmul.bf16.gmra.mxu1 %v10972_v53  ;;  %v1931_v13 = vadd.f32 %v10939_v62, %v10888_v1  ;;  %v2076_v1 = vadd.f32 %v10996_v3, %v10954_v10  ;;  %v2326_v2 = vunpack.c.l.b16 %v2107_v45 }
 0x341   : > { %2092 = vmatmul.bf16.gmra.mxu3 %v10972_v53  ;;  %2749 = vmatmul.bf16.gmra.mxu2 %v10972_v53  ;;  %v1673_v33 = vmul.f32 %v1657_v60, %v10869_v12  ;;  %v2157_v12 = vunpack.c.l.b16 %v1972_v5  ;;  %v2333_v35 = vpack.c.b16 %v2329_v26, %v2328_v47  ;;  %v2064_v44 = vadd.f32 %v10996_v3, %v10894_v48 }
 0x342   : > { %v1970_v15 = vpack.c.bf16 %v1931_v13, %v1931_v13  ;;  %v2108_v10 = vpack.c.bf16 %v2076_v1, %v2076_v1  ;;  %v1837_v60 = vpack.c.bf16 %v1798_v51, %v1798_v51  ;;  %v2324_v5 = vunpack.c.l.b16 %v2105_v59 }
 0x343   : > { %v1692_v30 = vmul.f32 %v10726_v58, %v1673_v33  ;;  %v2164_v18 = vpack.c.b16 %v2158_v39, %v2157_v12  ;;  %v2103_v33 = vpack.c.bf16 %v2064_v44, %v2064_v44  ;;  %v1803_v13 = vadd.f32 %v11011_v28, %v1802_v36 }
 0x344   : > { %v2155_v27 = vunpack.c.l.b16 %v1970_v15  ;;  %v2327_v46 = vunpack.c.l.b16 %v2108_v10  ;;  %v1804_v4 = vpop.f32.mrf.mxu0  ;;  %v2135_v19 = vunpack.c.l.b16 %v1837_v60  ;;  %v11039_v0 = vpop.f32.mrf.mxu1 }
 0x345   : > { %2197 = vmatpush.bf16.xpose.msrb.mxu3 %v2187_v7  ;;  %v1711_v24 = vadd.f32 %v10743_v16, %v1692_v30  ;;  %v2184_v23 = vsel %vm2167_vm12, %v2164_v18, 0  ;;  %v2071_v16 = vadd.f32 %v10996_v3, %v10912_v9  ;;  %v2066_v9 = vadd.f32 %v10996_v3, %v10899_v32 }
 0x346   : > { %v2163_v37 = vpack.c.b16 %v2156_v54, %v2155_v27  ;;  %v2332_v17 = vpack.c.b16 %v2327_v46, %v2326_v2  ;;  %v2136_v32 = vunpack.c.l.b16 %v1838_v57  ;;  %v2322_v7 = vunpack.c.l.b16 %v2103_v33 }
 0x347   : > { %v11006_v58 = vpack.c.bf16 %v1711_v24, %v1710_v21  ;;  %v2106_v52 = vpack.c.bf16 %v2071_v16, %v2071_v16  ;;  %v2104_v56 = vpack.c.bf16 %v2066_v9, %v2066_v9  ;;  %v1805_v30 = vadd.f32 %v11011_v28, %v1804_v4 }
 0x348   : > { %v2181_v55 = vsel %vm2167_vm12, %v2163_v37, 0  ;;  %v2143_v8 = vpack.c.b16 %v2136_v32, %v2135_v19  ;;  %v1839_v14 = vpack.c.bf16 %v1803_v13, %v1803_v13 }
 0x349   : > { %v2325_v49 = vunpack.c.l.b16 %v2106_v52  ;;  %v2323_v31 = vunpack.c.l.b16 %v2104_v56  ;;  %v1840_v12 = vpack.c.bf16 %v1805_v30, %v1805_v30 }
 0x34a   : > { %v2137_v41 = vunpack.c.l.b16 %v1839_v14 }
 0x34b   : > { %v2331_v39 = vpack.c.b16 %v2325_v49, %v2324_v5  ;;  %v2330_v48 = vpack.c.b16 %v2323_v31, %v2322_v7  ;;  %v2138_v40 = vunpack.c.l.b16 %v1840_v12  ;;  %v2083_v45 = vpop.f32.mrf.mxu3 }
 0x34c   : > { %v1807_v61 = vpop.f32.mrf.mxu0  ;;  %v1952_v47 = vpop.f32.mrf.mxu1 }
 0x34d   : > { %2198 = vmatpush.bf16.xpose.msrb.mxu3 %v2184_v23  ;;  %v2144_v24 = vpack.c.b16 %v2138_v40, %v2137_v41  ;;  %v1808_v20 = vadd.f32 %v11011_v28, %v1807_v61 }
 0x34f   : > { %v1841_v1 = vpack.c.bf16 %v1808_v20, %v1808_v20 }
 0x350   : > { %1831 = vmatmul.bf16.gmra.mxu0 %v11006_v58  ;;  %1964 = vmatmul.bf16.gmra.mxu1 %v11006_v58 }
 0x351   : > { %2097 = vmatmul.bf16.gmra.mxu3 %v11006_v58  ;;  %2754 = vmatmul.bf16.gmra.mxu2 %v11006_v58  ;;  %v2139_v23 = vunpack.c.l.b16 %v1841_v1 }
 0x353   : > { %v2085_v51 = vpop.f32.mrf.mxu3 }
 0x354   : > { %v1809_v18 = vpop.f32.mrf.mxu0 }
 0x355   : > { %2199 = vmatpush.bf16.xpose.msrb.mxu3 %v2181_v55  ;;  %v1810_v15 = vadd.f32 %v11011_v28, %v1809_v18 }
 0x357   : > { %v1842_v54 = vpack.c.bf16 %v1810_v15, %v1810_v15 }
 0x359   : > { %v2140_v22 = vunpack.c.l.b16 %v1842_v54 }
 0x35b   : > { %v2145_v27 = vpack.c.b16 %v2140_v22, %v2139_v23 }
 0x35c   : > { %v1812_v21 = vpop.f32.mrf.mxu0 }
 0x35d   : > { %2354 = vmatpush.bf16.msra.mxu3 %v2333_v35  ;;  %v1813_v36 = vadd.f32 %v11011_v28, %v1812_v21 }
 0x35f   : > { %v1843_v10 = vpack.c.bf16 %v1813_v36, %v1813_v36  ;;  %v11057_v36 = vld [vmem:[%s10413_s7] sm:$0xff] }
 0x361   : > { %2355 = vmatpush.bf16.msra.mxu3 %v2332_v17  ;;  %v2141_v37 = vunpack.c.l.b16 %v1843_v10 }
 0x362   : > { %8592 = vmatmul.msk.bf16.vlgmr.msrb.gmra.mxu3 %vm2167_vm12, %v2143_v8 }
 0x364   : > { %v1814_v29 = vpop.f32.mrf.mxu0 }
 0x365   : > { %2356 = vmatpush.bf16.msra.mxu3 %v2331_v39  ;;  %v1815_v43 = vadd.f32 %v11011_v28, %v1814_v29 }
 0x367   : > { %v1844_v16 = vpack.c.bf16 %v1815_v43, %v1815_v43 }
 0x369   : > { %2357 = vmatpush.bf16.msra.mxu3 %v2330_v48  ;;  %v2142_v26 = vunpack.c.l.b16 %v1844_v16 }
 0x36b   : > { %v2146_v50 = vpack.c.b16 %v2142_v26, %v2141_v37  ;;  %v2086_v26 = vadd.f32 %v10996_v3, %v2085_v51 }
 0x36c   : > { %v11045_v19 = vpop.f32.mrf.mxu0 }
 0x372   : > { %8593 = vmatmul.msk.bf16.gmra.mxu3 %vm2167_vm12, %v2144_v24 }
 0x374   : > { %v1819_v10 = vpop.f32.mrf.mxu0 }
 0x382   : > { %8594 = vmatmul.msk.bf16.gmra.mxu3 %vm2167_vm12, %v2145_v27 }
 0x392   : > { %8595 = vmatmul.msk.bf16.gmra.mxu3 %vm2167_vm12, %v2146_v50 }
 0x3ad   : > { %v1955_v9 = vpop.f32.mrf.mxu1 }
 0x3ae   : > { %v1956_v54 = vadd.f32 %v10939_v62, %v1955_v9  ;;  %v2084_v9 = vadd.f32 %v10996_v3, %v2083_v45 }
 0x3b4   : > { %v2088_v52 = vpop.f32.mrf.mxu3 }
 0x3b5   : > { %v1957_v46 = vpop.f32.mrf.mxu1  ;;  %v2089_v22 = vadd.f32 %v10996_v3, %v2088_v52 }
 0x3b6   : > { %v1958_v41 = vadd.f32 %v10939_v62, %v1957_v46 }
 0x3b8   : > { %v1981_v43 = vpack.c.bf16 %v1958_v41, %v1958_v41  ;;  %v1818_v41 = vadd.f32 %v11011_v28, %v11045_v19 }
 0x3bc   : > { %v2090_v35 = vpop.f32.mrf.mxu3 }
 0x3bd   : > { %v1960_v55 = vpop.f32.mrf.mxu1  ;;  %v2091_v15 = vadd.f32 %v10996_v3, %v2090_v35  ;;  %v1980_v35 = vpack.c.bf16 %v1956_v54, %v1956_v54 }
 0x3be   : > { %v1961_v32 = vadd.f32 %v10939_v62, %v1960_v55 }
 0x3bf   : > { %v2114_v37 = vpack.c.bf16 %v2091_v15, %v2091_v15  ;;  %v2409_v45 = vunpack.c.l.b16 %v1980_v35 }
 0x3c0   : > { %v1982_v30 = vpack.c.bf16 %v1961_v32, %v1961_v32 }
 0x3c2   : > { %v2411_v1 = vunpack.c.l.b16 %v1982_v30 }
 0x3c4   : > { %v2093_v44 = vpop.f32.mrf.mxu3 }
 0x3c5   : > { %v1962_v57 = vpop.f32.mrf.mxu1  ;;  %v2094_v12 = vadd.f32 %v10996_v3, %v2093_v44  ;;  %v2113_v44 = vpack.c.bf16 %v2089_v22, %v2089_v22 }
 0x3c6   : > { %v1963_v17 = vadd.f32 %v10939_v62, %v1962_v57 }
 0x3c7   : > { %v2115_v23 = vpack.c.bf16 %v2094_v12, %v2094_v12 }
 0x3c8   : > { %v1983_v39 = vpack.c.bf16 %v1963_v17, %v1963_v17 }
 0x3c9   : > { %v2576_v52 = vunpack.c.l.b16 %v2115_v23 }
 0x3ca   : > { %v2412_v18 = vunpack.c.l.b16 %v1983_v39  ;;  %v1822_v39 = vpop.f32.mrf.mxu0 }
 0x3cb   : > { %v1823_v35 = vadd.f32 %v11011_v28, %v1822_v39 }
 0x3cc   : > { %v2095_v59 = vpop.f32.mrf.mxu3  ;;  %v2417_v16 = vpack.c.b16 %v2412_v18, %v2411_v1  ;;  %v11083_v18 = vld [vmem:[%s10413_s7 + $0x10] sm:$0xff]  ;;  %v1845_v1 = vpack.c.bf16 %v1818_v41, %v1818_v41 }
 0x3cd   : > { %v1965_v2 = vpop.f32.mrf.mxu1  ;;  %v2096_v48 = vadd.f32 %v10996_v3, %v2095_v59  ;;  %v1953_v59 = vadd.f32 %v10939_v62, %v1952_v47  ;;  %v11071_v47 = vld [vmem:[%s10413_s7 + $0x8] sm:$0xff] }
 0x3ce   : > { %v1966_v60 = vadd.f32 %v10939_v62, %v1965_v2  ;;  %v2410_v2 = vunpack.c.l.b16 %v1981_v43  ;;  %v2438_v51 = vsel %vm2167_vm12, %v2417_v16, 0  ;;  %v2387_v19 = vunpack.c.l.b16 %v1845_v1 }
 0x3cf   : > { %v2116_v20 = vpack.c.bf16 %v2096_v48, %v2096_v48  ;;  %v1979_v32 = vpack.c.bf16 %v1953_v59, %v1953_v59 }
 0x3d0   : > { %v1984_v4 = vpack.c.bf16 %v1966_v60, %v1966_v60  ;;  %v2112_v60 = vpack.c.bf16 %v2086_v26, %v2086_v26 }
 0x3d1   : > { %v2577_v50 = vunpack.c.l.b16 %v2116_v20 }
 0x3d2   : > { %v2413_v7 = vunpack.c.l.b16 %v1984_v4  ;;  %v2111_v4 = vpack.c.bf16 %v2084_v9, %v2084_v9  ;;  %v9539_v9 = vld [vmem:[%s10402_s26 + $0x70] sm:$0xff] }
 0x3d3   : > { %v2582_v17 = vpack.c.b16 %v2577_v50, %v2576_v52 }
 0x3d4   : > { %v2098_v56 = vpop.f32.mrf.mxu3  ;;  %v2572_v30 = vunpack.c.l.b16 %v2111_v4 }
 0x3d5   : > { %v1967_v49 = vpop.f32.mrf.mxu1  ;;  %v2099_v31 = vadd.f32 %v10996_v3, %v2098_v56  ;;  %v2575_v56 = vunpack.c.l.b16 %v2114_v37 }
 0x3d6   : > { %v1968_v33 = vadd.f32 %v10939_v62, %v1967_v49 }
 0x3d7   : > { %v2117_v14 = vpack.c.bf16 %v2099_v31, %v2099_v31  ;;  %v2573_v31 = vunpack.c.l.b16 %v2112_v60 }
 0x3d8   : > { %v1985_v5 = vpack.c.bf16 %v1968_v33, %v1968_v33  ;;  %v2574_v33 = vunpack.c.l.b16 %v2113_v44 }
 0x3d9   : > { %v2578_v27 = vunpack.c.l.b16 %v2117_v14  ;;  %v2580_v12 = vpack.c.b16 %v2573_v31, %v2572_v30  ;;  %v9536_v31 = vld [vmem:[%s10402_s26 + $0x58] sm:$0xff]  ;;  %v9535_v30 = vld [vmem:[%s10402_s26 + $0x50] sm:$0xff] }
 0x3da   : > { %v2414_v8 = vunpack.c.l.b16 %v1985_v5  ;;  %v2416_v5 = vpack.c.b16 %v2410_v2, %v2409_v45  ;;  %v1847_v2 = vpack.c.bf16 %v1823_v35, %v1823_v35  ;;  %v9537_v45 = vld [vmem:[%s10402_s26 + $0x60] sm:$0xff] }
 0x3dc   : > { %v2100_v61 = vpop.f32.mrf.mxu3  ;;  %v2418_v13 = vpack.c.b16 %v2414_v8, %v2413_v7  ;;  %v2581_v7 = vpack.c.b16 %v2575_v56, %v2574_v33 }
 0x3dd   : > { %v2101_v40 = vadd.f32 %v10996_v3, %v2100_v61  ;;  %v1951_v3 = vadd.f32 %v10939_v62, %v11039_v0  ;;  %v2408_v62 = vunpack.c.l.b16 %v1979_v32  ;;  %v2435_v0 = vsel %vm2167_vm12, %v2416_v5, 0 }
 0x3de   : > { %v2441_v24 = vsel %vm2167_vm12, %v2418_v13, 0 }
 0x3df   : > { %v2118_v21 = vpack.c.bf16 %v2101_v40, %v2101_v40  ;;  %2447 = vmatpush.bf16.xpose.msrb.mxu0 %v2441_v24  ;;  %v1978_v8 = vpack.c.bf16 %v1951_v3, %v1951_v3  ;;  %v1820_v40 = vadd.f32 %v11011_v28, %v1819_v10  ;;  %v11114_v3 = vld [vmem:[%s10413_s7 + $0x28] sm:$0xff] }
 0x3e1   : > { %v2579_v29 = vunpack.c.l.b16 %v2118_v21  ;;  %v2407_v14 = vunpack.c.l.b16 %v1978_v8  ;;  %v1846_v15 = vpack.c.bf16 %v1820_v40, %v1820_v40  ;;  %v1824_v21 = vpop.f32.mrf.mxu0  ;;  %v11127_v8 = vld [vmem:[%s10413_s7 + $0x30] sm:$0xff]  ;;  %v9534_v40 = vld [vmem:[%s10402_s26 + $0x48] sm:$0xff] }
 0x3e2   : > { %v1825_v50 = vadd.f32 %v11011_v28, %v1824_v21 }
 0x3e3   : > { %v2583_v46 = vpack.c.b16 %v2579_v29, %v2578_v27  ;;  %v2415_v24 = vpack.c.b16 %v2408_v62, %v2407_v14  ;;  %v2388_v27 = vunpack.c.l.b16 %v1846_v15  ;;  %v11092_v29 = vld [vmem:[%s10413_s7 + $0x18] sm:$0xff] }
 0x3e4   : > { %v1848_v44 = vpack.c.bf16 %v1825_v50, %v1825_v50  ;;  %v11137_v15 = vld [vmem:[%s10413_s7 + $0x38] sm:$0xff] }
 0x3e5   : > { %v2201_v55 = vpop.f32.mrf.mxu3  ;;  %2604 = vmatpush.bf16.msrb.mxu1 %v2583_v46  ;;  %v2432_v22 = vsel %vm2167_vm12, %v2415_v24, 0  ;;  %v2395_v43 = vpack.c.b16 %v2388_v27, %v2387_v19  ;;  %v9540_v46 = vld [vmem:[%s10402_s26 + $0x78] sm:$0xff] }
 0x3e6   : > { %v11062_v57 = vadd.f32 %v2201_v55, %v11057_v36  ;;  %v11104_v55 = vld [vmem:[%s10413_s7 + $0x20] sm:$0xff]  ;;  %v2390_v56 = vunpack.c.l.b16 %v1848_v44 }
 0x3e7   : > { %2448 = vmatpush.bf16.xpose.msrb.mxu0 %v2438_v51  ;;  %v9538_v51 = vld [vmem:[%s10402_s26 + $0x68] sm:$0xff] }
 0x3e8   : > { %v2222_v49 = vsel %vm2221_vm3, %v11062_v57, -inf }
 0x3e9   : > { %2223 = vmax.xlane.f32.xlu2 %v2222_v49  ;;  %2605 = vmatpush.bf16.msrb.mxu1 %v2582_v17  ;;  %v1827_v26 = vpop.f32.mrf.mxu0  ;;  %v2389_v17 = vunpack.c.l.b16 %v1847_v2 }
 0x3eb   : > { %v2396_v33 = vpack.c.b16 %v2390_v56, %v2389_v17 }
 0x3ed   : > { %v2203_v48 = vpop.f32.mrf.mxu3  ;;  %2606 = vmatpush.bf16.msrb.mxu1 %v2581_v7  ;;  %v1828_v7 = vadd.f32 %v11011_v28, %v1827_v26 }
 0x3ee   : > { %v11074_v61 = vadd.f32 %v2203_v48, %v11071_v47 }
 0x3ef   : > { %2449 = vmatpush.bf16.xpose.msrb.mxu0 %v2435_v0 }
 0x3f0   : > { %v2225_v13 = vsel %vm2221_vm3, %v11074_v61, -inf }
 0x3f1   : > { %2226 = vmax.xlane.f32.xlu0 %v2225_v13  ;;  %2607 = vmatpush.bf16.msrb.mxu1 %v2580_v12  ;;  %v1829_v49 = vpop.f32.mrf.mxu0  ;;  %v1849_v12 = vpack.c.bf16 %v1828_v7, %v1828_v7 }
 0x3f2   : > { %v1830_v39 = vadd.f32 %v11011_v28, %v1829_v49 }
 0x3f3   : > { %v2391_v24 = vunpack.c.l.b16 %v1849_v12 }
 0x3f4   : > { %v1850_v62 = vpack.c.bf16 %v1830_v39, %v1830_v39 }
 0x3f5   : > { %v2206_v20 = vpop.f32.mrf.mxu3 }
 0x3f6   : > { %v11086_v54 = vadd.f32 %v2206_v20, %v11083_v18  ;;  %v2392_v41 = vunpack.c.l.b16 %v1850_v62  ;;  %v9533_v20 = vld [vmem:[%s10402_s26 + $0x40] sm:$0xff] }
 0x3f7   : > { %2450 = vmatpush.bf16.xpose.msrb.mxu0 %v2432_v22 }
 0x3f8   : > { %v2228_v23 = vsel %vm2221_vm3, %v11086_v54, -inf  ;;  %v2397_v1 = vpack.c.b16 %v2392_v41, %v2391_v24 }
 0x3f9   : > { %2229 = vmax.xlane.f32.xlu1 %v2228_v23  ;;  %v1832_v48 = vpop.f32.mrf.mxu0 }
 0x3fd   : > { %v2208_v16 = vpop.f32.mrf.mxu3 }
 0x3fe   : > { %v11095_v10 = vadd.f32 %v2208_v16, %v11092_v29  ;;  %8600 = vmatmul.msk.bf16.vlgmr.msrb.gmra.mxu0 %vm2167_vm12, %v2395_v43  ;;  %v1833_v43 = vadd.f32 %v11011_v28, %v1832_v48 }
 0x3ff   : > { %2981 = vmatpush.bf16.msra.mxu0 %v9540_v46 }
 0x400   : > { %v2231_v37 = vsel %vm2221_vm3, %v11095_v10, -inf  ;;  %v1851_v26 = vpack.c.bf16 %v1833_v43, %v1833_v43 }
 0x401   : > { %2232 = vmax.xlane.f32.xlu2 %v2231_v37  ;;  %v1834_v22 = vpop.f32.mrf.mxu0 }
 0x402   : > { %v1835_v19 = vadd.f32 %v11011_v28, %v1834_v22  ;;  %v2393_v50 = vunpack.c.l.b16 %v1851_v26 }
 0x403   : > { %2982 = vmatpush.bf16.msra.mxu0 %v9539_v9 }
 0x404   : > { %v1852_v16 = vpack.c.bf16 %v1835_v19, %v1835_v19 }
 0x405   : > { %v2211_v52 = vpop.f32.mrf.mxu3 }
 0x406   : > { %v11108_v59 = vadd.f32 %v2211_v52, %v11104_v55  ;;  %v2394_v37 = vunpack.c.l.b16 %v1852_v16 }
 0x407   : > { %2983 = vmatpush.bf16.msra.mxu0 %v9538_v51 }
 0x408   : > { %v2234_v60 = vsel %vm2221_vm3, %v11108_v59, -inf  ;;  %v2398_v46 = vpack.c.b16 %v2394_v37, %v2393_v50 }
 0x409   : > { %2235 = vmax.xlane.f32.xlu0 %v2234_v60 }
 0x40b   : > { %2984 = vmatpush.bf16.msra.mxu0 %v9537_v45 }
 0x40d   : > { %v2213_v4 = vpop.f32.mrf.mxu3 }
 0x40e   : > { %v11118_v32 = vadd.f32 %v2213_v4, %v11114_v3  ;;  %8601 = vmatmul.msk.bf16.gmra.mxu0 %vm2167_vm12, %v2396_v33 }
 0x40f   : > { %2985 = vmatpush.bf16.msra.mxu0 %v9536_v31 }
 0x410   : > { %v2237_v5 = vsel %vm2221_vm3, %v11118_v32, -inf }
 0x411   : > { %2238 = vmax.xlane.f32.xlu1 %v2237_v5 }
 0x413   : > { %2986 = vmatpush.bf16.msra.mxu0 %v9535_v30 }
 0x415   : > { %v2216_v0 = vpop.f32.mrf.mxu3 }
 0x416   : > { %v11131_v13 = vadd.f32 %v2216_v0, %v11127_v8 }
 0x417   : > { %2987 = vmatpush.bf16.msra.mxu0 %v9534_v40 }
 0x418   : > { %v2240_v14 = vsel %vm2221_vm3, %v11131_v13, -inf }
 0x419   : > { %2241 = vmax.xlane.f32.xlu2 %v2240_v14 }
 0x41b   : > { %2988 = vmatpush.bf16.msra.mxu0 %v9533_v20 }
 0x41d   : > { %v2218_v21 = vpop.f32.mrf.mxu3 }
 0x41e   : > { %v11141_v23 = vadd.f32 %v2218_v21, %v11137_v15  ;;  %8602 = vmatmul.msk.bf16.gmra.mxu0 %vm2167_vm12, %v2397_v1 }
 0x420   : > { %v2243_v27 = vsel %vm2221_vm3, %v11141_v23, -inf }
 0x421   : > { %2244 = vmax.xlane.f32.xlu0 %v2243_v27 }
 0x42e   : > { %8603 = vmatmul.msk.bf16.gmra.mxu0 %vm2167_vm12, %v2398_v46 }
 0x43e   : > { %2989 = vmatmul.bf16.vlgmr.msra.gmra.mxu0 %v10768_v25 }
 0x44e   : > { %2994 = vmatmul.bf16.gmra.mxu0 %v10808_v42 }
 0x45c   : > { %v2224_v35 = vpop.xlane.xlu2 %2223 }
 0x45d   : > { %v2246_v9 = vsub.f32 %v11062_v57, %v2224_v35 }
 0x45e   : > { %2999 = vmatmul.bf16.gmra.mxu0 %v10820_v63 }
 0x45f   : > { %v2254_v44 = vmul.f32 1.442695, %v2246_v9 }
 0x461   : > { %9742 = vpow2.f32 %v2254_v44 }
 0x464   : > { %v2227_v52 = vpop.xlane.xlu0 %2226 }
 0x465   : > { %v2247_v28 = vsub.f32 %v11074_v61, %v2227_v52 }
 0x467   : > { %v11154_v2 = vpop.eup %9742  ;;  %v2256_v51 = vmul.f32 1.442695, %v2247_v28 }
 0x468   : > { %v2270_v60 = vsel %vm2221_vm3, %v11154_v2, 0.0 }
 0x469   : > { %9744 = vpow2.f32 %v2256_v51  ;;  %2271 = vadd.xlane.f32.xlu1 %v2270_v60 }
 0x46c   : > { %v2230_v56 = vpop.xlane.xlu1 %2229 }
 0x46d   : > { %v2248_v49 = vsub.f32 %v11086_v54, %v2230_v56 }
 0x46e   : > { %3004 = vmatmul.bf16.gmra.mxu0 %v10857_v6 }
 0x46f   : > { %v11159_v17 = vpop.eup %9744  ;;  %v2258_v57 = vmul.f32 1.442695, %v2248_v49 }
 0x470   : > { %v2273_v45 = vsel %vm2221_vm3, %v11159_v17, 0.0 }
 0x471   : > { %9746 = vpow2.f32 %v2258_v57  ;;  %2274 = vadd.xlane.f32.xlu2 %v2273_v45 }
 0x474   : > { %v2233_v61 = vpop.xlane.xlu2 %2232 }
 0x475   : > { %v2249_v4 = vsub.f32 %v11095_v10, %v2233_v61 }
 0x477   : > { %v11165_v33 = vpop.eup %9746  ;;  %v2260_v5 = vmul.f32 1.442695, %v2249_v4 }
 0x478   : > { %v2276_v31 = vsel %vm2221_vm3, %v11165_v33, 0.0 }
 0x479   : > { %9748 = vpow2.f32 %v2260_v5  ;;  %2277 = vadd.xlane.f32.xlu0 %v2276_v31 }
 0x47b   : > { %v2452_v39 = vpop.f32.mrf.mxu0 }
 0x47c   : > { %v2236_v54 = vpop.xlane.xlu0 %2235  ;;  %v11187_v22 = vadd.f32 %v2452_v39, %v11057_v36 }
 0x47d   : > { %v2250_v7 = vsub.f32 %v11108_v59, %v2236_v54 }
 0x47e   : > { %3009 = vmatmul.bf16.gmra.mxu0 %v10880_v38  ;;  %v2472_v37 = vsel %vm2221_vm3, %v11187_v22, -inf }
 0x47f   : > { %v11170_v48 = vpop.eup %9748  ;;  %v2262_v30 = vmul.f32 1.442695, %v2250_v7 }
 0x480   : > { %v2279_v10 = vsel %vm2221_vm3, %v11170_v48, 0.0 }
 0x481   : > { %9750 = vpow2.f32 %v2262_v30  ;;  %2280 = vadd.xlane.f32.xlu1 %v2279_v10 }
 0x483   : > { %v2454_v0 = vpop.f32.mrf.mxu0 }
 0x484   : > { %v2239_v62 = vpop.xlane.xlu1 %2238  ;;  %v11197_v50 = vadd.f32 %v2454_v0, %v11071_v47 }
 0x485   : > { %v2251_v12 = vsub.f32 %v11118_v32, %v2239_v62 }
 0x486   : > { %v2475_v9 = vsel %vm2221_vm3, %v11197_v50, -inf }
 0x487   : > { %v11176_v14 = vpop.eup %9750  ;;  %v2264_v40 = vmul.f32 1.442695, %v2251_v12 }
 0x488   : > { %v2282_v59 = vsel %vm2221_vm3, %v11176_v14, 0.0 }
 0x489   : > { %9752 = vpow2.f32 %v2264_v40  ;;  %2283 = vadd.xlane.f32.xlu2 %v2282_v59  ;;  %v9532_v59 = vld [vmem:[%s10391_s25 + $0x78] sm:$0xff] }
 0x48a   : > { %2846 = vmatpush.bf16.msrb.mxu3 %v9532_v59 }
 0x48b   : > { %v2457_v24 = vpop.f32.mrf.mxu0 }
 0x48c   : > { %v2242_v41 = vpop.xlane.xlu2 %2241  ;;  %v11212_v44 = vadd.f32 %v2457_v24, %v11083_v18 }
 0x48d   : > { %v2252_v20 = vsub.f32 %v11131_v13, %v2242_v41 }
 0x48e   : > { %3014 = vmatmul.bf16.gmra.mxu0 %v10936_v34  ;;  %v2478_v28 = vsel %vm2221_vm3, %v11212_v44, -inf }
 0x48f   : > { %v11181_v21 = vpop.eup %9752  ;;  %v2266_v1 = vmul.f32 1.442695, %v2252_v20  ;;  %v9531_v20 = vld [vmem:[%s10391_s25 + $0x70] sm:$0xff] }
 0x490   : > { %v2285_v32 = vsel %vm2221_vm3, %v11181_v21, 0.0  ;;  %2847 = vmatpush.bf16.msrb.mxu3 %v9531_v20 }
 0x491   : > { %9754 = vpow2.f32 %v2266_v1  ;;  %2286 = vadd.xlane.f32.xlu0 %v2285_v32  ;;  %v9530_v1 = vld [vmem:[%s10391_s25 + $0x68] sm:$0xff] }
 0x493   : > { %v2459_v19 = vpop.f32.mrf.mxu0 }
 0x494   : > { %v2245_v27 = vpop.xlane.xlu0 %2244  ;;  %v11200_v46 = vadd.f32 %v2459_v19, %v11092_v29  ;;  %2848 = vmatpush.bf16.msrb.mxu3 %v9530_v1 }
 0x495   : > { %v2253_v43 = vsub.f32 %v11141_v23, %v2245_v27 }
 0x496   : > { %v2481_v47 = vsel %vm2221_vm3, %v11200_v46, -inf }
 0x497   : > { %v11190_v16 = vpop.eup %9754  ;;  %v2268_v13 = vmul.f32 1.442695, %v2253_v43 }
 0x498   : > { %v2288_v26 = vsel %vm2221_vm3, %v11190_v16, 0.0 }
 0x499   : > { %9756 = vpow2.f32 %v2268_v13  ;;  %2289 = vadd.xlane.f32.xlu1 %v2288_v26  ;;  %2473 = vmax.xlane.f32.xlu0 %v2472_v37  ;;  %v9529_v13 = vld [vmem:[%s10391_s25 + $0x60] sm:$0xff]  ;;  %v9528_v37 = vld [vmem:[%s10391_s25 + $0x58] sm:$0xff] }
 0x49a   : > { %2849 = vmatpush.bf16.msrb.mxu3 %v9529_v13 }
 0x49b   : > { %v2462_v36 = vpop.f32.mrf.mxu0 }
 0x49c   : > { %v11215_v29 = vadd.f32 %v2462_v36, %v11104_v55 }
 0x49e   : > { %3019 = vmatmul.bf16.gmra.mxu0 %v10972_v53  ;;  %v2484_v51 = vsel %vm2221_vm3, %v11215_v29, -inf  ;;  %2850 = vmatpush.bf16.msrb.mxu3 %v9528_v37 }
 0x49f   : > { %v11202_v23 = vpop.eup %9756 }
 0x4a0   : > { %v2291_v35 = vsel %vm2221_vm3, %v11202_v23, 0.0 }
 0x4a1   : > { %2292 = vadd.xlane.f32.xlu2 %v2291_v35  ;;  %2476 = vmax.xlane.f32.xlu1 %v2475_v9  ;;  %v9527_v9 = vld [vmem:[%s10391_s25 + $0x50] sm:$0xff] }
 0x4a2   : > { %2482 = vmax.xlane.f32.xlu0 %v2481_v47  ;;  %2851 = vmatpush.bf16.msrb.mxu3 %v9527_v9 }
 0x4a3   : > { %v2464_v52 = vpop.f32.mrf.mxu0 }
 0x4a4   : > { %v11222_v60 = vadd.f32 %v2464_v52, %v11114_v3 }
 0x4a6   : > { %v2487_v55 = vsel %vm2221_vm3, %v11222_v60, -inf }
 0x4a9   : > { %2479 = vmax.xlane.f32.xlu2 %v2478_v28  ;;  %2485 = vmax.xlane.f32.xlu1 %v2484_v51 }
 0x4ab   : > { %v2467_v56 = vpop.f32.mrf.mxu0 }
 0x4ac   : > { %v11225_v49 = vadd.f32 %v2467_v56, %v11127_v8 }
 0x4ae   : > { %3024 = vmatmul.bf16.gmra.mxu0 %v11006_v58  ;;  %v2490_v18 = vsel %vm2221_vm3, %v11225_v49, -inf }
 0x4af   : > { %2491 = vmax.xlane.f32.xlu0 %v2490_v18 }
 0x4b1   : > { %2488 = vmax.xlane.f32.xlu2 %v2487_v55 }
 0x4b3   : > { %v2469_v57 = vpop.f32.mrf.mxu0 }
 0x4b4   : > { %v11233_v45 = vadd.f32 %v2469_v57, %v11137_v15 }
 0x4b6   : > { %v2493_v3 = vsel %vm2221_vm3, %v11233_v45, -inf }
 0x4b7   : > { %2494 = vmax.xlane.f32.xlu1 %v2493_v3  ;;  %v9525_v3 = vld [vmem:[%s10391_s25 + $0x40] sm:$0xff] }
 0x4bb   : > { %v11237_v8 = vpop.f32.mrf.mxu0 }
 0x4c3   : > { %v11239_v61 = vpop.f32.mrf.mxu0 }
 0x4cb   : > { %v11241_v4 = vpop.f32.mrf.mxu0 }
 0x4d3   : > { %v11243_v5 = vpop.f32.mrf.mxu0 }
 0x4db   : > { %v11245_v31 = vpop.f32.mrf.mxu0 }
 0x4dc   : > { %v2272_v54 = vpop.xlane.xlu1 %2271 }
 0x4dd   : > { %9758 = vrcp.f32 %v2272_v54 }
 0x4e3   : > { %v11247_v15 = vpop.f32.mrf.mxu0  ;;  %v9759_v7 = vpop.eup %9758 }
 0x4e4   : > { %v2275_v39 = vpop.xlane.xlu2 %2274  ;;  %v2302_v10 = vmul.f32 %v9759_v7, %v11154_v2 }
 0x4e5   : > { %9760 = vrcp.f32 %v2275_v39 }
 0x4eb   : > { %v9761_v30 = vpop.eup %9760  ;;  %v11251_v0 = vpop.f32.mrf.mxu0 }
 0x4ec   : > { %v2303_v62 = vmul.f32 %v9761_v30, %v11159_v17  ;;  %v2278_v40 = vpop.xlane.xlu0 %2277 }
 0x4ed   : > { %9762 = vrcp.f32 %v2278_v40 }
 0x4ee   : > { %v2310_v12 = vpack.c.bf16 %v2303_v62, %v2302_v10 }
 0x4f0   : > { %8596 = vmatmul.msk.bf16.vlgmr.msra.gmra.mxu3 %vm2221_vm3, %v2310_v12 }
 0x4f3   : > { %v11255_v24 = vpop.f32.mrf.mxu0  ;;  %v9763_v2 = vpop.eup %9762 }
 0x4f4   : > { %v2281_v41 = vpop.xlane.xlu1 %2280  ;;  %v2304_v27 = vmul.f32 %v9763_v2, %v11165_v33 }
 0x4f5   : > { %9764 = vrcp.f32 %v2281_v41 }
 0x4fb   : > { %v9765_v17 = vpop.eup %9764  ;;  %v11259_v32 = vpop.f32.mrf.mxu0 }
 0x4fc   : > { %v2305_v19 = vmul.f32 %v9765_v17, %v11170_v48  ;;  %v2284_v26 = vpop.xlane.xlu2 %2283  ;;  %v9526_v48 = vld [vmem:[%s10391_s25 + $0x48] sm:$0xff] }
 0x4fd   : > { %9766 = vrcp.f32 %v2284_v26  ;;  %2852 = vmatpush.bf16.msrb.mxu3 %v9526_v48 }
 0x4fe   : > { %v2311_v43 = vpack.c.bf16 %v2305_v19, %v2304_v27 }
 0x500   : > { %8597 = vmatmul.msk.bf16.gmra.mxu3 %vm2221_vm3, %v2311_v43 }
 0x501   : > { %2853 = vmatpush.bf16.msrb.mxu3 %v9525_v3 }
 0x503   : > { %v11266_v35 = vpop.f32.mrf.mxu0  ;;  %v9767_v33 = vpop.eup %9766 }
 0x504   : > { %v2287_v36 = vpop.xlane.xlu0 %2286  ;;  %v2306_v51 = vmul.f32 %v9767_v33, %v11176_v14 }
 0x505   : > { %9768 = vrcp.f32 %v2287_v36 }
 0x50b   : > { %v9769_v47 = vpop.eup %9768  ;;  %v11273_v55 = vpop.f32.mrf.mxu0 }
 0x50c   : > { %v2290_v52 = vpop.xlane.xlu1 %2289  ;;  %v2474_v28 = vpop.xlane.xlu0 %2473  ;;  %v2307_v56 = vmul.f32 %v9769_v47, %v11181_v21 }
 0x50d   : > { %v2496_v18 = vsub.f32 %v11187_v22, %v2474_v28 }
 0x50e   : > { %v2312_v57 = vpack.c.bf16 %v2307_v56, %v2306_v51 }
 0x50f   : > { %v2504_v54 = vmul.f32 1.442695, %v2496_v18 }
 0x510   : > { %8598 = vmatmul.msk.bf16.gmra.mxu3 %vm2221_vm3, %v2312_v57 }
 0x511   : > { %9770 = vpow2.f32 %v2504_v54 }
 0x512   : > { %9772 = vrcp.f32 %v2290_v52 }
 0x513   : > { %v11278_v21 = vpop.f32.mrf.mxu0 }
 0x514   : > { %v2293_v39 = vpop.xlane.xlu2 %2292  ;;  %v2477_v7 = vpop.xlane.xlu1 %2476 }
 0x515   : > { %9774 = vrcp.f32 %v2293_v39  ;;  %v2497_v14 = vsub.f32 %v11197_v50, %v2477_v7  ;;  %v2483_v30 = vpop.xlane.xlu0 %2482  ;;  %v11316_v7 = vld [vmem:[%s10408_s27 + $0x1] ss:$0 sm:$0xff] }
 0x516   : > { %v2499_v22 = vsub.f32 %v11200_v46, %v2483_v30 }
 0x517   : > { %v11281_v10 = vpop.eup %9770  ;;  %v2506_v62 = vmul.f32 1.442695, %v2497_v14 }
 0x518   : > { %v2510_v12 = vmul.f32 1.442695, %v2499_v22  ;;  %v2520_v40 = vsel %vm2221_vm3, %v11281_v10, 0.0  ;;  %v9773_v59 = vpop.eup %9772 }
 0x519   : > { %9776 = vpow2.f32 %v2506_v62  ;;  %2521 = vadd.xlane.f32.xlu2 %v2520_v40  ;;  %v2308_v50 = vmul.f32 %v9773_v59, %v11190_v16 }
 0x51a   : > { %9778 = vpow2.f32 %v2510_v12 }
 0x51b   : > { %v9775_v41 = vpop.eup %9774  ;;  %v3020_v27 = vpop.f32.mrf.mxu0 }
 0x51c   : > { %v2480_v20 = vpop.xlane.xlu2 %2479  ;;  %v2486_v2 = vpop.xlane.xlu1 %2485  ;;  %v2309_v1 = vmul.f32 %v9775_v41, %v11202_v23  ;;  %v3021_v12 = vadd.f32 %v11316_v7, %v3020_v27  ;;  %v3013_v27 = vadd.f32 %v11316_v7, %v11266_v35 }
 0x51d   : > { %v2498_v46 = vsub.f32 %v11212_v44, %v2480_v20  ;;  %v2500_v17 = vsub.f32 %v11215_v29, %v2486_v2  ;;  %v3018_v20 = vadd.f32 %v11316_v7, %v11278_v21 }
 0x51e   : > { %v2313_v19 = vpack.c.bf16 %v2309_v1, %v2308_v50  ;;  %v3016_v1 = vadd.f32 %v11316_v7, %v11273_v55 }
 0x51f   : > { %v11289_v43 = vpop.eup %9776  ;;  %v2508_v13 = vmul.f32 1.442695, %v2498_v46  ;;  %v2512_v26 = vmul.f32 1.442695, %v2500_v17  ;;  %v3042_v46 = vpack.c.bf16 %v3021_v12, %v3021_v12 }
 0x520   : > { %v11291_v37 = vpop.eup %9778  ;;  %8599 = vmatmul.msk.bf16.gmra.mxu3 %vm2221_vm3, %v2313_v19  ;;  %v2523_v36 = vsel %vm2221_vm3, %v11289_v43, 0.0 }
 0x521   : > { %9780 = vpow2.f32 %v2508_v13  ;;  %v2529_v16 = vsel %vm2221_vm3, %v11291_v37, 0.0  ;;  %2524 = vadd.xlane.f32.xlu0 %v2523_v36  ;;  %v3041_v13 = vpack.c.bf16 %v3018_v20, %v3018_v20  ;;  %v3502_v21 = vunpack.c.l.b16 %v3042_v46 }
 0x522   : > { %9782 = vpow2.f32 %v2512_v26  ;;  %2530 = vadd.xlane.f32.xlu2 %v2529_v16  ;;  %v2492_v23 = vpop.xlane.xlu0 %2491  ;;  %v3011_v16 = vadd.f32 %v11316_v7, %v11259_v32 }
 0x523   : > { %v2502_v29 = vsub.f32 %v11225_v49, %v2492_v23  ;;  %v3022_v33 = vpop.f32.mrf.mxu0  ;;  %v3040_v23 = vpack.c.bf16 %v3016_v1, %v3016_v1 }
 0x524   : > { %v2489_v44 = vpop.xlane.xlu2 %2488  ;;  %v3023_v30 = vadd.f32 %v11316_v7, %v3022_v33 }
 0x525   : > { %v2501_v9 = vsub.f32 %v11222_v60, %v2489_v44  ;;  %v2516_v48 = vmul.f32 1.442695, %v2502_v29  ;;  %v3039_v44 = vpack.c.bf16 %v3013_v27, %v3013_v27  ;;  %v3501_v29 = vunpack.c.l.b16 %v3041_v13 }
 0x526   : > { %v3043_v2 = vpack.c.bf16 %v3023_v30, %v3023_v30  ;;  %v3500_v33 = vunpack.c.l.b16 %v3040_v23 }
 0x527   : > { %v11300_v47 = vpop.eup %9780  ;;  %v2514_v52 = vmul.f32 1.442695, %v2501_v9  ;;  %9784 = vpow2.f32 %v2516_v48  ;;  %v3038_v9 = vpack.c.bf16 %v3011_v16, %v3011_v16  ;;  %v3499_v48 = vunpack.c.l.b16 %v3039_v44 }
 0x528   : > { %v11302_v28 = vpop.eup %9782  ;;  %v2526_v51 = vsel %vm2221_vm3, %v11300_v47, 0.0  ;;  %v3503_v26 = vunpack.c.l.b16 %v3043_v2 }
 0x529   : > { %9786 = vpow2.f32 %v2514_v52  ;;  %2527 = vadd.xlane.f32.xlu1 %v2526_v51  ;;  %v2532_v56 = vsel %vm2221_vm3, %v11302_v28, 0.0  ;;  %v3507_v52 = vpack.c.b16 %v3501_v29, %v3500_v33  ;;  %v3498_v35 = vunpack.c.l.b16 %v3038_v9 }
 0x52a   : > { %2533 = vadd.xlane.f32.xlu0 %v2532_v56  ;;  %v2495_v49 = vpop.xlane.xlu1 %2494  ;;  %v3508_v55 = vpack.c.b16 %v3503_v26, %v3502_v21 }
 0x52b   : > { %v2503_v60 = vsub.f32 %v11233_v45, %v2495_v49  ;;  %v3025_v18 = vpop.f32.mrf.mxu0  ;;  %v3506_v51 = vpack.c.b16 %v3499_v48, %v3498_v35  ;;  %v2720_v35 = vpop.f32.mrf.mxu2 }
 0x52c   : > { %v3026_v45 = vadd.f32 %v11316_v7, %v3025_v18 }
 0x52d   : > { %v11309_v57 = vpop.eup %9784  ;;  %v2518_v3 = vmul.f32 1.442695, %v2503_v60 }
 0x52e   : > { %v2538_v39 = vsel %vm2221_vm3, %v11309_v57, 0.0  ;;  %v3044_v40 = vpack.c.bf16 %v3026_v45, %v3026_v45 }
 0x52f   : > { %v11311_v54 = vpop.eup %9786  ;;  %9788 = vpow2.f32 %v2518_v3  ;;  %2539 = vadd.xlane.f32.xlu2 %v2538_v39 }
 0x530   : > { %2854 = vmatmul.bf16.vlgmr.msrb.gmra.mxu3 %v10768_v25  ;;  %v2535_v14 = vsel %vm2221_vm3, %v11311_v54, 0.0  ;;  %v3504_v17 = vunpack.c.l.b16 %v3044_v40 }
 0x531   : > { %2536 = vadd.xlane.f32.xlu1 %v2535_v14 }
 0x533   : > { %v3027_v22 = vpop.f32.mrf.mxu0 }
 0x534   : > { %v3028_v59 = vadd.f32 %v11316_v7, %v3027_v22 }
 0x535   : > { %v11323_v62 = vpop.eup %9788 }
 0x536   : > { %v2541_v41 = vsel %vm2221_vm3, %v11323_v62, 0.0  ;;  %v3045_v50 = vpack.c.bf16 %v3028_v59, %v3028_v59 }
 0x537   : > { %2542 = vadd.xlane.f32.xlu0 %v2541_v41 }
 0x538   : > { %v3505_v19 = vunpack.c.l.b16 %v3045_v50 }
 0x53a   : > { %v3509_v36 = vpack.c.b16 %v3505_v19, %v3504_v17 }
 0x53c   : > { %3530 = vmatpush.bf16.msra.mxu3 %v3509_v36 }
 0x540   : > { %2859 = vmatmul.bf16.gmra.mxu3 %v10808_v42 }
 0x541   : > { %3531 = vmatpush.bf16.msra.mxu3 %v3508_v55 }
 0x545   : > { %3532 = vmatpush.bf16.msra.mxu3 %v3507_v52 }
 0x549   : > { %3533 = vmatpush.bf16.msra.mxu3 %v3506_v51 }
 0x550   : > { %2864 = vmatmul.bf16.gmra.mxu3 %v10820_v63 }
 0x560   : > { %2869 = vmatmul.bf16.gmra.mxu3 %v10857_v6 }
 0x570   : > { %2874 = vmatmul.bf16.gmra.mxu3 %v10880_v38 }
 0x573   : > { %v11341_v32 = vpop.f32.mrf.mxu3 }
 0x57b   : > { %v11343_v56 = vpop.f32.mrf.mxu3 }
 0x580   : > { %2879 = vmatmul.bf16.gmra.mxu3 %v10936_v34 }
 0x583   : > { %v11346_v49 = vpop.f32.mrf.mxu3 }
 0x58b   : > { %v11348_v60 = vpop.f32.mrf.mxu3 }
 0x58c   : > { %v2522_v18 = vpop.xlane.xlu2 %2521 }
 0x58d   : > { %9790 = vrcp.f32 %v2522_v18  ;;  %v11373_v18 = vld [vmem:[%s10397_s5 + $0x1] ss:$0 sm:$0xff] }
 0x590   : > { %2884 = vmatmul.bf16.gmra.mxu3 %v10972_v53 }
 0x593   : > { %v11351_v3 = vpop.f32.mrf.mxu3  ;;  %v9791_v14 = vpop.eup %9790 }
 0x594   : > { %v2525_v39 = vpop.xlane.xlu0 %2524  ;;  %v2552_v22 = vmul.f32 %v9791_v14, %v11281_v10  ;;  %v2722_v14 = vpop.f32.mrf.mxu2 }
 0x595   : > { %9792 = vrcp.f32 %v2525_v39  ;;  %v2531_v41 = vpop.xlane.xlu2 %2530 }
 0x59b   : > { %v9793_v45 = vpop.eup %9792  ;;  %v11353_v30 = vpop.f32.mrf.mxu3 }
 0x59c   : > { %v2553_v12 = vmul.f32 %v9793_v45, %v11289_v43  ;;  %v2528_v40 = vpop.xlane.xlu1 %2527 }
 0x59d   : > { %9794 = vrcp.f32 %v2528_v40  ;;  %v2534_v19 = vpop.xlane.xlu0 %2533 }
 0x59e   : > { %v2560_v59 = vpack.c.bf16 %v2553_v12, %v2552_v22  ;;  %9796 = vrcp.f32 %v2531_v41 }
 0x5a0   : > { %8604 = vmatmul.msk.bf16.vlgmr.msrb.gmra.mxu1 %vm2221_vm3, %v2560_v59  ;;  %2889 = vmatmul.bf16.gmra.mxu3 %v11006_v58 }
 0x5a2   : > { %v2540_v44 = vpop.xlane.xlu2 %2539 }
 0x5a3   : > { %v11359_v20 = vpop.f32.mrf.mxu3  ;;  %v9795_v2 = vpop.eup %9794 }
 0x5a4   : > { %v9797_v50 = vpop.eup %9796  ;;  %v2554_v1 = vmul.f32 %v9795_v2, %v11300_v47  ;;  %v2537_v43 = vpop.xlane.xlu1 %2536 }
 0x5a5   : > { %v2555_v10 = vmul.f32 %v9797_v50, %v11291_v37  ;;  %9798 = vrcp.f32 %v2537_v43 }
 0x5a6   : > { %9800 = vrcp.f32 %v2534_v19 }
 0x5a7   : > { %v2561_v17 = vpack.c.bf16 %v2555_v10, %v2554_v1  ;;  %v11379_v10 = vpop.f32.mrf.mxu2 }
 0x5aa   : > { %v2543_v47 = vpop.xlane.xlu0 %2542 }
 0x5ab   : > { %v11362_v46 = vpop.f32.mrf.mxu3  ;;  %v9799_v13 = vpop.eup %9798  ;;  %9802 = vrcp.f32 %v2543_v47 }
 0x5ac   : > { %v9801_v26 = vpop.eup %9800  ;;  %v2557_v36 = vmul.f32 %v9799_v13, %v11311_v54  ;;  %9804 = vrcp.f32 %v2540_v44 }
 0x5ad   : > { %v2556_v23 = vmul.f32 %v9801_v26, %v11302_v28 }
 0x5af   : > { %v2562_v21 = vpack.c.bf16 %v2557_v36, %v2556_v23 }
 0x5b0   : > { %8605 = vmatmul.msk.bf16.gmra.mxu1 %vm2221_vm3, %v2561_v17 }
 0x5b1   : > { %v9803_v29 = vpop.eup %9802 }
 0x5b2   : > { %v9805_v55 = vpop.eup %9804  ;;  %v2559_v9 = vmul.f32 %v9803_v29, %v11323_v62 }
 0x5b3   : > { %v2855_v27 = vpop.f32.mrf.mxu3  ;;  %v2558_v48 = vmul.f32 %v9805_v55, %v11309_v57 }
 0x5b5   : > { %v2563_v54 = vpack.c.bf16 %v2559_v9, %v2558_v48  ;;  %v2727_v48 = vpop.f32.mrf.mxu2 }
 0x5bb   : > { %v2857_v16 = vpop.f32.mrf.mxu3 }
 0x5bc   : > { %v2858_v29 = vadd.f32 %v11373_v18, %v2857_v16 }
 0x5c0   : > { %8606 = vmatmul.msk.bf16.gmra.mxu1 %vm2221_vm3, %v2562_v21 }
 0x5c3   : > { %v2860_v37 = vpop.f32.mrf.mxu3 }
 0x5c4   : > { %v2861_v26 = vadd.f32 %v11373_v18, %v2860_v37  ;;  %v3008_v37 = vadd.f32 %v11316_v7, %v11255_v24 }
 0x5c6   : > { %v2897_v21 = vpack.c.bf16 %v2861_v26, %v2861_v26 }
 0x5cb   : > { %v2862_v33 = vpop.f32.mrf.mxu3 }
 0x5cc   : > { %v2863_v17 = vadd.f32 %v11373_v18, %v2862_v33  ;;  %v2856_v33 = vadd.f32 %v11373_v18, %v2855_v27 }
 0x5ce   : > { %v2898_v23 = vpack.c.bf16 %v2863_v17, %v2863_v17 }
 0x5d0   : > { %8607 = vmatmul.msk.bf16.gmra.mxu1 %vm2221_vm3, %v2563_v54  ;;  %v3086_v55 = vunpack.c.l.b16 %v2898_v23  ;;  %v3085_v54 = vunpack.c.l.b16 %v2897_v21 }
 0x5d3   : > { %v2865_v28 = vpop.f32.mrf.mxu3 }
 0x5d4   : > { %v2866_v57 = vadd.f32 %v11373_v18, %v2865_v28  ;;  %v2896_v28 = vpack.c.bf16 %v2858_v29, %v2858_v29  ;;  %v2991_v29 = vadd.f32 %v11316_v7, %v11237_v8 }
 0x5d6   : > { %v2899_v50 = vpack.c.bf16 %v2866_v57, %v2866_v57  ;;  %v3001_v57 = vadd.f32 %v11316_v7, %v11245_v31  ;;  %v2993_v31 = vadd.f32 %v11316_v7, %v11239_v61 }
 0x5d8   : > { %v3087_v36 = vunpack.c.l.b16 %v2899_v50 }
 0x5db   : > { %v2867_v52 = vpop.f32.mrf.mxu3 }
 0x5dc   : > { %v2868_v22 = vadd.f32 %v11373_v18, %v2867_v52  ;;  %v3092_v52 = vpack.c.b16 %v3086_v55, %v3085_v54 }
 0x5de   : > { %v2900_v59 = vpack.c.bf16 %v2868_v22, %v2868_v22  ;;  %v3003_v22 = vadd.f32 %v11316_v7, %v11247_v15  ;;  %v3111_v27 = vsel %vm2167_vm12, %v3092_v52, 0  ;;  %v3030_v52 = vpack.c.bf16 %v2991_v29, %v2991_v29 }
 0x5e0   : > { %v3088_v19 = vunpack.c.l.b16 %v2900_v59  ;;  %v3035_v50 = vpack.c.bf16 %v3003_v22, %v3003_v22  ;;  %v3248_v8 = vunpack.c.l.b16 %v3030_v52 }
 0x5e2   : > { %v3093_v47 = vpack.c.b16 %v3088_v19, %v3087_v36  ;;  %v2996_v19 = vadd.f32 %v11316_v7, %v11241_v4 }
 0x5e3   : > { %v2870_v51 = vpop.f32.mrf.mxu3 }
 0x5e4   : > { %v2871_v39 = vadd.f32 %v11373_v18, %v2870_v51  ;;  %v3114_v9 = vsel %vm2167_vm12, %v3093_v47, 0  ;;  %v3006_v51 = vadd.f32 %v11316_v7, %v11251_v0  ;;  %v3032_v55 = vpack.c.bf16 %v2996_v19, %v2996_v19 }
 0x5e6   : > { %v2901_v12 = vpack.c.bf16 %v2871_v39, %v2871_v39  ;;  %v2895_v39 = vpack.c.bf16 %v2856_v33, %v2856_v33  ;;  %v3031_v33 = vpack.c.bf16 %v2993_v31, %v2993_v31 }
 0x5e8   : > { %v3089_v41 = vunpack.c.l.b16 %v2901_v12  ;;  %v3037_v12 = vpack.c.bf16 %v3008_v37, %v3008_v37  ;;  %v3083_v0 = vunpack.c.l.b16 %v2895_v39  ;;  %v3249_v22 = vunpack.c.l.b16 %v3031_v33 }
 0x5ea   : > { %v3255_v15 = vunpack.c.l.b16 %v3037_v12 }
 0x5eb   : > { %v2872_v45 = vpop.f32.mrf.mxu3 }
 0x5ec   : > { %v2873_v62 = vadd.f32 %v11373_v18, %v2872_v45  ;;  %v11396_v45 = vld [vmem:[%s14354_s10 + $0x1] ss:$0 sm:$0xff] }
 0x5ed   : > { %v2723_v24 = vadd.f32 %v11396_v45, %v2722_v14  ;;  %v2721_v59 = vadd.f32 %v11396_v45, %v2720_v35  ;;  %v3253_v35 = vunpack.c.l.b16 %v3035_v50 }
 0x5ee   : > { %v2902_v40 = vpack.c.bf16 %v2873_v62, %v2873_v62  ;;  %v3084_v62 = vunpack.c.l.b16 %v2896_v28 }
 0x5ef   : > { %v2761_v17 = vpack.c.bf16 %v2723_v24, %v2723_v24  ;;  %v2760_v26 = vpack.c.bf16 %v2721_v59, %v2721_v59 }
 0x5f0   : > { %v3090_v2 = vunpack.c.l.b16 %v2902_v40  ;;  %v3036_v40 = vpack.c.bf16 %v3006_v51, %v3006_v51  ;;  %v3250_v51 = vunpack.c.l.b16 %v3032_v55 }
 0x5f1   : > { %v3063_v4 = vunpack.c.l.b16 %v2760_v26 }
 0x5f2   : > { %v3094_v1 = vpack.c.b16 %v3090_v2, %v3089_v41  ;;  %v2730_v41 = vpop.f32.mrf.mxu2  ;;  %v2998_v2 = vadd.f32 %v11316_v7, %v11243_v5  ;;  %v3254_v14 = vunpack.c.l.b16 %v3036_v40  ;;  %v3064_v5 = vunpack.c.l.b16 %v2761_v17 }
 0x5f3   : > { %v11381_v43 = vpop.f32.mrf.mxu3  ;;  %v2726_v7 = vadd.f32 %v11396_v45, %v11379_v10  ;;  %v2731_v17 = vadd.f32 %v11396_v45, %v2730_v41 }
 0x5f4   : > { %v3117_v13 = vsel %vm2167_vm12, %v3094_v1, 0  ;;  %v3091_v1 = vpack.c.b16 %v3084_v62, %v3083_v0  ;;  %v3033_v23 = vpack.c.bf16 %v2998_v2, %v2998_v2  ;;  %v3259_v47 = vpack.c.b16 %v3255_v15, %v3254_v14 }
 0x5f5   : > { %3123 = vmatpush.bf16.xpose.msra.mxu1 %v3117_v13  ;;  %v3034_v13 = vpack.c.bf16 %v3001_v57, %v3001_v57  ;;  %v3071_v61 = vpack.c.b16 %v3064_v5, %v3063_v4  ;;  %v2728_v62 = vadd.f32 %v11396_v45, %v2727_v48  ;;  %v2762_v0 = vpack.c.bf16 %v2726_v7, %v2726_v7 }
 0x5f6   : > { %v3108_v21 = vsel %vm2167_vm12, %v3091_v1, 0  ;;  %v3251_v54 = vunpack.c.l.b16 %v3033_v23  ;;  %v2764_v14 = vpack.c.bf16 %v2731_v17, %v2731_v17 }
 0x5f7   : > { %v2763_v24 = vpack.c.bf16 %v2728_v62, %v2728_v62  ;;  %v3065_v2 = vunpack.c.l.b16 %v2762_v0 }
 0x5f8   : > { %v3257_v12 = vpack.c.b16 %v3251_v54, %v3250_v51  ;;  %v3067_v29 = vunpack.c.l.b16 %v2764_v14 }
 0x5f9   : > { %v3066_v59 = vunpack.c.l.b16 %v2763_v24 }
 0x5fa   : > { %v2732_v28 = vpop.f32.mrf.mxu2 }
 0x5fb   : > { %v11386_v44 = vpop.f32.mrf.mxu3  ;;  %v3072_v50 = vpack.c.b16 %v3066_v59, %v3065_v2  ;;  %v2733_v48 = vadd.f32 %v11396_v45, %v2732_v28 }
 0x5fc   : > { %v2878_v24 = vadd.f32 %v11373_v18, %v11386_v44 }
 0x5fd   : > { %3124 = vmatpush.bf16.xpose.msra.mxu1 %v3114_v9  ;;  %v3252_v9 = vunpack.c.l.b16 %v3034_v13  ;;  %v2765_v10 = vpack.c.bf16 %v2733_v48, %v2733_v48 }
 0x5ff   : > { %v3258_v37 = vpack.c.b16 %v3253_v35, %v3252_v9  ;;  %v3068_v35 = vunpack.c.l.b16 %v2765_v10 }
 0x601   : > { %v3073_v41 = vpack.c.b16 %v3068_v35, %v3067_v29  ;;  %v9550_v29 = vld [vmem:[%s14343_s15 + $0xb8] sm:$0xff] }
 0x602   : > { %v2735_v57 = vpop.f32.mrf.mxu2 }
 0x603   : > { %v11398_v16 = vpop.f32.mrf.mxu3 }
 0x604   : > { %v2881_v51 = vadd.f32 %v11373_v18, %v11398_v16  ;;  %v2876_v16 = vadd.f32 %v11373_v18, %v11381_v43 }
 0x605   : > { %3125 = vmatpush.bf16.xpose.msra.mxu1 %v3111_v27  ;;  %v3256_v27 = vpack.c.b16 %v3249_v22, %v3248_v8  ;;  %v2736_v22 = vadd.f32 %v11396_v45, %v2735_v57  ;;  %v2904_v57 = vpack.c.bf16 %v2878_v24, %v2878_v24 }
 0x606   : > { %v2903_v17 = vpack.c.bf16 %v2876_v16, %v2876_v16 }
 0x60a   : > { %v2737_v1 = vpop.f32.mrf.mxu2 }
 0x60b   : > { %v2882_v36 = vpop.f32.mrf.mxu3  ;;  %v2738_v52 = vadd.f32 %v11396_v45, %v2737_v1 }
 0x60d   : > { %3126 = vmatpush.bf16.xpose.msra.mxu1 %v3108_v21  ;;  %v2767_v7 = vpack.c.bf16 %v2738_v52, %v2738_v52 }
 0x60f   : > { %v3070_v59 = vunpack.c.l.b16 %v2767_v7 }
 0x612   : > { %v2740_v5 = vpop.f32.mrf.mxu2 }
 0x613   : > { %v2885_v39 = vpop.f32.mrf.mxu3 }
 0x614   : > { %8763 = vmatmul.msk.bf16.vlgmr.msra.gmra.mxu1 %vm2167_vm12, %v3071_v61 }
 0x615   : > { %3280 = vmatpush.bf16.msrb.mxu1 %v3259_v47  ;;  %v2886_v47 = vadd.f32 %v11373_v18, %v2885_v39 }
 0x617   : > { %v2907_v33 = vpack.c.bf16 %v2886_v47, %v2886_v47 }
 0x619   : > { %3281 = vmatpush.bf16.msrb.mxu1 %v3258_v37  ;;  %v2883_v37 = vadd.f32 %v11373_v18, %v2882_v36  ;;  %v3337_v39 = vunpack.c.l.b16 %v2907_v33  ;;  %v2766_v36 = vpack.c.bf16 %v2736_v22, %v2736_v22  ;;  %v9548_v33 = vld [vmem:[%s14343_s15 + $0xa8] sm:$0xff] }
 0x61a   : > { %v2742_v8 = vpop.f32.mrf.mxu2 }
 0x61b   : > { %v2887_v40 = vpop.f32.mrf.mxu3  ;;  %v2743_v10 = vadd.f32 %v11396_v45, %v2742_v8 }
 0x61c   : > { %v2888_v26 = vadd.f32 %v11373_v18, %v2887_v40 }
 0x61d   : > { %3282 = vmatpush.bf16.msrb.mxu1 %v3257_v12  ;;  %v2906_v12 = vpack.c.bf16 %v2883_v37, %v2883_v37  ;;  %v2769_v14 = vpack.c.bf16 %v2743_v10, %v2743_v10 }
 0x61e   : > { %v2908_v55 = vpack.c.bf16 %v2888_v26, %v2888_v26 }
 0x61f   : > { %v3336_v40 = vunpack.c.l.b16 %v2906_v12  ;;  %v3314_v35 = vunpack.c.l.b16 %v2769_v14  ;;  %v9545_v12 = vld [vmem:[%s14343_s15 + $0x90] sm:$0xff]  ;;  %v8756_v14 = vld [vmem:[%s10413_s7 + $0x48] sm:$0xff] }
 0x620   : > { %v3338_v28 = vunpack.c.l.b16 %v2908_v55 }
 0x621   : > { %3283 = vmatpush.bf16.msrb.mxu1 %v3256_v27  ;;  %v2905_v27 = vpack.c.bf16 %v2881_v51, %v2881_v51 }
 0x622   : > { %v3343_v62 = vpack.c.b16 %v3338_v28, %v3337_v39  ;;  %v2745_v1 = vpop.f32.mrf.mxu2  ;;  %v9547_v28 = vld [vmem:[%s14343_s15 + $0xa0] sm:$0xff]  ;;  %v9546_v39 = vld [vmem:[%s14343_s15 + $0x98] sm:$0xff] }
 0x623   : > { %v2890_v15 = vpop.f32.mrf.mxu3  ;;  %v3335_v2 = vunpack.c.l.b16 %v2905_v27  ;;  %v9544_v27 = vld [vmem:[%s14343_s15 + $0x88] sm:$0xff] }
 0x624   : > { %8764 = vmatmul.msk.bf16.gmra.mxu1 %vm2167_vm12, %v3072_v50  ;;  %v2891_v19 = vadd.f32 %v11373_v18, %v2890_v15  ;;  %v3364_v0 = vsel %vm2167_vm12, %v3343_v62, 0  ;;  %v3069_v50 = vunpack.c.l.b16 %v2766_v36 }
 0x625   : > { %v3342_v15 = vpack.c.b16 %v3336_v40, %v3335_v2 }
 0x626   : > { %v2909_v31 = vpack.c.bf16 %v2891_v19, %v2891_v19  ;;  %v3074_v48 = vpack.c.b16 %v3070_v59, %v3069_v50  ;;  %v3334_v19 = vunpack.c.l.b16 %v2904_v57  ;;  %v9543_v59 = vld [vmem:[%s14343_s15 + $0x80] sm:$0xff] }
 0x627   : > { %v3361_v44 = vsel %vm2167_vm12, %v3342_v15, 0 }
 0x628   : > { %v3339_v9 = vunpack.c.l.b16 %v2909_v31 }
 0x62a   : > { %v2747_v26 = vpop.f32.mrf.mxu2 }
 0x62b   : > { %v2892_v13 = vpop.f32.mrf.mxu3 }
 0x62c   : > { %v2893_v23 = vadd.f32 %v11373_v18, %v2892_v13  ;;  %v3333_v13 = vunpack.c.l.b16 %v2903_v17  ;;  %v2741_v18 = vadd.f32 %v11396_v45, %v2740_v5  ;;  %v9549_v5 = vld [vmem:[%s14343_s15 + $0xb0] sm:$0xff] }
 0x62e   : > { %v2910_v21 = vpack.c.bf16 %v2893_v23, %v2893_v23  ;;  %v3341_v43 = vpack.c.b16 %v3334_v19, %v3333_v13  ;;  %v2768_v31 = vpack.c.bf16 %v2741_v18, %v2741_v18  ;;  %v11466_v19 = vpop.f32.mrf.mxu1 }
 0x630   : > { %v3340_v4 = vunpack.c.l.b16 %v2910_v21  ;;  %v3358_v23 = vsel %vm2167_vm12, %v3341_v43, 0  ;;  %v3313_v47 = vunpack.c.l.b16 %v2768_v31 }
 0x632   : > { %v3344_v54 = vpack.c.b16 %v3340_v4, %v3339_v9  ;;  %v3321_v21 = vpack.c.b16 %v3314_v35, %v3313_v47  ;;  %v2750_v55 = vpop.f32.mrf.mxu2  ;;  %v2748_v9 = vadd.f32 %v11396_v45, %v2747_v26  ;;  %v2746_v4 = vadd.f32 %v11396_v45, %v2745_v1  ;;  %v11481_v47 = vld [vmem:[%s10413_s7 + $0x50] sm:$0xff] }
 0x633   : > { %v2751_v62 = vadd.f32 %v11396_v45, %v2750_v55 }
 0x634   : > { %8765 = vmatmul.msk.bf16.gmra.mxu1 %vm2167_vm12, %v3073_v41  ;;  %v3367_v61 = vsel %vm2167_vm12, %v3344_v54, 0  ;;  %v2771_v41 = vpack.c.bf16 %v2748_v9, %v2748_v9  ;;  %v2770_v54 = vpack.c.bf16 %v2746_v4, %v2746_v4 }
 0x635   : > { %3373 = vmatpush.bf16.xpose.msra.mxu2 %v3367_v61  ;;  %v2772_v36 = vpack.c.bf16 %v2751_v62, %v2751_v62 }
 0x636   : > { %v3316_v37 = vunpack.c.l.b16 %v2771_v41  ;;  %v3315_v52 = vunpack.c.l.b16 %v2770_v54 }
 0x637   : > { %v3317_v40 = vunpack.c.l.b16 %v2772_v36 }
 0x638   : > { %v3322_v51 = vpack.c.b16 %v3316_v37, %v3315_v52  ;;  %v11496_v37 = vld [vmem:[%s10413_s7 + $0x60] sm:$0xff] }
 0x63a   : > { %v2752_v61 = vpop.f32.mrf.mxu2 }
 0x63b   : > { %v2753_v22 = vadd.f32 %v11396_v45, %v2752_v61 }
 0x63d   : > { %3374 = vmatpush.bf16.xpose.msra.mxu2 %v3364_v0  ;;  %v2773_v7 = vpack.c.bf16 %v2753_v22, %v2753_v22 }
 0x63f   : > { %v3318_v24 = vunpack.c.l.b16 %v2773_v7 }
 0x641   : > { %v3323_v0 = vpack.c.b16 %v3318_v24, %v3317_v40  ;;  %v11525_v40 = vld [vmem:[%s10413_s7 + $0x78] sm:$0xff] }
 0x642   : > { %v2755_v8 = vpop.f32.mrf.mxu2 }
 0x643   : > { %v2756_v50 = vadd.f32 %v11396_v45, %v2755_v8  ;;  %v11515_v8 = vld [vmem:[%s10413_s7 + $0x70] sm:$0xff] }
 0x644   : > { %8766 = vmatmul.msk.bf16.gmra.mxu1 %vm2167_vm12, %v3074_v48 }
 0x645   : > { %3375 = vmatpush.bf16.xpose.msra.mxu2 %v3361_v44  ;;  %v2774_v15 = vpack.c.bf16 %v2756_v50, %v2756_v50  ;;  %v8755_v44 = vld [vmem:[%s10413_s7 + $0x40] sm:$0xff] }
 0x647   : > { %v3319_v48 = vunpack.c.l.b16 %v2774_v15 }
 0x64a   : > { %v2757_v16 = vpop.f32.mrf.mxu2 }
 0x64b   : > { %v2758_v2 = vadd.f32 %v11396_v45, %v2757_v16  ;;  %v11468_v45 = vpop.f32.mrf.mxu1 }
 0x64d   : > { %3376 = vmatpush.bf16.xpose.msra.mxu2 %v3358_v23  ;;  %v2775_v57 = vpack.c.bf16 %v2758_v2, %v2758_v2 }
 0x64f   : > { %v3320_v1 = vunpack.c.l.b16 %v2775_v57 }
 0x651   : > { %v3324_v17 = vpack.c.b16 %v3320_v1, %v3319_v48 }
 0x653   : > { %v11472_v18 = vpop.f32.mrf.mxu1 }
 0x654   : > { %8771 = vmatmul.msk.bf16.vlgmr.msra.gmra.mxu2 %vm2167_vm12, %v3321_v21 }
 0x655   : > { %3808 = vmatpush.bf16.msrb.mxu2 %v9550_v29 }
 0x659   : > { %3809 = vmatpush.bf16.msrb.mxu2 %v9549_v5  ;;  %v11488_v5 = vld [vmem:[%s10413_s7 + $0x58] sm:$0xff] }
 0x65b   : > { %v11477_v35 = vpop.f32.mrf.mxu1 }
 0x65d   : > { %3810 = vmatpush.bf16.msrb.mxu2 %v9548_v33 }
 0x661   : > { %3811 = vmatpush.bf16.msrb.mxu2 %v9547_v28 }
 0x663   : > { %v11485_v9 = vpop.f32.mrf.mxu1 }
 0x664   : > { %8772 = vmatmul.msk.bf16.gmra.mxu2 %vm2167_vm12, %v3322_v51  ;;  %v11504_v51 = vld [vmem:[%s10413_s7 + $0x68] sm:$0xff] }
 0x665   : > { %3812 = vmatpush.bf16.msrb.mxu2 %v9546_v39 }
 0x669   : > { %3813 = vmatpush.bf16.msrb.mxu2 %v9545_v12 }
 0x66b   : > { %v11493_v54 = vpop.f32.mrf.mxu1 }
 0x66d   : > { %3814 = vmatpush.bf16.msrb.mxu2 %v9544_v27 }
 0x671   : > { %3815 = vmatpush.bf16.msrb.mxu2 %v9543_v59 }
 0x673   : > { %v11509_v12 = vpop.f32.mrf.mxu1 }
 0x674   : > { %8773 = vmatmul.msk.bf16.gmra.mxu2 %vm2167_vm12, %v3323_v0 }
 0x67b   : > { %v11522_v24 = vpop.f32.mrf.mxu1 }
 0x684   : > { %8774 = vmatmul.msk.bf16.gmra.mxu2 %vm2167_vm12, %v3324_v17 }
 0x691   : > { %v3128_v2 = vpop.f32.mrf.mxu1 }
 0x692   : > { %v11532_v50 = vadd.f32 %v8755_v44, %v3128_v2 }
 0x694   : > { %3816 = vmatmul.bf16.vlgmr.msrb.gmra.mxu2 %v10768_v25  ;;  %v3148_v57 = vsel %vm2221_vm3, %v11532_v50, -inf }
 0x699   : > { %v3130_v1 = vpop.f32.mrf.mxu1 }
 0x6a4   : > { %3821 = vmatmul.bf16.gmra.mxu2 %v10808_v42 }
 0x6b4   : > { %3826 = vmatmul.bf16.gmra.mxu2 %v10820_v63 }
 0x6c4   : > { %3831 = vmatmul.bf16.gmra.mxu2 %v10857_v6 }
 0x6d4   : > { %3836 = vmatmul.bf16.gmra.mxu2 %v10880_v38 }
 0x6d7   : > { %v3378_v10 = vpop.f32.mrf.mxu2 }
 0x6d8   : > { %v3379_v13 = vadd.f32 %v8755_v44, %v3378_v10  ;;  %v11540_v44 = vadd.f32 %v8756_v14, %v3130_v1 }
 0x6da   : > { %v3398_v43 = vsel %vm2221_vm3, %v3379_v13, -inf }
 0x6db   : > { %3399 = vmax.xlane.f32.xlu1 %v3398_v43 }
 0x6df   : > { %v3380_v26 = vpop.f32.mrf.mxu2 }
 0x6e0   : > { %v3381_v31 = vadd.f32 %v8756_v14, %v3380_v26 }
 0x6e2   : > { %v3401_v23 = vsel %vm2221_vm3, %v3381_v31, -inf }
 0x6e3   : > { %3402 = vmax.xlane.f32.xlu2 %v3401_v23  ;;  %v3133_v23 = vpop.f32.mrf.mxu1 }
 0x6e4   : > { %3841 = vmatmul.bf16.gmra.mxu2 %v10936_v34 }
 0x6e7   : > { %v3383_v21 = vpop.f32.mrf.mxu2 }
 0x6e8   : > { %v3384_v29 = vadd.f32 %v11481_v47, %v3383_v21 }
 0x6ea   : > { %v3404_v55 = vsel %vm2221_vm3, %v3384_v29, -inf }
 0x6eb   : > { %3405 = vmax.xlane.f32.xlu0 %v3404_v55 }
 0x6ef   : > { %v3385_v4 = vpop.f32.mrf.mxu2 }
 0x6f0   : > { %v3386_v41 = vadd.f32 %v11488_v5, %v3385_v4 }
 0x6f2   : > { %v3407_v33 = vsel %vm2221_vm3, %v3386_v41, -inf }
 0x6f3   : > { %3408 = vmax.xlane.f32.xlu1 %v3407_v33 }
 0x6f4   : > { %3846 = vmatmul.bf16.gmra.mxu2 %v10972_v53 }
 0x6f7   : > { %v3388_v28 = vpop.f32.mrf.mxu2 }
 0x6f8   : > { %v11499_v61 = vadd.f32 %v11496_v37, %v3388_v28 }
 0x6fa   : > { %v3410_v52 = vsel %vm2221_vm3, %v11499_v61, -inf }
 0x6fb   : > { %3411 = vmax.xlane.f32.xlu2 %v3410_v52 }
 0x6ff   : > { %v3390_v39 = vpop.f32.mrf.mxu2 }
 0x700   : > { %v11507_v22 = vadd.f32 %v11504_v51, %v3390_v39  ;;  %v3135_v39 = vpop.f32.mrf.mxu1 }
 0x702   : > { %v3413_v62 = vsel %vm2221_vm3, %v11507_v22, -inf }
 0x703   : > { %3414 = vmax.xlane.f32.xlu0 %v3413_v62  ;;  %v11549_v62 = vadd.f32 %v11481_v47, %v3133_v23 }
 0x704   : > { %3851 = vmatmul.bf16.gmra.mxu2 %v11006_v58 }
 0x707   : > { %v3393_v7 = vpop.f32.mrf.mxu2 }
 0x708   : > { %v11518_v27 = vadd.f32 %v11515_v8, %v3393_v7  ;;  %v3138_v2 = vpop.f32.mrf.mxu1 }
 0x70a   : > { %v3416_v36 = vsel %vm2221_vm3, %v11518_v27, -inf }
 0x70b   : > { %3417 = vmax.xlane.f32.xlu1 %v3416_v36 }
 0x70f   : > { %v3395_v0 = vpop.f32.mrf.mxu2 }
 0x710   : > { %v11528_v59 = vadd.f32 %v11525_v40, %v3395_v0  ;;  %v3154_v0 = vsel %vm2221_vm3, %v11549_v62, -inf }
 0x712   : > { %v3419_v16 = vsel %vm2221_vm3, %v11528_v59, -inf }
 0x713   : > { %3420 = vmax.xlane.f32.xlu2 %v3419_v16 }
 0x71b   : > { %3149 = vmax.xlane.f32.xlu2 %v3148_v57  ;;  %v11558_v57 = vadd.f32 %v11488_v5, %v3135_v39 }
 0x74e   : > { %v3400_v15 = vpop.xlane.xlu1 %3399 }
 0x74f   : > { %v3422_v48 = vsub.f32 %v3379_v13, %v3400_v15 }
 0x751   : > { %v3430_v17 = vmul.f32 1.442695, %v3422_v48 }
 0x753   : > { %9806 = vpow2.f32 %v3430_v17  ;;  %v3157_v17 = vsel %vm2221_vm3, %v11558_v57, -inf }
 0x756   : > { %v3403_v10 = vpop.xlane.xlu2 %3402 }
 0x757   : > { %v3423_v43 = vsub.f32 %v3381_v31, %v3403_v10  ;;  %v3151_v31 = vsel %vm2221_vm3, %v11540_v44, -inf  ;;  %v11568_v10 = vadd.f32 %v11496_v37, %v3138_v2 }
 0x759   : > { %v11536_v26 = vpop.eup %9806  ;;  %v3432_v21 = vmul.f32 1.442695, %v3423_v43  ;;  %v3140_v43 = vpop.f32.mrf.mxu1 }
 0x75a   : > { %v3446_v55 = vsel %vm2221_vm3, %v11536_v26, 0.0 }
 0x75b   : > { %9808 = vpow2.f32 %v3432_v21  ;;  %3447 = vadd.xlane.f32.xlu0 %v3446_v55 }
 0x75e   : > { %v3406_v4 = vpop.xlane.xlu0 %3405 }
 0x75f   : > { %v3424_v33 = vsub.f32 %v3384_v29, %v3406_v4  ;;  %v3160_v4 = vsel %vm2221_vm3, %v11568_v10, -inf }
 0x761   : > { %v11542_v28 = vpop.eup %9808  ;;  %v3434_v13 = vmul.f32 1.442695, %v3424_v33  ;;  %v11578_v33 = vadd.f32 %v11504_v51, %v3140_v43 }
 0x762   : > { %v3449_v52 = vsel %vm2221_vm3, %v11542_v28, 0.0 }
 0x763   : > { %9810 = vpow2.f32 %v3434_v13  ;;  %3450 = vadd.xlane.f32.xlu1 %v3449_v52  ;;  %3152 = vmax.xlane.f32.xlu0 %v3151_v31  ;;  %v3163_v39 = vsel %vm2221_vm3, %v11578_v33, -inf }
 0x766   : > { %v3409_v14 = vpop.xlane.xlu1 %3408 }
 0x767   : > { %v3425_v7 = vsub.f32 %v3386_v41, %v3409_v14 }
 0x769   : > { %v11551_v36 = vpop.eup %9810  ;;  %v3436_v29 = vmul.f32 1.442695, %v3425_v7 }
 0x76a   : > { %v3452_v16 = vsel %vm2221_vm3, %v11551_v36, 0.0 }
 0x76b   : > { %9812 = vpow2.f32 %v3436_v29  ;;  %3155 = vmax.xlane.f32.xlu0 %v3154_v0  ;;  %3453 = vadd.xlane.f32.xlu1 %v3452_v16 }
 0x76e   : > { %v3412_v47 = vpop.xlane.xlu2 %3411 }
 0x76f   : > { %v3426_v15 = vsub.f32 %v11499_v61, %v3412_v47 }
 0x771   : > { %v11561_v41 = vpop.eup %9812  ;;  %v3438_v1 = vmul.f32 1.442695, %v3426_v15 }
 0x772   : > { %v3455_v48 = vsel %vm2221_vm3, %v11561_v41, 0.0 }
 0x773   : > { %9814 = vpow2.f32 %v3438_v1  ;;  %3456 = vadd.xlane.f32.xlu2 %v3455_v48  ;;  %3158 = vmax.xlane.f32.xlu1 %v3157_v17 }
 0x776   : > { %v3415_v5 = vpop.xlane.xlu0 %3414 }
 0x777   : > { %v3427_v23 = vsub.f32 %v11507_v22, %v3415_v5  ;;  %v3143_v22 = vpop.f32.mrf.mxu1 }
 0x778   : > { %v11588_v7 = vadd.f32 %v11515_v8, %v3143_v22 }
 0x779   : > { %v11571_v61 = vpop.eup %9814  ;;  %v3440_v21 = vmul.f32 1.442695, %v3427_v23 }
 0x77a   : > { %v3458_v55 = vsel %vm2221_vm3, %v11571_v61, 0.0  ;;  %v3166_v16 = vsel %vm2221_vm3, %v11588_v7, -inf }
 0x77b   : > { %9816 = vpow2.f32 %v3440_v21  ;;  %3459 = vadd.xlane.f32.xlu2 %v3458_v55  ;;  %3161 = vmax.xlane.f32.xlu1 %v3160_v4 }
 0x77e   : > { %v3418_v37 = vpop.xlane.xlu1 %3417 }
 0x77f   : > { %v3428_v13 = vsub.f32 %v11518_v27, %v3418_v37  ;;  %v3145_v47 = vpop.f32.mrf.mxu1 }
 0x780   : > { %v11598_v15 = vadd.f32 %v11525_v40, %v3145_v47  ;;  %v9557_v47 = vld [vmem:[%s10391_s25 + $0xb0] sm:$0xff] }
 0x781   : > { %v11581_v52 = vpop.eup %9816  ;;  %v3442_v31 = vmul.f32 1.442695, %v3428_v13 }
 0x782   : > { %v3461_v14 = vsel %vm2221_vm3, %v11581_v52, 0.0  ;;  %v3169_v5 = vsel %vm2221_vm3, %v11598_v15, -inf }
 0x783   : > { %9818 = vpow2.f32 %v3442_v31  ;;  %3164 = vmax.xlane.f32.xlu2 %v3163_v39  ;;  %3462 = vadd.xlane.f32.xlu0 %v3461_v14 }
 0x786   : > { %v3421_v51 = vpop.xlane.xlu2 %3420 }
 0x787   : > { %v3429_v29 = vsub.f32 %v11528_v59, %v3421_v51 }
 0x789   : > { %v11591_v27 = vpop.eup %9818  ;;  %v3444_v0 = vmul.f32 1.442695, %v3429_v29 }
 0x78a   : > { %v3464_v2 = vsel %vm2221_vm3, %v11591_v27, 0.0 }
 0x78b   : > { %9820 = vpow2.f32 %v3444_v0  ;;  %3167 = vmax.xlane.f32.xlu2 %v3166_v16  ;;  %3465 = vadd.xlane.f32.xlu0 %v3464_v2 }
 0x78e   : > { %v3150_v8 = vpop.xlane.xlu2 %3149 }
 0x78f   : > { %v3172_v1 = vsub.f32 %v11532_v50, %v3150_v8 }
 0x791   : > { %v11601_v59 = vpop.eup %9820  ;;  %v3180_v48 = vmul.f32 1.442695, %v3172_v1 }
 0x792   : > { %v3467_v17 = vsel %vm2221_vm3, %v11601_v59, 0.0 }
 0x793   : > { %9822 = vpow2.f32 %v3180_v48  ;;  %3468 = vadd.xlane.f32.xlu1 %v3467_v17  ;;  %3170 = vmax.xlane.f32.xlu0 %v3169_v5  ;;  %v9556_v5 = vld [vmem:[%s10391_s25 + $0xa8] sm:$0xff] }
 0x799   : > { %v11607_v43 = vpop.eup %9822 }
 0x79a   : > { %v3196_v40 = vsel %vm2221_vm3, %v11607_v43, 0.0 }
 0x79b   : > { %3197 = vadd.xlane.f32.xlu1 %v3196_v40 }
 0x7ce   : > { %v3448_v23 = vpop.xlane.xlu0 %3447 }
 0x7cf   : > { %9824 = vrcp.f32 %v3448_v23 }
 0x7d5   : > { %v9825_v37 = vpop.eup %9824 }
 0x7d6   : > { %v3451_v50 = vpop.xlane.xlu1 %3450  ;;  %v3153_v21 = vpop.xlane.xlu0 %3152  ;;  %v3478_v22 = vmul.f32 %v9825_v37, %v11536_v26  ;;  %v9558_v26 = vld [vmem:[%s10391_s25 + $0xb8] sm:$0xff]  ;;  %v9555_v37 = vld [vmem:[%s10391_s25 + $0xa0] sm:$0xff] }
 0x7d7   : > { %9826 = vrcp.f32 %v3451_v50  ;;  %v3173_v55 = vsub.f32 %v11540_v44, %v3153_v21  ;;  %3943 = vmatpush.bf16.msrb.mxu3 %v9558_v26  ;;  %v9552_v26 = vld [vmem:[%s10391_s25 + $0x88] sm:$0xff] }
 0x7d9   : > { %v3182_v4 = vmul.f32 1.442695, %v3173_v55 }
 0x7db   : > { %9828 = vpow2.f32 %v3182_v4  ;;  %3944 = vmatpush.bf16.msrb.mxu3 %v9557_v47 }
 0x7dd   : > { %v9827_v13 = vpop.eup %9826 }
 0x7de   : > { %v3479_v31 = vmul.f32 %v9827_v13, %v11542_v28  ;;  %v3454_v39 = vpop.xlane.xlu1 %3453  ;;  %v3156_v14 = vpop.xlane.xlu0 %3155 }
 0x7df   : > { %v3174_v51 = vsub.f32 %v11549_v62, %v3156_v14  ;;  %3945 = vmatpush.bf16.msrb.mxu3 %v9556_v5  ;;  %v9553_v14 = vld [vmem:[%s10391_s25 + $0x90] sm:$0xff] }
 0x7e0   : > { %v3486_v29 = vpack.c.bf16 %v3479_v31, %v3478_v22 }
 0x7e1   : > { %v11615_v0 = vpop.eup %9828  ;;  %v3184_v16 = vmul.f32 1.442695, %v3174_v51 }
 0x7e2   : > { %8775 = vmatmul.msk.bf16.vlgmr.msra.gmra.mxu3 %vm2221_vm3, %v3486_v29  ;;  %v3199_v44 = vsel %vm2221_vm3, %v11615_v0, 0.0 }
 0x7e3   : > { %9830 = vpow2.f32 %v3184_v16  ;;  %3200 = vadd.xlane.f32.xlu2 %v3199_v44  ;;  %3946 = vmatpush.bf16.msrb.mxu3 %v9555_v37 }
 0x7e4   : > { %9832 = vrcp.f32 %v3454_v39 }
 0x7e6   : > { %v3457_v28 = vpop.xlane.xlu2 %3456  ;;  %v3159_v2 = vpop.xlane.xlu1 %3158 }
 0x7e7   : > { %9834 = vrcp.f32 %v3457_v28  ;;  %v3175_v62 = vsub.f32 %v11558_v57, %v3159_v2 }
 0x7e9   : > { %v11623_v8 = vpop.eup %9830  ;;  %v3186_v1 = vmul.f32 1.442695, %v3175_v62 }
 0x7ea   : > { %v3202_v48 = vsel %vm2221_vm3, %v11623_v8, 0.0  ;;  %v9833_v17 = vpop.eup %9832 }
 0x7eb   : > { %9836 = vpow2.f32 %v3186_v1  ;;  %3203 = vadd.xlane.f32.xlu0 %v3202_v48  ;;  %v3480_v23 = vmul.f32 %v9833_v17, %v11551_v36  ;;  %v9554_v36 = vld [vmem:[%s10391_s25 + $0x98] sm:$0xff]  ;;  %v9551_v48 = vld [vmem:[%s10391_s25 + $0x80] sm:$0xff] }
 0x7ec   : > { %3947 = vmatpush.bf16.msrb.mxu3 %v9554_v36 }
 0x7ed   : > { %v9835_v40 = vpop.eup %9834 }
 0x7ee   : > { %v3481_v50 = vmul.f32 %v9835_v40, %v11561_v41  ;;  %v3460_v57 = vpop.xlane.xlu2 %3459  ;;  %v3162_v21 = vpop.xlane.xlu1 %3161 }
 0x7ef   : > { %v3176_v55 = vsub.f32 %v11568_v10, %v3162_v21 }
 0x7f0   : > { %v3487_v4 = vpack.c.bf16 %v3481_v50, %v3480_v23  ;;  %3948 = vmatpush.bf16.msrb.mxu3 %v9553_v14 }
 0x7f1   : > { %v11632_v13 = vpop.eup %9836  ;;  %v3188_v22 = vmul.f32 1.442695, %v3176_v55 }
 0x7f2   : > { %8776 = vmatmul.msk.bf16.gmra.mxu3 %vm2221_vm3, %v3487_v4  ;;  %v3205_v31 = vsel %vm2221_vm3, %v11632_v13, 0.0 }
 0x7f3   : > { %9838 = vpow2.f32 %v3188_v22  ;;  %3206 = vadd.xlane.f32.xlu1 %v3205_v31 }
 0x7f4   : > { %9840 = vrcp.f32 %v3460_v57  ;;  %3949 = vmatpush.bf16.msrb.mxu3 %v9552_v26 }
 0x7f6   : > { %v3165_v41 = vpop.xlane.xlu2 %3164  ;;  %v3463_v39 = vpop.xlane.xlu0 %3462 }
 0x7f7   : > { %v3177_v10 = vsub.f32 %v11578_v33, %v3165_v41  ;;  %9842 = vrcp.f32 %v3463_v39 }
 0x7f8   : > { %3950 = vmatpush.bf16.msrb.mxu3 %v9551_v48  ;;  %v9516_v48 = vld [vmem:[%s10419_s24 + $0x8] sm:$0xff] }
 0x7f9   : > { %v11640_v51 = vpop.eup %9838  ;;  %v3190_v29 = vmul.f32 1.442695, %v3177_v10  ;;  %3695 = vmatpush.bf16.msra.mxu1 %v9516_v48  ;;  %v2633_v48 = vpack.c.bf16 %v11468_v45, %v11466_v19 }
 0x7fa   : > { %v3208_v16 = vsel %vm2221_vm3, %v11640_v51, 0.0  ;;  %v9841_v44 = vpop.eup %9840 }
 0x7fb   : > { %9844 = vpow2.f32 %v3190_v29  ;;  %3209 = vadd.xlane.f32.xlu2 %v3208_v16  ;;  %v3482_v2 = vmul.f32 %v9841_v44, %v11571_v61 }
 0x7fd   : > { %v9843_v28 = vpop.eup %9842 }
 0x7fe   : > { %v3483_v33 = vmul.f32 %v9843_v28, %v11581_v52  ;;  %v3168_v62 = vpop.xlane.xlu2 %3167  ;;  %v3466_v47 = vpop.xlane.xlu0 %3465 }
 0x7ff   : > { %v3178_v1 = vsub.f32 %v11588_v7, %v3168_v62 }
 0x800   : > { %v3488_v17 = vpack.c.bf16 %v3483_v33, %v3482_v2 }
 0x801   : > { %v11649_v5 = vpop.eup %9844  ;;  %v3192_v40 = vmul.f32 1.442695, %v3178_v1 }
 0x802   : > { %8777 = vmatmul.msk.bf16.gmra.mxu3 %vm2221_vm3, %v3488_v17  ;;  %v3211_v23 = vsel %vm2221_vm3, %v11649_v5, 0.0 }
 0x803   : > { %9846 = vpow2.f32 %v3192_v40  ;;  %3212 = vadd.xlane.f32.xlu0 %v3211_v23 }
 0x804   : > { %9848 = vrcp.f32 %v3466_v47 }
 0x806   : > { %v3469_v61 = vpop.xlane.xlu1 %3468  ;;  %v3171_v52 = vpop.xlane.xlu0 %3170 }
 0x807   : > { %9850 = vrcp.f32 %v3469_v61  ;;  %v3179_v7 = vsub.f32 %v11598_v15, %v3171_v52  ;;  %v9515_v52 = vld [vmem:[%s10419_s24] sm:$0xff] }
 0x808   : > { %3696 = vmatpush.bf16.msra.mxu1 %v9515_v52 }
 0x809   : > { %v11655_v50 = vpop.eup %9846  ;;  %v3194_v57 = vmul.f32 1.442695, %v3179_v7 }
 0x80a   : > { %v3214_v21 = vsel %vm2221_vm3, %v11655_v50, 0.0  ;;  %v9849_v55 = vpop.eup %9848 }
 0x80b   : > { %9852 = vpow2.f32 %v3194_v57  ;;  %3215 = vadd.xlane.f32.xlu1 %v3214_v21  ;;  %v3484_v37 = vmul.f32 %v9849_v55, %v11591_v27 }
 0x80d   : > { %v9851_v4 = vpop.eup %9850 }
 0x80e   : > { %v3485_v22 = vmul.f32 %v9851_v4, %v11601_v59  ;;  %v3198_v41 = vpop.xlane.xlu1 %3197 }
 0x80f   : > { %9854 = vrcp.f32 %v3198_v41 }
 0x810   : > { %v3489_v31 = vpack.c.bf16 %v3485_v22, %v3484_v37 }
 0x811   : > { %v9853_v36 = vpop.eup %9852 }
 0x812   : > { %8778 = vmatmul.msk.bf16.gmra.mxu3 %vm2221_vm3, %v3489_v31  ;;  %v3217_v15 = vsel %vm2221_vm3, %v9853_v36, 0.0 }
 0x813   : > { %3218 = vadd.xlane.f32.xlu2 %v3217_v15 }
 0x815   : > { %v9855_v59 = vpop.eup %9854 }
 0x816   : > { %v3228_v10 = vmul.f32 %v9855_v59, %v11607_v43 }
 0x822   : > { %3951 = vmatmul.bf16.vlgmr.msrb.gmra.mxu3 %v10768_v25 }
 0x832   : > { %3956 = vmatmul.bf16.gmra.mxu3 %v10808_v42 }
 0x842   : > { %3961 = vmatmul.bf16.gmra.mxu3 %v10820_v63 }
 0x852   : > { %3966 = vmatmul.bf16.gmra.mxu3 %v10857_v6 }
 0x856   : > { %v3201_v27 = vpop.xlane.xlu2 %3200 }
 0x857   : > { %9856 = vrcp.f32 %v3201_v27  ;;  %v2629_v27 = vpack.c.bf16 %v11343_v56, %v11341_v32  ;;  %v9541_v32 = vld [vmem:[%s10419_s24 + $0x10] sm:$0xff] }
 0x85d   : > { %v9857_v39 = vpop.eup %9856 }
 0x85e   : > { %v3229_v14 = vmul.f32 %v9857_v39, %v11615_v0  ;;  %v3204_v16 = vpop.xlane.xlu0 %3203 }
 0x85f   : > { %9858 = vrcp.f32 %v3204_v16 }
 0x860   : > { %v3236_v29 = vpack.c.bf16 %v3229_v14, %v3228_v10  ;;  %v2631_v14 = vpack.c.bf16 %v11353_v30, %v11351_v3 }
 0x862   : > { %8767 = vmatmul.msk.bf16.vlgmr.msrb.gmra.mxu1 %vm2221_vm3, %v3236_v29  ;;  %3971 = vmatmul.bf16.gmra.mxu3 %v10880_v38  ;;  %v9542_v29 = vld [vmem:[%s10419_s24 + $0x18] sm:$0xff] }
 0x863   : > { %3610 = vmatpush.bf16.msrb.mxu0 %v9542_v29 }
 0x865   : > { %v11671_v44 = vpop.f32.mrf.mxu3  ;;  %v9859_v28 = vpop.eup %9858 }
 0x866   : > { %v3207_v26 = vpop.xlane.xlu1 %3206  ;;  %v3230_v43 = vmul.f32 %v9859_v28, %v11623_v8  ;;  %v11717_v28 = vld [vmem:[%s10397_s5 + $0x2] ss:$0 sm:$0xff] }
 0x867   : > { %9860 = vrcp.f32 %v3207_v26  ;;  %3611 = vmatpush.bf16.msrb.mxu0 %v9541_v32  ;;  %v11711_v26 = vpop.f32.mrf.mxu2 }
 0x86d   : > { %v9861_v2 = vpop.eup %9860  ;;  %v11673_v33 = vpop.f32.mrf.mxu3 }
 0x86e   : > { %v3231_v0 = vmul.f32 %v9861_v2, %v11632_v13  ;;  %v3210_v47 = vpop.xlane.xlu2 %3209 }
 0x86f   : > { %9862 = vrcp.f32 %v3210_v47  ;;  %v11719_v2 = vpop.f32.mrf.mxu2 }
 0x870   : > { %v3237_v62 = vpack.c.bf16 %v3231_v0, %v3230_v43 }
 0x872   : > { %8768 = vmatmul.msk.bf16.gmra.mxu1 %vm2221_vm3, %v3237_v62  ;;  %3976 = vmatmul.bf16.gmra.mxu3 %v10936_v34 }
 0x875   : > { %v11679_v1 = vpop.f32.mrf.mxu3  ;;  %v9863_v40 = vpop.eup %9862 }
 0x876   : > { %v3213_v17 = vpop.xlane.xlu0 %3212  ;;  %v3232_v8 = vmul.f32 %v9863_v40, %v11640_v51 }
 0x877   : > { %9864 = vrcp.f32 %v3213_v17 }
 0x87d   : > { %v9865_v23 = vpop.eup %9864  ;;  %v11682_v61 = vpop.f32.mrf.mxu3 }
 0x87e   : > { %v3233_v13 = vmul.f32 %v9865_v23, %v11649_v5  ;;  %v3216_v57 = vpop.xlane.xlu1 %3215 }
 0x87f   : > { %9866 = vrcp.f32 %v3216_v57 }
 0x880   : > { %v3238_v7 = vpack.c.bf16 %v3233_v13, %v3232_v8  ;;  %v11728_v8 = vpop.f32.mrf.mxu2 }
 0x882   : > { %8769 = vmatmul.msk.bf16.gmra.mxu1 %vm2221_vm3, %v3238_v7  ;;  %3981 = vmatmul.bf16.gmra.mxu3 %v10972_v53 }
 0x885   : > { %v11689_v21 = vpop.f32.mrf.mxu3  ;;  %v9867_v4 = vpop.eup %9866 }
 0x886   : > { %v3219_v55 = vpop.xlane.xlu2 %3218  ;;  %v3234_v51 = vmul.f32 %v9867_v4, %v11655_v50  ;;  %v2630_v50 = vpack.c.bf16 %v11348_v60, %v11346_v49  ;;  %v2632_v49 = vpack.c.bf16 %v11362_v46, %v11359_v20 }
 0x887   : > { %9868 = vrcp.f32 %v3219_v55 }
 0x88d   : > { %v9869_v37 = vpop.eup %9868  ;;  %v11691_v22 = vpop.f32.mrf.mxu3 }
 0x88e   : > { %v3235_v5 = vmul.f32 %v9869_v37, %v9853_v36 }
 0x890   : > { %v3239_v31 = vpack.c.bf16 %v3235_v5, %v3234_v51 }
 0x892   : > { %8770 = vmatmul.msk.bf16.gmra.mxu1 %vm2221_vm3, %v3239_v31  ;;  %3986 = vmatmul.bf16.gmra.mxu3 %v11006_v58 }
 0x895   : > { %v11696_v15 = vpop.f32.mrf.mxu3 }
 0x89d   : > { %v11698_v41 = vpop.f32.mrf.mxu3 }
 0x8a2   : > { %8807 = vmatmul.msk.bf16.vlgmr.msra.gmra.mxu1 %vm2167_vm12, %v2629_v27 }
 0x8a5   : > { %v3952_v59 = vpop.f32.mrf.mxu3 }
 0x8ad   : > { %v3954_v39 = vpop.f32.mrf.mxu3 }
 0x8b2   : > { %8808 = vmatmul.msk.bf16.gmra.mxu1 %vm2167_vm12, %v2630_v50  ;;  %v11736_v50 = vpop.f32.mrf.mxu2 }
 0x8b5   : > { %v3957_v36 = vpop.f32.mrf.mxu3 }
 0x8b6   : > { %v3958_v45 = vadd.f32 %v11717_v28, %v3957_v36  ;;  %v2634_v36 = vpack.c.bf16 %v11477_v35, %v11472_v18 }
 0x8b8   : > { %v3994_v27 = vpack.c.bf16 %v3958_v45, %v3958_v45  ;;  %v11764_v45 = vld [vmem:[%s14354_s10 + $0x2] ss:$0 sm:$0xff] }
 0x8bd   : > { %v3959_v10 = vpop.f32.mrf.mxu3 }
 0x8be   : > { %v3960_v57 = vadd.f32 %v11717_v28, %v3959_v10  ;;  %v3955_v10 = vadd.f32 %v11717_v28, %v3954_v39 }
 0x8c0   : > { %v3995_v5 = vpack.c.bf16 %v3960_v57, %v3960_v57 }
 0x8c2   : > { %8809 = vmatmul.msk.bf16.gmra.mxu1 %vm2167_vm12, %v2631_v14  ;;  %v4183_v29 = vunpack.c.l.b16 %v3995_v5 }
 0x8c5   : > { %v3962_v16 = vpop.f32.mrf.mxu3 }
 0x8c6   : > { %v3963_v20 = vadd.f32 %v11717_v28, %v3962_v16 }
 0x8c8   : > { %v3996_v13 = vpack.c.bf16 %v3963_v20, %v3963_v20 }
 0x8ca   : > { %v4184_v37 = vunpack.c.l.b16 %v3996_v13 }
 0x8cd   : > { %v3964_v56 = vpop.f32.mrf.mxu3 }
 0x8ce   : > { %v3965_v43 = vadd.f32 %v11717_v28, %v3964_v56  ;;  %v3953_v56 = vadd.f32 %v11717_v28, %v3952_v59 }
 0x8d0   : > { %v3997_v17 = vpack.c.bf16 %v3965_v43, %v3965_v43 }
 0x8d2   : > { %8810 = vmatmul.msk.bf16.gmra.mxu1 %vm2167_vm12, %v2632_v49  ;;  %v4185_v55 = vunpack.c.l.b16 %v3997_v17  ;;  %v4182_v49 = vunpack.c.l.b16 %v3994_v27  ;;  %v2635_v17 = vpack.c.bf16 %v11493_v54, %v11485_v9  ;;  %v3820_v9 = vadd.f32 %v11764_v45, %v11719_v2 }
 0x8d4   : > { %v4190_v31 = vpack.c.b16 %v4185_v55, %v4184_v37 }
 0x8d5   : > { %v3967_v60 = vpop.f32.mrf.mxu3 }
 0x8d6   : > { %v3968_v3 = vadd.f32 %v11717_v28, %v3967_v60  ;;  %v4211_v16 = vsel %vm2167_vm12, %v4190_v31, 0  ;;  %v3993_v60 = vpack.c.bf16 %v3955_v10, %v3955_v10  ;;  %v3858_v31 = vpack.c.bf16 %v3820_v9, %v3820_v9  ;;  %v9566_v9 = vld [vmem:[%s10402_s26 + $0xb8] sm:$0xff] }
 0x8d7   : > { %4078 = vmatpush.bf16.msra.mxu0 %v9566_v9 }
 0x8d8   : > { %v3998_v0 = vpack.c.bf16 %v3968_v3, %v3968_v3  ;;  %v4189_v3 = vpack.c.b16 %v4183_v29, %v4182_v49 }
 0x8da   : > { %v4186_v40 = vunpack.c.l.b16 %v3998_v0  ;;  %v4181_v0 = vunpack.c.l.b16 %v3993_v60  ;;  %v4208_v39 = vsel %vm2167_vm12, %v4189_v3, 0 }
 0x8dd   : > { %v3969_v30 = vpop.f32.mrf.mxu3 }
 0x8de   : > { %v3970_v62 = vadd.f32 %v11717_v28, %v3969_v30  ;;  %v3992_v30 = vpack.c.bf16 %v3953_v56, %v3953_v56 }
 0x8df   : > { %v3285_v47 = vpop.f32.mrf.mxu1 }
 0x8e0   : > { %v3999_v46 = vpack.c.bf16 %v3970_v62, %v3970_v62  ;;  %v11749_v62 = vpop.f32.mrf.mxu2 }
 0x8e2   : > { %v4187_v23 = vunpack.c.l.b16 %v3999_v46  ;;  %8811 = vmatmul.msk.bf16.gmra.mxu1 %vm2167_vm12, %v2633_v48  ;;  %v4180_v48 = vunpack.c.l.b16 %v3992_v30 }
 0x8e4   : > { %v4191_v52 = vpack.c.b16 %v4187_v23, %v4186_v40  ;;  %v4188_v18 = vpack.c.b16 %v4181_v0, %v4180_v48 }
 0x8e5   : > { %v11730_v7 = vpop.f32.mrf.mxu3 }
 0x8e6   : > { %v4214_v4 = vsel %vm2167_vm12, %v4191_v52, 0  ;;  %v4205_v59 = vsel %vm2167_vm12, %v4188_v18, 0  ;;  %v3823_v18 = vadd.f32 %v11764_v45, %v11728_v8 }
 0x8e7   : > { %v3287_v19 = vpop.f32.mrf.mxu1  ;;  %4220 = vmatpush.bf16.xpose.msrb.mxu1 %v4214_v4 }
 0x8e8   : > { %v3555_v51 = vpack.c.bf16 %v3287_v19, %v3285_v47  ;;  %v11755_v40 = vpop.f32.mrf.mxu2  ;;  %v2636_v19 = vpack.c.bf16 %v11522_v24, %v11509_v12  ;;  %v4161_v12 = vunpack.c.l.b16 %v3858_v31 }
 0x8ea   : > { %8791 = vmatmul.msk.bf16.vlgmr.msrb.gmra.mxu0 %vm2167_vm12, %v3555_v51  ;;  %v3818_v51 = vadd.f32 %v11764_v45, %v11711_v26 }
 0x8ec   : > { %v3857_v10 = vpack.c.bf16 %v3818_v51, %v3818_v51 }
 0x8ed   : > { %v11738_v14 = vpop.f32.mrf.mxu3 }
 0x8ef   : > { %v3290_v32 = vpop.f32.mrf.mxu1  ;;  %4221 = vmatpush.bf16.xpose.msrb.mxu1 %v4211_v16  ;;  %v4160_v16 = vunpack.c.l.b16 %v3857_v10 }
 0x8f0   : > { %v11759_v57 = vpop.f32.mrf.mxu2 }
 0x8f1   : > { %v4168_v26 = vpack.c.b16 %v4161_v12, %v4160_v16 }
 0x8f2   : > { %8812 = vmatmul.msk.bf16.gmra.mxu1 %vm2167_vm12, %v2634_v36 }
 0x8f5   : > { %v11746_v43 = vpop.f32.mrf.mxu3 }
 0x8f7   : > { %v3292_v47 = vpop.f32.mrf.mxu1  ;;  %4222 = vmatpush.bf16.xpose.msrb.mxu1 %v4208_v39 }
 0x8f8   : > { %v3556_v20 = vpack.c.bf16 %v3292_v47, %v3290_v32  ;;  %v11769_v54 = vpop.f32.mrf.mxu2  ;;  %v3825_v47 = vadd.f32 %v11764_v45, %v11736_v50  ;;  %v3978_v50 = vadd.f32 %v11717_v28, %v11746_v43 }
 0x8fa   : > { %8792 = vmatmul.msk.bf16.gmra.mxu0 %vm2167_vm12, %v3556_v20  ;;  %v4002_v51 = vpack.c.bf16 %v3978_v50, %v3978_v50 }
 0x8fc   : > { %v4432_v12 = vunpack.c.l.b16 %v4002_v51 }
 0x8fd   : > { %v3979_v35 = vpop.f32.mrf.mxu3 }
 0x8ff   : > { %v3295_v46 = vpop.f32.mrf.mxu1  ;;  %4223 = vmatpush.bf16.xpose.msrb.mxu1 %v4205_v59  ;;  %v3980_v59 = vadd.f32 %v11717_v28, %v3979_v35 }
 0x900   : > { %v3837_v56 = vpop.f32.mrf.mxu2 }
 0x901   : > { %v4003_v8 = vpack.c.bf16 %v3980_v59, %v3980_v59 }
 0x902   : > { %8813 = vmatmul.msk.bf16.gmra.mxu1 %vm2167_vm12, %v2635_v17 }
 0x905   : > { %v3982_v23 = vpop.f32.mrf.mxu3 }
 0x906   : > { %v3983_v60 = vadd.f32 %v11717_v28, %v3982_v23 }
 0x907   : > { %v3297_v13 = vpop.f32.mrf.mxu1 }
 0x908   : > { %v3557_v52 = vpack.c.bf16 %v3297_v13, %v3295_v46  ;;  %v4004_v48 = vpack.c.bf16 %v3983_v60, %v3983_v60  ;;  %v3860_v13 = vpack.c.bf16 %v3825_v47, %v3825_v47 }
 0x90a   : > { %8793 = vmatmul.msk.bf16.gmra.mxu0 %vm2167_vm12, %v3557_v52  ;;  %v3559_v52 = vpack.c.bf16 %v11673_v33, %v11671_v44  ;;  %v3975_v44 = vadd.f32 %v11717_v28, %v11738_v14  ;;  %v4433_v33 = vunpack.c.l.b16 %v4003_v8 }
 0x90c   : > { %v4439_v16 = vpack.c.b16 %v4433_v33, %v4432_v12  ;;  %v9559_v33 = vld [vmem:[%s10402_s26 + $0x80] sm:$0xff] }
 0x90d   : > { %v3984_v55 = vpop.f32.mrf.mxu3 }
 0x90e   : > { %v3985_v32 = vadd.f32 %v11717_v28, %v3984_v55  ;;  %v4434_v55 = vunpack.c.l.b16 %v4004_v48  ;;  %v3838_v48 = vadd.f32 %v11764_v45, %v3837_v56 }
 0x90f   : > { %v3300_v4 = vpop.f32.mrf.mxu1 }
 0x910   : > { %v4005_v30 = vpack.c.bf16 %v3985_v32, %v3985_v32  ;;  %v9564_v32 = vld [vmem:[%s10402_s26 + $0xa8] sm:$0xff] }
 0x912   : > { %8814 = vmatmul.msk.bf16.gmra.mxu1 %vm2167_vm12, %v2636_v19  ;;  %v4435_v46 = vunpack.c.l.b16 %v4005_v30  ;;  %v3859_v19 = vpack.c.bf16 %v3823_v18, %v3823_v18 }
 0x914   : > { %v4440_v35 = vpack.c.b16 %v4435_v46, %v4434_v55  ;;  %v9560_v55 = vld [vmem:[%s10402_s26 + $0x88] sm:$0xff] }
 0x915   : > { %v3987_v37 = vpop.f32.mrf.mxu3 }
 0x916   : > { %v3988_v29 = vadd.f32 %v11717_v28, %v3987_v37  ;;  %v4163_v37 = vunpack.c.l.b16 %v3860_v13  ;;  %v4461_v43 = vsel %vm2167_vm12, %v4440_v35, 0  ;;  %v3865_v13 = vpack.c.bf16 %v3838_v48, %v3838_v48 }
 0x917   : > { %v3302_v5 = vpop.f32.mrf.mxu1  ;;  %v3833_v35 = vadd.f32 %v11764_v45, %v11759_v57  ;;  %v9575_v57 = vld [vmem:[%s14343_s15 + $0xf0] sm:$0xff] }
 0x918   : > { %v3558_v27 = vpack.c.bf16 %v3302_v5, %v3300_v4  ;;  %v4006_v2 = vpack.c.bf16 %v3988_v29, %v3988_v29  ;;  %v3839_v4 = vpop.f32.mrf.mxu2  ;;  %v4162_v5 = vunpack.c.l.b16 %v3859_v19  ;;  %v3973_v29 = vadd.f32 %v11717_v28, %v11730_v7 }
 0x919   : > { %v3835_v19 = vadd.f32 %v11764_v45, %v11769_v54  ;;  %v9576_v54 = vld [vmem:[%s14343_s15 + $0xf8] sm:$0xff] }
 0x91a   : > { %8794 = vmatmul.msk.bf16.gmra.mxu0 %vm2167_vm12, %v3558_v27  ;;  %v4436_v0 = vunpack.c.l.b16 %v4006_v2  ;;  %v9565_v27 = vld [vmem:[%s10402_s26 + $0xb0] sm:$0xff]  ;;  %v4169_v10 = vpack.c.b16 %v4163_v37, %v4162_v5  ;;  %v3830_v2 = vadd.f32 %v11764_v45, %v11755_v40 }
 0x91b   : > { %4079 = vmatpush.bf16.msra.mxu0 %v9565_v27  ;;  %v3864_v51 = vpack.c.bf16 %v3835_v19, %v3835_v19 }
 0x91c   : > { %v3862_v30 = vpack.c.bf16 %v3830_v2, %v3830_v2 }
 0x91d   : > { %v3989_v24 = vpop.f32.mrf.mxu3 }
 0x91e   : > { %v3990_v36 = vadd.f32 %v11717_v28, %v3989_v24  ;;  %v4001_v24 = vpack.c.bf16 %v3975_v44, %v3975_v44  ;;  %v4458_v28 = vsel %vm2167_vm12, %v4439_v16, 0  ;;  %v4165_v18 = vunpack.c.l.b16 %v3862_v30  ;;  %v9572_v30 = vld [vmem:[%s14343_s15 + $0xd8] sm:$0xff] }
 0x91f   : > { %v11777_v49 = vpop.f32.mrf.mxu1  ;;  %4080 = vmatpush.bf16.msra.mxu0 %v9564_v32  ;;  %v3561_v44 = vpack.c.bf16 %v11691_v22, %v11689_v21  ;;  %v9574_v32 = vld [vmem:[%s14343_s15 + $0xe8] sm:$0xff] }
 0x920   : > { %v4007_v3 = vpack.c.bf16 %v3990_v36, %v3990_v36  ;;  %v3842_v14 = vpop.f32.mrf.mxu2  ;;  %v4000_v36 = vpack.c.bf16 %v3973_v29, %v3973_v29  ;;  %v4431_v60 = vunpack.c.l.b16 %v4001_v24 }
 0x921   : > { %v3843_v27 = vadd.f32 %v11764_v45, %v3842_v14 }
 0x922   : > { %v4437_v39 = vunpack.c.l.b16 %v4007_v3  ;;  %8970 = vmatmul.msk.bf16.vlgmr.msrb.gmra.mxu1 %vm2167_vm12, %v4168_v26  ;;  %v3828_v26 = vadd.f32 %v11764_v45, %v11749_v62  ;;  %v9563_v3 = vld [vmem:[%s10402_s26 + $0xa0] sm:$0xff]  ;;  %v4430_v40 = vunpack.c.l.b16 %v4000_v36 }
 0x923   : > { %4081 = vmatpush.bf16.msra.mxu0 %v9563_v3  ;;  %v3867_v24 = vpack.c.bf16 %v3843_v27, %v3843_v27  ;;  %v9573_v36 = vld [vmem:[%s14343_s15 + $0xe0] sm:$0xff]  ;;  %v3562_v3 = vpack.c.bf16 %v11698_v41, %v11696_v15 }
 0x924   : > { %v4441_v20 = vpack.c.b16 %v4437_v39, %v4436_v0  ;;  %v3840_v0 = vadd.f32 %v11764_v45, %v3839_v4  ;;  %v3560_v39 = vpack.c.bf16 %v11682_v61, %v11679_v1  ;;  %v3861_v47 = vpack.c.bf16 %v3828_v26, %v3828_v26  ;;  %v9561_v61 = vld [vmem:[%s10402_s26 + $0x90] sm:$0xff] }
 0x925   : > { %v4438_v62 = vpack.c.b16 %v4431_v60, %v4430_v40  ;;  %v4410_v4 = vunpack.c.l.b16 %v3865_v13  ;;  %v4412_v14 = vunpack.c.l.b16 %v3867_v24  ;;  %v9571_v40 = vld [vmem:[%s14343_s15 + $0xd0] sm:$0xff] }
 0x926   : > { %v4464_v17 = vsel %vm2167_vm12, %v4441_v20, 0  ;;  %v9562_v20 = vld [vmem:[%s10402_s26 + $0x98] sm:$0xff]  ;;  %v3866_v59 = vpack.c.bf16 %v3840_v0, %v3840_v0 }
 0x927   : > { %v11787_v23 = vpop.f32.mrf.mxu1  ;;  %4470 = vmatpush.bf16.xpose.msra.mxu3 %v4464_v17  ;;  %4082 = vmatpush.bf16.msra.mxu0 %v9562_v20  ;;  %v4164_v17 = vunpack.c.l.b16 %v3861_v47 }
 0x928   : > { %14355 = vst [vmem:[#allocation9_spill] sm:$0xff] %v11787_v23  ;;  %v3844_v46 = vpop.f32.mrf.mxu2  ;;  %v4411_v56 = vunpack.c.l.b16 %v3866_v59 }
 0x929   : > { %v4170_v50 = vpack.c.b16 %v4165_v18, %v4164_v17  ;;  %v3845_v5 = vadd.f32 %v11764_v45, %v3844_v46  ;;  %v9570_v18 = vld [vmem:[%s14343_s15 + $0xc8] sm:$0xff]  ;;  %v9569_v46 = vld [vmem:[%s14343_s15 + $0xc0] sm:$0xff] }
 0x92a   : > { %8795 = vmatmul.msk.bf16.gmra.mxu0 %vm2167_vm12, %v3559_v52  ;;  %v4455_v52 = vsel %vm2167_vm12, %v4438_v62, 0  ;;  %v4418_v8 = vpack.c.b16 %v4411_v56, %v4410_v4 }
 0x92b   : > { %4083 = vmatpush.bf16.msra.mxu0 %v9561_v61  ;;  %v3868_v29 = vpack.c.bf16 %v3845_v5, %v3845_v5 }
 0x92d   : > { %v4413_v22 = vunpack.c.l.b16 %v3868_v29 }
 0x92f   : > { %v11798_v31 = vpop.f32.mrf.mxu1  ;;  %4471 = vmatpush.bf16.xpose.msra.mxu3 %v4461_v43  ;;  %4084 = vmatpush.bf16.msra.mxu0 %v9560_v55  ;;  %v3863_v43 = vpack.c.bf16 %v3833_v35, %v3833_v35  ;;  %v4419_v26 = vpack.c.b16 %v4413_v22, %v4412_v14  ;;  %v11908_v22 = vld [vmem:[%s10413_s7 + $0x88] sm:$0xff] }
 0x930   : > { %v3847_v9 = vpop.f32.mrf.mxu2 }
 0x931   : > { %v4166_v12 = vunpack.c.l.b16 %v3863_v43  ;;  %v3848_v0 = vadd.f32 %v11764_v45, %v3847_v9 }
 0x932   : > { %8971 = vmatmul.msk.bf16.gmra.mxu1 %vm2167_vm12, %v4169_v10  ;;  %v4167_v10 = vunpack.c.l.b16 %v3864_v51 }
 0x933   : > { %4085 = vmatpush.bf16.msra.mxu0 %v9559_v33  ;;  %v3869_v48 = vpack.c.bf16 %v3848_v0, %v3848_v0 }
 0x934   : > { %v4171_v21 = vpack.c.b16 %v4167_v10, %v4166_v12  ;;  %v11898_v10 = vld [vmem:[%s10413_s7 + $0x80] sm:$0xff] }
 0x935   : > { %v4414_v59 = vunpack.c.l.b16 %v3869_v48  ;;  %v11933_v48 = vld [vmem:[%s10413_s7 + $0x98] sm:$0xff] }
 0x937   : > { %v11810_v7 = vpop.f32.mrf.mxu1  ;;  %4472 = vmatpush.bf16.xpose.msra.mxu3 %v4458_v28 }
 0x938   : > { %14356 = vst [vmem:[#allocation10_spill] sm:$0xff] %v11810_v7  ;;  %v3849_v2 = vpop.f32.mrf.mxu2 }
 0x939   : > { %v3850_v28 = vadd.f32 %v11764_v45, %v3849_v2 }
 0x93a   : > { %8796 = vmatmul.msk.bf16.gmra.mxu0 %vm2167_vm12, %v3560_v39 }
 0x93b   : > { %v3870_v47 = vpack.c.bf16 %v3850_v28, %v3850_v28  ;;  %v11921_v28 = vld [vmem:[%s10413_s7 + $0x90] sm:$0xff] }
 0x93d   : > { %v4415_v20 = vunpack.c.l.b16 %v3870_v47  ;;  %v9582_v47 = vld [vmem:[%s10391_s25 + $0xe8] sm:$0xff] }
 0x93f   : > { %v11820_v1 = vpop.f32.mrf.mxu1  ;;  %4473 = vmatpush.bf16.xpose.msra.mxu3 %v4455_v52  ;;  %v4420_v17 = vpack.c.b16 %v4415_v20, %v4414_v59 }
 0x940   : > { %v3852_v39 = vpop.f32.mrf.mxu2 }
 0x941   : > { %v3853_v61 = vadd.f32 %v11764_v45, %v3852_v39  ;;  %v9583_v39 = vld [vmem:[%s10391_s25 + $0xf0] sm:$0xff] }
 0x942   : > { %8972 = vmatmul.msk.bf16.gmra.mxu1 %vm2167_vm12, %v4170_v50 }
 0x943   : > { %v3871_v56 = vpack.c.bf16 %v3853_v61, %v3853_v61 }
 0x946   : > { %8978 = vmatmul.msk.bf16.vlgmr.msra.gmra.mxu3 %vm2167_vm12, %v4418_v8  ;;  %v4416_v8 = vunpack.c.l.b16 %v3871_v56 }
 0x947   : > { %v11830_v37 = vpop.f32.mrf.mxu1  ;;  %4836 = vmatpush.bf16.msrb.mxu3 %v9576_v54 }
 0x948   : > { %14357 = vst [vmem:[#allocation11_spill] sm:$0xff] %v11830_v37  ;;  %v3854_v15 = vpop.f32.mrf.mxu2 }
 0x949   : > { %v3855_v52 = vadd.f32 %v11764_v45, %v3854_v15  ;;  %v9580_v15 = vld [vmem:[%s10391_s25 + $0xd8] sm:$0xff] }
 0x94a   : > { %8797 = vmatmul.msk.bf16.gmra.mxu0 %vm2167_vm12, %v3561_v44 }
 0x94b   : > { %4837 = vmatpush.bf16.msrb.mxu3 %v9575_v57  ;;  %v3872_v50 = vpack.c.bf16 %v3855_v52, %v3855_v52  ;;  %v11947_v52 = vld [vmem:[%s10413_s7 + $0xa0] sm:$0xff] }
 0x94d   : > { %v4417_v19 = vunpack.c.l.b16 %v3872_v50 }
 0x94f   : > { %v11840_v16 = vpop.f32.mrf.mxu1  ;;  %4838 = vmatpush.bf16.msrb.mxu3 %v9574_v32  ;;  %v4421_v35 = vpack.c.b16 %v4417_v19, %v4416_v8  ;;  %v9579_v19 = vld [vmem:[%s10391_s25 + $0xd0] sm:$0xff] }
 0x952   : > { %8973 = vmatmul.msk.bf16.gmra.mxu1 %vm2167_vm12, %v4171_v21 }
 0x953   : > { %4839 = vmatpush.bf16.msrb.mxu3 %v9573_v36 }
 0x956   : > { %8979 = vmatmul.msk.bf16.gmra.mxu3 %vm2167_vm12, %v4419_v26  ;;  %v9584_v26 = vld [vmem:[%s10391_s25 + $0xf8] sm:$0xff] }
 0x957   : > { %v11846_v60 = vpop.f32.mrf.mxu1  ;;  %4840 = vmatpush.bf16.msrb.mxu3 %v9572_v30  ;;  %4971 = vmatpush.bf16.msrb.mxu0 %v9584_v26  ;;  %v9577_v26 = vld [vmem:[%s10391_s25 + $0xc0] sm:$0xff] }
 0x958   : > { %14358 = vst [vmem:[#allocation12_spill] sm:$0xff] %v11846_v60 }
 0x95a   : > { %8798 = vmatmul.msk.bf16.gmra.mxu0 %vm2167_vm12, %v3562_v3 }
 0x95b   : > { %4841 = vmatpush.bf16.msrb.mxu3 %v9571_v40  ;;  %4972 = vmatpush.bf16.msrb.mxu0 %v9583_v39  ;;  %v11972_v39 = vld [vmem:[%s10413_s7 + $0xb0] sm:$0xff] }
 0x95f   : > { %v11855_v62 = vpop.f32.mrf.mxu1  ;;  %4842 = vmatpush.bf16.msrb.mxu3 %v9570_v18  ;;  %4973 = vmatpush.bf16.msrb.mxu0 %v9582_v47 }
 0x963   : > { %4843 = vmatpush.bf16.msrb.mxu3 %v9569_v46  ;;  %v9581_v46 = vld [vmem:[%s10391_s25 + $0xe0] sm:$0xff] }
 0x964   : > { %4974 = vmatpush.bf16.msrb.mxu0 %v9581_v46 }
 0x966   : > { %8980 = vmatmul.msk.bf16.gmra.mxu3 %vm2167_vm12, %v4420_v17 }
 0x967   : > { %v11860_v41 = vpop.f32.mrf.mxu0  ;;  %v11862_v13 = vpop.f32.mrf.mxu1 }
 0x968   : > { %14359 = vst [vmem:[#allocation13_spill] sm:$0xff] %v11862_v13  ;;  %4975 = vmatpush.bf16.msrb.mxu0 %v9580_v15 }
 0x96a   : > { %4086 = vmatmul.bf16.vlgmr.msra.gmra.mxu0 %v10768_v25 }
 0x96c   : > { %4976 = vmatpush.bf16.msrb.mxu0 %v9579_v19 }
 0x96f   : > { %v11867_v55 = vpop.f32.mrf.mxu0  ;;  %v11869_v4 = vpop.f32.mrf.mxu1 }
 0x970   : > { %14360 = vst [vmem:[#allocation14_spill] sm:$0xff] %v11867_v55 }
 0x976   : > { %8981 = vmatmul.msk.bf16.gmra.mxu3 %vm2167_vm12, %v4421_v35  ;;  %v9578_v35 = vld [vmem:[%s10391_s25 + $0xc8] sm:$0xff] }
 0x977   : > { %v11872_v9 = vpop.f32.mrf.mxu0  ;;  %v11874_v51 = vpop.f32.mrf.mxu1  ;;  %4977 = vmatpush.bf16.msrb.mxu0 %v9578_v35 }
 0x978   : > { %14361 = vst [vmem:[#allocation15_spill] sm:$0xff] %v11874_v51 }
 0x97a   : > { %4091 = vmatmul.bf16.gmra.mxu0 %v10808_v42 }
 0x97b   : > { %4978 = vmatpush.bf16.msrb.mxu0 %v9577_v26 }
 0x97f   : > { %v11877_v45 = vpop.f32.mrf.mxu0  ;;  %v11879_v5 = vpop.f32.mrf.mxu1 }
 0x980   : > { %14362 = vst [vmem:[#allocation16_spill] sm:$0xff] %v11877_v45 }
 0x981   : > { %14363 = vst [vmem:[#allocation17_spill] sm:$0xff] %v11879_v5 }
 0x986   : > { %4844 = vmatmul.bf16.vlgmr.msrb.gmra.mxu3 %v10768_v25 }
 0x987   : > { %v11882_v44 = vpop.f32.mrf.mxu0  ;;  %v11884_v33 = vpop.f32.mrf.mxu1 }
 0x988   : > { %14364 = vst [vmem:[#allocation18_spill] sm:$0xff] %v11884_v33 }
 0x98a   : > { %4096 = vmatmul.bf16.gmra.mxu0 %v10820_v63 }
 0x98f   : > { %v11887_v54 = vpop.f32.mrf.mxu0  ;;  %v11889_v43 = vpop.f32.mrf.mxu1 }
 0x990   : > { %14365 = vst [vmem:[#allocation19_spill] sm:$0xff] %v11887_v54 }
 0x991   : > { %14366 = vst [vmem:[#allocation20_spill] sm:$0xff] %v11889_v43 }
 0x996   : > { %4849 = vmatmul.bf16.gmra.mxu3 %v10808_v42 }
 0x997   : > { %v11892_v27 = vpop.f32.mrf.mxu0  ;;  %v11894_v57 = vpop.f32.mrf.mxu1 }
 0x998   : > { %14367 = vst [vmem:[#allocation21_spill] sm:$0xff] %v11894_v57 }
 0x99a   : > { %4101 = vmatmul.bf16.gmra.mxu0 %v10857_v6 }
 0x99f   : > { %v11900_v29 = vpop.f32.mrf.mxu0  ;;  %v4225_v12 = vpop.f32.mrf.mxu1 }
 0x9a0   : > { %14368 = vst [vmem:[#allocation22_spill] sm:$0xff] %v11900_v29  ;;  %v11903_v24 = vadd.f32 %v11898_v10, %v4225_v12  ;;  %v11959_v12 = vld [vmem:[%s10413_s7 + $0xa8] sm:$0xff] }
 0x9a2   : > { %v4245_v21 = vsel %vm2221_vm3, %v11903_v24, -inf }
 0x9a3   : > { %4246 = vmax.xlane.f32.xlu0 %v4245_v21 }
 0x9a6   : > { %4854 = vmatmul.bf16.gmra.mxu3 %v10820_v63 }
 0x9a7   : > { %v11911_v32 = vpop.f32.mrf.mxu0  ;;  %v4227_v2 = vpop.f32.mrf.mxu1 }
 0x9a8   : > { %v11914_v14 = vadd.f32 %v11908_v22, %v4227_v2 }
 0x9aa   : > { %4106 = vmatmul.bf16.gmra.mxu0 %v10880_v38  ;;  %v4248_v36 = vsel %vm2221_vm3, %v11914_v14, -inf }
 0x9ab   : > { %4249 = vmax.xlane.f32.xlu1 %v4248_v36 }
 0x9af   : > { %v11923_v3 = vpop.f32.mrf.mxu0  ;;  %v4230_v30 = vpop.f32.mrf.mxu1 }
 0x9b0   : > { %14369 = vst [vmem:[#allocation23_spill] sm:$0xff] %v11923_v3  ;;  %v11926_v0 = vadd.f32 %v11921_v28, %v4230_v30 }
 0x9b2   : > { %v4251_v40 = vsel %vm2221_vm3, %v11926_v0, -inf }
 0x9b3   : > { %4252 = vmax.xlane.f32.xlu2 %v4251_v40 }
 0x9b6   : > { %4859 = vmatmul.bf16.gmra.mxu3 %v10857_v6 }
 0x9b7   : > { %v11936_v20 = vpop.f32.mrf.mxu0  ;;  %v4232_v18 = vpop.f32.mrf.mxu1 }
 0x9b8   : > { %v11939_v59 = vadd.f32 %v11933_v48, %v4232_v18 }
 0x9ba   : > { %4111 = vmatmul.bf16.gmra.mxu0 %v10936_v34  ;;  %v4254_v17 = vsel %vm2221_vm3, %v11939_v59, -inf }
 0x9bb   : > { %4255 = vmax.xlane.f32.xlu0 %v4254_v17  ;;  %v11982_v17 = vld [vmem:[%s10413_s7 + $0xb8] sm:$0xff] }
 0x9bf   : > { %v11949_v61 = vpop.f32.mrf.mxu0  ;;  %v4235_v50 = vpop.f32.mrf.mxu1 }
 0x9c0   : > { %14370 = vst [vmem:[#allocation24_spill] sm:$0xff] %v11949_v61  ;;  %v11952_v56 = vadd.f32 %v11947_v52, %v4235_v50  ;;  %v12004_v61 = vld [vmem:[%s10408_s27 + $0x2] ss:$0 sm:$0xff] }
 0x9c2   : > { %v4257_v8 = vsel %vm2221_vm3, %v11952_v56, -inf }
 0x9c3   : > { %4258 = vmax.xlane.f32.xlu1 %v4257_v8 }
 0x9c6   : > { %4864 = vmatmul.bf16.gmra.mxu3 %v10880_v38 }
 0x9c7   : > { %v11962_v21 = vpop.f32.mrf.mxu0  ;;  %v4237_v2 = vpop.f32.mrf.mxu1 }
 0x9c8   : > { %14371 = vst [vmem:[#allocation25_spill] sm:$0xff] %v11962_v21  ;;  %v11965_v36 = vadd.f32 %v11959_v12, %v4237_v2 }
 0x9ca   : > { %4116 = vmatmul.bf16.gmra.mxu0 %v10972_v53  ;;  %v4260_v30 = vsel %vm2221_vm3, %v11965_v36, -inf }
 0x9cb   : > { %4261 = vmax.xlane.f32.xlu2 %v4260_v30 }
 0x9cf   : > { %v11974_v40 = vpop.f32.mrf.mxu0  ;;  %v4240_v47 = vpop.f32.mrf.mxu1 }
 0x9d0   : > { %14372 = vst [vmem:[#allocation26_spill] sm:$0xff] %v11974_v40  ;;  %v11977_v18 = vadd.f32 %v11972_v39, %v4240_v47 }
 0x9d2   : > { %v4263_v46 = vsel %vm2221_vm3, %v11977_v18, -inf }
 0x9d3   : > { %4264 = vmax.xlane.f32.xlu0 %v4263_v46 }
 0x9d6   : > { %4869 = vmatmul.bf16.gmra.mxu3 %v10936_v34 }
 0x9d7   : > { %v11985_v15 = vpop.f32.mrf.mxu0  ;;  %v4242_v50 = vpop.f32.mrf.mxu1 }
 0x9d8   : > { %14373 = vst [vmem:[#allocation27_spill] sm:$0xff] %v11985_v15  ;;  %v11988_v19 = vadd.f32 %v11982_v17, %v4242_v50  ;;  %v4475_v50 = vpop.f32.mrf.mxu3 }
 0x9da   : > { %4121 = vmatmul.bf16.gmra.mxu0 %v11006_v58  ;;  %v4266_v8 = vsel %vm2221_vm3, %v11988_v19, -inf }
 0x9db   : > { %4267 = vmax.xlane.f32.xlu1 %v4266_v8 }
 0x9df   : > { %v11993_v35 = vpop.f32.mrf.mxu0 }
 0x9e0   : > { %14374 = vst [vmem:[#allocation28_spill] sm:$0xff] %v11993_v35  ;;  %v12000_v35 = vpop.f32.mrf.mxu3 }
 0x9e6   : > { %4874 = vmatmul.bf16.gmra.mxu3 %v10972_v53 }
 0x9e7   : > { %v4087_v2 = vpop.f32.mrf.mxu0 }
 0x9ea   : > { %4979 = vmatmul.bf16.vlgmr.msrb.gmra.mxu0 %v10768_v25 }
 0x9ef   : > { %v4089_v26 = vpop.f32.mrf.mxu0 }
 0x9f6   : > { %4879 = vmatmul.bf16.gmra.mxu3 %v11006_v58 }
 0x9f7   : > { %v4092_v30 = vpop.f32.mrf.mxu0 }
 0x9fa   : > { %4984 = vmatmul.bf16.gmra.mxu0 %v10808_v42 }
 0x9ff   : > { %v4094_v47 = vpop.f32.mrf.mxu0 }
 0xa07   : > { %v4097_v46 = vpop.f32.mrf.mxu0 }
 0xa08   : > { %v4098_v37 = vadd.f32 %v12004_v61, %v4097_v46 }
 0xa0a   : > { %4989 = vmatmul.bf16.gmra.mxu0 %v10820_v63 }
 0xa0f   : > { %v4099_v8 = vpop.f32.mrf.mxu0 }
 0xa10   : > { %v4100_v3 = vadd.f32 %v12004_v61, %v4099_v8 }
 0xa12   : > { %v4132_v45 = vpack.c.bf16 %v4100_v3, %v4100_v3 }
 0xa14   : > { %v4350_v55 = vunpack.c.l.b16 %v4132_v45 }
 0xa16   : > { %v4247_v57 = vpop.xlane.xlu0 %4246 }
 0xa17   : > { %v4269_v33 = vsub.f32 %v11903_v24, %v4247_v57  ;;  %v4102_v40 = vpop.f32.mrf.mxu0 }
 0xa18   : > { %v4103_v13 = vadd.f32 %v12004_v61, %v4102_v40 }
 0xa19   : > { %v4277_v51 = vmul.f32 1.442695, %v4269_v33  ;;  %v12014_v33 = vpop.f32.mrf.mxu3 }
 0xa1a   : > { %4994 = vmatmul.bf16.gmra.mxu0 %v10857_v6  ;;  %v4133_v54 = vpack.c.bf16 %v4103_v13, %v4103_v13 }
 0xa1b   : > { %9870 = vpow2.f32 %v4277_v51  ;;  %v4095_v51 = vadd.f32 %v12004_v61, %v4094_v47 }
 0xa1c   : > { %v4351_v13 = vunpack.c.l.b16 %v4133_v54 }
 0xa1d   : > { %v4130_v23 = vpack.c.bf16 %v4095_v51, %v4095_v51 }
 0xa1e   : > { %v4250_v11 = vpop.xlane.xlu1 %4249 }
 0xa1f   : > { %v4270_v60 = vsub.f32 %v11914_v14, %v4250_v11  ;;  %v4104_v29 = vpop.f32.mrf.mxu0  ;;  %v4093_v11 = vadd.f32 %v12004_v61, %v4092_v30  ;;  %v4131_v14 = vpack.c.bf16 %v4098_v37, %v4098_v37  ;;  %v4348_v30 = vunpack.c.l.b16 %v4130_v23 }
 0xa20   : > { %v4105_v57 = vadd.f32 %v12004_v61, %v4104_v29  ;;  %v4090_v29 = vadd.f32 %v12004_v61, %v4089_v26 }
 0xa21   : > { %v12012_v24 = vpop.eup %9870  ;;  %v4279_v7 = vmul.f32 1.442695, %v4270_v60  ;;  %v4129_v15 = vpack.c.bf16 %v4093_v11, %v4093_v11  ;;  %v4482_v51 = vpop.f32.mrf.mxu3 }
 0xa22   : > { %v4134_v40 = vpack.c.bf16 %v4105_v57, %v4105_v57  ;;  %v4293_v8 = vsel %vm2221_vm3, %v12012_v24, 0.0  ;;  %v4088_v57 = vadd.f32 %v12004_v61, %v4087_v2  ;;  %v4128_v54 = vpack.c.bf16 %v4090_v29, %v4090_v29 }
 0xa23   : > { %9872 = vpow2.f32 %v4279_v7  ;;  %4294 = vadd.xlane.f32.xlu2 %v4293_v8  ;;  %v4349_v7 = vunpack.c.l.b16 %v4131_v14  ;;  %v12031_v2 = vadd.f32 %v11898_v10, %v4475_v50 }
 0xa24   : > { %v4352_v46 = vunpack.c.l.b16 %v4134_v40  ;;  %v4347_v40 = vunpack.c.l.b16 %v4129_v15 }
 0xa25   : > { %v4355_v26 = vpack.c.b16 %v4350_v55, %v4349_v7  ;;  %v4495_v15 = vsel %vm2221_vm3, %v12031_v2, -inf }
 0xa26   : > { %v4356_v43 = vpack.c.b16 %v4352_v46, %v4351_v13  ;;  %v4253_v60 = vpop.xlane.xlu2 %4252  ;;  %v4354_v14 = vpack.c.b16 %v4348_v30, %v4347_v40 }
 0xa27   : > { %v4271_v47 = vsub.f32 %v11926_v0, %v4253_v60  ;;  %v12022_v3 = vpop.f32.mrf.mxu0  ;;  %v4127_v0 = vpack.c.bf16 %v4088_v57, %v4088_v57 }
 0xa28   : > { %4377 = vmatpush.bf16.msra.mxu2 %v4356_v43  ;;  %v4346_v43 = vunpack.c.l.b16 %v4128_v54 }
 0xa29   : > { %v12025_v8 = vpop.eup %9872  ;;  %v4281_v37 = vmul.f32 1.442695, %v4271_v47  ;;  %v4345_v46 = vunpack.c.l.b16 %v4127_v0  ;;  %v4485_v50 = vpop.f32.mrf.mxu3 }
 0xa2a   : > { %4999 = vmatmul.bf16.gmra.mxu0 %v10880_v38  ;;  %v4296_v45 = vsel %vm2221_vm3, %v12025_v8, 0.0 }
 0xa2b   : > { %9874 = vpow2.f32 %v4281_v37  ;;  %4297 = vadd.xlane.f32.xlu0 %v4296_v45  ;;  %v4353_v10 = vpack.c.b16 %v4346_v43, %v4345_v46 }
 0xa2c   : > { %4378 = vmatpush.bf16.msra.mxu2 %v4355_v26 }
 0xa2e   : > { %v4256_v11 = vpop.xlane.xlu0 %4255 }
 0xa2f   : > { %v4272_v23 = vsub.f32 %v11939_v59, %v4256_v11  ;;  %v12034_v13 = vpop.f32.mrf.mxu0  ;;  %v12044_v59 = vadd.f32 %v11908_v22, %v12000_v35  ;;  %v12058_v22 = vadd.f32 %v11921_v28, %v12014_v33  ;;  %v12068_v28 = vadd.f32 %v11933_v48, %v4482_v51 }
 0xa30   : > { %4379 = vmatpush.bf16.msra.mxu2 %v4354_v14  ;;  %v12079_v48 = vadd.f32 %v11947_v52, %v4485_v50 }
 0xa31   : > { %v12036_v29 = vpop.eup %9874  ;;  %v4283_v55 = vmul.f32 1.442695, %v4272_v23  ;;  %v4498_v30 = vsel %vm2221_vm3, %v12044_v59, -inf  ;;  %v4487_v35 = vpop.f32.mrf.mxu3  ;;  %v4501_v11 = vsel %vm2221_vm3, %v12058_v22, -inf }
 0xa32   : > { %v4299_v60 = vsel %vm2221_vm3, %v12036_v29, 0.0  ;;  %v12092_v50 = vadd.f32 %v11959_v12, %v4487_v35 }
 0xa33   : > { %9876 = vpow2.f32 %v4283_v55  ;;  %4300 = vadd.xlane.f32.xlu1 %v4299_v60  ;;  %4496 = vmax.xlane.f32.xlu0 %v4495_v15 }
 0xa34   : > { %4380 = vmatpush.bf16.msra.mxu2 %v4353_v10  ;;  %v4504_v10 = vsel %vm2221_vm3, %v12068_v28, -inf }
 0xa36   : > { %v4259_v47 = vpop.xlane.xlu1 %4258 }
 0xa37   : > { %v4273_v57 = vsub.f32 %v11952_v56, %v4259_v47  ;;  %v12047_v7 = vpop.f32.mrf.mxu0 }
 0xa39   : > { %v12049_v37 = vpop.eup %9876  ;;  %v4285_v54 = vmul.f32 1.442695, %v4273_v57  ;;  %v4490_v55 = vpop.f32.mrf.mxu3 }
 0xa3a   : > { %5004 = vmatmul.bf16.gmra.mxu0 %v10936_v34  ;;  %v4302_v45 = vsel %vm2221_vm3, %v12049_v37, 0.0  ;;  %v12105_v12 = vadd.f32 %v11972_v39, %v4490_v55  ;;  %v4113_v39 = vadd.f32 %v12004_v61, %v12047_v7 }
 0xa3b   : > { %9878 = vpow2.f32 %v4285_v54  ;;  %4499 = vmax.xlane.f32.xlu1 %v4498_v30  ;;  %4303 = vadd.xlane.f32.xlu2 %v4302_v45  ;;  %v4507_v30 = vsel %vm2221_vm3, %v12079_v48, -inf }
 0xa3e   : > { %v4262_v56 = vpop.xlane.xlu2 %4261 }
 0xa3f   : > { %v4274_v26 = vsub.f32 %v11965_v36, %v4262_v56  ;;  %v4114_v0 = vpop.f32.mrf.mxu0 }
 0xa41   : > { %v12061_v40 = vpop.eup %9878  ;;  %v4287_v43 = vmul.f32 1.442695, %v4274_v26  ;;  %v4492_v56 = vpop.f32.mrf.mxu3 }
 0xa42   : > { %v4305_v14 = vsel %vm2221_vm3, %v12061_v40, 0.0  ;;  %v12089_v52 = vadd.f32 %v11982_v17, %v4492_v56  ;;  %v4510_v17 = vsel %vm2221_vm3, %v12092_v50, -inf }
 0xa43   : > { %9880 = vpow2.f32 %v4287_v43  ;;  %4502 = vmax.xlane.f32.xlu1 %v4501_v11  ;;  %4306 = vadd.xlane.f32.xlu2 %v4305_v14 }
 0xa44   : > { %v4516_v11 = vsel %vm2221_vm3, %v12089_v52, -inf }
 0xa46   : > { %v4265_v33 = vpop.xlane.xlu0 %4264 }
 0xa47   : > { %v4275_v23 = vsub.f32 %v11977_v18, %v4265_v33  ;;  %v4117_v36 = vpop.f32.mrf.mxu0 }
 0xa49   : > { %v12071_v46 = vpop.eup %9880  ;;  %v4289_v60 = vmul.f32 1.442695, %v4275_v23  ;;  %v4118_v23 = vadd.f32 %v12004_v61, %v4117_v36  ;;  %v4110_v36 = vadd.f32 %v12004_v61, %v12034_v13 }
 0xa4a   : > { %5009 = vmatmul.bf16.gmra.mxu0 %v10972_v53  ;;  %v4308_v15 = vsel %vm2221_vm3, %v12071_v46, 0.0 }
 0xa4b   : > { %9882 = vpow2.f32 %v4289_v60  ;;  %4309 = vadd.xlane.f32.xlu0 %v4308_v15  ;;  %4505 = vmax.xlane.f32.xlu2 %v4504_v10  ;;  %v4115_v10 = vadd.f32 %v12004_v61, %v4114_v0  ;;  %v4139_v55 = vpack.c.bf16 %v4118_v23, %v4118_v23  ;;  %v4108_v0 = vadd.f32 %v12004_v61, %v12022_v3 }
 0xa4e   : > { %v4268_v18 = vpop.xlane.xlu1 %4267 }
 0xa4f   : > { %v4276_v51 = vsub.f32 %v11988_v19, %v4268_v18  ;;  %v4119_v47 = vpop.f32.mrf.mxu0 }
 0xa50   : > { %v4120_v35 = vadd.f32 %v12004_v61, %v4119_v47 }
 0xa51   : > { %v12082_v57 = vpop.eup %9882  ;;  %v4291_v54 = vmul.f32 1.442695, %v4276_v51 }
 0xa52   : > { %v4311_v45 = vsel %vm2221_vm3, %v12082_v57, 0.0  ;;  %v4140_v18 = vpack.c.bf16 %v4120_v35, %v4120_v35 }
 0xa53   : > { %9884 = vpow2.f32 %v4291_v54  ;;  %4508 = vmax.xlane.f32.xlu2 %v4507_v30  ;;  %4312 = vadd.xlane.f32.xlu0 %v4311_v45  ;;  %v4513_v54 = vsel %vm2221_vm3, %v12105_v12, -inf  ;;  %v4138_v45 = vpack.c.bf16 %v4115_v10, %v4115_v10 }
 0xa54   : > { %v4600_v56 = vunpack.c.l.b16 %v4140_v18 }
 0xa55   : > { %v4598_v7 = vunpack.c.l.b16 %v4138_v45 }
 0xa57   : > { %v4122_v19 = vpop.f32.mrf.mxu0 }
 0xa58   : > { %v4123_v14 = vadd.f32 %v12004_v61, %v4122_v19 }
 0xa59   : > { %v12094_v26 = vpop.eup %9884 }
 0xa5a   : > { %5014 = vmatmul.bf16.gmra.mxu0 %v11006_v58  ;;  %v4314_v43 = vsel %vm2221_vm3, %v12094_v26, 0.0  ;;  %v4141_v60 = vpack.c.bf16 %v4123_v14, %v4123_v14  ;;  %v4136_v14 = vpack.c.bf16 %v4110_v36, %v4110_v36  ;;  %v12128_v36 = vld [vmem:[%s10397_s5 + $0x3] ss:$0 sm:$0xff] }
 0xa5b   : > { %4315 = vadd.xlane.f32.xlu1 %v4314_v43  ;;  %4517 = vmax.xlane.f32.xlu2 %v4516_v11  ;;  %v4137_v11 = vpack.c.bf16 %v4113_v39, %v4113_v39  ;;  %v9567_v39 = vld [vmem:[%s10419_s24 + $0x20] sm:$0xff] }
 0xa5c   : > { %4511 = vmax.xlane.f32.xlu0 %v4510_v17  ;;  %v4601_v30 = vunpack.c.l.b16 %v4141_v60  ;;  %v4599_v17 = vunpack.c.l.b16 %v4139_v55  ;;  %v4596_v13 = vunpack.c.l.b16 %v4136_v14 }
 0xa5d   : > { %v4597_v23 = vunpack.c.l.b16 %v4137_v11 }
 0xa5e   : > { %v4605_v35 = vpack.c.b16 %v4600_v56, %v4599_v17 }
 0xa5f   : > { %v4124_v33 = vpop.f32.mrf.mxu0  ;;  %v4604_v60 = vpack.c.b16 %v4598_v7, %v4597_v23 }
 0xa60   : > { %v4125_v15 = vadd.f32 %v12004_v61, %v4124_v33  ;;  %v4135_v33 = vpack.c.bf16 %v4108_v0, %v4108_v0 }
 0xa62   : > { %v4142_v51 = vpack.c.bf16 %v4125_v15, %v4125_v15  ;;  %v4595_v10 = vunpack.c.l.b16 %v4135_v33 }
 0xa63   : > { %4514 = vmax.xlane.f32.xlu1 %v4513_v54 }
 0xa64   : > { %v4602_v47 = vunpack.c.l.b16 %v4142_v51  ;;  %v4603_v18 = vpack.c.b16 %v4596_v13, %v4595_v10  ;;  %v9568_v51 = vld [vmem:[%s10419_s24 + $0x28] sm:$0xff] }
 0xa65   : > { %4707 = vmatpush.bf16.msrb.mxu2 %v9568_v51 }
 0xa66   : > { %v4606_v19 = vpack.c.b16 %v4602_v47, %v4601_v30  ;;  %v12125_v30 = vpop.f32.mrf.mxu3 }
 0xa67   : > { %v12117_v43 = vpop.f32.mrf.mxu0 }
 0xa68   : > { %4627 = vmatpush.bf16.msra.mxu1 %v4606_v19 }
 0xa69   : > { %4708 = vmatpush.bf16.msrb.mxu2 %v9567_v39 }
 0xa6c   : > { %4628 = vmatpush.bf16.msra.mxu1 %v4605_v35 }
 0xa6e   : > { %v12130_v56 = vpop.f32.mrf.mxu3 }
 0xa6f   : > { %v12121_v15 = vpop.f32.mrf.mxu0 }
 0xa70   : > { %4629 = vmatpush.bf16.msra.mxu1 %v4604_v60 }
 0xa74   : > { %4630 = vmatpush.bf16.msra.mxu1 %v4603_v18 }
 0xa76   : > { %v12136_v18 = vpop.f32.mrf.mxu3 }
 0xa77   : > { %v4985_v61 = vpop.f32.mrf.mxu0 }
 0xa7f   : > { %v4987_v3 = vpop.f32.mrf.mxu0 }
 0xa87   : > { %v4990_v54 = vpop.f32.mrf.mxu0 }
 0xa88   : > { %v4991_v23 = vadd.f32 %v12128_v36, %v4990_v54 }
 0xa8f   : > { %v4992_v55 = vpop.f32.mrf.mxu0 }
 0xa90   : > { %v4993_v7 = vadd.f32 %v12128_v36, %v4992_v55 }
 0xa92   : > { %v5025_v51 = vpack.c.bf16 %v4993_v7, %v4993_v7 }
 0xa94   : > { %v5213_v21 = vunpack.c.l.b16 %v5025_v51 }
 0xa96   : > { %v4295_v45 = vpop.xlane.xlu2 %4294 }
 0xa97   : > { %v4995_v47 = vpop.f32.mrf.mxu0  ;;  %9886 = vrcp.f32 %v4295_v45 }
 0xa98   : > { %v4996_v19 = vadd.f32 %v12128_v36, %v4995_v47 }
 0xa9a   : > { %v5026_v17 = vpack.c.bf16 %v4996_v19, %v4996_v19 }
 0xa9c   : > { %v5214_v13 = vunpack.c.l.b16 %v5026_v17 }
 0xa9d   : > { %v9887_v33 = vpop.eup %9886 }
 0xa9e   : > { %v4298_v0 = vpop.xlane.xlu0 %4297  ;;  %v4325_v39 = vmul.f32 %v9887_v33, %v12012_v24  ;;  %v4986_v24 = vadd.f32 %v12128_v36, %v4985_v61  ;;  %v4983_v61 = vadd.f32 %v12128_v36, %v12121_v15 }
 0xa9f   : > { %9888 = vrcp.f32 %v4298_v0  ;;  %v4997_v11 = vpop.f32.mrf.mxu0 }
 0xaa0   : > { %v4998_v14 = vadd.f32 %v12128_v36, %v4997_v11 }
 0xaa2   : > { %v5027_v35 = vpack.c.bf16 %v4998_v14, %v4998_v14  ;;  %v5024_v14 = vpack.c.bf16 %v4991_v23, %v4991_v23  ;;  %v12147_v23 = vpop.f32.mrf.mxu3 }
 0xaa4   : > { %v5215_v60 = vunpack.c.l.b16 %v5027_v35  ;;  %v4988_v35 = vadd.f32 %v12128_v36, %v4987_v3  ;;  %v5022_v3 = vpack.c.bf16 %v4986_v24, %v4986_v24 }
 0xaa5   : > { %v9889_v10 = vpop.eup %9888 }
 0xaa6   : > { %v4326_v47 = vmul.f32 %v9889_v10, %v12025_v8  ;;  %v5219_v45 = vpack.c.b16 %v5215_v60, %v5214_v13  ;;  %v4301_v19 = vpop.xlane.xlu1 %4300  ;;  %v4497_v0 = vpop.xlane.xlu0 %4496  ;;  %v5212_v8 = vunpack.c.l.b16 %v5024_v14  ;;  %v5023_v7 = vpack.c.bf16 %v4988_v35, %v4988_v35 }
 0xaa7   : > { %v4519_v11 = vsub.f32 %v12031_v2, %v4497_v0  ;;  %v12141_v55 = vpop.f32.mrf.mxu0 }
 0xaa8   : > { %v4333_v5 = vpack.c.bf16 %v4326_v47, %v4325_v39  ;;  %v5242_v54 = vsel %vm2167_vm12, %v5219_v45, 0  ;;  %v5218_v13 = vpack.c.b16 %v5213_v21, %v5212_v8  ;;  %v5211_v39 = vunpack.c.l.b16 %v5023_v7 }
 0xaa9   : > { %v4527_v17 = vmul.f32 1.442695, %v4519_v11  ;;  %v5021_v11 = vpack.c.bf16 %v4983_v61, %v4983_v61 }
 0xaaa   : > { %8974 = vmatmul.msk.bf16.vlgmr.msra.gmra.mxu2 %vm2221_vm3, %v4333_v5  ;;  %v5239_v47 = vsel %vm2167_vm12, %v5218_v13, 0  ;;  %v12168_v13 = vpop.f32.mrf.mxu3 }
 0xaab   : > { %9890 = vpow2.f32 %v4527_v17  ;;  %5248 = vmatpush.bf16.xpose.msra.mxu2 %v5242_v54 }
 0xaac   : > { %9892 = vrcp.f32 %v4301_v19  ;;  %v5210_v19 = vunpack.c.l.b16 %v5022_v3 }
 0xaae   : > { %v4500_v2 = vpop.xlane.xlu1 %4499  ;;  %v4304_v33 = vpop.xlane.xlu2 %4303  ;;  %v5217_v35 = vpack.c.b16 %v5211_v39, %v5210_v19 }
 0xaaf   : > { %v4520_v60 = vsub.f32 %v12044_v59, %v4500_v2  ;;  %9894 = vrcp.f32 %v4304_v33  ;;  %v12150_v10 = vpop.f32.mrf.mxu0  ;;  %v4981_v59 = vadd.f32 %v12128_v36, %v12117_v43 }
 0xab1   : > { %v12152_v51 = vpop.eup %9890  ;;  %v4529_v5 = vmul.f32 1.442695, %v4520_v60  ;;  %v5020_v7 = vpack.c.bf16 %v4981_v59, %v4981_v59  ;;  %v5209_v60 = vunpack.c.l.b16 %v5021_v11 }
 0xab2   : > { %v4543_v21 = vsel %vm2221_vm3, %v12152_v51, 0.0  ;;  %v9893_v45 = vpop.eup %9892  ;;  %v12182_v11 = vpop.f32.mrf.mxu3 }
 0xab3   : > { %9896 = vpow2.f32 %v4529_v5  ;;  %5249 = vmatpush.bf16.xpose.msra.mxu2 %v5239_v47  ;;  %4544 = vadd.xlane.f32.xlu0 %v4543_v21  ;;  %v4327_v14 = vmul.f32 %v9893_v45, %v12036_v29  ;;  %v5236_v29 = vsel %vm2167_vm12, %v5217_v35, 0 }
 0xab5   : > { %v9895_v0 = vpop.eup %9894 }
 0xab6   : > { %v4328_v15 = vmul.f32 %v9895_v0, %v12049_v37  ;;  %v4503_v54 = vpop.xlane.xlu1 %4502  ;;  %v4307_v17 = vpop.xlane.xlu2 %4306 }
 0xab7   : > { %v4521_v24 = vsub.f32 %v12058_v22, %v4503_v54  ;;  %v12164_v8 = vpop.f32.mrf.mxu0  ;;  %v5208_v22 = vunpack.c.l.b16 %v5020_v7 }
 0xab8   : > { %v4334_v2 = vpack.c.bf16 %v4328_v15, %v4327_v14 }
 0xab9   : > { %v12166_v33 = vpop.eup %9896  ;;  %v4531_v43 = vmul.f32 1.442695, %v4521_v24  ;;  %v5216_v61 = vpack.c.b16 %v5209_v60, %v5208_v22 }
 0xaba   : > { %8975 = vmatmul.msk.bf16.gmra.mxu2 %vm2221_vm3, %v4334_v2  ;;  %v4546_v37 = vsel %vm2221_vm3, %v12166_v33, 0.0 }
 0xabb   : > { %9898 = vpow2.f32 %v4531_v43  ;;  %5250 = vmatpush.bf16.xpose.msra.mxu2 %v5236_v29  ;;  %4547 = vadd.xlane.f32.xlu1 %v4546_v37  ;;  %v5233_v59 = vsel %vm2167_vm12, %v5216_v61, 0  ;;  %v12192_v29 = vpop.f32.mrf.mxu3 }
 0xabc   : > { %9900 = vrcp.f32 %v4307_v17 }
 0xabe   : > { %v4506_v3 = vpop.xlane.xlu2 %4505  ;;  %v4310_v5 = vpop.xlane.xlu0 %4309 }
 0xabf   : > { %v4522_v39 = vsub.f32 %v12068_v28, %v4506_v3  ;;  %9902 = vrcp.f32 %v4310_v5  ;;  %v12175_v47 = vpop.f32.mrf.mxu0 }
 0xac1   : > { %v12177_v21 = vpop.eup %9898  ;;  %v4533_v45 = vmul.f32 1.442695, %v4522_v39 }
 0xac2   : > { %v4549_v19 = vsel %vm2221_vm3, %v12177_v21, 0.0  ;;  %v9901_v0 = vpop.eup %9900 }
 0xac3   : > { %9904 = vpow2.f32 %v4533_v45  ;;  %5251 = vmatpush.bf16.xpose.msra.mxu2 %v5233_v59  ;;  %4550 = vadd.xlane.f32.xlu2 %v4549_v19  ;;  %v4329_v28 = vmul.f32 %v9901_v0, %v12061_v40 }
 0xac5   : > { %v9903_v14 = vpop.eup %9902 }
 0xac6   : > { %v4330_v15 = vmul.f32 %v9903_v14, %v12071_v46  ;;  %v4509_v54 = vpop.xlane.xlu2 %4508  ;;  %v4313_v17 = vpop.xlane.xlu0 %4312 }
 0xac7   : > { %v4523_v35 = vsub.f32 %v12079_v48, %v4509_v54  ;;  %v5010_v24 = vpop.f32.mrf.mxu0 }
 0xac8   : > { %v4335_v7 = vpack.c.bf16 %v4330_v15, %v4329_v28  ;;  %v12202_v28 = vpop.f32.mrf.mxu3 }
 0xac9   : > { %v12187_v2 = vpop.eup %9904  ;;  %v4535_v43 = vmul.f32 1.442695, %v4523_v35 }
 0xaca   : > { %8976 = vmatmul.msk.bf16.gmra.mxu2 %vm2221_vm3, %v4335_v7  ;;  %v4552_v60 = vsel %vm2221_vm3, %v12187_v2, 0.0 }
 0xacb   : > { %9906 = vpow2.f32 %v4535_v43  ;;  %4553 = vadd.xlane.f32.xlu0 %v4552_v60 }
 0xacc   : > { %9908 = vrcp.f32 %v4313_v17 }
 0xace   : > { %v4316_v40 = vpop.xlane.xlu1 %4315  ;;  %v4518_v46 = vpop.xlane.xlu2 %4517 }
 0xacf   : > { %9910 = vrcp.f32 %v4316_v40  ;;  %v4526_v48 = vsub.f32 %v12089_v52, %v4518_v46  ;;  %v4512_v37 = vpop.xlane.xlu0 %4511  ;;  %v5012_v22 = vpop.f32.mrf.mxu0 }
 0xad0   : > { %v4524_v3 = vsub.f32 %v12092_v50, %v4512_v37  ;;  %v5013_v60 = vadd.f32 %v12128_v36, %v5012_v22  ;;  %v4865_v37 = vpop.f32.mrf.mxu3  ;;  %v5008_v22 = vadd.f32 %v12128_v36, %v12175_v47  ;;  %v5001_v47 = vadd.f32 %v12128_v36, %v12141_v55 }
 0xad1   : > { %v12196_v5 = vpop.eup %9906  ;;  %v4541_v61 = vmul.f32 1.442695, %v4526_v48 }
 0xad2   : > { %v4537_v39 = vmul.f32 1.442695, %v4524_v3  ;;  %v4555_v45 = vsel %vm2221_vm3, %v12196_v5, 0.0  ;;  %v9909_v59 = vpop.eup %9908  ;;  %v5011_v3 = vadd.f32 %v12128_v36, %v5010_v24  ;;  %v5006_v24 = vadd.f32 %v12128_v36, %v12164_v8 }
 0xad3   : > { %9912 = vpow2.f32 %v4541_v61  ;;  %4556 = vadd.xlane.f32.xlu1 %v4555_v45  ;;  %v4331_v0 = vmul.f32 %v9909_v59, %v12082_v57  ;;  %v5033_v45 = vpack.c.bf16 %v5013_v60, %v5013_v60 }
 0xad4   : > { %9914 = vpow2.f32 %v4537_v39 }
 0xad5   : > { %v9911_v19 = vpop.eup %9910 }
 0xad6   : > { %v4332_v52 = vmul.f32 %v9911_v19, %v12094_v26  ;;  %v4515_v14 = vpop.xlane.xlu1 %4514 }
 0xad7   : > { %v4525_v50 = vsub.f32 %v12105_v12, %v4515_v14  ;;  %v5015_v15 = vpop.f32.mrf.mxu0  ;;  %v5463_v14 = vunpack.c.l.b16 %v5033_v45 }
 0xad8   : > { %v4336_v54 = vpack.c.bf16 %v4332_v52, %v4331_v0  ;;  %v5016_v26 = vadd.f32 %v12128_v36, %v5015_v15  ;;  %v5032_v0 = vpack.c.bf16 %v5011_v3, %v5011_v3 }
 0xad9   : > { %v12205_v17 = vpop.eup %9912  ;;  %v4539_v35 = vmul.f32 1.442695, %v4525_v50 }
 0xada   : > { %v12207_v7 = vpop.eup %9914  ;;  %8977 = vmatmul.msk.bf16.gmra.mxu2 %vm2221_vm3, %v4336_v54  ;;  %v4564_v43 = vsel %vm2221_vm3, %v12205_v17, 0.0  ;;  %v5034_v40 = vpack.c.bf16 %v5016_v26, %v5016_v26  ;;  %v5462_v15 = vunpack.c.l.b16 %v5032_v0  ;;  %v4867_v54 = vpop.f32.mrf.mxu3  ;;  %v5003_v26 = vadd.f32 %v12128_v36, %v12150_v10 }
 0xadb   : > { %9916 = vpow2.f32 %v4539_v35  ;;  %4565 = vadd.xlane.f32.xlu1 %v4564_v43  ;;  %v4558_v57 = vsel %vm2221_vm3, %v12207_v7, 0.0  ;;  %v5031_v35 = vpack.c.bf16 %v5008_v22, %v5008_v22 }
 0xadc   : > { %4559 = vadd.xlane.f32.xlu2 %v4558_v57  ;;  %v5464_v59 = vunpack.c.l.b16 %v5034_v40  ;;  %v5468_v43 = vpack.c.b16 %v5463_v14, %v5462_v15  ;;  %v5030_v57 = vpack.c.bf16 %v5006_v24, %v5006_v24 }
 0xade   : > { %v5489_v60 = vsel %vm2167_vm12, %v5468_v43, 0  ;;  %v5460_v40 = vunpack.c.l.b16 %v5030_v57 }
 0xadf   : > { %v5017_v12 = vpop.f32.mrf.mxu0 }
 0xae0   : > { %v5018_v46 = vadd.f32 %v12128_v36, %v5017_v12  ;;  %v5461_v12 = vunpack.c.l.b16 %v5031_v35 }
 0xae1   : > { %v12217_v48 = vpop.eup %9916 }
 0xae2   : > { %v5035_v61 = vpack.c.bf16 %v5018_v46, %v5018_v46  ;;  %v4561_v39 = vsel %vm2221_vm3, %v12217_v48, 0.0  ;;  %v5029_v46 = vpack.c.bf16 %v5003_v26, %v5003_v26  ;;  %v5467_v3 = vpack.c.b16 %v5461_v12, %v5460_v40  ;;  %v4870_v8 = vpop.f32.mrf.mxu3 }
 0xae3   : > { %4562 = vadd.xlane.f32.xlu0 %v4561_v39  ;;  %v12233_v39 = vld [vmem:[%s14354_s10 + $0x3] ss:$0 sm:$0xff] }
 0xae4   : > { %v5465_v19 = vunpack.c.l.b16 %v5035_v61  ;;  %v5028_v61 = vpack.c.bf16 %v5001_v47, %v5001_v47  ;;  %v5459_v45 = vunpack.c.l.b16 %v5029_v46  ;;  %v4868_v10 = vadd.f32 %v12233_v39, %v4867_v54 }
 0xae5   : > { %v4866_v0 = vadd.f32 %v12233_v39, %v4865_v37  ;;  %v4871_v54 = vadd.f32 %v12233_v39, %v4870_v8 }
 0xae6   : > { %v5469_v52 = vpack.c.b16 %v5465_v19, %v5464_v59  ;;  %v5486_v59 = vsel %vm2167_vm12, %v5467_v3, 0  ;;  %v5458_v19 = vunpack.c.l.b16 %v5028_v61  ;;  %v4894_v22 = vpack.c.bf16 %v4868_v10, %v4868_v10 }
 0xae7   : > { %v4893_v36 = vpack.c.bf16 %v4866_v0, %v4866_v0  ;;  %v4895_v26 = vpack.c.bf16 %v4871_v54, %v4871_v54 }
 0xae8   : > { %v5492_v50 = vsel %vm2167_vm12, %v5469_v52, 0  ;;  %v5466_v52 = vpack.c.b16 %v5459_v45, %v5458_v19 }
 0xae9   : > { %5498 = vmatpush.bf16.xpose.msra.mxu0 %v5492_v50  ;;  %v5439_v50 = vunpack.c.l.b16 %v4894_v22  ;;  %v5438_v24 = vunpack.c.l.b16 %v4893_v36 }
 0xaea   : > { %v4872_v14 = vpop.f32.mrf.mxu3  ;;  %v5483_v55 = vsel %vm2167_vm12, %v5466_v52, 0 }
 0xaeb   : > { %v5446_v15 = vpack.c.b16 %v5439_v50, %v5438_v24  ;;  %v4873_v43 = vadd.f32 %v12233_v39, %v4872_v14 }
 0xaed   : > { %v4896_v57 = vpack.c.bf16 %v4873_v43, %v4873_v43 }
 0xaef   : > { %v5441_v37 = vunpack.c.l.b16 %v4896_v57 }
 0xaf1   : > { %5499 = vmatpush.bf16.xpose.msra.mxu0 %v5489_v60  ;;  %v5440_v60 = vunpack.c.l.b16 %v4895_v26 }
 0xaf2   : > { %v4875_v35 = vpop.f32.mrf.mxu3 }
 0xaf3   : > { %v5447_v47 = vpack.c.b16 %v5441_v37, %v5440_v60  ;;  %v4876_v46 = vadd.f32 %v12233_v39, %v4875_v35 }
 0xaf5   : > { %v4897_v45 = vpack.c.bf16 %v4876_v46, %v4876_v46 }
 0xaf7   : > { %v5442_v10 = vunpack.c.l.b16 %v4897_v45 }
 0xaf9   : > { %5500 = vmatpush.bf16.xpose.msra.mxu0 %v5486_v59 }
 0xafa   : > { %v4877_v12 = vpop.f32.mrf.mxu3 }
 0xafb   : > { %v4878_v40 = vadd.f32 %v12233_v39, %v4877_v12 }
 0xafd   : > { %v4898_v61 = vpack.c.bf16 %v4878_v40, %v4878_v40  ;;  %v9592_v40 = vld [vmem:[%s10402_s26 + $0xf8] sm:$0xff] }
 0xafe   : > { %5106 = vmatpush.bf16.msrb.mxu1 %v9592_v40 }
 0xaff   : > { %v5443_v59 = vunpack.c.l.b16 %v4898_v61  ;;  %v9591_v61 = vld [vmem:[%s10402_s26 + $0xf0] sm:$0xff] }
 0xb01   : > { %5501 = vmatpush.bf16.xpose.msra.mxu0 %v5483_v55  ;;  %v5448_v19 = vpack.c.b16 %v5443_v59, %v5442_v10 }
 0xb02   : > { %v4880_v3 = vpop.f32.mrf.mxu3  ;;  %5107 = vmatpush.bf16.msrb.mxu1 %v9591_v61 }
 0xb03   : > { %v4881_v22 = vadd.f32 %v12233_v39, %v4880_v3 }
 0xb05   : > { %v4899_v50 = vpack.c.bf16 %v4881_v22, %v4881_v22 }
 0xb07   : > { %v5444_v35 = vunpack.c.l.b16 %v4899_v50 }
 0xb08   : > { %9169 = vmatmul.msk.bf16.vlgmr.msra.gmra.mxu0 %vm2167_vm12, %v5446_v15 }
 0xb0a   : > { %v4882_v0 = vpop.f32.mrf.mxu3 }
 0xb0b   : > { %v4883_v8 = vadd.f32 %v12233_v39, %v4882_v0 }
 0xb0d   : > { %v4900_v36 = vpack.c.bf16 %v4883_v8, %v4883_v8  ;;  %v9589_v8 = vld [vmem:[%s10402_s26 + $0xe0] sm:$0xff] }
 0xb0f   : > { %v5445_v24 = vunpack.c.l.b16 %v4900_v36 }
 0xb11   : > { %v5449_v57 = vpack.c.b16 %v5445_v24, %v5444_v35 }
 0xb18   : > { %9170 = vmatmul.msk.bf16.gmra.mxu0 %vm2167_vm12, %v5447_v47 }
 0xb26   : > { %v4545_v52 = vpop.xlane.xlu0 %4544 }
 0xb27   : > { %9918 = vrcp.f32 %v4545_v52 }
 0xb28   : > { %9171 = vmatmul.msk.bf16.gmra.mxu0 %vm2167_vm12, %v5448_v19 }
 0xb2d   : > { %v4382_v14 = vpop.f32.mrf.mxu2  ;;  %v9919_v15 = vpop.eup %9918 }
 0xb2e   : > { %v4548_v55 = vpop.xlane.xlu1 %4547  ;;  %v4575_v26 = vmul.f32 %v9919_v15, %v12152_v51  ;;  %v9590_v51 = vld [vmem:[%s10402_s26 + $0xe8] sm:$0xff] }
 0xb2f   : > { %9920 = vrcp.f32 %v4548_v55  ;;  %5108 = vmatpush.bf16.msrb.mxu1 %v9590_v51 }
 0xb33   : > { %5109 = vmatpush.bf16.msrb.mxu1 %v9589_v8 }
 0xb35   : > { %v9921_v43 = vpop.eup %9920  ;;  %v4384_v54 = vpop.f32.mrf.mxu2 }
 0xb36   : > { %v4576_v37 = vmul.f32 %v9921_v43, %v12166_v33  ;;  %v4652_v12 = vpack.c.bf16 %v4384_v54, %v4382_v14  ;;  %v4551_v47 = vpop.xlane.xlu2 %4550  ;;  %v9588_v14 = vld [vmem:[%s10402_s26 + $0xd8] sm:$0xff] }
 0xb37   : > { %9922 = vrcp.f32 %v4551_v47  ;;  %5110 = vmatpush.bf16.msrb.mxu1 %v9588_v14  ;;  %v3714_v14 = vadd.f32 %v11840_v16, %v11892_v27 }
 0xb38   : > { %v4583_v60 = vpack.c.bf16 %v4576_v37, %v4575_v26  ;;  %8998 = vmatmul.msk.bf16.vlgmr.msrb.gmra.mxu2 %vm2167_vm12, %v4652_v12  ;;  %9172 = vmatmul.msk.bf16.gmra.mxu0 %vm2167_vm12, %v5449_v57  ;;  %v9585_v57 = vld [vmem:[%s10402_s26 + $0xc0] sm:$0xff] }
 0xb3a   : > { %8982 = vmatmul.msk.bf16.vlgmr.msra.gmra.mxu1 %vm2221_vm3, %v4583_v60 }
 0xb3d   : > { %v4387_v46 = vpop.f32.mrf.mxu2  ;;  %v9923_v33 = vpop.eup %9922 }
 0xb3e   : > { %v4554_v3 = vpop.xlane.xlu0 %4553  ;;  %v4577_v10 = vmul.f32 %v9923_v33, %v12177_v21  ;;  %v9587_v21 = vld [vmem:[%s10402_s26 + $0xd0] sm:$0xff] }
 0xb3f   : > { %9924 = vrcp.f32 %v4554_v3  ;;  %5111 = vmatpush.bf16.msrb.mxu1 %v9587_v21  ;;  %v4846_v21 = vadd.f32 %v12233_v39, %v12125_v30 }
 0xb45   : > { %v9925_v45 = vpop.eup %9924  ;;  %v4389_v59 = vpop.f32.mrf.mxu2 }
 0xb46   : > { %v4578_v19 = vmul.f32 %v9925_v45, %v12187_v2  ;;  %v4653_v0 = vpack.c.bf16 %v4389_v59, %v4387_v46  ;;  %v4557_v22 = vpop.xlane.xlu1 %4556  ;;  %v9586_v2 = vld [vmem:[%s10402_s26 + $0xc8] sm:$0xff]  ;;  %s14379_s26 = scalar_lea.vmem %s14262_s13, %s10363_s23 }
 0xb47   : > { %9926 = vrcp.f32 %v4557_v22  ;;  %5112 = vmatpush.bf16.msrb.mxu1 %v9586_v2 }
 0xb48   : > { %8999 = vmatmul.msk.bf16.gmra.mxu2 %vm2167_vm12, %v4653_v0  ;;  %v4584_v52 = vpack.c.bf16 %v4578_v19, %v4577_v10  ;;  %v3709_v0 = vadd.f32 %v11820_v1, %v11882_v44  ;;  %v4848_v44 = vadd.f32 %v12233_v39, %v12130_v56 }
 0xb4a   : > { %8983 = vmatmul.msk.bf16.gmra.mxu1 %vm2221_vm3, %v4584_v52 }
 0xb4b   : > { %5113 = vmatpush.bf16.msrb.mxu1 %v9585_v57 }
 0xb4d   : > { %v4392_v36 = vpop.f32.mrf.mxu2  ;;  %v9927_v50 = vpop.eup %9926 }
 0xb4e   : > { %v4579_v43 = vmul.f32 %v9927_v50, %v12196_v5  ;;  %v4566_v12 = vpop.xlane.xlu1 %4565  ;;  %v4886_v50 = vpack.c.bf16 %v4848_v44, %v4848_v44 }
 0xb4f   : > { %v4560_v55 = vpop.xlane.xlu2 %4559 }
 0xb50   : > { %9928 = vrcp.f32 %v4560_v55 }
 0xb55   : > { %v4394_v24 = vpop.f32.mrf.mxu2 }
 0xb56   : > { %v9929_v15 = vpop.eup %9928  ;;  %v4654_v35 = vpack.c.bf16 %v4394_v24, %v4392_v36  ;;  %v4563_v26 = vpop.xlane.xlu0 %4562  ;;  %v4885_v24 = vpack.c.bf16 %v4846_v21, %v4846_v21 }
 0xb57   : > { %v4580_v54 = vmul.f32 %v9929_v15, %v12207_v7  ;;  %9930 = vrcp.f32 %v4563_v26  ;;  %v5189_v15 = vunpack.c.l.b16 %v4886_v50 }
 0xb58   : > { %9000 = vmatmul.msk.bf16.gmra.mxu2 %vm2167_vm12, %v4654_v35  ;;  %9932 = vrcp.f32 %v4566_v12  ;;  %v5188_v16 = vunpack.c.l.b16 %v4885_v24  ;;  %v4853_v35 = vadd.f32 %v12233_v39, %v12147_v23 }
 0xb59   : > { %v4585_v37 = vpack.c.bf16 %v4580_v54, %v4579_v43  ;;  %v4851_v43 = vadd.f32 %v12233_v39, %v12136_v18 }
 0xb5a   : > { %v4888_v56 = vpack.c.bf16 %v4853_v35, %v4853_v35 }
 0xb5b   : > { %8984 = vmatmul.msk.bf16.gmra.mxu1 %vm2221_vm3, %v4585_v37  ;;  %v4887_v57 = vpack.c.bf16 %v4851_v43, %v4851_v43 }
 0xb5c   : > { %v5191_v26 = vunpack.c.l.b16 %v4888_v56 }
 0xb5d   : > { %v4397_v60 = vpop.f32.mrf.mxu2  ;;  %v9931_v47 = vpop.eup %9930  ;;  %v5190_v30 = vunpack.c.l.b16 %v4887_v57 }
 0xb5e   : > { %v9933_v40 = vpop.eup %9932  ;;  %v4581_v46 = vmul.f32 %v9931_v47, %v12217_v48  ;;  %v3699_v48 = vadd.f32 %v11777_v49, %v11860_v41  ;;  %v4856_v47 = vadd.f32 %v12233_v39, %v12168_v13 }
 0xb5f   : > { %v4582_v7 = vmul.f32 %v9933_v40, %v12205_v17  ;;  %v5197_v12 = vpack.c.b16 %v5191_v26, %v5190_v30 }
 0xb61   : > { %v4586_v61 = vpack.c.bf16 %v4582_v7, %v4581_v46  ;;  %v4889_v46 = vpack.c.bf16 %v4856_v47, %v4856_v47 }
 0xb65   : > { %v4399_v5 = vpop.f32.mrf.mxu2 }
 0xb66   : > { %v4655_v3 = vpack.c.bf16 %v4399_v5, %v4397_v60  ;;  %v4858_v60 = vadd.f32 %v12233_v39, %v12182_v11  ;;  %v5192_v5 = vunpack.c.l.b16 %v4889_v46 }
 0xb68   : > { %9001 = vmatmul.msk.bf16.gmra.mxu2 %vm2167_vm12, %v4655_v3  ;;  %v4890_v40 = vpack.c.bf16 %v4858_v60, %v4858_v60 }
 0xb6a   : > { %v5193_v18 = vunpack.c.l.b16 %v4890_v40  ;;  %v3724_v40 = vadd.f32 %v11869_v4, %v11936_v20 }
 0xb6b   : > { %8985 = vmatmul.msk.bf16.gmra.mxu1 %vm2221_vm3, %v4586_v61  ;;  %v4863_v61 = vadd.f32 %v12233_v39, %v12202_v28 }
 0xb6c   : > { %v5198_v7 = vpack.c.b16 %v5193_v18, %v5192_v5 }
 0xb6d   : > { %v4892_v11 = vpack.c.bf16 %v4863_v61, %v4863_v61  ;;  %v14375_v61 = vld [vmem:[#allocation25_spill] sm:$0xff] }
 0xb6f   : > { %v5195_v13 = vunpack.c.l.b16 %v4892_v11 }
 0xb7b   : > { %5114 = vmatmul.bf16.vlgmr.msrb.gmra.mxu1 %v10768_v25 }
 0xb8b   : > { %5119 = vmatmul.bf16.gmra.mxu1 %v10808_v42 }
 0xb9b   : > { %5124 = vmatmul.bf16.gmra.mxu1 %v10820_v63  ;;  %v3704_v63 = vadd.f32 %v11798_v31, %v11872_v9 }
 0xbab   : > { %5129 = vmatmul.bf16.gmra.mxu1 %v10857_v6 }
 0xbb7   : > { %v4632_v51 = vpop.f32.mrf.mxu1 }
 0xbbb   : > { %5134 = vmatmul.bf16.gmra.mxu1 %v10880_v38  ;;  %v4710_v17 = vpop.f32.mrf.mxu2 }
 0xbbc   : > { %v12280_v33 = vadd.f32 %v4710_v17, %v3699_v48 }
 0xbbf   : > { %v4634_v45 = vpop.f32.mrf.mxu1 }
 0xbc0   : > { %v4656_v59 = vpack.c.bf16 %v4634_v45, %v4632_v51  ;;  %v4861_v51 = vadd.f32 %v12233_v39, %v12192_v29  ;;  %v12327_v45 = vld [vmem:[%s10408_s27 + $0x3] ss:$0 sm:$0xff] }
 0xbc2   : > { %9002 = vmatmul.msk.bf16.gmra.mxu2 %vm2167_vm12, %v4656_v59  ;;  %v4891_v17 = vpack.c.bf16 %v4861_v51, %v4861_v51 }
 0xbc3   : > { %v12283_v25 = vpop.f32.mrf.mxu2 }
 0xbc7   : > { %v4637_v42 = vpop.f32.mrf.mxu1 }
 0xbcb   : > { %5139 = vmatmul.bf16.gmra.mxu1 %v10936_v34  ;;  %v4715_v6 = vpop.f32.mrf.mxu2 }
 0xbcc   : > { %v12288_v10 = vadd.f32 %v4715_v6, %v3704_v63 }
 0xbcf   : > { %v4639_v49 = vpop.f32.mrf.mxu1 }
 0xbd0   : > { %v4657_v38 = vpack.c.bf16 %v4639_v49, %v4637_v42  ;;  %v5194_v42 = vunpack.c.l.b16 %v4891_v17 }
 0xbd2   : > { %9003 = vmatmul.msk.bf16.gmra.mxu2 %vm2167_vm12, %v4657_v38  ;;  %v5199_v49 = vpack.c.b16 %v5195_v13, %v5194_v42 }
 0xbd3   : > { %v12291_v41 = vpop.f32.mrf.mxu2 }
 0xbd8   : > { %v4642_v19 = vpop.f32.mrf.mxu1 }
 0xbdb   : > { %5144 = vmatmul.bf16.gmra.mxu1 %v10972_v53  ;;  %v4720_v8 = vpop.f32.mrf.mxu2 }
 0xbdc   : > { %v12296_v52 = vadd.f32 %v4720_v8, %v3709_v0 }
 0xbe0   : > { %v4644_v31 = vpop.f32.mrf.mxu1 }
 0xbe1   : > { %v4658_v34 = vpack.c.bf16 %v4644_v31, %v4642_v19 }
 0xbe3   : > { %9004 = vmatmul.msk.bf16.gmra.mxu2 %vm2167_vm12, %v4658_v34  ;;  %v12299_v9 = vpop.f32.mrf.mxu2 }
 0xbe8   : > { %v4647_v22 = vpop.f32.mrf.mxu1 }
 0xbeb   : > { %5149 = vmatmul.bf16.gmra.mxu1 %v11006_v58  ;;  %v4725_v36 = vpop.f32.mrf.mxu2  ;;  %v5196_v58 = vpack.c.b16 %v5189_v15, %v5188_v16 }
 0xbec   : > { %v12304_v55 = vadd.f32 %v4725_v36, %v3714_v14 }
 0xbf0   : > { %v4649_v1 = vpop.f32.mrf.mxu1 }
 0xbf1   : > { %v4659_v53 = vpack.c.bf16 %v4649_v1, %v4647_v22 }
 0xbf3   : > { %9005 = vmatmul.msk.bf16.gmra.mxu2 %vm2167_vm12, %v4659_v53  ;;  %v12338_v35 = vpop.f32.mrf.mxu2 }
 0xbf8   : > { %v5115_v2 = vpop.f32.mrf.mxu1 }
 0xbf9   : > { %v5116_v21 = vadd.f32 %v12327_v45, %v5115_v2  ;;  %v3719_v2 = vadd.f32 %v11855_v62, %v11911_v32  ;;  %v14376_v62 = vld [vmem:[#allocation17_spill] sm:$0xff] }
 0xbfa   : > { %v3729_v32 = vadd.f32 %v14376_v62, %v14375_v61 }
 0xbfb   : > { %v5155_v43 = vpack.c.bf16 %v5116_v21, %v5116_v21 }
 0xbfd   : > { %v5373_v26 = vunpack.c.l.b16 %v5155_v43 }
 0xc00   : > { %v5117_v27 = vpop.f32.mrf.mxu1 }
 0xc01   : > { %v5118_v14 = vadd.f32 %v12327_v45, %v5117_v27 }
 0xc03   : > { %9161 = vmatmul.msk.bf16.vlgmr.msra.gmra.mxu2 %vm2167_vm12, %v5196_v58  ;;  %v5156_v15 = vpack.c.bf16 %v5118_v14, %v5118_v14 }
 0xc05   : > { %v5374_v56 = vunpack.c.l.b16 %v5156_v15 }
 0xc07   : > { %v5381_v30 = vpack.c.b16 %v5374_v56, %v5373_v26 }
 0xc08   : > { %v5120_v54 = vpop.f32.mrf.mxu1 }
 0xc09   : > { %v5121_v8 = vadd.f32 %v12327_v45, %v5120_v54 }
 0xc0b   : > { %v5157_v50 = vpack.c.bf16 %v5121_v8, %v5121_v8 }
 0xc0d   : > { %v5375_v54 = vunpack.c.l.b16 %v5157_v50 }
 0xc10   : > { %v5122_v37 = vpop.f32.mrf.mxu1 }
 0xc11   : > { %v5123_v29 = vadd.f32 %v12327_v45, %v5122_v37 }
 0xc13   : > { %9162 = vmatmul.msk.bf16.gmra.mxu2 %vm2167_vm12, %v5197_v12  ;;  %v5158_v36 = vpack.c.bf16 %v5123_v29, %v5123_v29 }
 0xc15   : > { %v5376_v16 = vunpack.c.l.b16 %v5158_v36 }
 0xc17   : > { %v5382_v57 = vpack.c.b16 %v5376_v16, %v5375_v54 }
 0xc18   : > { %v5125_v23 = vpop.f32.mrf.mxu1 }
 0xc19   : > { %v5126_v38 = vadd.f32 %v12327_v45, %v5125_v23 }
 0xc1b   : > { %v5159_v31 = vpack.c.bf16 %v5126_v38, %v5126_v38 }
 0xc1d   : > { %v5377_v24 = vunpack.c.l.b16 %v5159_v31 }
 0xc20   : > { %v5127_v3 = vpop.f32.mrf.mxu1 }
 0xc21   : > { %v5128_v63 = vadd.f32 %v12327_v45, %v5127_v3 }
 0xc23   : > { %9163 = vmatmul.msk.bf16.gmra.mxu2 %vm2167_vm12, %v5198_v7  ;;  %v5160_v39 = vpack.c.bf16 %v5128_v63, %v5128_v63 }
 0xc25   : > { %v5378_v1 = vunpack.c.l.b16 %v5160_v39 }
 0xc27   : > { %v5383_v58 = vpack.c.b16 %v5378_v1, %v5377_v24 }
 0xc28   : > { %v5130_v48 = vpop.f32.mrf.mxu1 }
 0xc29   : > { %v5131_v59 = vadd.f32 %v12327_v45, %v5130_v48 }
 0xc2b   : > { %v5161_v19 = vpack.c.bf16 %v5131_v59, %v5131_v59 }
 0xc2d   : > { %v5379_v34 = vunpack.c.l.b16 %v5161_v19  ;;  %v14377_v19 = vld [vmem:[#allocation27_spill] sm:$0xff] }
 0xc30   : > { %v5132_v6 = vpop.f32.mrf.mxu1 }
 0xc31   : > { %v5133_v28 = vadd.f32 %v12327_v45, %v5132_v6 }
 0xc33   : > { %v5162_v0 = vpack.c.bf16 %v5133_v28, %v5133_v28  ;;  %9164 = vmatmul.msk.bf16.gmra.mxu2 %vm2167_vm12, %v5199_v49  ;;  %v14378_v28 = vld [vmem:[#allocation20_spill] sm:$0xff] }
 0xc34   : > { %v3734_v29 = vadd.f32 %v14378_v28, %v14377_v19  ;;  %v12400_v19 = vld [vmem:[%s10413_s7 + $0xf0] sm:$0xff] }
 0xc35   : > { %v5380_v22 = vunpack.c.l.b16 %v5162_v0 }
 0xc37   : > { %v5384_v53 = vpack.c.b16 %v5380_v22, %v5379_v34 }
 0xc38   : > { %v5135_v44 = vpop.f32.mrf.mxu1 }
 0xc39   : > { %5405 = vmatpush.bf16.msra.mxu3 %v5384_v53  ;;  %v5136_v21 = vadd.f32 %v12327_v45, %v5135_v44 }
 0xc3b   : > { %v5163_v43 = vpack.c.bf16 %v5136_v21, %v5136_v21 }
 0xc3d   : > { %5406 = vmatpush.bf16.msra.mxu3 %v5383_v58  ;;  %v5623_v26 = vunpack.c.l.b16 %v5163_v43 }
 0xc40   : > { %v5137_v27 = vpop.f32.mrf.mxu1 }
 0xc41   : > { %5407 = vmatpush.bf16.msra.mxu3 %v5382_v57  ;;  %v5138_v34 = vadd.f32 %v12327_v45, %v5137_v27 }
 0xc43   : > { %v5164_v15 = vpack.c.bf16 %v5138_v34, %v5138_v34 }
 0xc45   : > { %5408 = vmatpush.bf16.msra.mxu3 %v5381_v30  ;;  %v4730_v37 = vpop.f32.mrf.mxu2  ;;  %v5624_v57 = vunpack.c.l.b16 %v5164_v15 }
 0xc46   : > { %v12342_v12 = vadd.f32 %v4730_v37, %v3719_v2 }
 0xc47   : > { %v5631_v30 = vpack.c.b16 %v5624_v57, %v5623_v26 }
 0xc48   : > { %v5140_v60 = vpop.f32.mrf.mxu1 }
 0xc49   : > { %v5141_v39 = vadd.f32 %v12327_v45, %v5140_v60  ;;  %v12375_v60 = vld [vmem:[%s10413_s7 + $0xc8] sm:$0xff] }
 0xc4b   : > { %v5165_v50 = vpack.c.bf16 %v5141_v39, %v5141_v39 }
 0xc4d   : > { %v12344_v47 = vpop.f32.mrf.mxu2  ;;  %v5625_v54 = vunpack.c.l.b16 %v5165_v50 }
 0xc50   : > { %v5142_v23 = vpop.f32.mrf.mxu1 }
 0xc51   : > { %v5143_v6 = vadd.f32 %v12327_v45, %v5142_v23 }
 0xc53   : > { %v5166_v14 = vpack.c.bf16 %v5143_v6, %v5143_v6 }
 0xc55   : > { %v4735_v46 = vpop.f32.mrf.mxu2  ;;  %v5626_v16 = vunpack.c.l.b16 %v5166_v14 }
 0xc56   : > { %v12348_v18 = vadd.f32 %v4735_v46, %v3724_v40 }
 0xc57   : > { %v5632_v27 = vpack.c.b16 %v5626_v16, %v5625_v54 }
 0xc58   : > { %v5145_v5 = vpop.f32.mrf.mxu1 }
 0xc59   : > { %v5146_v59 = vadd.f32 %v12327_v45, %v5145_v5  ;;  %v12380_v5 = vld [vmem:[%s10413_s7 + $0xd0] sm:$0xff] }
 0xc5b   : > { %v5167_v0 = vpack.c.bf16 %v5146_v59, %v5146_v59 }
 0xc5d   : > { %v12350_v3 = vpop.f32.mrf.mxu2  ;;  %v5627_v24 = vunpack.c.l.b16 %v5167_v0  ;;  %v12408_v0 = vld [vmem:[%s10413_s7 + $0xf8] sm:$0xff] }
 0xc60   : > { %v5147_v7 = vpop.f32.mrf.mxu1 }
 0xc61   : > { %v5148_v4 = vadd.f32 %v12327_v45, %v5147_v7 }
 0xc63   : > { %v5168_v49 = vpack.c.bf16 %v5148_v4, %v5148_v4  ;;  %v12390_v4 = vld [vmem:[%s10413_s7 + $0xe0] sm:$0xff] }
 0xc65   : > { %v5628_v36 = vunpack.c.l.b16 %v5168_v49 }
 0xc66   : > { %v4740_v51 = vpop.f32.mrf.mxu2 }
 0xc67   : > { %v12354_v48 = vadd.f32 %v4740_v51, %v3729_v32  ;;  %v5633_v58 = vpack.c.b16 %v5628_v36, %v5627_v24  ;;  %v12385_v32 = vld [vmem:[%s10413_s7 + $0xd8] sm:$0xff] }
 0xc68   : > { %v5150_v11 = vpop.f32.mrf.mxu1 }
 0xc69   : > { %v5151_v17 = vadd.f32 %v12327_v45, %v5150_v11 }
 0xc6b   : > { %v5169_v42 = vpack.c.bf16 %v5151_v17, %v5151_v17 }
 0xc6d   : > { %v5629_v8 = vunpack.c.l.b16 %v5169_v42 }
 0xc6e   : > { %v12357_v13 = vpop.f32.mrf.mxu2 }
 0xc70   : > { %v5152_v20 = vpop.f32.mrf.mxu1 }
 0xc71   : > { %v5153_v63 = vadd.f32 %v12327_v45, %v5152_v20  ;;  %v9153_v45 = vld [vmem:[%s10413_s7 + $0xc0] sm:$0xff] }
 0xc73   : > { %v5170_v38 = vpack.c.bf16 %v5153_v63, %v5153_v63  ;;  %v12395_v63 = vld [vmem:[%s10413_s7 + $0xe8] sm:$0xff] }
 0xc75   : > { %v5630_v31 = vunpack.c.l.b16 %v5170_v38 }
 0xc76   : > { %v4745_v22 = vpop.f32.mrf.mxu2 }
 0xc77   : > { %v5634_v1 = vpack.c.b16 %v5630_v31, %v5629_v8  ;;  %v12367_v53 = vadd.f32 %v4745_v22, %v3734_v29  ;;  %v5503_v22 = vpop.f32.mrf.mxu0 }
 0xc79   : > { %5655 = vmatpush.bf16.msra.mxu1 %v5634_v1 }
 0xc7d   : > { %5656 = vmatpush.bf16.msra.mxu1 %v5633_v58 }
 0xc7e   : > { %v12370_v56 = vpop.f32.mrf.mxu2 }
 0xc7f   : > { %v5505_v36 = vpop.f32.mrf.mxu0 }
 0xc81   : > { %5657 = vmatpush.bf16.msra.mxu1 %v5632_v27 }
 0xc85   : > { %5658 = vmatpush.bf16.msra.mxu1 %v5631_v30 }
 0xc86   : > { %v5253_v44 = vpop.f32.mrf.mxu2 }
 0xc87   : > { %v5254_v2 = vadd.f32 %v9153_v45, %v5253_v44  ;;  %v5508_v16 = vpop.f32.mrf.mxu0 }
 0xc89   : > { %v5273_v37 = vsel %vm2221_vm3, %v5254_v2, -inf }
 0xc8a   : > { %5274 = vmax.xlane.f32.xlu2 %v5273_v37 }
 0xc8e   : > { %v5255_v23 = vpop.f32.mrf.mxu2 }
 0xc8f   : > { %v5256_v40 = vadd.f32 %v12375_v60, %v5255_v23  ;;  %v5510_v44 = vpop.f32.mrf.mxu0 }
 0xc91   : > { %v5276_v46 = vsel %vm2221_vm3, %v5256_v40, -inf }
 0xc92   : > { %5277 = vmax.xlane.f32.xlu0 %v5276_v46 }
 0xc96   : > { %v5258_v7 = vpop.f32.mrf.mxu2 }
 0xc97   : > { %v5259_v61 = vadd.f32 %v12380_v5, %v5258_v7 }
 0xc99   : > { %v5279_v62 = vsel %vm2221_vm3, %v5259_v61, -inf }
 0xc9a   : > { %5280 = vmax.xlane.f32.xlu1 %v5279_v62  ;;  %v5513_v62 = vpop.f32.mrf.mxu0 }
 0xc9e   : > { %v5260_v51 = vpop.f32.mrf.mxu2 }
 0xc9f   : > { %v5261_v11 = vadd.f32 %v12385_v32, %v5260_v51  ;;  %v12432_v51 = vadd.f32 %v12375_v60, %v5505_v36 }
 0xca1   : > { %v5282_v17 = vsel %vm2221_vm3, %v5261_v11, -inf }
 0xca2   : > { %5283 = vmax.xlane.f32.xlu2 %v5282_v17  ;;  %v5515_v60 = vpop.f32.mrf.mxu0 }
 0xca6   : > { %v5263_v20 = vpop.f32.mrf.mxu2 }
 0xca7   : > { %v5264_v59 = vadd.f32 %v12390_v4, %v5263_v20 }
 0xca9   : > { %v5285_v42 = vsel %vm2221_vm3, %v5264_v59, -inf }
 0xcaa   : > { %5286 = vmax.xlane.f32.xlu0 %v5285_v42  ;;  %v5526_v42 = vsel %vm2221_vm3, %v12432_v51, -inf }
 0xcae   : > { %v5265_v6 = vpop.f32.mrf.mxu2 }
 0xcaf   : > { %v5266_v49 = vadd.f32 %v12395_v63, %v5265_v6 }
 0xcb1   : > { %v5288_v38 = vsel %vm2221_vm3, %v5266_v49, -inf }
 0xcb2   : > { %5289 = vmax.xlane.f32.xlu1 %v5288_v38  ;;  %v12441_v38 = vadd.f32 %v12380_v5, %v5508_v16  ;;  %v12460_v16 = vadd.f32 %v12390_v4, %v5513_v62  ;;  %v12473_v4 = vadd.f32 %v12395_v63, %v5515_v60 }
 0xcb6   : > { %v5268_v28 = vpop.f32.mrf.mxu2 }
 0xcb7   : > { %v12403_v29 = vadd.f32 %v12400_v19, %v5268_v28 }
 0xcb9   : > { %v5291_v39 = vsel %vm2221_vm3, %v12403_v29, -inf }
 0xcba   : > { %5292 = vmax.xlane.f32.xlu2 %v5291_v39 }
 0xcbe   : > { %v5270_v8 = vpop.f32.mrf.mxu2 }
 0xcbf   : > { %v12411_v31 = vadd.f32 %v12408_v0, %v5270_v8 }
 0xcc1   : > { %v5294_v34 = vsel %vm2221_vm3, %v12411_v31, -inf }
 0xcc2   : > { %5295 = vmax.xlane.f32.xlu0 %v5294_v34  ;;  %v5529_v34 = vsel %vm2221_vm3, %v12441_v38, -inf }
 0xcfd   : > { %v5275_v14 = vpop.xlane.xlu2 %5274 }
 0xcfe   : > { %v5297_v1 = vsub.f32 %v5254_v2, %v5275_v14  ;;  %v12423_v2 = vadd.f32 %v9153_v45, %v5503_v22  ;;  %v12450_v14 = vadd.f32 %v12385_v32, %v5510_v44 }
 0xd00   : > { %v5305_v21 = vmul.f32 1.442695, %v5297_v1 }
 0xd02   : > { %9934 = vpow2.f32 %v5305_v21 }
 0xd05   : > { %v5278_v50 = vpop.xlane.xlu0 %5277 }
 0xd06   : > { %v5298_v24 = vsub.f32 %v5256_v40, %v5278_v50 }
 0xd08   : > { %v12415_v15 = vpop.eup %9934  ;;  %v5307_v58 = vmul.f32 1.442695, %v5298_v24  ;;  %v5532_v24 = vsel %vm2221_vm3, %v12450_v14, -inf }
 0xd09   : > { %v5321_v43 = vsel %vm2221_vm3, %v12415_v15, 0.0 }
 0xd0a   : > { %9936 = vpow2.f32 %v5307_v58  ;;  %5322 = vadd.xlane.f32.xlu1 %v5321_v43 }
 0xd0d   : > { %v5281_v54 = vpop.xlane.xlu1 %5280 }
 0xd0e   : > { %v5299_v57 = vsub.f32 %v5259_v61, %v5281_v54  ;;  %v5523_v61 = vsel %vm2221_vm3, %v12423_v2, -inf  ;;  %v5535_v54 = vsel %vm2221_vm3, %v12460_v16, -inf }
 0xd10   : > { %v12419_v27 = vpop.eup %9936  ;;  %v5309_v26 = vmul.f32 1.442695, %v5299_v57 }
 0xd11   : > { %v5324_v30 = vsel %vm2221_vm3, %v12419_v27, 0.0 }
 0xd12   : > { %9938 = vpow2.f32 %v5309_v26  ;;  %5325 = vadd.xlane.f32.xlu2 %v5324_v30 }
 0xd15   : > { %v5284_v37 = vpop.xlane.xlu2 %5283 }
 0xd16   : > { %v5300_v23 = vsub.f32 %v5261_v11, %v5284_v37 }
 0xd18   : > { %v12425_v40 = vpop.eup %9938  ;;  %v5311_v46 = vmul.f32 1.442695, %v5300_v23  ;;  %v5538_v23 = vsel %vm2221_vm3, %v12473_v4, -inf }
 0xd19   : > { %v5327_v7 = vsel %vm2221_vm3, %v12425_v40, 0.0 }
 0xd1a   : > { %9940 = vpow2.f32 %v5311_v46  ;;  %5328 = vadd.xlane.f32.xlu0 %v5327_v7  ;;  %5524 = vmax.xlane.f32.xlu2 %v5523_v61 }
 0xd1d   : > { %v5287_v45 = vpop.xlane.xlu0 %5286 }
 0xd1e   : > { %v5301_v17 = vsub.f32 %v5264_v59, %v5287_v45 }
 0xd20   : > { %v12434_v20 = vpop.eup %9940  ;;  %v5313_v11 = vmul.f32 1.442695, %v5301_v17 }
 0xd21   : > { %v5330_v6 = vsel %vm2221_vm3, %v12434_v20, 0.0 }
 0xd22   : > { %9942 = vpow2.f32 %v5313_v11  ;;  %5527 = vmax.xlane.f32.xlu0 %v5526_v42  ;;  %5331 = vadd.xlane.f32.xlu1 %v5330_v6 }
 0xd25   : > { %v5290_v28 = vpop.xlane.xlu1 %5289 }
 0xd26   : > { %v5302_v39 = vsub.f32 %v5266_v49, %v5290_v28  ;;  %v5518_v49 = vpop.f32.mrf.mxu0 }
 0xd28   : > { %v12443_v8 = vpop.eup %9942  ;;  %v5315_v59 = vmul.f32 1.442695, %v5302_v39 }
 0xd29   : > { %v5333_v22 = vsel %vm2221_vm3, %v12443_v8, 0.0 }
 0xd2a   : > { %9944 = vpow2.f32 %v5315_v59  ;;  %5530 = vmax.xlane.f32.xlu0 %v5529_v34  ;;  %5334 = vadd.xlane.f32.xlu1 %v5333_v22 }
 0xd2d   : > { %v5293_v5 = vpop.xlane.xlu2 %5292 }
 0xd2e   : > { %v5303_v36 = vsub.f32 %v12403_v29, %v5293_v5  ;;  %v5520_v26 = vpop.f32.mrf.mxu0 }
 0xd2f   : > { %v12470_v30 = vadd.f32 %v12408_v0, %v5520_v26  ;;  %v12484_v0 = vadd.f32 %v12400_v19, %v5518_v49 }
 0xd30   : > { %v12453_v1 = vpop.eup %9944  ;;  %v5317_v21 = vmul.f32 1.442695, %v5303_v36 }
 0xd31   : > { %v5336_v50 = vsel %vm2221_vm3, %v12453_v1, 0.0  ;;  %v5544_v37 = vsel %vm2221_vm3, %v12470_v30, -inf  ;;  %v5541_v63 = vsel %vm2221_vm3, %v12484_v0, -inf }
 0xd32   : > { %9946 = vpow2.f32 %v5317_v21  ;;  %5337 = vadd.xlane.f32.xlu2 %v5336_v50  ;;  %5533 = vmax.xlane.f32.xlu1 %v5532_v24 }
 0xd35   : > { %v5296_v32 = vpop.xlane.xlu0 %5295 }
 0xd36   : > { %v5304_v58 = vsub.f32 %v12411_v31, %v5296_v32 }
 0xd38   : > { %v12463_v29 = vpop.eup %9946  ;;  %v5319_v43 = vmul.f32 1.442695, %v5304_v58 }
 0xd39   : > { %v5339_v57 = vsel %vm2221_vm3, %v12463_v29, 0.0 }
 0xd3a   : > { %9948 = vpow2.f32 %v5319_v43  ;;  %5536 = vmax.xlane.f32.xlu1 %v5535_v54  ;;  %5340 = vadd.xlane.f32.xlu2 %v5339_v57 }
 0xd40   : > { %v12475_v31 = vpop.eup %9948 }
 0xd41   : > { %v5342_v44 = vsel %vm2221_vm3, %v12475_v31, 0.0 }
 0xd42   : > { %5343 = vadd.xlane.f32.xlu0 %v5342_v44  ;;  %5545 = vmax.xlane.f32.xlu1 %v5544_v37 }
 0xd43   : > { %5539 = vmax.xlane.f32.xlu2 %v5538_v23 }
 0xd4a   : > { %5542 = vmax.xlane.f32.xlu0 %v5541_v63 }
 0xd7d   : > { %v5323_v46 = vpop.xlane.xlu1 %5322 }
 0xd7e   : > { %9950 = vrcp.f32 %v5323_v46 }
 0xd84   : > { %v9951_v61 = vpop.eup %9950 }
 0xd85   : > { %v5326_v7 = vpop.xlane.xlu2 %5325  ;;  %v5353_v45 = vmul.f32 %v9951_v61, %v12415_v15 }
 0xd86   : > { %9952 = vrcp.f32 %v5326_v7 }
 0xd8c   : > { %v9953_v62 = vpop.eup %9952 }
 0xd8d   : > { %v5354_v17 = vmul.f32 %v9953_v62, %v12419_v27  ;;  %v5329_v11 = vpop.xlane.xlu0 %5328  ;;  %v5525_v42 = vpop.xlane.xlu2 %5524 }
 0xd8e   : > { %v5547_v6 = vsub.f32 %v12423_v2, %v5525_v42 }
 0xd8f   : > { %v5361_v19 = vpack.c.bf16 %v5354_v17, %v5353_v45 }
 0xd90   : > { %v5555_v28 = vmul.f32 1.442695, %v5547_v6 }
 0xd91   : > { %9165 = vmatmul.msk.bf16.vlgmr.msra.gmra.mxu3 %vm2221_vm3, %v5361_v19 }
 0xd92   : > { %9954 = vpow2.f32 %v5555_v28 }
 0xd93   : > { %9956 = vrcp.f32 %v5329_v11 }
 0xd95   : > { %v5528_v60 = vpop.xlane.xlu0 %5527  ;;  %v5332_v39 = vpop.xlane.xlu1 %5331 }
 0xd96   : > { %v5548_v59 = vsub.f32 %v12432_v51, %v5528_v60  ;;  %9958 = vrcp.f32 %v5332_v39 }
 0xd98   : > { %v12493_v34 = vpop.eup %9954  ;;  %v5557_v15 = vmul.f32 1.442695, %v5548_v59 }
 0xd99   : > { %v5571_v27 = vsel %vm2221_vm3, %v12493_v34, 0.0  ;;  %v9957_v22 = vpop.eup %9956 }
 0xd9a   : > { %9960 = vpow2.f32 %v5557_v15  ;;  %5572 = vadd.xlane.f32.xlu2 %v5571_v27  ;;  %v5355_v5 = vmul.f32 %v9957_v22, %v12425_v40 }
 0xd9c   : > { %v9959_v2 = vpop.eup %9958 }
 0xd9d   : > { %v5356_v36 = vmul.f32 %v9959_v2, %v12434_v20  ;;  %v5531_v49 = vpop.xlane.xlu0 %5530  ;;  %v5335_v21 = vpop.xlane.xlu1 %5334 }
 0xd9e   : > { %v5549_v50 = vsub.f32 %v12441_v38, %v5531_v49 }
 0xd9f   : > { %v5362_v51 = vpack.c.bf16 %v5356_v36, %v5355_v5 }
 0xda0   : > { %v12500_v24 = vpop.eup %9960  ;;  %v5559_v32 = vmul.f32 1.442695, %v5549_v50 }
 0xda1   : > { %9166 = vmatmul.msk.bf16.gmra.mxu3 %vm2221_vm3, %v5362_v51  ;;  %v5574_v58 = vsel %vm2221_vm3, %v12500_v24, 0.0 }
 0xda2   : > { %9962 = vpow2.f32 %v5559_v32  ;;  %5575 = vadd.xlane.f32.xlu0 %v5574_v58 }
 0xda3   : > { %9964 = vrcp.f32 %v5335_v21  ;;  %v9593_v21 = vld [vmem:[%s10419_s24 + $0x30] sm:$0xff] }
 0xda5   : > { %v5534_v43 = vpop.xlane.xlu1 %5533  ;;  %v5338_v40 = vpop.xlane.xlu2 %5337 }
 0xda6   : > { %v5550_v20 = vsub.f32 %v12450_v14, %v5534_v43  ;;  %9966 = vrcp.f32 %v5338_v40 }
 0xda8   : > { %v12506_v54 = vpop.eup %9962  ;;  %v5561_v38 = vmul.f32 1.442695, %v5550_v20 }
 0xda9   : > { %v5577_v57 = vsel %vm2221_vm3, %v12506_v54, 0.0  ;;  %v9965_v26 = vpop.eup %9964 }
 0xdaa   : > { %9968 = vpow2.f32 %v5561_v38  ;;  %5578 = vadd.xlane.f32.xlu1 %v5577_v57  ;;  %v5357_v37 = vmul.f32 %v9965_v26, %v12443_v8 }
 0xdac   : > { %v9967_v44 = vpop.eup %9966 }
 0xdad   : > { %v5358_v23 = vmul.f32 %v9967_v44, %v12453_v1  ;;  %v5537_v63 = vpop.xlane.xlu1 %5536  ;;  %v5341_v46 = vpop.xlane.xlu2 %5340 }
 0xdae   : > { %v5551_v7 = vsub.f32 %v12460_v16, %v5537_v63 }
 0xdaf   : > { %v5363_v14 = vpack.c.bf16 %v5358_v23, %v5357_v37 }
 0xdb0   : > { %v12513_v61 = vpop.eup %9968  ;;  %v5563_v62 = vmul.f32 1.442695, %v5551_v7 }
 0xdb1   : > { %9167 = vmatmul.msk.bf16.gmra.mxu3 %vm2221_vm3, %v5363_v14  ;;  %v5580_v45 = vsel %vm2221_vm3, %v12513_v61, 0.0 }
 0xdb2   : > { %9970 = vpow2.f32 %v5563_v62  ;;  %5581 = vadd.xlane.f32.xlu2 %v5580_v45 }
 0xdb3   : > { %9972 = vrcp.f32 %v5341_v46 }
 0xdb5   : > { %v5344_v17 = vpop.xlane.xlu0 %5343  ;;  %v5546_v8 = vpop.xlane.xlu1 %5545 }
 0xdb6   : > { %9974 = vrcp.f32 %v5344_v17  ;;  %v5554_v1 = vsub.f32 %v12470_v30, %v5546_v8  ;;  %v5540_v11 = vpop.xlane.xlu2 %5539 }
 0xdb7   : > { %v5552_v16 = vsub.f32 %v12473_v4, %v5540_v11 }
 0xdb8   : > { %v12520_v42 = vpop.eup %9970  ;;  %v5569_v6 = vmul.f32 1.442695, %v5554_v1 }
 0xdb9   : > { %v5565_v19 = vmul.f32 1.442695, %v5552_v16  ;;  %v5583_v28 = vsel %vm2221_vm3, %v12520_v42, 0.0  ;;  %v9973_v60 = vpop.eup %9972 }
 0xdba   : > { %9976 = vpow2.f32 %v5569_v6  ;;  %5584 = vadd.xlane.f32.xlu0 %v5583_v28  ;;  %v5359_v59 = vmul.f32 %v9973_v60, %v12463_v29 }
 0xdbb   : > { %9978 = vpow2.f32 %v5565_v19 }
 0xdbc   : > { %v9975_v39 = vpop.eup %9974 }
 0xdbd   : > { %v5360_v15 = vmul.f32 %v9975_v39, %v12475_v31  ;;  %v5543_v30 = vpop.xlane.xlu0 %5542 }
 0xdbe   : > { %v5553_v4 = vsub.f32 %v12484_v0, %v5543_v30  ;;  %v9594_v0 = vld [vmem:[%s10419_s24 + $0x38] sm:$0xff] }
 0xdbf   : > { %v5364_v27 = vpack.c.bf16 %v5360_v15, %v5359_v59  ;;  %5735 = vmatpush.bf16.msrb.mxu2 %v9594_v0 }
 0xdc0   : > { %v12527_v22 = vpop.eup %9976  ;;  %v5567_v2 = vmul.f32 1.442695, %v5553_v4 }
 0xdc1   : > { %v9979_v5 = vpop.eup %9978  ;;  %9168 = vmatmul.msk.bf16.gmra.mxu3 %vm2221_vm3, %v5364_v27  ;;  %v5592_v36 = vsel %vm2221_vm3, %v12527_v22, 0.0 }
 0xdc2   : > { %9980 = vpow2.f32 %v5567_v2  ;;  %5593 = vadd.xlane.f32.xlu0 %v5592_v36  ;;  %v5586_v29 = vsel %vm2221_vm3, %v9979_v5, 0.0 }
 0xdc3   : > { %5587 = vadd.xlane.f32.xlu1 %v5586_v29  ;;  %5736 = vmatpush.bf16.msrb.mxu2 %v9593_v21 }
 0xdc8   : > { %v9981_v31 = vpop.eup %9980 }
 0xdc9   : > { %v5589_v49 = vsel %vm2221_vm3, %v9981_v31, 0.0 }
 0xdca   : > { %5590 = vadd.xlane.f32.xlu2 %v5589_v49  ;;  %v12556_v49 = vld [vmem:[%s14379_s26] ss:$0 sm:$0xff] }
 0xe0d   : > { %v5573_v50 = vpop.xlane.xlu2 %5572 }
 0xe0e   : > { %9982 = vrcp.f32 %v5573_v50  ;;  %v14380_v50 = vld [vmem:[#allocation14_spill] sm:$0xff] }
 0xe14   : > { %v5410_v51 = vpop.f32.mrf.mxu3  ;;  %v9983_v58 = vpop.eup %9982 }
 0xe15   : > { %v5576_v32 = vpop.xlane.xlu0 %5575  ;;  %v5603_v20 = vmul.f32 %v9983_v58, %v12493_v34 }
 0xe16   : > { %9984 = vrcp.f32 %v5576_v32 }
 0xe1c   : > { %v9985_v43 = vpop.eup %9984  ;;  %v5412_v40 = vpop.f32.mrf.mxu3 }
 0xe1d   : > { %v5604_v38 = vmul.f32 %v9985_v43, %v12500_v24  ;;  %v5680_v57 = vpack.c.bf16 %v5412_v40, %v5410_v51  ;;  %v5579_v44 = vpop.xlane.xlu1 %5578 }
 0xe1e   : > { %9986 = vrcp.f32 %v5579_v44 }
 0xe1f   : > { %v5611_v26 = vpack.c.bf16 %v5604_v38, %v5603_v20  ;;  %9189 = vmatmul.msk.bf16.vlgmr.msrb.gmra.mxu2 %vm2167_vm12, %v5680_v57  ;;  %v10159_v20 = vld [vmem:[#allocation2] sm:$0xff] }
 0xe21   : > { %9173 = vmatmul.msk.bf16.vlgmr.msra.gmra.mxu1 %vm2221_vm3, %v5611_v26 }
 0xe24   : > { %v5415_v37 = vpop.f32.mrf.mxu3  ;;  %v9987_v63 = vpop.eup %9986 }
 0xe25   : > { %v5582_v23 = vpop.xlane.xlu2 %5581  ;;  %v5605_v14 = vmul.f32 %v9987_v63, %v12506_v54 }
 0xe26   : > { %9988 = vrcp.f32 %v5582_v23  ;;  %v10160_v23 = vld [vmem:[#allocation2 + $0x58] sm:$0xff] }
 0xe2c   : > { %v9989_v46 = vpop.eup %9988  ;;  %v5417_v7 = vpop.f32.mrf.mxu3 }
 0xe2d   : > { %v5606_v34 = vmul.f32 %v9989_v46, %v12513_v61  ;;  %v5681_v62 = vpack.c.bf16 %v5417_v7, %v5415_v37  ;;  %v5585_v45 = vpop.xlane.xlu0 %5584  ;;  %v14384_v46 = vld [vmem:[#allocation16_spill] sm:$0xff]  ;;  %v14385_v7 = vld [vmem:[#allocation10_spill] sm:$0xff] }
 0xe2e   : > { %9990 = vrcp.f32 %v5585_v45 }
 0xe2f   : > { %9190 = vmatmul.msk.bf16.gmra.mxu2 %vm2167_vm12, %v5681_v62  ;;  %v5612_v24 = vpack.c.bf16 %v5606_v34, %v5605_v14  ;;  %v3706_v14 = vadd.f32 %v14385_v7, %v14384_v46 }
 0xe31   : > { %9174 = vmatmul.msk.bf16.gmra.mxu1 %vm2221_vm3, %v5612_v24  ;;  %v4753_v24 = vadd.f32 %v12291_v41, %v3706_v14  ;;  %v14388_v41 = vld [vmem:[#allocation19_spill] sm:$0xff] }
 0xe34   : > { %v5420_v17 = vpop.f32.mrf.mxu3  ;;  %v9991_v1 = vpop.eup %9990 }
 0xe35   : > { %v5607_v19 = vmul.f32 %v9991_v1, %v12520_v42  ;;  %v5594_v60 = vpop.xlane.xlu0 %5593 }
 0xe36   : > { %v5588_v8 = vpop.xlane.xlu1 %5587 }
 0xe37   : > { %9992 = vrcp.f32 %v5588_v8  ;;  %v10161_v8 = vld [vmem:[#allocation2 + $0x18] sm:$0xff] }
 0xe3c   : > { %v5422_v11 = vpop.f32.mrf.mxu3 }
 0xe3d   : > { %v9993_v16 = vpop.eup %9992  ;;  %v5682_v6 = vpack.c.bf16 %v5422_v11, %v5420_v17  ;;  %v5591_v61 = vpop.xlane.xlu2 %5590 }
 0xe3e   : > { %v5608_v54 = vmul.f32 %v9993_v16, %v9979_v5  ;;  %9994 = vrcp.f32 %v5591_v61  ;;  %v14389_v61 = vld [vmem:[#allocation11_spill] sm:$0xff] }
 0xe3f   : > { %9191 = vmatmul.msk.bf16.gmra.mxu2 %vm2167_vm12, %v5682_v6  ;;  %9996 = vrcp.f32 %v5594_v60 }
 0xe40   : > { %v5613_v28 = vpack.c.bf16 %v5608_v54, %v5607_v19  ;;  %v10162_v19 = vld [vmem:[#allocation2 + $0x50] sm:$0xff] }
 0xe42   : > { %9175 = vmatmul.msk.bf16.gmra.mxu1 %vm2221_vm3, %v5613_v28  ;;  %v3711_v28 = vadd.f32 %v14389_v61, %v14388_v41 }
 0xe44   : > { %v5425_v39 = vpop.f32.mrf.mxu3  ;;  %v9995_v59 = vpop.eup %9994 }
 0xe45   : > { %v9997_v15 = vpop.eup %9996  ;;  %v5609_v30 = vmul.f32 %v9995_v59, %v9981_v31  ;;  %v10158_v31 = vld [vmem:[#allocation2 + $0x30] sm:$0xff] }
 0xe46   : > { %v5610_v2 = vmul.f32 %v9997_v15, %v12527_v22  ;;  %v14381_v22 = vld [vmem:[#allocation9_spill] sm:$0xff]  ;;  %v4755_v15 = vadd.f32 %v12299_v9, %v3711_v28 }
 0xe47   : > { %v3701_v51 = vadd.f32 %v14381_v22, %v14380_v50  ;;  %v14393_v22 = vld [vmem:[#allocation22_spill] sm:$0xff] }
 0xe48   : > { %v5614_v42 = vpack.c.bf16 %v5610_v2, %v5609_v30 }
 0xe49   : > { %v4751_v43 = vadd.f32 %v12283_v25, %v3701_v51  ;;  %v14394_v51 = vld [vmem:[#allocation12_spill] sm:$0xff] }
 0xe4c   : > { %v5427_v4 = vpop.f32.mrf.mxu3 }
 0xe4d   : > { %v5683_v27 = vpack.c.bf16 %v5427_v4, %v5425_v39 }
 0xe4f   : > { %9192 = vmatmul.msk.bf16.gmra.mxu2 %vm2167_vm12, %v5683_v27  ;;  %v10163_v27 = vld [vmem:[#allocation2 + $0x68] sm:$0xff] }
 0xe52   : > { %9176 = vmatmul.msk.bf16.gmra.mxu1 %vm2221_vm3, %v5614_v42 }
 0xe9e   : > { %v5660_v5 = vpop.f32.mrf.mxu1 }
 0xea2   : > { %v5738_v36 = vpop.f32.mrf.mxu2 }
 0xea3   : > { %v5778_v29 = vadd.f32 %v5738_v36, %v12280_v33 }
 0xea5   : > { %v5794_v0 = vadd.f32 %v10158_v31, %v5778_v29  ;;  %v10164_v29 = vld [vmem:[#allocation2 + $0x8] sm:$0xff] }
 0xea6   : > { %v5662_v21 = vpop.f32.mrf.mxu1 }
 0xea7   : > { %v5684_v32 = vpack.c.bf16 %v5662_v21, %v5660_v5  ;;  %v12561_v58 = vadd.f32 %v12556_v49, %v5794_v0 }
 0xea9   : > { %14382 = vst [vmem:[#allocation25_spill] sm:$0xff] %v12561_v58  ;;  %5832 = vadd.xlane.f32.xlu1 %v12561_v58  ;;  %9193 = vmatmul.msk.bf16.gmra.mxu2 %vm2167_vm12, %v5684_v32  ;;  %v3716_v32 = vadd.f32 %v14394_v51, %v14393_v22 }
 0xeaa   : > { %v5740_v33 = vpop.f32.mrf.mxu2 }
 0xeab   : > { %v5779_v40 = vadd.f32 %v5740_v33, %v4751_v43  ;;  %v14395_v43 = vld [vmem:[#allocation8_spill] sm:$0xff] }
 0xead   : > { %v5795_v38 = vadd.f32 %v10159_v20, %v5779_v40 }
 0xeae   : > { %v5665_v57 = vpop.f32.mrf.mxu1 }
 0xeaf   : > { %v12567_v26 = vadd.f32 %v12556_v49, %v5795_v38 }
 0xeb1   : > { %14383 = vst [vmem:[#allocation17_spill] sm:$0xff] %v12567_v26  ;;  %5834 = vadd.xlane.f32.xlu2 %v12567_v26 }
 0xeb2   : > { %v5743_v44 = vpop.f32.mrf.mxu2 }
 0xeb3   : > { %v5780_v37 = vadd.f32 %v5743_v44, %v12288_v10 }
 0xeb5   : > { %v5796_v63 = vadd.f32 %v10160_v23, %v5780_v37  ;;  %v10165_v37 = vld [vmem:[#allocation2 + $0x48] sm:$0xff] }
 0xeb6   : > { %v5667_v25 = vpop.f32.mrf.mxu1 }
 0xeb7   : > { %v5685_v34 = vpack.c.bf16 %v5667_v25, %v5665_v57  ;;  %v12574_v62 = vadd.f32 %v12556_v49, %v5796_v63 }
 0xeb9   : > { %14386 = vst [vmem:[#allocation27_spill] sm:$0xff] %v12574_v62  ;;  %5836 = vadd.xlane.f32.xlu0 %v12574_v62  ;;  %9194 = vmatmul.msk.bf16.gmra.mxu2 %vm2167_vm12, %v5685_v34 }
 0xeba   : > { %v5745_v45 = vpop.f32.mrf.mxu2 }
 0xebb   : > { %v5781_v17 = vadd.f32 %v5745_v45, %v4753_v24 }
 0xebd   : > { %v5797_v10 = vadd.f32 %v10161_v8, %v5781_v17  ;;  %v10166_v17 = vld [vmem:[#allocation2 + $0x40] sm:$0xff] }
 0xebf   : > { %v5670_v1 = vpop.f32.mrf.mxu1  ;;  %v12580_v11 = vadd.f32 %v12556_v49, %v5797_v10  ;;  %v14397_v10 = vld [vmem:[#allocation23_spill] sm:$0xff] }
 0xec1   : > { %14387 = vst [vmem:[#allocation20_spill] sm:$0xff] %v12580_v11  ;;  %5838 = vadd.xlane.f32.xlu1 %v12580_v11 }
 0xec2   : > { %v5748_v16 = vpop.f32.mrf.mxu2 }
 0xec3   : > { %v5782_v6 = vadd.f32 %v5748_v16, %v12296_v52 }
 0xec5   : > { %v5798_v54 = vadd.f32 %v10162_v19, %v5782_v6 }
 0xec7   : > { %v5672_v60 = vpop.f32.mrf.mxu1  ;;  %v12587_v39 = vadd.f32 %v12556_v49, %v5798_v54 }
 0xec8   : > { %v5686_v59 = vpack.c.bf16 %v5672_v60, %v5670_v1  ;;  %v14398_v1 = vld [vmem:[#allocation13_spill] sm:$0xff] }
 0xec9   : > { %14390 = vst [vmem:[#allocation14_spill] sm:$0xff] %v12587_v39  ;;  %5840 = vadd.xlane.f32.xlu2 %v12587_v39  ;;  %v3721_v16 = vadd.f32 %v14398_v1, %v14397_v10 }
 0xeca   : > { %9195 = vmatmul.msk.bf16.gmra.mxu2 %vm2167_vm12, %v5686_v59  ;;  %v5750_v30 = vpop.f32.mrf.mxu2  ;;  %v10167_v59 = vld [vmem:[#allocation2 + $0x20] sm:$0xff] }
 0xecb   : > { %v5783_v4 = vadd.f32 %v5750_v30, %v4755_v15  ;;  %v4759_v54 = vadd.f32 %v12344_v47, %v3721_v16 }
 0xecd   : > { %v5799_v52 = vadd.f32 %v10163_v27, %v5783_v4 }
 0xecf   : > { %v5675_v2 = vpop.f32.mrf.mxu1  ;;  %v12593_v42 = vadd.f32 %v12556_v49, %v5799_v52 }
 0xed1   : > { %14391 = vst [vmem:[#allocation9_spill] sm:$0xff] %v12593_v42  ;;  %5842 = vadd.xlane.f32.xlu0 %v12593_v42 }
 0xed2   : > { %v5753_v5 = vpop.f32.mrf.mxu2 }
 0xed3   : > { %v5784_v36 = vadd.f32 %v5753_v5, %v12304_v55  ;;  %v4757_v55 = vadd.f32 %v12338_v35, %v3716_v32  ;;  %v10168_v5 = vld [vmem:[#allocation2 + $0x10] sm:$0xff] }
 0xed5   : > { %v5800_v31 = vadd.f32 %v10164_v29, %v5784_v36 }
 0xed7   : > { %v5677_v9 = vpop.f32.mrf.mxu1  ;;  %v12598_v0 = vadd.f32 %v12556_v49, %v5800_v31  ;;  %v14401_v31 = vld [vmem:[#allocation24_spill] sm:$0xff] }
 0xed8   : > { %v5687_v21 = vpack.c.bf16 %v5677_v9, %v5675_v2  ;;  %v14402_v9 = vld [vmem:[#allocation15_spill] sm:$0xff] }
 0xed9   : > { %14392 = vst [vmem:[#allocation16_spill] sm:$0xff] %v12598_v0  ;;  %5844 = vadd.xlane.f32.xlu0 %v12598_v0 }
 0xeda   : > { %9196 = vmatmul.msk.bf16.gmra.mxu2 %vm2167_vm12, %v5687_v21  ;;  %v5755_v40 = vpop.f32.mrf.mxu2  ;;  %v3726_v21 = vadd.f32 %v14402_v9, %v14401_v31  ;;  %v9624_v9 = vld [vmem:[%s10440_s3 + $0xec] sm:$0xf] }
 0xedb   : > { %v5785_v38 = vadd.f32 %v5755_v40, %v4757_v55 }
 0xedc   : > { %v4761_v51 = vadd.f32 %v12350_v3, %v3726_v21  ;;  %v9321_v21 = vld [vmem:[%s10440_s3 + $0xf8] sm:$0xf0] }
 0xedd   : > { %v5801_v23 = vadd.f32 %v10165_v37, %v5785_v38  ;;  %v10169_v38 = vld [vmem:[#allocation2 + $0x38] sm:$0xff] }
 0xedf   : > { %v12616_v46 = vadd.f32 %v12556_v49, %v5801_v23 }
 0xee1   : > { %14396 = vst [vmem:[#allocation10_spill] sm:$0xff] %v12616_v46 }
 0xf1c   : > { %v5833_v50 = vpop.xlane.xlu1 %5832 }
 0xf1d   : > { %v5864_v33 = vmul.f32 %v5833_v50, %v14395_v43 }
 0xf1f   : > { %v12607_v20 = vsub.f32 %v12561_v58, %v5864_v33 }
 0xf21   : > { %v5896_v57 = vmul.f32 %v12607_v20, %v12607_v20 }
 0xf23   : > { %5912 = vadd.xlane.f32.xlu1 %v5896_v57 }
 0xf24   : > { %v5835_v44 = vpop.xlane.xlu2 %5834 }
 0xf25   : > { %v5865_v63 = vmul.f32 %v5835_v44, %v14395_v43 }
 0xf27   : > { %v12613_v25 = vsub.f32 %v12567_v26, %v5865_v63 }
 0xf29   : > { %v5897_v35 = vmul.f32 %v12613_v25, %v12613_v25 }
 0xf2b   : > { %5846 = vadd.xlane.f32.xlu1 %v12616_v46  ;;  %5914 = vadd.xlane.f32.xlu2 %v5897_v35 }
 0xf2c   : > { %v5837_v7 = vpop.xlane.xlu0 %5836  ;;  %v5758_v14 = vpop.f32.mrf.mxu2 }
 0xf2d   : > { %v5866_v34 = vmul.f32 %v5837_v7, %v14395_v43  ;;  %v5786_v24 = vadd.f32 %v5758_v14, %v12342_v12  ;;  %v10170_v14 = vld [vmem:[#allocation2 + $0x60] sm:$0xff] }
 0xf2f   : > { %v12624_v45 = vsub.f32 %v12574_v62, %v5866_v34  ;;  %v5802_v8 = vadd.f32 %v10166_v17, %v5786_v24  ;;  %v14405_v17 = vld [vmem:[#allocation26_spill] sm:$0xff] }
 0xf31   : > { %v12629_v6 = vadd.f32 %v12556_v49, %v5802_v8  ;;  %v5898_v19 = vmul.f32 %v12624_v45, %v12624_v45  ;;  %v14406_v8 = vld [vmem:[#allocation18_spill] sm:$0xff] }
 0xf32   : > { %v3731_v10 = vadd.f32 %v14406_v8, %v14405_v17  ;;  %v9281_v8 = vld [vmem:[%s10440_s3 + $0xb0] sm:$0xf0] }
 0xf33   : > { %14399 = vst [vmem:[#allocation19_spill] sm:$0xff] %v12629_v6  ;;  %5848 = vadd.xlane.f32.xlu1 %v12629_v6  ;;  %5916 = vadd.xlane.f32.xlu2 %v5898_v19 }
 0xf34   : > { %v5839_v12 = vpop.xlane.xlu1 %5838  ;;  %v5760_v41 = vpop.f32.mrf.mxu2  ;;  %v4763_v16 = vadd.f32 %v12357_v13, %v3731_v10  ;;  %v9287_v10 = vld [vmem:[%s10440_s3 + $0xa8] sm:$0xf] }
 0xf35   : > { %v5867_v61 = vmul.f32 %v5839_v12, %v14395_v43  ;;  %v5787_v28 = vadd.f32 %v5760_v41, %v4759_v54  ;;  %v10171_v54 = vld [vmem:[#allocation2 + $0x70] sm:$0xff] }
 0xf37   : > { %v12637_v60 = vsub.f32 %v12580_v11, %v5867_v61  ;;  %v5803_v15 = vadd.f32 %v10167_v59, %v5787_v28  ;;  %v10172_v28 = vld [vmem:[#allocation2 + $0x78] sm:$0xff]  ;;  %v9645_v11 = vld [vmem:[%s10449_s9 + $0x90] sm:$0xff] }
 0xf39   : > { %v5899_v30 = vmul.f32 %v12637_v60, %v12637_v60  ;;  %v12642_v4 = vadd.f32 %v12556_v49, %v5803_v15 }
 0xf3b   : > { %14400 = vst [vmem:[#allocation11_spill] sm:$0xff] %v12642_v4  ;;  %5918 = vadd.xlane.f32.xlu0 %v5899_v30  ;;  %5850 = vadd.xlane.f32.xlu2 %v12642_v4  ;;  %v9311_v30 = vld [vmem:[%s10440_s3 + $0xe0] sm:$0xf] }
 0xf3c   : > { %v5763_v47 = vpop.f32.mrf.mxu2  ;;  %v5841_v27 = vpop.xlane.xlu2 %5840 }
 0xf3d   : > { %v5788_v52 = vadd.f32 %v5763_v47, %v12348_v18  ;;  %v5868_v2 = vmul.f32 %v5841_v27, %v14395_v43  ;;  %v9625_v47 = vld [vmem:[%s10440_s3 + $0xec] sm:$0xf0]  ;;  %v9623_v27 = vld [vmem:[%s10440_s3 + $0xe4] sm:$0xf] }
 0xf3f   : > { %v5804_v36 = vadd.f32 %v10168_v5, %v5788_v52  ;;  %v12648_v29 = vsub.f32 %v12587_v39, %v5868_v2  ;;  %v9312_v52 = vor.u32 %v9625_v47, %v9311_v30  ;;  %v9313_v2 = vld [vmem:[%s10440_s3 + $0xf0] sm:$0xf0]  ;;  %v9319_v5 = vld [vmem:[%s10440_s3 + $0xe8] sm:$0xf] }
 0xf40   : > { %v9265_v47 = vld [vmem:[%s10440_s3 + $0x90] sm:$0xf0] }
 0xf41   : > { %v12653_v50 = vadd.f32 %v12556_v49, %v5804_v36  ;;  %v5900_v22 = vmul.f32 %v12648_v29, %v12648_v29  ;;  %v9626_v36 = vld [vmem:[%s10440_s3 + $0xf4] sm:$0xf0]  ;;  %6400 = vmatpush.bf16.msrb.mxu3 %v9312_v52 }
 0xf42   : > { %v9320_v31 = vor.u32 %v9626_v36, %v9319_v5  ;;  %v9614_v52 = vld [vmem:[%s10440_s3 + $0x94] sm:$0xf0]  ;;  %v9612_v36 = vld [vmem:[%s10440_s3 + $0x8c] sm:$0xf] }
 0xf43   : > { %14403 = vst [vmem:[#allocation22_spill] sm:$0xff] %v12653_v50  ;;  %5852 = vadd.xlane.f32.xlu2 %v12653_v50  ;;  %5920 = vadd.xlane.f32.xlu0 %v5900_v22  ;;  %v9324_v22 = vor.u32 %v9624_v9, %v9321_v21  ;;  %v9247_v9 = vld [vmem:[%s10440_s3 + $0x60] sm:$0xf]  ;;  %v9609_v21 = vld [vmem:[%s10440_s3 + $0x6c] sm:$0xf0] }
 0xf44   : > { %v5843_v18 = vpop.xlane.xlu0 %5842  ;;  %v5765_v32 = vpop.f32.mrf.mxu2  ;;  %6498 = vmatpush.bf16.msrb.mxu1 %v9320_v31 }
 0xf45   : > { %v5869_v33 = vmul.f32 %v5843_v18, %v14395_v43  ;;  %v5789_v40 = vadd.f32 %v5765_v32, %v4761_v51  ;;  %v9295_v51 = vld [vmem:[%s10440_s3 + $0xc0] sm:$0xf]  ;;  %v9621_v18 = vld [vmem:[%s10440_s3 + $0xcc] sm:$0xf0]  ;;  %v9619_v32 = vld [vmem:[%s10440_s3 + $0xc4] sm:$0xf]  ;;  %6547 = vmatpush.bf16.msra.mxu2 %v9324_v22 }
 0xf46   : > { %v9607_v22 = vld [vmem:[%s10440_s3 + $0x64] sm:$0xf] }
 0xf47   : > { %v12661_v55 = vsub.f32 %v12593_v42, %v5869_v33  ;;  %v5805_v57 = vadd.f32 %v10169_v38, %v5789_v40  ;;  %v9296_v33 = vor.u32 %v9621_v18, %v9295_v51  ;;  %v9297_v40 = vld [vmem:[%s10440_s3 + $0xd0] sm:$0xf0]  ;;  %v9303_v38 = vld [vmem:[%s10440_s3 + $0xc8] sm:$0xf]  ;;  %v9248_v51 = vor.u32 %v9609_v21, %v9247_v9  ;;  %v9199_v9 = vld [vmem:[%s10440_s3] sm:$0xf] }
 0xf48   : > { %v9249_v18 = vld [vmem:[%s10440_s3 + $0x70] sm:$0xf0]  ;;  %v9597_v21 = vld [vmem:[%s10440_s3 + $0xc] sm:$0xf0] }
 0xf49   : > { %v5901_v44 = vmul.f32 %v12661_v55, %v12661_v55  ;;  %v12666_v37 = vadd.f32 %v12556_v49, %v5805_v57  ;;  %v9622_v57 = vld [vmem:[%s10440_s3 + $0xd4] sm:$0xf0]  ;;  %6401 = vmatpush.bf16.msrb.mxu3 %v9296_v33 }
 0xf4a   : > { %v9610_v33 = vld [vmem:[%s10440_s3 + $0x74] sm:$0xf0] }
 0xf4b   : > { %14404 = vst [vmem:[#allocation12_spill] sm:$0xff] %v12666_v37  ;;  %5922 = vadd.xlane.f32.xlu1 %v5901_v44  ;;  %5854 = vadd.xlane.f32.xlu0 %v12666_v37  ;;  %v9300_v44 = vor.u32 %v9619_v32, %v9297_v40  ;;  %v9255_v32 = vld [vmem:[%s10440_s3 + $0x68] sm:$0xf]  ;;  %v9252_v40 = vor.u32 %v9607_v22, %v9249_v18  ;;  %v9201_v18 = vld [vmem:[%s10440_s3 + $0x10] sm:$0xf0] }
 0xf4c   : > { %v5845_v3 = vpop.xlane.xlu0 %5844  ;;  %v9200_v22 = vor.u32 %v9597_v21, %v9199_v9 }
 0xf4d   : > { %v5870_v23 = vmul.f32 %v5845_v3, %v14395_v43  ;;  %v5768_v63 = vpop.f32.mrf.mxu2  ;;  %v9304_v3 = vor.u32 %v9622_v57, %v9303_v38  ;;  %v9256_v38 = vor.u32 %v9610_v33, %v9255_v32  ;;  %v9608_v57 = vld [vmem:[%s10440_s3 + $0x6c] sm:$0xf]  ;;  %v9207_v32 = vld [vmem:[%s10440_s3 + $0x8] sm:$0xf] }
 0xf4e   : > { %v5790_v35 = vadd.f32 %v5768_v63, %v12354_v48  ;;  %v9305_v63 = vld [vmem:[%s10440_s3 + $0xd8] sm:$0xf0] }
 0xf4f   : > { %v12672_v7 = vsub.f32 %v12598_v0, %v5870_v23  ;;  %v9620_v23 = vld [vmem:[%s10440_s3 + $0xcc] sm:$0xf]  ;;  %6499 = vmatpush.bf16.msrb.mxu1 %v9304_v3 }
 0xf50   : > { %v5806_v34 = vadd.f32 %v10170_v14, %v5790_v35  ;;  %v9308_v35 = vor.u32 %v9620_v23, %v9305_v63  ;;  %v9279_v14 = vld [vmem:[%s10440_s3 + $0xa0] sm:$0xf]  ;;  %v9605_v63 = vld [vmem:[%s10440_s3 + $0x4c] sm:$0xf0] }
 0xf51   : > { %v5902_v24 = vmul.f32 %v12672_v7, %v12672_v7  ;;  %v9231_v23 = vld [vmem:[%s10440_s3 + $0x40] sm:$0xf] }
 0xf52   : > { %v12679_v1 = vadd.f32 %v12556_v49, %v5806_v34  ;;  %v9617_v34 = vld [vmem:[%s10440_s3 + $0xac] sm:$0xf0]  ;;  %6548 = vmatpush.bf16.msra.mxu2 %v9308_v35  ;;  %v9603_v35 = vld [vmem:[%s10440_s3 + $0x44] sm:$0xf] }
 0xf53   : > { %5924 = vadd.xlane.f32.xlu1 %v5902_v24  ;;  %v9615_v24 = vld [vmem:[%s10440_s3 + $0xa4] sm:$0xf]  ;;  %v9280_v17 = vor.u32 %v9617_v34, %v9279_v14  ;;  %v9232_v14 = vor.u32 %v9605_v63, %v9231_v23  ;;  %v9233_v34 = vld [vmem:[%s10440_s3 + $0x50] sm:$0xf0] }
 0xf54   : > { %14407 = vst [vmem:[#allocation23_spill] sm:$0xff] %v12679_v1  ;;  %5856 = vadd.xlane.f32.xlu0 %v12679_v1 }
 0xf55   : > { %v5770_v48 = vpop.f32.mrf.mxu2  ;;  %6402 = vmatpush.bf16.msrb.mxu3 %v9280_v17  ;;  %v9606_v17 = vld [vmem:[%s10440_s3 + $0x54] sm:$0xf0] }
 0xf56   : > { %v5791_v19 = vadd.f32 %v5770_v48, %v4763_v16  ;;  %v9618_v16 = vld [vmem:[%s10440_s3 + $0xb4] sm:$0xf0]  ;;  %v9284_v48 = vor.u32 %v9615_v24, %v9281_v8  ;;  %v9239_v24 = vld [vmem:[%s10440_s3 + $0x48] sm:$0xf]  ;;  %v9236_v8 = vor.u32 %v9603_v35, %v9233_v34 }
 0xf58   : > { %v5807_v12 = vadd.f32 %v10171_v54, %v5791_v19  ;;  %v9288_v19 = vor.u32 %v9618_v16, %v9287_v10  ;;  %v9616_v54 = vld [vmem:[%s10440_s3 + $0xac] sm:$0xf]  ;;  %v9240_v10 = vor.u32 %v9606_v17, %v9239_v24 }
 0xf59   : > { %v9604_v16 = vld [vmem:[%s10440_s3 + $0x4c] sm:$0xf] }
 0xf5a   : > { %v12684_v41 = vadd.f32 %v12556_v49, %v5807_v12  ;;  %v9289_v12 = vld [vmem:[%s10440_s3 + $0xb8] sm:$0xf0]  ;;  %6500 = vmatpush.bf16.msrb.mxu1 %v9288_v19 }
 0xf5c   : > { %14408 = vst [vmem:[#allocation13_spill] sm:$0xff] %v12684_v41  ;;  %5858 = vadd.xlane.f32.xlu1 %v12684_v41 }
 0xf5d   : > { %v5773_v61 = vpop.f32.mrf.mxu2 }
 0xf5e   : > { %v5792_v13 = vadd.f32 %v5773_v61, %v12367_v53  ;;  %v9316_v53 = vor.u32 %v9623_v27, %v9313_v2  ;;  %v9292_v61 = vor.u32 %v9616_v54, %v9289_v12  ;;  %v9271_v27 = vld [vmem:[%s10440_s3 + $0x88] sm:$0xf]  ;;  %v9215_v54 = vld [vmem:[%s10440_s3 + $0x20] sm:$0xf]  ;;  %v9601_v12 = vld [vmem:[%s10440_s3 + $0x2c] sm:$0xf0] }
 0xf5f   : > { %v9272_v5 = vor.u32 %v9614_v52, %v9271_v27 }
 0xf60   : > { %v5808_v59 = vadd.f32 %v10172_v28, %v5792_v13  ;;  %6449 = vmatpush.bf16.msrb.mxu0 %v9316_v53  ;;  %v9263_v13 = vld [vmem:[%s10440_s3 + $0x80] sm:$0xf]  ;;  %v9613_v28 = vld [vmem:[%s10440_s3 + $0x8c] sm:$0xf0]  ;;  %6549 = vmatpush.bf16.msra.mxu2 %v9292_v61  ;;  %v9273_v53 = vld [vmem:[%s10440_s3 + $0x98] sm:$0xf0] }
 0xf61   : > { %v9264_v30 = vor.u32 %v9613_v28, %v9263_v13  ;;  %v9276_v31 = vor.u32 %v9612_v36, %v9273_v53  ;;  %6501 = vmatpush.bf16.msrb.mxu1 %v9272_v5  ;;  %v9599_v61 = vld [vmem:[%s10440_s3 + $0x24] sm:$0xf]  ;;  %v9216_v28 = vor.u32 %v9601_v12, %v9215_v54  ;;  %v9600_v5 = vld [vmem:[%s10440_s3 + $0x2c] sm:$0xf]  ;;  %v9225_v36 = vld [vmem:[%s10440_s3 + $0x38] sm:$0xf0] }
 0xf62   : > { %v12689_v15 = vadd.f32 %v12556_v49, %v5808_v59  ;;  %v9611_v59 = vld [vmem:[%s10440_s3 + $0x84] sm:$0xf]  ;;  %v9228_v53 = vor.u32 %v9600_v5, %v9225_v36 }
 0xf63   : > { %v9268_v2 = vor.u32 %v9611_v59, %v9265_v47  ;;  %6403 = vmatpush.bf16.msrb.mxu3 %v9264_v30  ;;  %v9217_v59 = vld [vmem:[%s10440_s3 + $0x30] sm:$0xf0]  ;;  %v9223_v30 = vld [vmem:[%s10440_s3 + $0x28] sm:$0xf]  ;;  %v9602_v47 = vld [vmem:[%s10440_s3 + $0x34] sm:$0xf0] }
 0xf64   : > { %14409 = vst [vmem:[#allocation24_spill] sm:$0xff] %v12689_v15  ;;  %5860 = vadd.xlane.f32.xlu1 %v12689_v15  ;;  %6450 = vmatpush.bf16.msrb.mxu0 %v9300_v44  ;;  %v9257_v44 = vld [vmem:[%s10440_s3 + $0x78] sm:$0xf0]  ;;  %v9220_v52 = vor.u32 %v9599_v61, %v9217_v59  ;;  %v14410_v12 = vld [vmem:[#allocation28_spill] sm:$0xff]  ;;  %v14411_v61 = vld [vmem:[#allocation21_spill] sm:$0xff] }
 0xf65   : > { %6550 = vmatpush.bf16.msra.mxu2 %v9276_v31  ;;  %v9260_v3 = vor.u32 %v9608_v57, %v9257_v44  ;;  %6502 = vmatpush.bf16.msrb.mxu1 %v9256_v38  ;;  %v9596_v38 = vld [vmem:[%s10440_s3 + $0xc] sm:$0xf]  ;;  %v9209_v57 = vld [vmem:[%s10440_s3 + $0x18] sm:$0xf0] }
 0xf67   : > { %6404 = vmatpush.bf16.msrb.mxu3 %v9248_v51  ;;  %v9595_v51 = vld [vmem:[%s10440_s3 + $0x4] sm:$0xf] }
 0xf68   : > { %6451 = vmatpush.bf16.msrb.mxu0 %v9284_v48  ;;  %v9241_v48 = vld [vmem:[%s10440_s3 + $0x58] sm:$0xf0]  ;;  %v9204_v33 = vor.u32 %v9595_v51, %v9201_v18 }
 0xf69   : > { %6551 = vmatpush.bf16.msra.mxu2 %v9260_v3  ;;  %v9244_v19 = vor.u32 %v9604_v16, %v9241_v48  ;;  %6503 = vmatpush.bf16.msrb.mxu1 %v9240_v10  ;;  %v9212_v3 = vor.u32 %v9596_v38, %v9209_v57 }
 0xf6b   : > { %6405 = vmatpush.bf16.msrb.mxu3 %v9232_v14 }
 0xf6c   : > { %6452 = vmatpush.bf16.msrb.mxu0 %v9268_v2  ;;  %v9224_v2 = vor.u32 %v9602_v47, %v9223_v30  ;;  %v5775_v30 = vpop.f32.mrf.mxu2 }
 0xf6d   : > { %6552 = vmatpush.bf16.msra.mxu2 %v9244_v19 }
 0xf6e   : > { %6504 = vmatpush.bf16.msrb.mxu1 %v9224_v2 }
 0xf6f   : > { %6406 = vmatpush.bf16.msrb.mxu3 %v9216_v28 }
 0xf70   : > { %6453 = vmatpush.bf16.msrb.mxu0 %v9252_v40  ;;  %v9598_v40 = vld [vmem:[%s10440_s3 + $0x14] sm:$0xf0] }
 0xf71   : > { %6553 = vmatpush.bf16.msra.mxu2 %v9228_v53  ;;  %v9208_v44 = vor.u32 %v9598_v40, %v9207_v32 }
 0xf73   : > { %6407 = vmatpush.bf16.msrb.mxu3 %v9200_v22  ;;  %6505 = vmatpush.bf16.msrb.mxu1 %v9208_v44 }
 0xf74   : > { %6454 = vmatpush.bf16.msrb.mxu0 %v9236_v8 }
 0xf75   : > { %6554 = vmatpush.bf16.msra.mxu2 %v9212_v3 }
 0xf78   : > { %6455 = vmatpush.bf16.msrb.mxu0 %v9220_v52 }
 0xf7c   : > { %6456 = vmatpush.bf16.msrb.mxu0 %v9204_v33  ;;  %v10173_v33 = vld [vmem:[#allocation2 + $0x28] sm:$0xff] }
 0xf96   : > { %v5913_v13 = vpop.xlane.xlu1 %5912 }
 0xf97   : > { %v5944_v27 = vmul.f32 %v5913_v13, %v14395_v43  ;;  %v3736_v13 = vadd.f32 %v14411_v61, %v14410_v12 }
 0xf99   : > { %v5960_v31 = vadd.f32 1e-05, %v5944_v27  ;;  %v4765_v52 = vadd.f32 %v12370_v56, %v3736_v13 }
 0xf9b   : > { %9998 = vrsqrt.f32 %v5960_v31  ;;  %v5793_v9 = vadd.f32 %v5775_v30, %v4765_v52  ;;  %vm5982_vm5 = vweird.f32 %v5960_v31 }
 0xf9d   : > { %v5809_v40 = vadd.f32 %v10173_v33, %v5793_v9 }
 0xf9e   : > { %v5847_v23 = vpop.xlane.xlu1 %5846  ;;  %v5915_v63 = vpop.xlane.xlu2 %5914 }
 0xf9f   : > { %v5871_v35 = vmul.f32 %v5847_v23, %v14395_v43  ;;  %v5945_v14 = vmul.f32 %v5915_v63, %v14395_v43  ;;  %v12777_v23 = vld [vmem:[%s10429_s28] ss:$0 sm:$0xff] }
 0xfa1   : > { %v9999_v34 = vpop.eup %9998  ;;  %v12760_v24 = vsub.f32 %v12616_v46, %v5871_v35  ;;  %v5961_v17 = vadd.f32 1e-05, %v5945_v14  ;;  %v9630_v46 = vld [vmem:[%s10449_s9 + $0x18] sm:$0xff] }
 0xfa2   : > { %v5977_v8 = vmul.f32 %v9999_v34, %v5960_v31  ;;  %vm5983_vm4 = vweird.f32 %v9999_v34 }
 0xfa3   : > { %10000 = vrsqrt.f32 %v5961_v17  ;;  %v5903_v10 = vmul.f32 %v12760_v24, %v12760_v24  ;;  %vm5984_vm6 = vmor %vm5982_vm5, %vm5983_vm4  ;;  %vm5992_vm8 = vweird.f32 %v5961_v17 }
 0xfa4   : > { %v5978_v16 = vmul.f32 %v9999_v34, %v5977_v8 }
 0xfa5   : > { %5926 = vadd.xlane.f32.xlu2 %v5903_v10  ;;  %v12786_v10 = vadd.f32 %v12556_v49, %v5809_v40 }
 0xfa6   : > { %v5979_v48 = vmul.f32 0.5, %v5978_v16  ;;  %v5849_v19 = vpop.xlane.xlu1 %5848  ;;  %v5917_v54 = vpop.xlane.xlu2 %5916 }
 0xfa7   : > { %v5872_v28 = vmul.f32 %v5849_v19, %v14395_v43  ;;  %v5946_v59 = vmul.f32 %v5917_v54, %v14395_v43  ;;  %14412 = vst [vmem:[#allocation15_spill] sm:$0xff] %v12786_v10  ;;  %v12789_v19 = vld [vmem:[%s10435_s2] ss:$0 sm:$0xff] }
 0xfa8   : > { %v5980_v47 = vsub.f32 1.5, %v5979_v48 }
 0xfa9   : > { %v10001_v27 = vpop.eup %10000  ;;  %v12770_v2 = vsub.f32 %v12629_v6, %v5872_v28  ;;  %v5962_v5 = vadd.f32 1e-05, %v5946_v59 }
 0xfaa   : > { %v5981_v36 = vmul.f32 %v9999_v34, %v5980_v47  ;;  %v5987_v53 = vmul.f32 %v10001_v27, %v5961_v17  ;;  %vm5993_vm7 = vweird.f32 %v10001_v27 }
 0xfab   : > { %10002 = vrsqrt.f32 %v5962_v5  ;;  %v5904_v21 = vmul.f32 %v12770_v2, %v12770_v2  ;;  %vm5994_vm9 = vmor %vm5992_vm8, %vm5993_vm7  ;;  %vm6002_vm11 = vweird.f32 %v5962_v5 }
 0xfac   : > { %v5988_v22 = vmul.f32 %v10001_v27, %v5987_v53  ;;  %v5985_v51 = vsel %vm5984_vm6, %v9999_v34, %v5981_v36 }
 0xfad   : > { %5928 = vadd.xlane.f32.xlu2 %v5904_v21  ;;  %v6136_v31 = vmul.f32 %v5985_v51, %v12607_v20 }
 0xfae   : > { %v5989_v18 = vmul.f32 0.5, %v5988_v22  ;;  %v5919_v56 = vpop.xlane.xlu0 %5918  ;;  %v5851_v32 = vpop.xlane.xlu2 %5850 }
 0xfaf   : > { %v5947_v38 = vmul.f32 %v5919_v56, %v14395_v43  ;;  %v5873_v57 = vmul.f32 %v5851_v32, %v14395_v43  ;;  %v6155_v20 = vmul.f32 %v12777_v23, %v6136_v31 }
 0xfb0   : > { %v5990_v44 = vsub.f32 1.5, %v5989_v18 }
 0xfb1   : > { %v10003_v3 = vpop.eup %10002  ;;  %v5963_v63 = vadd.f32 1e-05, %v5947_v38  ;;  %v12781_v35 = vsub.f32 %v12642_v4, %v5873_v57  ;;  %v6174_v47 = vadd.f32 %v12789_v19, %v6155_v20 }
 0xfb2   : > { %v5991_v14 = vmul.f32 %v10001_v27, %v5990_v44  ;;  %v5997_v34 = vmul.f32 %v10003_v3, %v5962_v5  ;;  %vm6003_vm10 = vweird.f32 %v10003_v3 }
 0xfb3   : > { %10004 = vrsqrt.f32 %v5963_v63  ;;  %v5905_v8 = vmul.f32 %v12781_v35, %v12781_v35  ;;  %vm6004_vm12 = vmor %vm6002_vm11, %vm6003_vm10  ;;  %vm6012_vm14 = vweird.f32 %v5963_v63 }
 0xfb4   : > { %v5995_v16 = vsel %vm5994_vm9, %v10001_v27, %v5991_v14  ;;  %v5998_v48 = vmul.f32 %v10003_v3, %v5997_v34 }
 0xfb5   : > { %v6137_v54 = vmul.f32 %v5995_v16, %v12613_v25  ;;  %5930 = vadd.xlane.f32.xlu0 %v5905_v8  ;;  %5862 = vadd.xlane.f32.xlu2 %v12786_v10 }
 0xfb6   : > { %v5999_v17 = vmul.f32 0.5, %v5998_v48  ;;  %v5921_v12 = vpop.xlane.xlu0 %5920  ;;  %v5853_v61 = vpop.xlane.xlu2 %5852 }
 0xfb7   : > { %v6156_v13 = vmul.f32 %v12777_v23, %v6137_v54  ;;  %v5948_v28 = vmul.f32 %v5921_v12, %v14395_v43  ;;  %v5874_v49 = vmul.f32 %v5853_v61, %v14395_v43 }
 0xfb8   : > { %v6000_v59 = vsub.f32 1.5, %v5999_v17 }
 0xfb9   : > { %v10005_v30 = vpop.eup %10004  ;;  %v6175_v27 = vadd.f32 %v12789_v19, %v6156_v13  ;;  %v5964_v52 = vadd.f32 1e-05, %v5948_v28  ;;  %v12800_v25 = vsub.f32 %v12653_v50, %v5874_v49 }
 0xfba   : > { %v6001_v36 = vmul.f32 %v10003_v3, %v6000_v59  ;;  %v6007_v53 = vmul.f32 %v10005_v30, %v5963_v63  ;;  %vm6013_vm13 = vweird.f32 %v10005_v30 }
 0xfbb   : > { %10006 = vrsqrt.f32 %v5964_v52  ;;  %v6190_v9 = vpack.c.bf16 %v6175_v27, %v6174_v47  ;;  %v5906_v21 = vmul.f32 %v12800_v25, %v12800_v25  ;;  %vm6014_vm15 = vmor %vm6012_vm14, %vm6013_vm13  ;;  %vm6022_vm1 = vweird.f32 %v5964_v52 }
 0xfbc   : > { %v6008_v22 = vmul.f32 %v10005_v30, %v6007_v53  ;;  %v6005_v51 = vsel %vm6004_vm12, %v10003_v3, %v6001_v36 }
 0xfbd   : > { %6408 = vmatmul.bf16.vlgmr.msrb.gmra.mxu3 %v6190_v9  ;;  %6457 = vmatmul.bf16.vlgmr.msrb.gmra.mxu0 %v6190_v9  ;;  %v6138_v5 = vmul.f32 %v6005_v51, %v12624_v45 }
 0xfbe   : > { %v6009_v18 = vmul.f32 0.5, %v6008_v22  ;;  %6506 = vmatmul.bf16.vlgmr.msrb.gmra.mxu1 %v6190_v9  ;;  %6555 = vmatmul.bf16.vlgmr.msra.gmra.mxu2 %v6190_v9  ;;  %v5923_v56 = vpop.xlane.xlu1 %5922  ;;  %v5855_v32 = vpop.xlane.xlu0 %5854 }
 0xfbf   : > { %5932 = vadd.xlane.f32.xlu0 %v5906_v21  ;;  %v5949_v33 = vmul.f32 %v5923_v56, %v14395_v43  ;;  %v5875_v40 = vmul.f32 %v5855_v32, %v14395_v43  ;;  %v6157_v20 = vmul.f32 %v12777_v23, %v6138_v5 }
 0xfc0   : > { %v6010_v38 = vsub.f32 1.5, %v6009_v18 }
 0xfc1   : > { %v10007_v57 = vpop.eup %10006  ;;  %v5965_v44 = vadd.f32 1e-05, %v5949_v33  ;;  %v12808_v31 = vsub.f32 %v12666_v37, %v5875_v40  ;;  %v6176_v28 = vadd.f32 %v12789_v19, %v6157_v20 }
 0xfc2   : > { %v6011_v3 = vmul.f32 %v10005_v30, %v6010_v38  ;;  %v6017_v14 = vmul.f32 %v10007_v57, %v5964_v52  ;;  %vm6023_vm0 = vweird.f32 %v10007_v57 }
 0xfc3   : > { %10008 = vrsqrt.f32 %v5965_v44  ;;  %v5907_v34 = vmul.f32 %v12808_v31, %v12808_v31  ;;  %vm6024_vm2 = vmor %vm6022_vm1, %vm6023_vm0  ;;  %vm6032_vm4 = vweird.f32 %v5965_v44 }
 0xfc4   : > { %v6015_v8 = vsel %vm6014_vm15, %v10005_v30, %v6011_v3  ;;  %v6018_v16 = vmul.f32 %v10007_v57, %v6017_v14 }
 0xfc5   : > { %v6139_v48 = vmul.f32 %v6015_v8, %v12637_v60  ;;  %5934 = vadd.xlane.f32.xlu1 %v5907_v34 }
 0xfc6   : > { %v6019_v45 = vmul.f32 0.5, %v6018_v16  ;;  %v5925_v54 = vpop.xlane.xlu1 %5924 }
 0xfc7   : > { %v5857_v17 = vpop.xlane.xlu0 %5856  ;;  %v6158_v12 = vmul.f32 %v12777_v23, %v6139_v48 }
 0xfc8   : > { %v6020_v61 = vsub.f32 1.5, %v6019_v45  ;;  %v5876_v63 = vmul.f32 %v5857_v17, %v14395_v43 }
 0xfc9   : > { %v10009_v13 = vpop.eup %10008  ;;  %v6177_v49 = vadd.f32 %v12789_v19, %v6158_v12 }
 0xfca   : > { %v6021_v59 = vmul.f32 %v10007_v57, %v6020_v61  ;;  %v6027_v30 = vmul.f32 %v10009_v13, %v5965_v44  ;;  %v12819_v60 = vsub.f32 %v12679_v1, %v5876_v63  ;;  %vm6033_vm3 = vweird.f32 %v10009_v13 }
 0xfcb   : > { %v6191_v47 = vpack.c.bf16 %v6177_v49, %v6176_v28  ;;  %vm6034_vm5 = vmor %vm6032_vm4, %vm6033_vm3 }
 0xfcc   : > { %v6028_v27 = vmul.f32 %v10009_v13, %v6027_v30  ;;  %v5908_v36 = vmul.f32 %v12819_v60, %v12819_v60  ;;  %v6025_v53 = vsel %vm6024_vm2, %v10007_v57, %v6021_v59 }
 0xfcd   : > { %6413 = vmatmul.bf16.gmra.mxu3 %v6191_v47  ;;  %6462 = vmatmul.bf16.gmra.mxu0 %v6191_v47  ;;  %v6140_v18 = vmul.f32 %v6025_v53, %v12648_v29 }
 0xfce   : > { %v6029_v9 = vmul.f32 0.5, %v6028_v27  ;;  %6511 = vmatmul.bf16.gmra.mxu1 %v6191_v47  ;;  %6560 = vmatmul.bf16.gmra.mxu2 %v6191_v47 }
 0xfcf   : > { %5936 = vadd.xlane.f32.xlu2 %v5908_v36  ;;  %v5859_v21 = vpop.xlane.xlu1 %5858  ;;  %v6159_v38 = vmul.f32 %v12777_v23, %v6140_v18 }
 0xfd0   : > { %v6030_v22 = vsub.f32 1.5, %v6029_v9  ;;  %v5877_v51 = vmul.f32 %v5859_v21, %v14395_v43 }
 0xfd1   : > { %v6178_v44 = vadd.f32 %v12789_v19, %v6159_v38 }
 0xfd2   : > { %v6031_v52 = vmul.f32 %v10009_v13, %v6030_v22  ;;  %v12826_v56 = vsub.f32 %v12684_v41, %v5877_v51 }
 0xfd4   : > { %v6035_v32 = vsel %vm6034_vm5, %v10009_v13, %v6031_v52  ;;  %v5909_v33 = vmul.f32 %v12826_v56, %v12826_v56 }
 0xfd5   : > { %v6141_v40 = vmul.f32 %v6035_v32, %v12661_v55  ;;  %v5950_v55 = vmul.f32 %v5925_v54, %v14395_v43 }
 0xfd6   : > { %5938 = vadd.xlane.f32.xlu0 %v5909_v33 }
 0xfd7   : > { %v5861_v57 = vpop.xlane.xlu1 %5860  ;;  %v6160_v5 = vmul.f32 %v12777_v23, %v6141_v40  ;;  %v5966_v16 = vadd.f32 1e-05, %v5950_v55 }
 0xfd8   : > { %v5878_v29 = vmul.f32 %v5861_v57, %v14395_v43 }
 0xfd9   : > { %v6179_v3 = vadd.f32 %v12789_v19, %v6160_v5  ;;  %10010 = vrsqrt.f32 %v5966_v16  ;;  %vm6042_vm7 = vweird.f32 %v5966_v16 }
 0xfda   : > { %v12837_v14 = vsub.f32 %v12689_v15, %v5878_v29 }
 0xfdb   : > { %v6192_v34 = vpack.c.bf16 %v6179_v3, %v6178_v44 }
 0xfdc   : > { %v5910_v8 = vmul.f32 %v12837_v14, %v12837_v14 }
 0xfdd   : > { %6418 = vmatmul.bf16.gmra.mxu3 %v6192_v34  ;;  %6467 = vmatmul.bf16.gmra.mxu0 %v6192_v34 }
 0xfde   : > { %5940 = vadd.xlane.f32.xlu1 %v5910_v8  ;;  %6516 = vmatmul.bf16.gmra.mxu1 %v6192_v34 }
 0xfdf   : > { %6565 = vmatmul.bf16.gmra.mxu2 %v6192_v34  ;;  %v10011_v48 = vpop.eup %10010 }
 0xfe0   : > { %v6037_v20 = vmul.f32 %v10011_v48, %v5966_v16  ;;  %vm6043_vm6 = vweird.f32 %v10011_v48 }
 0xfe1   : > { %vm6044_vm8 = vmor %vm6042_vm7, %vm6043_vm6 }
 0xfe2   : > { %v6038_v45 = vmul.f32 %v10011_v48, %v6037_v20 }
 0xfe4   : > { %v6039_v63 = vmul.f32 0.5, %v6038_v45 }
 0xfe6   : > { %v6040_v13 = vsub.f32 1.5, %v6039_v63 }
 0xfe8   : > { %v6041_v47 = vmul.f32 %v10011_v48, %v6040_v13 }
 0xfea   : > { %v6045_v36 = vsel %vm6044_vm8, %v10011_v48, %v6041_v47 }
 0xfeb   : > { %v6142_v32 = vmul.f32 %v6045_v36, %v12672_v7 }
 0xfed   : > { %v6161_v34 = vmul.f32 %v12777_v23, %v6142_v32 }
 0xfef   : > { %v6180_v16 = vadd.f32 %v12789_v19, %v6161_v34 }
0x1018   : > { %v5927_v17 = vpop.xlane.xlu2 %5926 }
0x1019   : > { %v5951_v12 = vmul.f32 %v5927_v17, %v14395_v43 }
0x101b   : > { %v5967_v61 = vadd.f32 1e-05, %v5951_v12 }
0x101d   : > { %10012 = vrsqrt.f32 %v5967_v61  ;;  %vm6052_vm10 = vweird.f32 %v5967_v61 }
0x1020   : > { %v5929_v28 = vpop.xlane.xlu2 %5928 }
0x1021   : > { %v5952_v49 = vmul.f32 %v5929_v28, %v14395_v43 }
0x1023   : > { %v10013_v59 = vpop.eup %10012  ;;  %v5968_v30 = vadd.f32 1e-05, %v5952_v49 }
0x1024   : > { %v6047_v54 = vmul.f32 %v10013_v59, %v5967_v61  ;;  %vm6053_vm9 = vweird.f32 %v10013_v59 }
0x1025   : > { %10014 = vrsqrt.f32 %v5968_v30  ;;  %vm6054_vm11 = vmor %vm6052_vm10, %vm6053_vm9  ;;  %vm6062_vm14 = vweird.f32 %v5968_v30 }
0x1026   : > { %v6048_v27 = vmul.f32 %v10013_v59, %v6047_v54 }
0x1028   : > { %v6049_v53 = vmul.f32 0.5, %v6048_v27  ;;  %v5931_v9 = vpop.xlane.xlu0 %5930  ;;  %v5863_v21 = vpop.xlane.xlu2 %5862 }
0x1029   : > { %v5953_v22 = vmul.f32 %v5931_v9, %v14395_v43  ;;  %v5879_v51 = vmul.f32 %v5863_v21, %v14395_v43 }
0x102a   : > { %v6050_v18 = vsub.f32 1.5, %v6049_v53 }
0x102b   : > { %v10015_v52 = vpop.eup %10014  ;;  %v5969_v33 = vadd.f32 1e-05, %v5953_v22  ;;  %v12848_v40 = vsub.f32 %v12786_v10, %v5879_v51 }
0x102c   : > { %v6051_v38 = vmul.f32 %v10013_v59, %v6050_v18  ;;  %v6057_v57 = vmul.f32 %v10015_v52, %v5968_v30  ;;  %vm6063_vm12 = vweird.f32 %v10015_v52 }
0x102d   : > { %10016 = vrsqrt.f32 %v5969_v33  ;;  %v5911_v5 = vmul.f32 %v12848_v40, %v12848_v40  ;;  %vm6064_vm15 = vmor %vm6062_vm14, %vm6063_vm12  ;;  %vm6072_vm0 = vweird.f32 %v5969_v33 }
0x102e   : > { %v6055_v29 = vsel %vm6054_vm11, %v10013_v59, %v6051_v38  ;;  %v6058_v3 = vmul.f32 %v10015_v52, %v6057_v57 }
0x102f   : > { %v6143_v44 = vmul.f32 %v6055_v29, %v12760_v24  ;;  %5942 = vadd.xlane.f32.xlu2 %v5911_v5 }
0x1030   : > { %v6059_v55 = vmul.f32 0.5, %v6058_v3 }
0x1031   : > { %v6162_v7 = vmul.f32 %v12777_v23, %v6143_v44 }
0x1032   : > { %v6060_v12 = vsub.f32 1.5, %v6059_v55  ;;  %v5933_v24 = vpop.xlane.xlu0 %5932 }
0x1033   : > { %v10017_v8 = vpop.eup %10016  ;;  %v6181_v48 = vadd.f32 %v12789_v19, %v6162_v7  ;;  %v5954_v49 = vmul.f32 %v5933_v24, %v14395_v43 }
0x1034   : > { %v6067_v20 = vmul.f32 %v10017_v8, %v5969_v33  ;;  %v6061_v28 = vmul.f32 %v10015_v52, %v6060_v12  ;;  %vm6073_vm13 = vweird.f32 %v10017_v8 }
0x1035   : > { %v6193_v45 = vpack.c.bf16 %v6181_v48, %v6180_v16  ;;  %vm6074_vm1 = vmor %vm6072_vm0, %vm6073_vm13  ;;  %v5970_v36 = vadd.f32 1e-05, %v5954_v49 }
0x1036   : > { %v6068_v17 = vmul.f32 %v10017_v8, %v6067_v20  ;;  %v6065_v54 = vsel %vm6064_vm15, %v10015_v52, %v6061_v28 }
0x1037   : > { %6423 = vmatmul.bf16.gmra.mxu3 %v6193_v45  ;;  %6472 = vmatmul.bf16.gmra.mxu0 %v6193_v45  ;;  %v6144_v9 = vmul.f32 %v6065_v54, %v12770_v2  ;;  %10018 = vrsqrt.f32 %v5970_v36  ;;  %vm6082_vm3 = vweird.f32 %v5970_v36 }
0x1038   : > { %v6069_v61 = vmul.f32 0.5, %v6068_v17  ;;  %6521 = vmatmul.bf16.gmra.mxu1 %v6193_v45  ;;  %6570 = vmatmul.bf16.gmra.mxu2 %v6193_v45  ;;  %v5935_v13 = vpop.xlane.xlu1 %5934 }
0x1039   : > { %v5955_v47 = vmul.f32 %v5935_v13, %v14395_v43  ;;  %v6163_v51 = vmul.f32 %v12777_v23, %v6144_v9 }
0x103a   : > { %v6070_v63 = vsub.f32 1.5, %v6069_v61 }
0x103b   : > { %v5971_v53 = vadd.f32 1e-05, %v5955_v47  ;;  %v6182_v33 = vadd.f32 %v12789_v19, %v6163_v51 }
0x103c   : > { %v6071_v59 = vmul.f32 %v10017_v8, %v6070_v63 }
0x103d   : > { %10020 = vrsqrt.f32 %v5971_v53  ;;  %v10019_v18 = vpop.eup %10018  ;;  %vm6092_vm6 = vweird.f32 %v5971_v53 }
0x103e   : > { %v6075_v27 = vsel %vm6074_vm1, %v10017_v8, %v6071_v59  ;;  %v6077_v57 = vmul.f32 %v10019_v18, %v5970_v36  ;;  %vm6083_vm2 = vweird.f32 %v10019_v18 }
0x103f   : > { %v6145_v21 = vmul.f32 %v6075_v27, %v12781_v35  ;;  %vm6084_vm5 = vmor %vm6082_vm3, %vm6083_vm2 }
0x1040   : > { %v6078_v44 = vmul.f32 %v10019_v18, %v6077_v57  ;;  %v6507_v57 = vpop.f32.mrf.mxu1 }
0x1041   : > { %v6164_v30 = vmul.f32 %v12777_v23, %v6145_v21 }
0x1042   : > { %v5937_v22 = vpop.xlane.xlu2 %5936  ;;  %v6079_v7 = vmul.f32 0.5, %v6078_v44 }
0x1043   : > { %v5956_v32 = vmul.f32 %v5937_v22, %v14395_v43  ;;  %v6183_v52 = vadd.f32 %v12789_v19, %v6164_v30  ;;  %v10021_v38 = vpop.eup %10020  ;;  %v6458_v22 = vpop.f32.mrf.mxu0 }
0x1044   : > { %v6087_v29 = vmul.f32 %v10021_v38, %v5971_v53  ;;  %v6080_v48 = vsub.f32 1.5, %v6079_v7  ;;  %vm6093_vm4 = vweird.f32 %v10021_v38 }
0x1045   : > { %v6194_v5 = vpack.c.bf16 %v6183_v52, %v6182_v33  ;;  %v5972_v2 = vadd.f32 1e-05, %v5956_v32  ;;  %vm6094_vm7 = vmor %vm6092_vm6, %vm6093_vm4 }
0x1046   : > { %v6088_v3 = vmul.f32 %v10021_v38, %v6087_v29  ;;  %v6081_v12 = vmul.f32 %v10019_v18, %v6080_v48 }
0x1047   : > { %6428 = vmatmul.bf16.gmra.mxu3 %v6194_v5  ;;  %6477 = vmatmul.bf16.gmra.mxu0 %v6194_v5  ;;  %10022 = vrsqrt.f32 %v5972_v2  ;;  %vm6102_vm10 = vweird.f32 %v5972_v2 }
0x1048   : > { %6526 = vmatmul.bf16.gmra.mxu1 %v6194_v5  ;;  %6575 = vmatmul.bf16.gmra.mxu2 %v6194_v5  ;;  %v6089_v55 = vmul.f32 0.5, %v6088_v3  ;;  %v6085_v28 = vsel %vm6084_vm5, %v10019_v18, %v6081_v12  ;;  %v6409_v3 = vpop.f32.mrf.mxu3 }
0x1049   : > { %v5939_v35 = vpop.xlane.xlu0 %5938  ;;  %v6146_v47 = vmul.f32 %v6085_v28, %v12800_v25 }
0x104a   : > { %v5957_v34 = vmul.f32 %v5939_v35, %v14395_v43  ;;  %v6090_v20 = vsub.f32 1.5, %v6089_v55 }
0x104b   : > { %v6165_v36 = vmul.f32 %v12777_v23, %v6146_v47  ;;  %v6460_v35 = vpop.f32.mrf.mxu0 }
0x104c   : > { %v5973_v8 = vadd.f32 1e-05, %v5957_v34  ;;  %v6091_v24 = vmul.f32 %v10021_v38, %v6090_v20 }
0x104d   : > { %v10023_v16 = vpop.eup %10022  ;;  %v6184_v53 = vadd.f32 %v12789_v19, %v6165_v36 }
0x104e   : > { %10024 = vrsqrt.f32 %v5973_v8  ;;  %v6097_v45 = vmul.f32 %v10023_v16, %v5972_v2  ;;  %v6095_v49 = vsel %vm6094_vm7, %v10021_v38, %v6091_v24  ;;  %vm6103_vm8 = vweird.f32 %v10023_v16 }
0x104f   : > { %v6147_v27 = vmul.f32 %v6095_v49, %v12808_v31  ;;  %vm6104_vm11 = vmor %vm6102_vm10, %vm6103_vm8  ;;  %vm6112_vm12 = vweird.f32 %v5973_v8  ;;  %v6230_v31 = vld [vmem:[%s988_s1] sm:$0xf] }
0x1050   : > { %v6098_v63 = vmul.f32 %v10023_v16, %v6097_v45  ;;  %v12878_v38 = vperm.slane %v6230_v31, 1  ;;  %v12882_v29 = vperm.slane %v6230_v31, 2  ;;  %v12884_v44 = vperm.slane %v6230_v31, 0  ;;  %v6411_v47 = vpop.f32.mrf.mxu3 }
0x1051   : > { %v6166_v51 = vmul.f32 %v12777_v23, %v6147_v27  ;;  %v12889_v7 = vperm.slane %v6230_v31, 3 }
0x1052   : > { %v6099_v59 = vmul.f32 0.5, %v6098_v63  ;;  %v12887_v34 = vadd.f32 %v6458_v22, %v12878_v38  ;;  %v12892_v55 = vadd.f32 %v6460_v35, %v12878_v38  ;;  %v12900_v48 = vadd.f32 %v6409_v3, %v12884_v44  ;;  %v5941_v35 = vpop.xlane.xlu1 %5940 }
0x1053   : > { %v6185_v32 = vadd.f32 %v12789_v19, %v6166_v51  ;;  %v12926_v36 = vadd.f32 %v6411_v47, %v12884_v44 }
0x1054   : > { %v10025_v17 = vpop.eup %10024  ;;  %v6100_v9 = vsub.f32 1.5, %v6099_v59  ;;  %v6597_v45 = vmul.f32 %v12887_v34, %v12887_v34  ;;  %v6596_v63 = vmul.f32 %v12900_v48, %v12900_v48 }
0x1055   : > { %v6107_v61 = vmul.f32 %v10025_v17, %v5973_v8  ;;  %vm6113_vm9 = vweird.f32 %v10025_v17  ;;  %v6195_v25 = vpack.c.bf16 %v6185_v32, %v6184_v53  ;;  %v6556_v8 = vpop.f32.mrf.mxu2  ;;  %v6600_v31 = vmul.f32 %v12926_v36, %v12926_v36 }
0x1056   : > { %v6101_v30 = vmul.f32 %v10023_v16, %v6100_v9  ;;  %vm6114_vm13 = vmor %vm6112_vm12, %vm6113_vm9  ;;  %v6661_v28 = vmul.f32 %v6597_v45, %v12887_v34  ;;  %v6660_v27 = vmul.f32 %v6596_v63, %v12900_v48 }
0x1057   : > { %v6108_v13 = vmul.f32 %v10025_v17, %v6107_v61  ;;  %6433 = vmatmul.bf16.gmra.mxu3 %v6195_v25  ;;  %6482 = vmatmul.bf16.gmra.mxu0 %v6195_v25  ;;  %v6601_v61 = vmul.f32 %v12892_v55, %v12892_v55 }
0x1058   : > { %v6105_v33 = vsel %vm6104_vm11, %v10023_v16, %v6101_v30  ;;  %6531 = vmatmul.bf16.gmra.mxu1 %v6195_v25  ;;  %6580 = vmatmul.bf16.gmra.mxu2 %v6195_v25  ;;  %v6725_v9 = vmul.f32 0.044715, %v6661_v28  ;;  %v6724_v53 = vmul.f32 0.044715, %v6660_v27 }
0x1059   : > { %v6109_v54 = vmul.f32 0.5, %v6108_v13  ;;  %v6148_v5 = vmul.f32 %v6105_v33, %v12819_v60  ;;  %v6509_v13 = vpop.f32.mrf.mxu1  ;;  %v6665_v59 = vmul.f32 %v6601_v61, %v12892_v55 }
0x105a   : > { %v6789_v32 = vadd.f32 %v6725_v9, %v12887_v34 }
0x105b   : > { %v6110_v21 = vsub.f32 1.5, %v6109_v54  ;;  %v6167_v16 = vmul.f32 %v12777_v23, %v6148_v5  ;;  %v12921_v54 = vadd.f32 %v6509_v13, %v12882_v29  ;;  %v6729_v22 = vmul.f32 0.044715, %v6665_v59 }
0x105c   : > { %v6853_v3 = vmul.f32 0.7978846, %v6789_v32 }
0x105d   : > { %v6111_v18 = vmul.f32 %v10025_v17, %v6110_v21  ;;  %v6186_v12 = vadd.f32 %v12789_v19, %v6167_v16  ;;  %v6602_v30 = vmul.f32 %v12921_v54, %v12921_v54  ;;  %v6793_v33 = vadd.f32 %v6729_v22, %v12892_v55 }
0x105e   : > { %v6664_v16 = vmul.f32 %v6600_v31, %v12926_v36  ;;  %10026 = vtanh.f32 %v6853_v3 }
0x105f   : > { %v6115_v52 = vsel %vm6114_vm13, %v10025_v17, %v6111_v18  ;;  %v12906_v17 = vadd.f32 %v6556_v8, %v12889_v7  ;;  %v6558_v18 = vpop.f32.mrf.mxu2  ;;  %v6666_v5 = vmul.f32 %v6602_v30, %v12921_v54 }
0x1060   : > { %v6149_v2 = vmul.f32 %v6115_v52, %v12826_v56  ;;  %v12897_v56 = vadd.f32 %v6507_v57, %v12882_v29  ;;  %v12935_v52 = vadd.f32 %v6558_v18, %v12889_v7  ;;  %v6728_v28 = vmul.f32 0.044715, %v6664_v16 }
0x1061   : > { %v6599_v49 = vmul.f32 %v12906_v17, %v12906_v17  ;;  %v6512_v59 = vpop.f32.mrf.mxu1 }
0x1062   : > { %v6168_v60 = vmul.f32 %v12777_v23, %v6149_v2  ;;  %v6598_v23 = vmul.f32 %v12897_v56, %v12897_v56  ;;  %v6788_v2 = vadd.f32 %v6724_v53, %v12900_v48  ;;  %v6603_v45 = vmul.f32 %v12935_v52, %v12935_v52 }
0x1063   : > { %v6663_v21 = vmul.f32 %v6599_v49, %v12906_v17  ;;  %v6792_v9 = vadd.f32 %v6728_v28, %v12926_v36 }
0x1064   : > { %v6187_v20 = vadd.f32 %v12789_v19, %v6168_v60  ;;  %v6662_v19 = vmul.f32 %v6598_v23, %v12897_v56  ;;  %v6463_v60 = vpop.f32.mrf.mxu0  ;;  %v6730_v23 = vmul.f32 0.044715, %v6666_v5  ;;  %v6852_v63 = vmul.f32 0.7978846, %v6788_v2 }
0x1065   : > { %v6727_v25 = vmul.f32 0.044715, %v6663_v21  ;;  %v6667_v49 = vmul.f32 %v6603_v45, %v12935_v52 }
0x1066   : > { %v6196_v24 = vpack.c.bf16 %v6187_v20, %v6186_v12  ;;  %v6726_v51 = vmul.f32 0.044715, %v6662_v19  ;;  %v6857_v20 = vmul.f32 0.7978846, %v6793_v33  ;;  %v6414_v12 = vpop.f32.mrf.mxu3  ;;  %v6794_v47 = vadd.f32 %v6730_v23, %v12921_v54 }
0x1067   : > { %v6791_v8 = vadd.f32 %v6727_v25, %v12906_v17  ;;  %v12948_v19 = vadd.f32 %v6463_v60, %v12878_v38  ;;  %v6561_v21 = vpop.f32.mrf.mxu2  ;;  %v6731_v22 = vmul.f32 0.044715, %v6667_v49  ;;  %v12959_v25 = vadd.f32 %v6512_v59, %v12882_v29 }
0x1068   : > { %6438 = vmatmul.bf16.gmra.mxu3 %v6196_v24  ;;  %6487 = vmatmul.bf16.gmra.mxu0 %v6196_v24  ;;  %v6790_v57 = vadd.f32 %v6726_v51, %v12897_v56  ;;  %10028 = vtanh.f32 %v6857_v20  ;;  %v10027_v51 = vpop.eup %10026  ;;  %v6858_v30 = vmul.f32 0.7978846, %v6794_v47 }
0x1069   : > { %6536 = vmatmul.bf16.gmra.mxu1 %v6196_v24  ;;  %6585 = vmatmul.bf16.gmra.mxu2 %v6196_v24  ;;  %v5958_v24 = vmul.f32 %v5941_v35, %v14395_v43  ;;  %v6855_v13 = vmul.f32 0.7978846, %v6791_v8  ;;  %v6605_v18 = vmul.f32 %v12948_v19, %v12948_v19  ;;  %v6795_v2 = vadd.f32 %v6731_v22, %v12935_v52  ;;  %v12968_v45 = vpop.f32.mrf.mxu1 }
0x106a   : > { %v6854_v61 = vmul.f32 0.7978846, %v6790_v57  ;;  %v6856_v57 = vmul.f32 0.7978846, %v6792_v9  ;;  %v12963_v35 = vadd.f32 %v6414_v12, %v12884_v44  ;;  %v6981_v8 = vadd.f32 1.0, %v10027_v51  ;;  %v9634_v12 = vld [vmem:[%s10449_s9 + $0x38] sm:$0xff] }
0x106b   : > { %v12950_v27 = vadd.f32 1e-05, %v5958_v24  ;;  %v6669_v60 = vmul.f32 %v6605_v18, %v12948_v19  ;;  %v6606_v20 = vmul.f32 %v12959_v25, %v12959_v25  ;;  %v12973_v24 = vadd.f32 %v6561_v21, %v12889_v7  ;;  %v9658_v9 = vld [vmem:[%s10449_s9 + $0xf8] sm:$0xff]  ;;  %7460 = vmatpush.bf16.msra.mxu3 %v9634_v12 }
0x106c   : > { %10030 = vtanh.f32 %v6854_v61  ;;  %v12956_v53 = vpop.f32.mrf.mxu0  ;;  %v6859_v59 = vmul.f32 0.7978846, %v6795_v2  ;;  %v6604_v47 = vmul.f32 %v12963_v35, %v12963_v35  ;;  %v7045_v22 = vmul.f32 0.5, %v6981_v8  ;;  %7607 = vmatpush.bf16.msrb.mxu2 %v9658_v9 }
0x106d   : > { %10032 = vtanh.f32 %v6852_v63  ;;  %v9642_v63 = vld [vmem:[%s10449_s9 + $0x78] sm:$0xff]  ;;  %v6670_v21 = vmul.f32 %v6606_v20, %v12959_v25  ;;  %vm6122_vm14 = vweird.f32 %v12950_v27 }
0x106e   : > { %10034 = vtanh.f32 %v6855_v13  ;;  %v10029_v32 = vpop.eup %10028  ;;  %v6416_v31 = vpop.f32.mrf.mxu3  ;;  %v9650_v13 = vld [vmem:[%s10449_s9 + $0xb8] sm:$0xff]  ;;  %7509 = vmatpush.bf16.msra.mxu0 %v9642_v63  ;;  %v12990_v20 = vmul.f32 %v7045_v22, %v12887_v34 }
0x106f   : > { %10036 = vrsqrt.f32 %v12950_v27  ;;  %v6985_v16 = vadd.f32 1.0, %v10029_v32  ;;  %v12981_v18 = vpop.f32.mrf.mxu2  ;;  %7558 = vmatpush.bf16.msra.mxu1 %v9650_v13  ;;  %v6734_v9 = vmul.f32 0.044715, %v6670_v21 }
0x1070   : > { %10038 = vtanh.f32 %v6858_v30  ;;  %v6733_v30 = vmul.f32 0.044715, %v6669_v60 }
0x1071   : > { %10040 = vtanh.f32 %v6856_v57  ;;  %v7049_v51 = vmul.f32 0.5, %v6985_v16  ;;  %v6668_v16 = vmul.f32 %v6604_v47, %v12963_v35 }
0x1072   : > { %v10031_v33 = vpop.eup %10030  ;;  %10042 = vtanh.f32 %v6859_v59 }
0x1073   : > { %v10033_v5 = vpop.eup %10032  ;;  %v6982_v23 = vadd.f32 1.0, %v10031_v33  ;;  %v12993_v63 = vmul.f32 %v7049_v51, %v12892_v55  ;;  %v13005_v55 = vadd.f32 %v6416_v31, %v12884_v44  ;;  %v6732_v21 = vmul.f32 0.044715, %v6668_v16 }
0x1074   : > { %v10035_v3 = vpop.eup %10034  ;;  %v6980_v28 = vadd.f32 1.0, %v10033_v5  ;;  %v6607_v5 = vmul.f32 %v12973_v24, %v12973_v24  ;;  %v6468_v2 = vpop.f32.mrf.mxu0  ;;  %v6798_v16 = vadd.f32 %v6734_v9, %v12959_v25 }
0x1075   : > { %v12970_v61 = vpop.eup %10036  ;;  %v6983_v49 = vadd.f32 1.0, %v10035_v3  ;;  %v7046_v57 = vmul.f32 0.5, %v6982_v23  ;;  %v6797_v23 = vadd.f32 %v6733_v30, %v12948_v19  ;;  %v6796_v9 = vadd.f32 %v6732_v21, %v12963_v35 }
0x1076   : > { %v6117_v32 = vmul.f32 %v12970_v61, %v12950_v27  ;;  %v10039_v33 = vpop.eup %10038  ;;  %v7044_v3 = vmul.f32 0.5, %v6980_v28  ;;  %v6419_v60 = vpop.f32.mrf.mxu3  ;;  %v6671_v34 = vmul.f32 %v6607_v5, %v12973_v24  ;;  %v9649_v5 = vld [vmem:[%s10449_s9 + $0xb0] sm:$0xff]  ;;  %vm6123_vm15 = vweird.f32 %v12970_v61 }
0x1077   : > { %v7047_v8 = vmul.f32 0.5, %v6983_v49  ;;  %v10041_v12 = vpop.eup %10040  ;;  %v6986_v13 = vadd.f32 1.0, %v10039_v33  ;;  %v12998_v49 = vadd.f32 %v6468_v2, %v12878_v38  ;;  %v13001_v59 = vmul.f32 %v7046_v57, %v12897_v56  ;;  %v9633_v33 = vld [vmem:[%s10449_s9 + $0x30] sm:$0xff]  ;;  %v6566_v31 = vpop.f32.mrf.mxu2  ;;  %7559 = vmatpush.bf16.msra.mxu1 %v9649_v5  ;;  %v9640_v5 = vld [vmem:[%s10449_s9 + $0x68] sm:$0xff]  ;;  %vm13101_vm0 = vmor %vm6122_vm14, %vm6123_vm15 }
0x1078   : > { %v6118_v28 = vmul.f32 %v12970_v61, %v6117_v32  ;;  %v13008_v47 = vadd.f32 %v6419_v60, %v12884_v44  ;;  %v13011_v22 = vmul.f32 %v7044_v3, %v12900_v48  ;;  %v6984_v30 = vadd.f32 1.0, %v10041_v12  ;;  %v6517_v32 = vpop.f32.mrf.mxu1  ;;  %v9641_v57 = vld [vmem:[%s10449_s9 + $0x70] sm:$0xff]  ;;  %7461 = vmatpush.bf16.msra.mxu3 %v9633_v33 }
0x1079   : > { %v13014_v51 = vmul.f32 %v7047_v8, %v12906_v17  ;;  %v6861_v2 = vmul.f32 0.7978846, %v6797_v23  ;;  %v13023_v60 = vadd.f32 %v12956_v53, %v12878_v38  ;;  %v9657_v3 = vld [vmem:[%s10449_s9 + $0xf0] sm:$0xff]  ;;  %v10043_v17 = vpop.eup %10042  ;;  %v7050_v8 = vmul.f32 0.5, %v6986_v13  ;;  %7510 = vmatpush.bf16.msra.mxu0 %v9641_v57 }
0x107a   : > { %v6119_v12 = vmul.f32 0.5, %v6118_v28  ;;  %v6613_v10 = vmul.f32 %v12998_v49, %v12998_v49  ;;  %v6735_v15 = vmul.f32 0.044715, %v6671_v34  ;;  %v6608_v23 = vmul.f32 %v13005_v55, %v13005_v55  ;;  %7608 = vmatpush.bf16.msrb.mxu2 %v9657_v3 }
0x107b   : > { %v6612_v53 = vmul.f32 %v13008_v47, %v13008_v47  ;;  %v7048_v13 = vmul.f32 0.5, %v6984_v30  ;;  %v13040_v28 = vadd.f32 %v12968_v45, %v12882_v29  ;;  %v13043_v34 = vadd.f32 %v6517_v32, %v12882_v29  ;;  %v9632_v32 = vld [vmem:[%s10449_s9 + $0x28] sm:$0xff] }
0x107c   : > { %v6609_v33 = vmul.f32 %v13023_v60, %v13023_v60  ;;  %v13049_v57 = vadd.f32 %v12981_v18, %v12889_v7  ;;  %v13053_v30 = vmul.f32 %v7050_v8, %v12921_v54  ;;  %v6120_v45 = vsub.f32 1.5, %v6119_v12  ;;  %v6470_v1 = vpop.f32.mrf.mxu0  ;;  %v9656_v54 = vld [vmem:[%s10449_s9 + $0xe8] sm:$0xff]  ;;  %7462 = vmatpush.bf16.msra.mxu3 %v9632_v32  ;;  %v9639_v12 = vld [vmem:[%s10449_s9 + $0x60] sm:$0xff] }
0x107d   : > { %v6677_v21 = vmul.f32 %v6613_v10, %v12998_v49  ;;  %v6862_v3 = vmul.f32 0.7978846, %v6798_v16  ;;  %v6672_v18 = vmul.f32 %v6608_v23, %v13005_v55  ;;  %v6676_v41 = vmul.f32 %v6612_v53, %v13008_v47  ;;  %7511 = vmatpush.bf16.msra.mxu0 %v9640_v5 }
0x107e   : > { %v6860_v10 = vmul.f32 0.7978846, %v6796_v9  ;;  %v6610_v8 = vmul.f32 %v13040_v28, %v13040_v28  ;;  %v6614_v16 = vmul.f32 %v13043_v34, %v13043_v34  ;;  %v6673_v53 = vmul.f32 %v6609_v33, %v13023_v60  ;;  %7609 = vmatpush.bf16.msrb.mxu2 %v9656_v54  ;;  %v9655_v9 = vld [vmem:[%s10449_s9 + $0xe0] sm:$0xff]  ;;  %v6421_v6 = vpop.f32.mrf.mxu3 }
0x107f   : > { %v6611_v37 = vmul.f32 %v13049_v57, %v13049_v57  ;;  %v6121_v50 = vmul.f32 %v12970_v61, %v6120_v45  ;;  %v6741_v32 = vmul.f32 0.044715, %v6677_v21  ;;  %v6736_v4 = vmul.f32 0.044715, %v6672_v18 }
0x1080   : > { %v6519_v33 = vpop.f32.mrf.mxu1  ;;  %v6674_v45 = vmul.f32 %v6610_v8, %v13040_v28  ;;  %v6678_v21 = vmul.f32 %v6614_v16, %v13043_v34  ;;  %v6568_v16 = vpop.f32.mrf.mxu2 }
0x1081   : > { %7512 = vmatpush.bf16.msra.mxu0 %v9639_v12  ;;  %v6675_v18 = vmul.f32 %v6611_v37, %v13049_v57  ;;  %v13109_v8 = vadd.f32 %v6519_v33, %v12882_v29  ;;  %v9654_v12 = vld [vmem:[%s10449_s9 + $0xd8] sm:$0xff]  ;;  %v6125_v27 = vsel %vm13101_vm0, %v12970_v61, %v6121_v50  ;;  %v6805_v0 = vadd.f32 %v6741_v32, %v12998_v49 }
0x1082   : > { %7610 = vmatpush.bf16.msrb.mxu2 %v9655_v9  ;;  %v6800_v33 = vadd.f32 %v6736_v4, %v13005_v55  ;;  %v6738_v9 = vmul.f32 0.044715, %v6674_v45  ;;  %v6742_v39 = vmul.f32 0.044715, %v6678_v21  ;;  %v6150_v32 = vmul.f32 %v6125_v27, %v12837_v14 }
0x1083   : > { %v6618_v4 = vmul.f32 %v13109_v8, %v13109_v8 }
0x1085   : > { %v6682_v27 = vmul.f32 %v6618_v4, %v13109_v8  ;;  %v9637_v4 = vld [vmem:[%s10449_s9 + $0x50] sm:$0xff] }
0x1086   : > { %7611 = vmatpush.bf16.msrb.mxu2 %v9654_v12  ;;  %v6802_v12 = vadd.f32 %v6738_v9, %v13040_v28 }
0x1088   : > { %v6866_v26 = vmul.f32 0.7978846, %v6802_v12 }
0x10a2   : > { %v5943_v56 = vpop.xlane.xlu2 %5942 }
0x10a3   : > { %v5959_v48 = vmul.f32 %v5943_v56, %v14395_v43  ;;  %v6987_v56 = vadd.f32 1.0, %v10043_v17  ;;  %v6799_v17 = vadd.f32 %v6735_v15, %v12973_v24  ;;  %v9631_v15 = vld [vmem:[%s10449_s9 + $0x20] sm:$0xff] }
0x10a4   : > { %7463 = vmatpush.bf16.msra.mxu3 %v9631_v15  ;;  %v9646_v15 = vld [vmem:[%s10449_s9 + $0x98] sm:$0xff] }
0x10a5   : > { %v13034_v43 = vadd.f32 1e-05, %v5959_v48  ;;  %v9648_v48 = vld [vmem:[%s10449_s9 + $0xa8] sm:$0xff]  ;;  %v13072_v23 = vmul.f32 0.5, %v6987_v56  ;;  %v13085_v56 = vadd.f32 %v6470_v1, %v12878_v38 }
0x10a6   : > { %7560 = vmatpush.bf16.msra.mxu1 %v9648_v48  ;;  %v6740_v48 = vmul.f32 0.044715, %v6676_v41  ;;  %v13126_v41 = vadd.f32 %v6568_v16, %v12889_v7 }
0x10a7   : > { %10044 = vrsqrt.f32 %v13034_v43  ;;  %v6617_v37 = vmul.f32 %v13085_v56, %v13085_v56  ;;  %vm6132_vm2 = vweird.f32 %v13034_v43 }
0x10a8   : > { %10046 = vtanh.f32 %v6861_v2  ;;  %v13064_v2 = vmul.f32 %v7048_v13, %v12926_v36  ;;  %v13078_v36 = vadd.f32 %v6566_v31, %v12889_v7  ;;  %v9647_v13 = vld [vmem:[%s10449_s9 + $0xa0] sm:$0xff]  ;;  %v6863_v31 = vmul.f32 0.7978846, %v6799_v17  ;;  %7464 = vmatpush.bf16.msra.mxu3 %v9630_v46 }
0x10a9   : > { %10048 = vtanh.f32 %v6862_v3  ;;  %v9638_v3 = vld [vmem:[%s10449_s9 + $0x58] sm:$0xff]  ;;  %v6737_v17 = vmul.f32 0.044715, %v6673_v53  ;;  %v6804_v42 = vadd.f32 %v6740_v48, %v13008_v47  ;;  %v6869_v48 = vmul.f32 0.7978846, %v6805_v0 }
0x10aa   : > { %10050 = vtanh.f32 %v6860_v10  ;;  %v6615_v10 = vmul.f32 %v13078_v36, %v13078_v36  ;;  %7561 = vmatpush.bf16.msra.mxu1 %v9647_v13  ;;  %v13123_v13 = vadd.f32 %v6421_v6, %v12884_v44  ;;  %7513 = vmatpush.bf16.msra.mxu0 %v9638_v3  ;;  %v6681_v45 = vmul.f32 %v6617_v37, %v13085_v56 }
0x10ab   : > { %10052 = vtanh.f32 %v6863_v31  ;;  %v6801_v46 = vadd.f32 %v6737_v17, %v13023_v60  ;;  %v6864_v3 = vmul.f32 0.7978846, %v6800_v33  ;;  %v6868_v16 = vmul.f32 0.7978846, %v6804_v42  ;;  %v10174_v33 = vld [vmem:[%s10429_s28] ss:$0 sm:$0xff]  ;;  %s14422_s28 = scalar_lea.vmem %s14268_s19, %s10363_s23 }
0x10ac   : > { %v6679_v31 = vmul.f32 %v6615_v10, %v13078_v36  ;;  %v6616_v14 = vmul.f32 %v13123_v13, %v13123_v13  ;;  %v6619_v10 = vmul.f32 %v13126_v41, %v13126_v41  ;;  %10054 = vtanh.f32 %v6869_v48  ;;  %s14439_s23 = sld [smem:[#allocation5_spill]] }
0x10ad   : > { %v13087_v5 = vpop.eup %10044  ;;  %v6745_v37 = vmul.f32 0.044715, %v6681_v45  ;;  %v6169_v9 = vmul.f32 %v10174_v33, %v6150_v32  ;;  %10056 = vtanh.f32 %v6868_v16 }
0x10ae   : > { %v13089_v54 = vpop.eup %10046  ;;  %v6127_v1 = vmul.f32 %v13087_v5, %v13034_v43  ;;  %7562 = vmatpush.bf16.msra.mxu1 %v9646_v15  ;;  %vm6133_vm1 = vweird.f32 %v13087_v5  ;;  %v6743_v42 = vmul.f32 0.044715, %v6679_v31  ;;  %v6683_v48 = vmul.f32 %v6619_v10, %v13126_v41  ;;  %7514 = vmatpush.bf16.msra.mxu0 %v9637_v4 }
0x10af   : > { %v10049_v61 = vpop.eup %10048  ;;  %vm6134_vm3 = vmor %vm6132_vm2, %vm6133_vm1  ;;  %10058 = vtanh.f32 %v6864_v3 }
0x10b0   : > { %v6128_v53 = vmul.f32 %v13087_v5, %v6127_v1  ;;  %v6739_v1 = vmul.f32 0.044715, %v6675_v18  ;;  %v10051_v6 = vpop.eup %10050  ;;  %v6806_v18 = vadd.f32 %v6742_v39, %v13043_v34  ;;  %v6807_v32 = vadd.f32 %v6743_v42, %v13078_v36 }
0x10b1   : > { %v10053_v15 = vpop.eup %10052  ;;  %v6990_v10 = vadd.f32 1.0, %v10049_v61  ;;  %v13166_v42 = vmul.f32 %v13072_v23, %v12935_v52  ;;  %v9644_v23 = vld [vmem:[%s10449_s9 + $0x88] sm:$0xff] }
0x10b2   : > { %v6129_v50 = vmul.f32 0.5, %v6128_v53  ;;  %v6803_v17 = vadd.f32 %v6739_v1, %v13049_v57  ;;  %v6680_v1 = vmul.f32 %v6616_v14, %v13123_v13  ;;  %v6870_v62 = vmul.f32 0.7978846, %v6806_v18  ;;  %7563 = vmatpush.bf16.msra.mxu1 %v9645_v11  ;;  %v10055_v12 = vpop.eup %10054  ;;  %p9453_p5 = scmp.ne.s32.totalorder %s14439_s23, 1 }
0x10b3   : > { %v6809_v14 = vadd.f32 %v6745_v37, %v13085_v56  ;;  %v6989_v18 = vadd.f32 1.0, %v13089_v54  ;;  %v6991_v11 = vadd.f32 1.0, %v10053_v15  ;;  %v10057_v37 = vpop.eup %10056  ;;  %s14447_s1 = sld [smem:[#allocation45_spill]] (!%p9453_p5) }
0x10b4   : > { %v6130_v21 = vsub.f32 1.5, %v6129_v50  ;;  %v13145_v39 = vpop.f32.mrf.mxu0  ;;  %v6865_v50 = vmul.f32 0.7978846, %v6801_v46  ;;  %v6746_v46 = vmul.f32 0.044715, %v6682_v27  ;;  %s14452_s21 = sld [smem:[#allocation47_spill]] (!%p9453_p5) }
0x10b5   : > { %v13148_v43 = vpop.f32.mrf.mxu1  ;;  %v6744_v3 = vmul.f32 0.044715, %v6680_v1  ;;  %v9628_v1 = vld [vmem:[%s10449_s9 + $0x8] sm:$0xff]  ;;  %v10059_v61 = vpop.eup %10058  ;;  %v6873_v52 = vmul.f32 0.7978846, %v6809_v14  ;;  %v7053_v4 = vmul.f32 0.5, %v6989_v18 }
0x10b6   : > { %v6131_v0 = vmul.f32 %v13087_v5, %v6130_v21  ;;  %v9629_v21 = vld [vmem:[%s10449_s9 + $0x10] sm:$0xff]  ;;  %10060 = vtanh.f32 %v6865_v50  ;;  %v6810_v54 = vadd.f32 %v6746_v46, %v13109_v8  ;;  %v9636_v50 = vld [vmem:[%s10449_s9 + $0x48] sm:$0xff]  ;;  %v9635_v18 = vld [vmem:[%s10449_s9 + $0x40] sm:$0xff]  ;;  %7564 = vmatpush.bf16.msra.mxu1 %v9644_v23  ;;  %s14453_s20 = sld [smem:[#allocation46_spill]] (!%p9453_p5) }
0x10b7   : > { %7465 = vmatpush.bf16.msra.mxu3 %v9629_v21  ;;  %10062 = vtanh.f32 %v6870_v62  ;;  %v9652_v21 = vld [vmem:[%s10449_s9 + $0xc8] sm:$0xff]  ;;  %7515 = vmatpush.bf16.msra.mxu0 %v9636_v50  ;;  %s14464_s5 = sld [smem:[#allocation48_spill]] (!%p9453_p5) }
0x10b8   : > { %v6135_v53 = vsel %vm6134_vm3, %v13087_v5, %v6131_v0  ;;  %v9653_v5 = vld [vmem:[%s10449_s9 + $0xd0] sm:$0xff]  ;;  %v6988_v0 = vadd.f32 1.0, %v10051_v6  ;;  %10064 = vtanh.f32 %v6866_v26  ;;  %v7172_v26 = vpack.c.bf16 %v13064_v2, %v13011_v22 }
0x10b9   : > { %v6151_v31 = vmul.f32 %v6135_v53, %v12848_v40  ;;  %v6867_v40 = vmul.f32 0.7978846, %v6803_v17  ;;  %v10175_v53 = vld [vmem:[%s10435_s2] ss:$0 sm:$0xff]  ;;  %7612 = vmatpush.bf16.msrb.mxu2 %v9653_v5  ;;  %v6747_v17 = vmul.f32 0.044715, %v6683_v48  ;;  %v6808_v48 = vadd.f32 %v6744_v3, %v13123_v13 }
0x10ba   : > { %v13157_v45 = vpop.f32.mrf.mxu3  ;;  %v6188_v58 = vadd.f32 %v10175_v53, %v6169_v9  ;;  %v7052_v62 = vmul.f32 0.5, %v6988_v0  ;;  %v7054_v5 = vmul.f32 0.5, %v6990_v10  ;;  %v6992_v3 = vadd.f32 1.0, %v10059_v61 }
0x10bb   : > { %v6170_v16 = vmul.f32 %v10174_v33, %v6151_v31  ;;  %v13168_v27 = vpop.f32.mrf.mxu2  ;;  %v6871_v33 = vmul.f32 0.7978846, %v6807_v32  ;;  %10066 = vtanh.f32 %v6867_v40  ;;  %v6811_v46 = vadd.f32 %v6747_v17, %v13126_v41  ;;  %7466 = vmatpush.bf16.msra.mxu3 %v9628_v1  ;;  %v9627_v40 = vld [vmem:[%s10449_s9] sm:$0xff]  ;;  %7516 = vmatpush.bf16.msra.mxu0 %v9635_v18 }
0x10bc   : > { %v6475_v15 = vpop.f32.mrf.mxu0  ;;  %v10061_v14 = vpop.eup %10060  ;;  %v13192_v32 = vmul.f32 %v7052_v62, %v12963_v35  ;;  %v6872_v1 = vmul.f32 0.7978846, %v6808_v48 }
0x10bd   : > { %v6189_v6 = vadd.f32 %v10175_v53, %v6170_v16  ;;  %v6524_v0 = vpop.f32.mrf.mxu1  ;;  %v7055_v16 = vmul.f32 0.5, %v6991_v11  ;;  %10068 = vtanh.f32 %v6871_v33  ;;  %v6874_v53 = vmul.f32 0.7978846, %v6810_v54  ;;  %v10063_v10 = vpop.eup %10062  ;;  %7613 = vmatpush.bf16.msrb.mxu2 %v9652_v21  ;;  %v9651_v11 = vld [vmem:[%s10449_s9 + $0xc0] sm:$0xff] }
0x10be   : > { %v13195_v33 = vmul.f32 %v7053_v4, %v12948_v19  ;;  %10070 = vtanh.f32 %v6873_v52  ;;  %v10065_v54 = vpop.eup %10064  ;;  %v6875_v61 = vmul.f32 0.7978846, %v6811_v46  ;;  %v13204_v23 = vadd.f32 %v6524_v0, %v12882_v29 }
0x10bf   : > { %v6197_v9 = vpack.c.bf16 %v6189_v6, %v6188_v58  ;;  %v6997_v58 = vadd.f32 1.0, %v10055_v12  ;;  %v6996_v6 = vadd.f32 1.0, %v10057_v37  ;;  %v13187_v12 = vadd.f32 %v13145_v39, %v12878_v38  ;;  %7467 = vmatpush.bf16.msra.mxu3 %v9627_v40 }
0x10c0   : > { %v13198_v37 = vadd.f32 %v6475_v15, %v12878_v38  ;;  %v13201_v39 = vmul.f32 %v7054_v5, %v12959_v25  ;;  %v6993_v21 = vadd.f32 1.0, %v10061_v14  ;;  %v13207_v35 = vmul.f32 %v7055_v16, %v12973_v24 }
0x10c1   : > { %6443 = vmatmul.bf16.gmra.mxu3 %v6197_v9  ;;  %6492 = vmatmul.bf16.gmra.mxu0 %v6197_v9  ;;  %v7061_v50 = vmul.f32 0.5, %v6997_v58  ;;  %v10067_v19 = vpop.eup %10066  ;;  %v13211_v52 = vadd.f32 %v13148_v43, %v12882_v29  ;;  %v7056_v25 = vmul.f32 0.5, %v6992_v3  ;;  %v13216_v4 = vmul.f32 0.5, %v6996_v6 }
0x10c2   : > { %6541 = vmatmul.bf16.gmra.mxu1 %v6197_v9  ;;  %6590 = vmatmul.bf16.gmra.mxu2 %v6197_v9  ;;  %v6426_v17 = vpop.f32.mrf.mxu3  ;;  %v9643_v9 = vld [vmem:[%s10449_s9 + $0x80] sm:$0xff]  ;;  %v6621_v48 = vmul.f32 %v13187_v12, %v13187_v12  ;;  %v6994_v24 = vadd.f32 1.0, %v10065_v54  ;;  %10072 = vtanh.f32 %v6874_v53  ;;  %v6998_v5 = vadd.f32 1.0, %v10063_v10 }
0x10c3   : > { %v13214_v62 = vadd.f32 %v6426_v17, %v12884_v44  ;;  %v6573_v15 = vpop.f32.mrf.mxu2  ;;  %7565 = vmatpush.bf16.msra.mxu1 %v9643_v9  ;;  %7614 = vmatpush.bf16.msrb.mxu2 %v9651_v11  ;;  %v10069_v58 = vpop.eup %10068  ;;  %v13222_v43 = vadd.f32 %v13157_v45, %v12884_v44  ;;  %v6625_v46 = vmul.f32 %v13198_v37, %v13198_v37  ;;  %10074 = vtanh.f32 %v6872_v1 }
0x10c4   : > { %v13227_v0 = vmul.f32 %v7061_v50, %v12998_v49  ;;  %v10071_v16 = vpop.eup %10070  ;;  %v13231_v14 = vadd.f32 %v13168_v27, %v12889_v7  ;;  %v6626_v53 = vmul.f32 %v13204_v23, %v13204_v23  ;;  %v7057_v40 = vmul.f32 0.5, %v6993_v21  ;;  %v6478_v49 = vpop.f32.mrf.mxu0 }
0x10c5   : > { %v6995_v18 = vadd.f32 1.0, %v10067_v19  ;;  %v6622_v45 = vmul.f32 %v13211_v52, %v13211_v52  ;;  %v6624_v3 = vmul.f32 %v13214_v62, %v13214_v62  ;;  %v13240_v6 = vadd.f32 %v6573_v15, %v12889_v7  ;;  %v6527_v17 = vpop.f32.mrf.mxu1 }
0x10c6   : > { %14415 = vst [vmem:[#allocation26_spill] sm:$0xff] %v13231_v14  ;;  %v13243_v10 = vmul.f32 %v7056_v25, %v13005_v55  ;;  %v6685_v27 = vmul.f32 %v6621_v48, %v13187_v12  ;;  %v7058_v9 = vmul.f32 0.5, %v6994_v24  ;;  %v13246_v11 = vmul.f32 0.5, %v6998_v5 }
0x10c7   : > { %v6999_v54 = vadd.f32 1.0, %v10069_v58  ;;  %v6620_v1 = vmul.f32 %v13222_v43, %v13222_v43  ;;  %v6689_v50 = vmul.f32 %v6625_v46, %v13198_v37  ;;  %v7001_v21 = vadd.f32 1.0, %v10071_v16 }
0x10c8   : > { %10076 = vtanh.f32 %v6875_v61  ;;  %v10073_v19 = vpop.eup %10072  ;;  %v6623_v15 = vmul.f32 %v13231_v14, %v13231_v14  ;;  %v6690_v55 = vmul.f32 %v6626_v53, %v13204_v23  ;;  %v13255_v25 = vmul.f32 %v7057_v40, %v13023_v60 }
0x10c9   : > { %v7059_v48 = vmul.f32 0.5, %v6995_v18  ;;  %v10075_v24 = vpop.eup %10074  ;;  %v6686_v5 = vmul.f32 %v6622_v45, %v13211_v52  ;;  %v6688_v58 = vmul.f32 %v6624_v3, %v13214_v62  ;;  %v6627_v46 = vmul.f32 %v13240_v6, %v13240_v6 }
0x10ca   : > { %v6749_v16 = vmul.f32 0.044715, %v6685_v27  ;;  %v13264_v31 = vadd.f32 %v6478_v49, %v12878_v38  ;;  %v13267_v53 = vmul.f32 %v7058_v9, %v13040_v28  ;;  %v13269_v60 = vmul.f32 0.5, %v6999_v54  ;;  %v6429_v3 = vpop.f32.mrf.mxu3 }
0x10cb   : > { %v6684_v40 = vmul.f32 %v6620_v1, %v13222_v43  ;;  %v6753_v18 = vmul.f32 0.044715, %v6689_v50  ;;  %v13273_v45 = vadd.f32 %v6527_v17, %v12882_v29  ;;  %v14416_v49 = vpack.c.bf16 %v12993_v63, %v12990_v20  ;;  %v6576_v54 = vpop.f32.mrf.mxu2 }
0x10cc   : > { %v7065_v27 = vmul.f32 0.5, %v7001_v21  ;;  %v6687_v28 = vmul.f32 %v6623_v15, %v13231_v14  ;;  %v6754_v9 = vmul.f32 0.044715, %v6690_v55  ;;  %v14417_v1 = vpack.c.bf16 %v13053_v30, %v13001_v59  ;;  %v6480_v21 = vpop.f32.mrf.mxu0 }
0x10cd   : > { %v14418_v17 = vpack.c.bf16 %v13166_v42, %v13014_v51  ;;  %v13291_v2 = vmul.f32 %v7059_v48, %v13049_v57  ;;  %v6750_v63 = vmul.f32 0.044715, %v6686_v5  ;;  %v6691_v50 = vmul.f32 %v6627_v46, %v13240_v6 }
0x10ce   : > { %v10077_v20 = vpop.eup %10076  ;;  %v7002_v15 = vadd.f32 1.0, %v10073_v19  ;;  %v6813_v59 = vadd.f32 %v6749_v16, %v13187_v12  ;;  %v6629_v30 = vmul.f32 %v13264_v31, %v13264_v31  ;;  %v13298_v51 = vadd.f32 %v6429_v3, %v12884_v44  ;;  %v6529_v19 = vpop.f32.mrf.mxu1 }
0x10cf   : > { %v7178_v42 = vpack.c.bf16 %v13267_v53, %v13201_v39  ;;  %v6748_v57 = vmul.f32 0.044715, %v6684_v40  ;;  %v6817_v55 = vadd.f32 %v6753_v18, %v13198_v37  ;;  %v6630_v48 = vmul.f32 %v13273_v45, %v13273_v45 }
0x10d0   : > { %v13306_v5 = vadd.f32 %v6576_v54, %v12889_v7  ;;  %v6818_v46 = vadd.f32 %v6754_v9, %v13204_v23  ;;  %v13310_v16 = vadd.f32 %v6480_v21, %v12878_v38  ;;  %v7000_v3 = vadd.f32 1.0, %v10075_v24 }
0x10d1   : > { %7468 = vmatmul.bf16.vlgmr.msra.gmra.mxu3 %v7172_v26  ;;  %7517 = vmatmul.bf16.vlgmr.msra.gmra.mxu0 %v14416_v49  ;;  %v6752_v26 = vmul.f32 0.044715, %v6688_v58  ;;  %v6751_v58 = vmul.f32 0.044715, %v6687_v28  ;;  %v6814_v49 = vadd.f32 %v6750_v63, %v13211_v52  ;;  %v6755_v53 = vmul.f32 0.044715, %v6691_v50 }
0x10d2   : > { %7566 = vmatmul.bf16.vlgmr.msra.gmra.mxu1 %v14417_v1  ;;  %7615 = vmatmul.bf16.vlgmr.msrb.gmra.mxu2 %v14418_v17  ;;  %v13315_v40 = vmul.f32 %v7065_v27, %v13085_v56  ;;  %v6877_v18 = vmul.f32 0.7978846, %v6813_v59  ;;  %v6693_v54 = vmul.f32 %v6629_v30, %v13264_v31  ;;  %v6628_v28 = vmul.f32 %v13298_v51, %v13298_v51 }
0x10d3   : > { %v6816_v39 = vadd.f32 %v6752_v26, %v13214_v62  ;;  %v13321_v9 = vadd.f32 %v6529_v19, %v12882_v29  ;;  %v6812_v1 = vadd.f32 %v6748_v57, %v13222_v43  ;;  %v6881_v24 = vmul.f32 0.7978846, %v6817_v55  ;;  %v6431_v57 = vpop.f32.mrf.mxu3 }
0x10d4   : > { %v6694_v17 = vmul.f32 %v6630_v48, %v13273_v45  ;;  %v6631_v63 = vmul.f32 %v13306_v5, %v13306_v5  ;;  %v6815_v56 = vadd.f32 %v6751_v58, %v13231_v14  ;;  %v6882_v27 = vmul.f32 0.7978846, %v6818_v46 }
0x10d5   : > { %v6633_v26 = vmul.f32 %v13310_v16, %v13310_v16  ;;  %v7179_v50 = vpack.c.bf16 %v13291_v2, %v13207_v35  ;;  %v6878_v21 = vmul.f32 0.7978846, %v6814_v49  ;;  %v6880_v59 = vmul.f32 0.7978846, %v6816_v39  ;;  %v6578_v49 = vpop.f32.mrf.mxu2 }
0x10d6   : > { %v6819_v30 = vadd.f32 %v6755_v53, %v13240_v6  ;;  %v7066_v55 = vmul.f32 0.5, %v7002_v15  ;;  %10078 = vtanh.f32 %v6877_v18  ;;  %v6757_v48 = vmul.f32 0.044715, %v6693_v54 }
0x10d7   : > { %v6692_v19 = vmul.f32 %v6628_v28, %v13298_v51  ;;  %v6634_v58 = vmul.f32 %v13321_v9, %v13321_v9  ;;  %v6876_v46 = vmul.f32 0.7978846, %v6812_v1  ;;  %v6758_v22 = vmul.f32 0.044715, %v6694_v17 }
0x10d8   : > { %v6695_v61 = vmul.f32 %v6631_v63, %v13306_v5  ;;  %10080 = vtanh.f32 %v6881_v24  ;;  %v6879_v14 = vmul.f32 0.7978846, %v6815_v56  ;;  %v6697_v35 = vmul.f32 %v6633_v26, %v13310_v16 }
0x10d9   : > { %v13339_v2 = vadd.f32 %v6431_v57, %v12884_v44  ;;  %10082 = vtanh.f32 %v6882_v27  ;;  %v6883_v15 = vmul.f32 0.7978846, %v6819_v30  ;;  %v7064_v39 = vmul.f32 0.5, %v7000_v3 }
0x10da   : > { %v7003_v53 = vadd.f32 1.0, %v10077_v20  ;;  %10084 = vtanh.f32 %v6880_v59  ;;  %v6821_v18 = vadd.f32 %v6757_v48, %v13264_v31  ;;  %v6756_v54 = vmul.f32 0.044715, %v6692_v19 }
0x10db   : > { %10086 = vtanh.f32 %v6878_v21  ;;  %v6698_v28 = vmul.f32 %v6634_v58, %v13321_v9  ;;  %v6822_v1 = vadd.f32 %v6758_v22, %v13273_v45  ;;  %v6759_v24 = vmul.f32 0.044715, %v6695_v61 }
0x10dc   : > { %10088 = vtanh.f32 %v6876_v46  ;;  %v13345_v17 = vadd.f32 %v6578_v49, %v12889_v7  ;;  %v14419_v63 = vpack.c.bf16 %v13243_v10, %v13192_v32  ;;  %v14420_v20 = vpack.c.bf16 %v13255_v25, %v13195_v33  ;;  %v10079_v3 = vpop.eup %10078 }
0x10dd   : > { %10090 = vtanh.f32 %v6879_v14  ;;  %v6761_v56 = vmul.f32 0.044715, %v6697_v35  ;;  %v6632_v27 = vmul.f32 %v13339_v2, %v13339_v2  ;;  %v13356_v61 = vmul.f32 %v7066_v55, %v13109_v8 }
0x10de   : > { %v10081_v22 = vpop.eup %10080  ;;  %v13360_v32 = vmul.f32 %v13216_v4, %v13008_v47  ;;  %v13364_v33 = vmul.f32 %v13246_v11, %v13043_v34  ;;  %v7067_v10 = vmul.f32 0.5, %v7003_v53  ;;  %10092 = vtanh.f32 %v6883_v15 }
0x10df   : > { %v10083_v14 = vpop.eup %10082  ;;  %v6885_v25 = vmul.f32 0.7978846, %v6821_v18  ;;  %v6820_v26 = vadd.f32 %v6756_v54, %v13298_v51  ;;  %v13369_v8 = vmul.f32 %v13269_v60, %v13078_v36  ;;  %v6886_v21 = vmul.f32 0.7978846, %v6822_v1 }
0x10e0   : > { %v6823_v47 = vadd.f32 %v6759_v24, %v13306_v5  ;;  %v6635_v4 = vmul.f32 %v13345_v17, %v13345_v17  ;;  %v7181_v34 = vpack.c.bf16 %v13315_v40, %v13227_v0  ;;  %v6825_v59 = vadd.f32 %v6761_v56, %v13310_v16 }
0x10e1   : > { %7473 = vmatmul.bf16.gmra.mxu3 %v14419_v63  ;;  %7522 = vmatmul.bf16.gmra.mxu0 %v14420_v20  ;;  %v6696_v30 = vmul.f32 %v6632_v27, %v13339_v2  ;;  %v7128_v57 = vmul.f32 %v7064_v39, %v13123_v13  ;;  %v7182_v36 = vpack.c.bf16 %v13356_v61, %v13364_v33  ;;  %v7005_v48 = vadd.f32 1.0, %v10079_v3  ;;  %v6483_v3 = vpop.f32.mrf.mxu0  ;;  %v6532_v33 = vpop.f32.mrf.mxu1 }
0x10e2   : > { %7571 = vmatmul.bf16.gmra.mxu1 %v7178_v42  ;;  %7620 = vmatmul.bf16.gmra.mxu2 %v7179_v50  ;;  %v6762_v42 = vmul.f32 0.044715, %v6698_v28  ;;  %v10085_v50 = vpop.eup %10084  ;;  %v7131_v55 = vmul.f32 %v7067_v10, %v13126_v41  ;;  %v7009_v19 = vadd.f32 1.0, %v10081_v22  ;;  %v7010_v58 = vadd.f32 1.0, %v10083_v14 }
0x10e3   : > { %v10087_v11 = vpop.eup %10086  ;;  %10094 = vtanh.f32 %v6885_v25  ;;  %v6884_v35 = vmul.f32 0.7978846, %v6820_v26  ;;  %v7008_v40 = vadd.f32 1.0, %v10085_v50  ;;  %v6887_v15 = vmul.f32 0.7978846, %v6823_v47 }
0x10e4   : > { %v10089_v60 = vpop.eup %10088  ;;  %v6826_v0 = vadd.f32 %v6762_v42, %v13321_v9  ;;  %10096 = vtanh.f32 %v6886_v21  ;;  %v6699_v13 = vmul.f32 %v6635_v4, %v13345_v17  ;;  %v7006_v39 = vadd.f32 1.0, %v10087_v11 }
0x10e5   : > { %v10091_v46 = vpop.eup %10090  ;;  %v6889_v53 = vmul.f32 0.7978846, %v6825_v59  ;;  %v6760_v18 = vmul.f32 0.044715, %v6696_v30  ;;  %v7180_v54 = vpack.c.bf16 %v7128_v57, %v13360_v32  ;;  %v7004_v41 = vadd.f32 1.0, %v10089_v60 }
0x10e6   : > { %v10093_v49 = vpop.eup %10092  ;;  %v7069_v28 = vmul.f32 0.5, %v7005_v48  ;;  %v7073_v1 = vmul.f32 0.5, %v7009_v19  ;;  %v7074_v24 = vmul.f32 0.5, %v7010_v58  ;;  %v7007_v63 = vadd.f32 1.0, %v10091_v46  ;;  %v6434_v48 = vpop.f32.mrf.mxu3 }
0x10e7   : > { %10098 = vtanh.f32 %v6884_v35  ;;  %v6890_v20 = vmul.f32 0.7978846, %v6826_v0  ;;  %v7072_v56 = vmul.f32 0.5, %v7008_v40  ;;  %v7011_v27 = vadd.f32 1.0, %v10093_v49  ;;  %v6581_v46 = vpop.f32.mrf.mxu2  ;;  %v14421_v35 = vld [vmem:[#allocation26_spill] sm:$0xff] }
0x10e8   : > { %10100 = vtanh.f32 %v6887_v15  ;;  %v6763_v61 = vmul.f32 0.044715, %v6699_v13  ;;  %v13386_v22 = vadd.f32 %v6483_v3, %v12878_v38  ;;  %v7070_v10 = vmul.f32 0.5, %v7006_v39 }
0x10e9   : > { %v10095_v14 = vpop.eup %10094  ;;  %10102 = vtanh.f32 %v6889_v53  ;;  %v6824_v32 = vadd.f32 %v6760_v18, %v13339_v2  ;;  %v7183_v25 = vpack.c.bf16 %v7131_v55, %v13369_v8  ;;  %v7068_v26 = vmul.f32 0.5, %v7004_v41  ;;  %v6485_v49 = vpop.f32.mrf.mxu0 }
0x10ea   : > { %v10097_v42 = vpop.eup %10096  ;;  %v13391_v50 = vadd.f32 %v6532_v33, %v12882_v29  ;;  %v13394_v21 = vmul.f32 %v7073_v1, %v13198_v37  ;;  %v13397_v47 = vmul.f32 %v7074_v24, %v13204_v23  ;;  %v7071_v4 = vmul.f32 0.5, %v7007_v63 }
0x10eb   : > { %10104 = vtanh.f32 %v6890_v20  ;;  %v6637_v11 = vmul.f32 %v13386_v22, %v13386_v22  ;;  %v13402_v59 = vmul.f32 %v7072_v56, %v13214_v62  ;;  %v7075_v8 = vmul.f32 0.5, %v7011_v27 }
0x10ec   : > { %v6827_v30 = vadd.f32 %v6763_v61, %v13345_v17  ;;  %v13406_v57 = vmul.f32 %v7069_v28, %v13187_v12  ;;  %v13409_v37 = vmul.f32 %v7070_v10, %v13211_v52  ;;  %v7013_v23 = vadd.f32 1.0, %v10095_v14 }
0x10ed   : > { %v10099_v60 = vpop.eup %10098  ;;  %v6888_v55 = vmul.f32 0.7978846, %v6824_v32  ;;  %v13412_v62 = vmul.f32 %v7068_v26, %v13222_v43  ;;  %v7014_v19 = vadd.f32 1.0, %v10097_v42  ;;  %v13421_v0 = vmul.f32 %v7071_v4, %v14421_v35 }
0x10ee   : > { %v10101_v58 = vpop.eup %10100  ;;  %v7185_v12 = vpack.c.bf16 %v13394_v21, %v13406_v57  ;;  %v7186_v52 = vpack.c.bf16 %v13397_v47, %v13409_v37  ;;  %v6701_v40 = vmul.f32 %v6637_v11, %v13386_v22  ;;  %v13425_v43 = vadd.f32 %v6434_v48, %v12884_v44  ;;  %v6436_v42 = vpop.f32.mrf.mxu3 }
0x10ef   : > { %v7184_v15 = vpack.c.bf16 %v13402_v59, %v13412_v62  ;;  %v13430_v13 = vmul.f32 %v7075_v8, %v13240_v6  ;;  %v6891_v39 = vmul.f32 0.7978846, %v6827_v30  ;;  %v13433_v53 = vadd.f32 %v6581_v46, %v12889_v7 }
0x10f0   : > { %v13436_v18 = vadd.f32 %v6485_v49, %v12878_v38  ;;  %v7077_v41 = vmul.f32 0.5, %v7013_v23  ;;  %10106 = vtanh.f32 %v6888_v55  ;;  %v7012_v24 = vadd.f32 1.0, %v10099_v60  ;;  %v6583_v23 = vpop.f32.mrf.mxu2 }
0x10f1   : > { %7478 = vmatmul.bf16.gmra.mxu3 %v7180_v54  ;;  %7527 = vmatmul.bf16.gmra.mxu0 %v7181_v34  ;;  %v6638_v34 = vmul.f32 %v13391_v50, %v13391_v50  ;;  %v6534_v54 = vpop.f32.mrf.mxu1  ;;  %v7078_v63 = vmul.f32 0.5, %v7014_v19  ;;  %v7015_v56 = vadd.f32 1.0, %v10101_v58  ;;  %v6765_v27 = vmul.f32 0.044715, %v6701_v40 }
0x10f2   : > { %7576 = vmatmul.bf16.gmra.mxu1 %v7182_v36  ;;  %7625 = vmatmul.bf16.gmra.mxu2 %v7183_v25  ;;  %v10103_v36 = vpop.eup %10102  ;;  %v13439_v1 = vadd.f32 %v6534_v54, %v12882_v29  ;;  %v6641_v6 = vmul.f32 %v13436_v18, %v13436_v18  ;;  %v6636_v61 = vmul.f32 %v13425_v43, %v13425_v43  ;;  %10108 = vtanh.f32 %v6891_v39 }
0x10f3   : > { %v10105_v28 = vpop.eup %10104  ;;  %v6702_v20 = vmul.f32 %v6638_v34, %v13391_v50  ;;  %v7017_v3 = vadd.f32 1.0, %v10103_v36  ;;  %v7187_v10 = vpack.c.bf16 %v13430_v13, %v13421_v0  ;;  %v6639_v14 = vmul.f32 %v13433_v53, %v13433_v53  ;;  %v6488_v34 = vpop.f32.mrf.mxu0 }
0x10f4   : > { %v6642_v33 = vmul.f32 %v13439_v1, %v13439_v1  ;;  %v6705_v32 = vmul.f32 %v6641_v6, %v13436_v18  ;;  %v7018_v25 = vadd.f32 1.0, %v10105_v28  ;;  %v7076_v4 = vmul.f32 0.5, %v7012_v24 }
0x10f5   : > { %v13455_v11 = vmul.f32 %v7077_v41, %v13264_v31  ;;  %v13458_v59 = vmul.f32 %v7078_v63, %v13273_v45  ;;  %v6766_v8 = vmul.f32 0.044715, %v6702_v20  ;;  %v13461_v30 = vadd.f32 %v6436_v42, %v12884_v44 }
0x10f6   : > { %v6706_v26 = vmul.f32 %v6642_v33, %v13439_v1  ;;  %v7081_v60 = vmul.f32 0.5, %v7017_v3  ;;  %v13463_v55 = vmul.f32 0.5, %v7015_v56  ;;  %v10107_v48 = vpop.eup %10106  ;;  %v6829_v62 = vadd.f32 %v6765_v27, %v13386_v22 }
0x10f7   : > { %v6700_v19 = vmul.f32 %v6636_v61, %v13425_v43  ;;  %v6769_v58 = vmul.f32 0.044715, %v6705_v32  ;;  %v13468_v31 = vadd.f32 %v6583_v23, %v12889_v7  ;;  %v6703_v45 = vmul.f32 %v6639_v14, %v13433_v53 }
0x10f8   : > { %v6770_v46 = vmul.f32 0.044715, %v6706_v26  ;;  %v6640_v35 = vmul.f32 %v13461_v30, %v13461_v30  ;;  %v7082_v36 = vmul.f32 0.5, %v7018_v25  ;;  %v13476_v49 = vadd.f32 %v6488_v34, %v12878_v38  ;;  %v10109_v54 = vpop.eup %10108  ;;  %v6439_v25 = vpop.f32.mrf.mxu3 }
0x10f9   : > { %v6537_v0 = vpop.f32.mrf.mxu1  ;;  %v6643_v40 = vmul.f32 %v13468_v31, %v13468_v31  ;;  %v13482_v39 = vmul.f32 %v7076_v4, %v13298_v51  ;;  %v6830_v41 = vadd.f32 %v6766_v8, %v13391_v50  ;;  %v7016_v24 = vadd.f32 1.0, %v10107_v48  ;;  %v6586_v57 = vpop.f32.mrf.mxu2 }
0x10fa   : > { %v13479_v13 = vadd.f32 %v6537_v0, %v12882_v29  ;;  %v6704_v28 = vmul.f32 %v6640_v35, %v13461_v30  ;;  %v13487_v63 = vmul.f32 %v7081_v60, %v13310_v16  ;;  %v6893_v20 = vmul.f32 0.7978846, %v6829_v62 }
0x10fb   : > { %v6764_v6 = vmul.f32 0.044715, %v6700_v19  ;;  %v6833_v3 = vadd.f32 %v6769_v58, %v13436_v18  ;;  %v6707_v56 = vmul.f32 %v6643_v40, %v13468_v31  ;;  %v6767_v27 = vmul.f32 0.044715, %v6703_v45  ;;  %v6490_v23 = vpop.f32.mrf.mxu0 }
0x10fc   : > { %v6834_v61 = vadd.f32 %v6770_v46, %v13439_v1  ;;  %v6768_v51 = vmul.f32 0.044715, %v6704_v28  ;;  %v13496_v33 = vmul.f32 %v7082_v36, %v13321_v9  ;;  %v6645_v14 = vmul.f32 %v13476_v49, %v13476_v49 }
0x10fd   : > { %v6771_v16 = vmul.f32 0.044715, %v6707_v56  ;;  %v6646_v32 = vmul.f32 %v13479_v13, %v13479_v13  ;;  %v6894_v26 = vmul.f32 0.7978846, %v6830_v41  ;;  %v13507_v9 = vadd.f32 %v6439_v25, %v12884_v44 }
0x10fe   : > { %v6832_v21 = vadd.f32 %v6768_v51, %v13461_v30  ;;  %10110 = vtanh.f32 %v6893_v20  ;;  %v6828_v42 = vadd.f32 %v6764_v6, %v13425_v43  ;;  %v6897_v4 = vmul.f32 0.7978846, %v6833_v3 }
0x10ff   : > { %v6835_v8 = vadd.f32 %v6771_v16, %v13468_v31  ;;  %v6831_v47 = vadd.f32 %v6767_v27, %v13433_v53  ;;  %v6898_v37 = vmul.f32 0.7978846, %v6834_v61  ;;  %v6709_v62 = vmul.f32 %v6645_v14, %v13476_v49 }
0x1100   : > { %v6896_v48 = vmul.f32 0.7978846, %v6832_v21  ;;  %v6710_v19 = vmul.f32 %v6646_v32, %v13479_v13  ;;  %10112 = vtanh.f32 %v6894_v26  ;;  %v6644_v45 = vmul.f32 %v13507_v9, %v13507_v9  ;;  %v6441_v3 = vpop.f32.mrf.mxu3 }
0x1101   : > { %7483 = vmatmul.bf16.gmra.mxu3 %v7184_v15  ;;  %7532 = vmatmul.bf16.gmra.mxu0 %v7185_v12  ;;  %v7019_v15 = vadd.f32 1.0, %v10109_v54  ;;  %v7080_v12 = vmul.f32 0.5, %v7016_v24  ;;  %v6539_v60 = vpop.f32.mrf.mxu1  ;;  %v6899_v34 = vmul.f32 0.7978846, %v6835_v8  ;;  %v6892_v35 = vmul.f32 0.7978846, %v6828_v42  ;;  %v6588_v61 = vpop.f32.mrf.mxu2 }
0x1102   : > { %7581 = vmatmul.bf16.gmra.mxu1 %v7186_v52  ;;  %7630 = vmatmul.bf16.gmra.mxu2 %v7187_v10  ;;  %v13513_v52 = vadd.f32 %v6586_v57, %v12889_v7  ;;  %v13516_v10 = vadd.f32 %v6490_v23, %v12878_v38  ;;  %v13521_v58 = vadd.f32 %v6539_v60, %v12882_v29  ;;  %10114 = vtanh.f32 %v6897_v4 }
0x1103   : > { %v7083_v36 = vmul.f32 0.5, %v7019_v15  ;;  %v6895_v40 = vmul.f32 0.7978846, %v6831_v47  ;;  %10116 = vtanh.f32 %v6898_v37  ;;  %v6773_v24 = vmul.f32 0.044715, %v6709_v62 }
0x1104   : > { %v6649_v46 = vmul.f32 %v13516_v10, %v13516_v10  ;;  %v6650_v0 = vmul.f32 %v13521_v58, %v13521_v58  ;;  %v6647_v54 = vmul.f32 %v13513_v52, %v13513_v52  ;;  %v10111_v28 = vpop.eup %10110  ;;  %10118 = vtanh.f32 %v6896_v48 }
0x1105   : > { %v6774_v20 = vmul.f32 0.044715, %v6710_v19  ;;  %10120 = vtanh.f32 %v6899_v34  ;;  %v6708_v56 = vmul.f32 %v6644_v45, %v13507_v9  ;;  %v13535_v27 = vadd.f32 %v6441_v3, %v12884_v44 }
0x1106   : > { %v6713_v41 = vmul.f32 %v6649_v46, %v13516_v10  ;;  %v6714_v6 = vmul.f32 %v6650_v0, %v13521_v58  ;;  %v7144_v51 = vmul.f32 %v7080_v12, %v13339_v2  ;;  %10122 = vtanh.f32 %v6892_v35  ;;  %v10113_v25 = vpop.eup %10112 }
0x1107   : > { %v13539_v14 = vadd.f32 %v6588_v61, %v12889_v7  ;;  %v7147_v32 = vmul.f32 %v7083_v36, %v13345_v17  ;;  %10124 = vtanh.f32 %v6895_v40  ;;  %v6711_v15 = vmul.f32 %v6647_v54, %v13513_v52 }
0x1108   : > { %v6777_v16 = vmul.f32 0.044715, %v6713_v41  ;;  %v6778_v26 = vmul.f32 0.044715, %v6714_v6  ;;  %v6648_v21 = vmul.f32 %v13535_v27, %v13535_v27  ;;  %v10115_v57 = vpop.eup %10114  ;;  %v6837_v42 = vadd.f32 %v6773_v24, %v13476_v49 }
0x1109   : > { %v6838_v2 = vadd.f32 %v6774_v20, %v13479_v13  ;;  %v6651_v12 = vmul.f32 %v13539_v14, %v13539_v14  ;;  %v7143_v4 = vmul.f32 %v13463_v55, %v13306_v5  ;;  %v10117_v17 = vpop.eup %10116  ;;  %v6772_v8 = vmul.f32 0.044715, %v6708_v56 }
0x110a   : > { %v6712_v23 = vmul.f32 %v6648_v21, %v13535_v27  ;;  %v7188_v47 = vpack.c.bf16 %v7144_v51, %v13482_v39  ;;  %v7189_v37 = vpack.c.bf16 %v13487_v63, %v13455_v11  ;;  %v10119_v60 = vpop.eup %10118  ;;  %v6841_v48 = vadd.f32 %v6777_v16, %v13516_v10 }
0x110b   : > { %v6715_v62 = vmul.f32 %v6651_v12, %v13539_v14  ;;  %v7190_v19 = vpack.c.bf16 %v13496_v33, %v13458_v59  ;;  %v7191_v34 = vpack.c.bf16 %v7147_v32, %v7143_v4  ;;  %v10121_v45 = vpop.eup %10120  ;;  %v6775_v5 = vmul.f32 0.044715, %v6711_v15 }
0x110c   : > { %v6842_v55 = vadd.f32 %v6778_v26, %v13521_v58  ;;  %v6776_v46 = vmul.f32 0.044715, %v6712_v23  ;;  %v10123_v39 = vpop.eup %10122  ;;  %v6901_v35 = vmul.f32 0.7978846, %v6837_v42  ;;  %v6902_v0 = vmul.f32 0.7978846, %v6838_v2 }
0x110d   : > { %v6779_v11 = vmul.f32 0.044715, %v6715_v62  ;;  %v10125_v63 = vpop.eup %10124  ;;  %v6836_v36 = vadd.f32 %v6772_v8, %v13507_v9  ;;  %v7024_v59 = vadd.f32 1.0, %v10119_v60  ;;  %v7025_v33 = vadd.f32 1.0, %v10115_v57 }
0x110e   : > { %v6840_v40 = vadd.f32 %v6776_v46, %v13535_v27  ;;  %v6905_v54 = vmul.f32 0.7978846, %v6841_v48  ;;  %v7026_v24 = vadd.f32 1.0, %v10117_v17  ;;  %v7027_v20 = vadd.f32 1.0, %v10121_v45 }
0x110f   : > { %v6843_v41 = vadd.f32 %v6779_v11, %v13539_v14  ;;  %v6839_v6 = vadd.f32 %v6775_v5, %v13513_v52  ;;  %v6906_v3 = vmul.f32 0.7978846, %v6842_v55  ;;  %v7020_v56 = vadd.f32 1.0, %v10123_v39 }
0x1110   : > { %v7021_v61 = vadd.f32 1.0, %v10111_v28  ;;  %10126 = vtanh.f32 %v6901_v35  ;;  %v6904_v51 = vmul.f32 0.7978846, %v6840_v40  ;;  %v7022_v16 = vadd.f32 1.0, %v10113_v25 }
0x1111   : > { %7488 = vmatmul.bf16.gmra.mxu3 %v7188_v47  ;;  %7537 = vmatmul.bf16.gmra.mxu0 %v7189_v37  ;;  %v7023_v32 = vadd.f32 1.0, %v10125_v63  ;;  %10128 = vtanh.f32 %v6902_v0  ;;  %v6907_v15 = vmul.f32 0.7978846, %v6843_v41  ;;  %v7088_v26 = vmul.f32 0.5, %v7024_v59 }
0x1112   : > { %7586 = vmatmul.bf16.gmra.mxu1 %v7190_v19  ;;  %7635 = vmatmul.bf16.gmra.mxu2 %v7191_v34  ;;  %v7089_v21 = vmul.f32 0.5, %v7025_v33  ;;  %v6900_v42 = vmul.f32 0.7978846, %v6836_v36  ;;  %10130 = vtanh.f32 %v6905_v54  ;;  %v7090_v57 = vmul.f32 0.5, %v7026_v24 }
0x1113   : > { %v7091_v2 = vmul.f32 0.5, %v7027_v20  ;;  %v6903_v12 = vmul.f32 0.7978846, %v6839_v6  ;;  %10132 = vtanh.f32 %v6906_v3  ;;  %v7084_v4 = vmul.f32 0.5, %v7020_v56 }
0x1114   : > { %v7085_v17 = vmul.f32 0.5, %v7021_v61  ;;  %10134 = vtanh.f32 %v6904_v51  ;;  %v7086_v8 = vmul.f32 0.5, %v7022_v16  ;;  %v7087_v23 = vmul.f32 0.5, %v7023_v32 }
0x1115   : > { %10136 = vtanh.f32 %v6907_v15  ;;  %v7152_v28 = vmul.f32 %v7088_v26, %v13461_v30  ;;  %v7153_v25 = vmul.f32 %v7089_v21, %v13436_v18  ;;  %v7154_v37 = vmul.f32 %v7090_v57, %v13439_v1 }
0x1116   : > { %v10127_v47 = vpop.eup %10126  ;;  %10138 = vtanh.f32 %v6900_v42  ;;  %v7155_v60 = vmul.f32 %v7091_v2, %v13468_v31  ;;  %v7148_v62 = vmul.f32 %v7084_v4, %v13425_v43  ;;  %v7149_v19 = vmul.f32 %v7085_v17, %v13386_v22 }
0x1117   : > { %v10129_v48 = vpop.eup %10128  ;;  %10140 = vtanh.f32 %v6903_v12  ;;  %v7150_v45 = vmul.f32 %v7086_v8, %v13391_v50  ;;  %v7151_v5 = vmul.f32 %v7087_v23, %v13433_v53  ;;  %v7029_v36 = vadd.f32 1.0, %v10127_v47 }
0x1118   : > { %v10131_v34 = vpop.eup %10130  ;;  %v7192_v55 = vpack.c.bf16 %v7152_v28, %v7148_v62  ;;  %v7193_v18 = vpack.c.bf16 %v7153_v25, %v7149_v19  ;;  %v7030_v53 = vadd.f32 1.0, %v10129_v48 }
0x1119   : > { %v10133_v30 = vpop.eup %10132  ;;  %v7194_v39 = vpack.c.bf16 %v7154_v37, %v7150_v45  ;;  %v7195_v35 = vpack.c.bf16 %v7155_v60, %v7151_v5  ;;  %v7033_v22 = vadd.f32 1.0, %v10131_v34  ;;  %v7093_v20 = vmul.f32 0.5, %v7029_v36 }
0x111a   : > { %v10135_v46 = vpop.eup %10134  ;;  %v7034_v11 = vadd.f32 1.0, %v10133_v30  ;;  %v7094_v6 = vmul.f32 0.5, %v7030_v53 }
0x111b   : > { %v10137_v1 = vpop.eup %10136  ;;  %v7032_v0 = vadd.f32 1.0, %v10135_v46  ;;  %v7097_v33 = vmul.f32 0.5, %v7033_v22  ;;  %v7157_v15 = vmul.f32 %v7093_v20, %v13476_v49 }
0x111c   : > { %v10139_v31 = vpop.eup %10138  ;;  %v7035_v63 = vadd.f32 1.0, %v10137_v1  ;;  %v7098_v54 = vmul.f32 0.5, %v7034_v11  ;;  %v7158_v26 = vmul.f32 %v7094_v6, %v13479_v13 }
0x111d   : > { %v10141_v43 = vpop.eup %10140  ;;  %v7028_v50 = vadd.f32 1.0, %v10139_v31  ;;  %v7096_v59 = vmul.f32 0.5, %v7032_v0  ;;  %v7161_v61 = vmul.f32 %v7097_v33, %v13516_v10 }
0x111e   : > { %v7031_v40 = vadd.f32 1.0, %v10141_v43  ;;  %v7099_v41 = vmul.f32 0.5, %v7035_v63  ;;  %v7162_v51 = vmul.f32 %v7098_v54, %v13521_v58 }
0x111f   : > { %v7092_v24 = vmul.f32 0.5, %v7028_v50  ;;  %v7160_v56 = vmul.f32 %v7096_v59, %v13535_v27  ;;  %v7197_v57 = vpack.c.bf16 %v7161_v61, %v7157_v15 }
0x1120   : > { %v7095_v3 = vmul.f32 0.5, %v7031_v40  ;;  %v7163_v16 = vmul.f32 %v7099_v41, %v13539_v14  ;;  %v7198_v2 = vpack.c.bf16 %v7162_v51, %v7158_v26 }
0x1121   : > { %7493 = vmatmul.bf16.gmra.mxu3 %v7192_v55  ;;  %7542 = vmatmul.bf16.gmra.mxu0 %v7193_v18  ;;  %v7156_v32 = vmul.f32 %v7092_v24, %v13507_v9 }
0x1122   : > { %7591 = vmatmul.bf16.gmra.mxu1 %v7194_v39  ;;  %7640 = vmatmul.bf16.gmra.mxu2 %v7195_v35  ;;  %v7159_v21 = vmul.f32 %v7095_v3, %v13513_v52 }
0x1123   : > { %v7196_v42 = vpack.c.bf16 %v7160_v56, %v7156_v32 }
0x1124   : > { %v7199_v12 = vpack.c.bf16 %v7163_v16, %v7159_v21 }
0x1131   : > { %7498 = vmatmul.bf16.gmra.mxu3 %v7196_v42  ;;  %7547 = vmatmul.bf16.gmra.mxu0 %v7197_v57 }
0x1132   : > { %7596 = vmatmul.bf16.gmra.mxu1 %v7198_v2  ;;  %7645 = vmatmul.bf16.gmra.mxu2 %v7199_v12 }
0x113e   : > { %v6493_v10 = vpop.f32.mrf.mxu0 }
0x113f   : > { %v13581_v58 = vadd.f32 %v6493_v10, %v12878_v38  ;;  %v6542_v27 = vpop.f32.mrf.mxu1 }
0x1140   : > { %v13584_v9 = vadd.f32 %v6542_v27, %v12882_v29 }
0x1141   : > { %v6653_v49 = vmul.f32 %v13581_v58, %v13581_v58 }
0x1142   : > { %v6654_v13 = vmul.f32 %v13584_v9, %v13584_v9 }
0x1143   : > { %v6717_v52 = vmul.f32 %v6653_v49, %v13581_v58 }
0x1144   : > { %v6718_v14 = vmul.f32 %v6654_v13, %v13584_v9  ;;  %v6444_v4 = vpop.f32.mrf.mxu3 }
0x1145   : > { %v6781_v17 = vmul.f32 0.044715, %v6717_v52  ;;  %v13593_v8 = vadd.f32 %v6444_v4, %v12884_v44  ;;  %v6591_v23 = vpop.f32.mrf.mxu2 }
0x1146   : > { %v6782_v28 = vmul.f32 0.044715, %v6718_v14  ;;  %v13596_v25 = vadd.f32 %v6591_v23, %v12889_v7  ;;  %v6495_v47 = vpop.f32.mrf.mxu0  ;;  %v13641_v23 = vld [vmem:[%s14422_s28] ss:$0 sm:$0xff] }
0x1147   : > { %v6845_v37 = vadd.f32 %v6781_v17, %v13581_v58  ;;  %v6652_v60 = vmul.f32 %v13593_v8, %v13593_v8  ;;  %v13602_v48 = vadd.f32 %v6495_v47, %v12878_v38  ;;  %v6544_v62 = vpop.f32.mrf.mxu1 }
0x1148   : > { %v6846_v19 = vadd.f32 %v6782_v28, %v13584_v9  ;;  %v6655_v34 = vmul.f32 %v13596_v25, %v13596_v25  ;;  %v13608_v45 = vadd.f32 %v6544_v62, %v12882_v29 }
0x1149   : > { %v6909_v5 = vmul.f32 0.7978846, %v6845_v37  ;;  %v6716_v30 = vmul.f32 %v6652_v60, %v13593_v8  ;;  %v6657_v55 = vmul.f32 %v13602_v48, %v13602_v48  ;;  %v14423_v60 = vld [vmem:[#allocation25_spill] sm:$0xff] }
0x114a   : > { %v6910_v18 = vmul.f32 0.7978846, %v6846_v19  ;;  %v6719_v46 = vmul.f32 %v6655_v34, %v13596_v25  ;;  %v6658_v38 = vmul.f32 %v13608_v45, %v13608_v45 }
0x114b   : > { %v6780_v39 = vmul.f32 0.044715, %v6716_v30  ;;  %v6721_v35 = vmul.f32 %v6657_v55, %v13602_v48  ;;  %10142 = vtanh.f32 %v6909_v5 }
0x114c   : > { %v6783_v1 = vmul.f32 0.044715, %v6719_v46  ;;  %v6722_v31 = vmul.f32 %v6658_v38, %v13608_v45  ;;  %v6446_v29 = vpop.f32.mrf.mxu3  ;;  %10144 = vtanh.f32 %v6910_v18 }
0x114d   : > { %v6844_v43 = vadd.f32 %v6780_v39, %v13593_v8  ;;  %v6785_v0 = vmul.f32 0.044715, %v6721_v35  ;;  %v13620_v22 = vadd.f32 %v6446_v29, %v12884_v44  ;;  %v6593_v11 = vpop.f32.mrf.mxu2 }
0x114e   : > { %v6847_v63 = vadd.f32 %v6783_v1, %v13596_v25  ;;  %v6786_v50 = vmul.f32 0.044715, %v6722_v31  ;;  %v13624_v36 = vadd.f32 %v6593_v11, %v12889_v7  ;;  %v7518_v53 = vpop.f32.mrf.mxu0 }
0x114f   : > { %v6908_v40 = vmul.f32 0.7978846, %v6844_v43  ;;  %v6849_v59 = vadd.f32 %v6785_v0, %v13602_v48  ;;  %v6656_v33 = vmul.f32 %v13620_v22, %v13620_v22  ;;  %v7567_v54 = vpop.f32.mrf.mxu1 }
0x1150   : > { %v6911_v41 = vmul.f32 0.7978846, %v6847_v63  ;;  %v6850_v44 = vadd.f32 %v6786_v50, %v13608_v45  ;;  %v6659_v24 = vmul.f32 %v13624_v36, %v13624_v36 }
0x1151   : > { %10146 = vtanh.f32 %v6908_v40  ;;  %v6913_v20 = vmul.f32 0.7978846, %v6849_v59  ;;  %v6720_v6 = vmul.f32 %v6656_v33, %v13620_v22  ;;  %v10143_v56 = vpop.eup %10142 }
0x1152   : > { %10148 = vtanh.f32 %v6911_v41  ;;  %v6914_v7 = vmul.f32 0.7978846, %v6850_v44  ;;  %v6723_v3 = vmul.f32 %v6659_v24, %v13624_v36  ;;  %v10145_v51 = vpop.eup %10144  ;;  %v7037_v2 = vadd.f32 1.0, %v10143_v56 }
0x1153   : > { %10150 = vtanh.f32 %v6913_v20  ;;  %v6784_v61 = vmul.f32 0.044715, %v6720_v6  ;;  %v7038_v13 = vadd.f32 1.0, %v10145_v51 }
0x1154   : > { %10152 = vtanh.f32 %v6914_v7  ;;  %v6787_v16 = vmul.f32 0.044715, %v6723_v3  ;;  %v7469_v32 = vpop.f32.mrf.mxu3  ;;  %v7101_v37 = vmul.f32 0.5, %v7037_v2 }
0x1155   : > { %v6848_v15 = vadd.f32 %v6784_v61, %v13620_v22  ;;  %v7519_v26 = vadd.f32 %v7518_v53, %v7469_v32  ;;  %v7616_v21 = vpop.f32.mrf.mxu2  ;;  %v7102_v34 = vmul.f32 0.5, %v7038_v13 }
0x1156   : > { %v6851_v42 = vadd.f32 %v6787_v16, %v13624_v36  ;;  %v7520_v57 = vpop.f32.mrf.mxu0  ;;  %v7165_v31 = vmul.f32 %v7101_v37, %v13581_v58 }
0x1157   : > { %v10147_v12 = vpop.eup %10146  ;;  %v6912_v10 = vmul.f32 0.7978846, %v6848_v15  ;;  %v7568_v27 = vadd.f32 %v7567_v54, %v7519_v26  ;;  %v7569_v49 = vpop.f32.mrf.mxu1  ;;  %v7166_v63 = vmul.f32 %v7102_v34, %v13584_v9  ;;  %v14427_v34 = vld [vmem:[#allocation14_spill] sm:$0xff] }
0x1158   : > { %v10149_v52 = vpop.eup %10148  ;;  %v6915_v14 = vmul.f32 0.7978846, %v6851_v42  ;;  %v7036_v55 = vadd.f32 1.0, %v10147_v12 }
0x1159   : > { %v10151_v4 = vpop.eup %10150  ;;  %10154 = vtanh.f32 %v6912_v10  ;;  %v7617_v17 = vadd.f32 %v7616_v21, %v7568_v27  ;;  %v7039_v35 = vadd.f32 1.0, %v10149_v52  ;;  %v14426_v52 = vld [vmem:[#allocation20_spill] sm:$0xff] }
0x115a   : > { %v10153_v28 = vpop.eup %10152  ;;  %10156 = vtanh.f32 %v6915_v14  ;;  %v7041_v47 = vadd.f32 1.0, %v10151_v4  ;;  %v7100_v33 = vmul.f32 0.5, %v7036_v55 }
0x115b   : > { %v7656_v62 = vadd.f32 %v7617_v17, %v14423_v60  ;;  %v7042_v19 = vadd.f32 1.0, %v10153_v28  ;;  %v7103_v24 = vmul.f32 0.5, %v7039_v35 }
0x115c   : > { %v7471_v5 = vpop.f32.mrf.mxu3  ;;  %v7105_v30 = vmul.f32 0.5, %v7041_v47  ;;  %v7164_v3 = vmul.f32 %v7100_v33, %v13593_v8 }
0x115d   : > { %v13645_v18 = vadd.f32 %v13641_v23, %v7656_v62  ;;  %v7521_v46 = vadd.f32 %v7520_v57, %v7471_v5  ;;  %v7618_v38 = vpop.f32.mrf.mxu2  ;;  %v7106_v39 = vmul.f32 0.5, %v7042_v19  ;;  %v7167_v51 = vmul.f32 %v7103_v24, %v13596_v25 }
0x115e   : > { %v7523_v1 = vpop.f32.mrf.mxu0  ;;  %v7169_v29 = vmul.f32 %v7105_v30, %v13602_v48  ;;  %v14424_v48 = vld [vmem:[#allocation17_spill] sm:$0xff] }
0x115f   : > { %v10155_v43 = vpop.eup %10154  ;;  %7692 = vst [vmem:[#allocation2 + $0x30] sm:$0xff] %v13645_v18  ;;  %v7570_v0 = vadd.f32 %v7569_v49, %v7521_v46  ;;  %v7572_v11 = vpop.f32.mrf.mxu1  ;;  %v7170_v50 = vmul.f32 %v7106_v39, %v13608_v45 }
0x1160   : > { %v10157_v53 = vpop.eup %10156  ;;  %v7201_v40 = vpack.c.bf16 %v7169_v29, %v7165_v31  ;;  %v7040_v59 = vadd.f32 1.0, %v10155_v43  ;;  %v14428_v29 = vld [vmem:[#allocation9_spill] sm:$0xff] }
0x1161   : > { %v7619_v54 = vadd.f32 %v7618_v38, %v7570_v0  ;;  %v7202_v41 = vpack.c.bf16 %v7170_v50, %v7166_v63  ;;  %v7043_v44 = vadd.f32 1.0, %v10157_v53 }
0x1162   : > { %7552 = vmatmul.bf16.gmra.mxu0 %v7201_v40  ;;  %v7104_v58 = vmul.f32 0.5, %v7040_v59 }
0x1163   : > { %v7657_v20 = vadd.f32 %v7619_v54, %v14424_v48  ;;  %7601 = vmatmul.bf16.gmra.mxu1 %v7202_v41  ;;  %v7107_v6 = vmul.f32 0.5, %v7043_v44  ;;  %v14429_v54 = vld [vmem:[#allocation16_spill] sm:$0xff] }
0x1164   : > { %v7474_v7 = vpop.f32.mrf.mxu3  ;;  %v7168_v9 = vmul.f32 %v7104_v58, %v13620_v22  ;;  %v14425_v22 = vld [vmem:[#allocation27_spill] sm:$0xff] }
0x1165   : > { %v13656_v45 = vadd.f32 %v13641_v23, %v7657_v20  ;;  %v7524_v56 = vadd.f32 %v7523_v1, %v7474_v7  ;;  %v7621_v61 = vpop.f32.mrf.mxu2  ;;  %v7171_v16 = vmul.f32 %v7107_v6, %v13624_v36 }
0x1166   : > { %v7525_v32 = vpop.f32.mrf.mxu0  ;;  %v7200_v15 = vpack.c.bf16 %v7168_v9, %v7164_v3  ;;  %v14430_v9 = vld [vmem:[#allocation10_spill] sm:$0xff] }
0x1167   : > { %7693 = vst [vmem:[#allocation2] sm:$0xff] %v13656_v45  ;;  %v7573_v26 = vadd.f32 %v7572_v11, %v7524_v56  ;;  %v7574_v21 = vpop.f32.mrf.mxu1  ;;  %v7203_v42 = vpack.c.bf16 %v7171_v16, %v7167_v51 }
0x1168   : > { %7503 = vmatmul.bf16.gmra.mxu3 %v7200_v15 }
0x1169   : > { %v7622_v8 = vadd.f32 %v7621_v61, %v7573_v26  ;;  %7650 = vmatmul.bf16.gmra.mxu2 %v7203_v42 }
0x116b   : > { %v7658_v57 = vadd.f32 %v7622_v8, %v14425_v22  ;;  %v14431_v8 = vld [vmem:[#allocation19_spill] sm:$0xff] }
0x116c   : > { %v7476_v2 = vpop.f32.mrf.mxu3 }
0x116d   : > { %v13663_v12 = vadd.f32 %v13641_v23, %v7658_v57  ;;  %v7526_v10 = vadd.f32 %v7525_v32, %v7476_v2  ;;  %v7623_v25 = vpop.f32.mrf.mxu2 }
0x116e   : > { %v7528_v27 = vpop.f32.mrf.mxu0 }
0x116f   : > { %7694 = vst [vmem:[#allocation2 + $0x58] sm:$0xff] %v13663_v12  ;;  %v7575_v36 = vadd.f32 %v7574_v21, %v7526_v10  ;;  %v7577_v49 = vpop.f32.mrf.mxu1 }
0x1171   : > { %v7624_v13 = vadd.f32 %v7623_v25, %v7575_v36 }
0x1173   : > { %v7659_v14 = vadd.f32 %v7624_v13, %v14426_v52  ;;  %v14432_v52 = vld [vmem:[#allocation11_spill] sm:$0xff] }
0x1174   : > { %v7479_v4 = vpop.f32.mrf.mxu3 }
0x1175   : > { %v13668_v17 = vadd.f32 %v13641_v23, %v7659_v14  ;;  %v7529_v28 = vadd.f32 %v7528_v27, %v7479_v4  ;;  %v7626_v47 = vpop.f32.mrf.mxu2 }
0x1176   : > { %v7530_v37 = vpop.f32.mrf.mxu0 }
0x1177   : > { %7695 = vst [vmem:[#allocation2 + $0x18] sm:$0xff] %v13668_v17  ;;  %v7578_v60 = vadd.f32 %v7577_v49, %v7529_v28  ;;  %v7579_v62 = vpop.f32.mrf.mxu1 }
0x1179   : > { %v7627_v19 = vadd.f32 %v7626_v47, %v7578_v60 }
0x117b   : > { %v7660_v5 = vadd.f32 %v7627_v19, %v14427_v34 }
0x117c   : > { %v7481_v30 = vpop.f32.mrf.mxu3 }
0x117d   : > { %v13673_v55 = vadd.f32 %v13641_v23, %v7660_v5  ;;  %v7531_v46 = vadd.f32 %v7530_v37, %v7481_v30  ;;  %v7628_v38 = vpop.f32.mrf.mxu2  ;;  %v14433_v5 = vld [vmem:[#allocation22_spill] sm:$0xff] }
0x117e   : > { %v7533_v39 = vpop.f32.mrf.mxu0 }
0x117f   : > { %7696 = vst [vmem:[#allocation2 + $0x50] sm:$0xff] %v13673_v55  ;;  %v7580_v35 = vadd.f32 %v7579_v62, %v7531_v46  ;;  %v7582_v1 = vpop.f32.mrf.mxu1 }
0x1181   : > { %v7629_v31 = vadd.f32 %v7628_v38, %v7580_v35 }
0x1183   : > { %v7661_v43 = vadd.f32 %v7629_v31, %v14428_v29 }
0x1184   : > { %v7484_v0 = vpop.f32.mrf.mxu3 }
0x1185   : > { %v13678_v11 = vadd.f32 %v13641_v23, %v7661_v43  ;;  %v7534_v63 = vadd.f32 %v7533_v39, %v7484_v0  ;;  %v7631_v50 = vpop.f32.mrf.mxu2  ;;  %v14434_v43 = vld [vmem:[#allocation12_spill] sm:$0xff] }
0x1186   : > { %v7535_v53 = vpop.f32.mrf.mxu0 }
0x1187   : > { %7697 = vst [vmem:[#allocation2 + $0x68] sm:$0xff] %v13678_v11  ;;  %v7583_v40 = vadd.f32 %v7582_v1, %v7534_v63  ;;  %v7584_v59 = vpop.f32.mrf.mxu1 }
0x1189   : > { %v7632_v33 = vadd.f32 %v7631_v50, %v7583_v40 }
0x118b   : > { %v7662_v41 = vadd.f32 %v7632_v33, %v14429_v54 }
0x118c   : > { %v7486_v44 = vpop.f32.mrf.mxu3 }
0x118d   : > { %v13683_v24 = vadd.f32 %v13641_v23, %v7662_v41  ;;  %v7536_v58 = vadd.f32 %v7535_v53, %v7486_v44  ;;  %v7633_v48 = vpop.f32.mrf.mxu2  ;;  %v14435_v41 = vld [vmem:[#allocation23_spill] sm:$0xff] }
0x118e   : > { %v7538_v20 = vpop.f32.mrf.mxu0 }
0x118f   : > { %7698 = vst [vmem:[#allocation2 + $0x8] sm:$0xff] %v13683_v24  ;;  %v7585_v6 = vadd.f32 %v7584_v59, %v7536_v58  ;;  %v7587_v7 = vpop.f32.mrf.mxu1 }
0x1191   : > { %v7634_v3 = vadd.f32 %v7633_v48, %v7585_v6 }
0x1193   : > { %v7663_v56 = vadd.f32 %v7634_v3, %v14430_v9 }
0x1194   : > { %v7489_v61 = vpop.f32.mrf.mxu3 }
0x1195   : > { %v13688_v51 = vadd.f32 %v13641_v23, %v7663_v56  ;;  %v7539_v16 = vadd.f32 %v7538_v20, %v7489_v61  ;;  %v7636_v32 = vpop.f32.mrf.mxu2  ;;  %v14436_v61 = vld [vmem:[#allocation13_spill] sm:$0xff] }
0x1196   : > { %v7540_v15 = vpop.f32.mrf.mxu0 }
0x1197   : > { %7699 = vst [vmem:[#allocation2 + $0x48] sm:$0xff] %v13688_v51  ;;  %v7588_v26 = vadd.f32 %v7587_v7, %v7539_v16  ;;  %v7589_v21 = vpop.f32.mrf.mxu1 }
0x1199   : > { %v7637_v42 = vadd.f32 %v7636_v32, %v7588_v26 }
0x119b   : > { %v7664_v22 = vadd.f32 %v7637_v42, %v14431_v8 }
0x119c   : > { %v7491_v57 = vpop.f32.mrf.mxu3 }
0x119d   : > { %v13693_v2 = vadd.f32 %v13641_v23, %v7664_v22  ;;  %v7541_v10 = vadd.f32 %v7540_v15, %v7491_v57  ;;  %v7638_v25 = vpop.f32.mrf.mxu2 }
0x119e   : > { %v7543_v27 = vpop.f32.mrf.mxu0 }
0x119f   : > { %7700 = vst [vmem:[#allocation2 + $0x40] sm:$0xff] %v13693_v2  ;;  %v7590_v36 = vadd.f32 %v7589_v21, %v7541_v10  ;;  %v7592_v49 = vpop.f32.mrf.mxu1  ;;  %v14437_v10 = vld [vmem:[#allocation24_spill] sm:$0xff] }
0x11a1   : > { %v7639_v13 = vadd.f32 %v7638_v25, %v7590_v36 }
0x11a3   : > { %v7665_v14 = vadd.f32 %v7639_v13, %v14432_v52 }
0x11a4   : > { %v7494_v4 = vpop.f32.mrf.mxu3 }
0x11a5   : > { %v13698_v28 = vadd.f32 %v13641_v23, %v7665_v14  ;;  %v7544_v47 = vadd.f32 %v7543_v27, %v7494_v4  ;;  %v7641_v37 = vpop.f32.mrf.mxu2 }
0x11a6   : > { %v7545_v62 = vpop.f32.mrf.mxu0 }
0x11a7   : > { %7701 = vst [vmem:[#allocation2 + $0x20] sm:$0xff] %v13698_v28  ;;  %v7593_v60 = vadd.f32 %v7592_v49, %v7544_v47  ;;  %v7594_v34 = vpop.f32.mrf.mxu1 }
0x11a9   : > { %v7642_v19 = vadd.f32 %v7641_v37, %v7593_v60  ;;  %v14438_v37 = vld [vmem:[#allocation15_spill] sm:$0xff] }
0x11ab   : > { %v7666_v30 = vadd.f32 %v7642_v19, %v14433_v5 }
0x11ac   : > { %v7496_v46 = vpop.f32.mrf.mxu3 }
0x11ad   : > { %v13703_v38 = vadd.f32 %v13641_v23, %v7666_v30  ;;  %v7546_v39 = vadd.f32 %v7545_v62, %v7496_v46  ;;  %v7643_v35 = vpop.f32.mrf.mxu2 }
0x11ae   : > { %v7548_v29 = vpop.f32.mrf.mxu0 }
0x11af   : > { %7702 = vst [vmem:[#allocation2 + $0x10] sm:$0xff] %v13703_v38  ;;  %v7595_v1 = vadd.f32 %v7594_v34, %v7546_v39  ;;  %v7597_v63 = vpop.f32.mrf.mxu1 }
0x11b1   : > { %v7644_v31 = vadd.f32 %v7643_v35, %v7595_v1 }
0x11b3   : > { %v7667_v0 = vadd.f32 %v7644_v31, %v14434_v43 }
0x11b4   : > { %v7499_v50 = vpop.f32.mrf.mxu3 }
0x11b5   : > { %v13708_v53 = vadd.f32 %v13641_v23, %v7667_v0  ;;  %v7549_v40 = vadd.f32 %v7548_v29, %v7499_v50  ;;  %v7646_v59 = vpop.f32.mrf.mxu2 }
0x11b6   : > { %v7550_v58 = vpop.f32.mrf.mxu0 }
0x11b7   : > { %7703 = vst [vmem:[#allocation2 + $0x38] sm:$0xff] %v13708_v53  ;;  %v7598_v33 = vadd.f32 %v7597_v63, %v7549_v40  ;;  %v7599_v7 = vpop.f32.mrf.mxu1 }
0x11b9   : > { %v7647_v54 = vadd.f32 %v7646_v59, %v7598_v33 }
0x11bb   : > { %v7668_v44 = vadd.f32 %v7647_v54, %v14435_v41 }
0x11bc   : > { %v7501_v48 = vpop.f32.mrf.mxu3 }
0x11bd   : > { %v13713_v20 = vadd.f32 %v13641_v23, %v7668_v44  ;;  %v7551_v6 = vadd.f32 %v7550_v58, %v7501_v48  ;;  %v7648_v9 = vpop.f32.mrf.mxu2 }
0x11bf   : > { %7704 = vst [vmem:[#allocation2 + $0x60] sm:$0xff] %v13713_v20  ;;  %v7600_v3 = vadd.f32 %v7599_v7, %v7551_v6 }
0x11c1   : > { %v7649_v56 = vadd.f32 %v7648_v9, %v7600_v3 }
0x11c3   : > { %v7669_v16 = vadd.f32 %v7649_v56, %v14436_v61 }
0x11c5   : > { %v13718_v32 = vadd.f32 %v13641_v23, %v7669_v16 }
0x11c7   : > { %7705 = vst [vmem:[#allocation2 + $0x70] sm:$0xff] %v13718_v32 }
0x11df   : > { %v7553_v15 = vpop.f32.mrf.mxu0 }
0x11e0   : > { %v7602_v26 = vpop.f32.mrf.mxu1 }
0x11e7   : > { %v7555_v27 = vpop.f32.mrf.mxu0 }
0x11e8   : > { %v7604_v52 = vpop.f32.mrf.mxu1 }
0x11eb   : > { %v7504_v21 = vpop.f32.mrf.mxu3 }
0x11ec   : > { %v7554_v42 = vadd.f32 %v7553_v15, %v7504_v21  ;;  %v7651_v8 = vpop.f32.mrf.mxu2 }
0x11ee   : > { %v7603_v22 = vadd.f32 %v7602_v26, %v7554_v42 }
0x11f0   : > { %v7652_v57 = vadd.f32 %v7651_v8, %v7603_v22 }
0x11f2   : > { %v7670_v25 = vadd.f32 %v7652_v57, %v14437_v10 }
0x11f3   : > { %v7506_v36 = vpop.f32.mrf.mxu3 }
0x11f4   : > { %v13723_v49 = vadd.f32 %v13641_v23, %v7670_v25  ;;  %v7556_v13 = vadd.f32 %v7555_v27, %v7506_v36  ;;  %v7653_v4 = vpop.f32.mrf.mxu2 }
0x11f6   : > { %7706 = vst [vmem:[#allocation2 + $0x78] sm:$0xff] %v13723_v49  ;;  %v7605_v14 = vadd.f32 %v7604_v52, %v7556_v13 }
0x11f8   : > { %v7654_v47 = vadd.f32 %v7653_v4, %v7605_v14 }
0x11fa   : > { %v7671_v60 = vadd.f32 %v7654_v47, %v14438_v37  ;;  %7711 = sbr.rel (%p9453_p5) target bundleno = 5067 (0x13cb), region = 124 }
0x11fc   : > { %v13728_v62 = vadd.f32 %v13641_v23, %v7671_v60 }
0x11fe   : > { %7707 = vst [vmem:[#allocation2 + $0x28] sm:$0xff] %v13728_v62 }
0x11ff   : > { %7718 = vadd.xlane.f32.xlu2 %v13663_v12  ;;  %7730 = vadd.xlane.f32.xlu1 %v13693_v2  ;;  %v14440_v34 = vld [vmem:[#allocation8_spill] sm:$0xff] }
0x1200   : > { %7714 = vadd.xlane.f32.xlu0 %v13645_v18 }
0x1207   : > { %7734 = vadd.xlane.f32.xlu2 %v13703_v38  ;;  %7732 = vadd.xlane.f32.xlu1 %v13698_v28 }
0x1208   : > { %7716 = vadd.xlane.f32.xlu0 %v13656_v45 }
0x120f   : > { %7722 = vadd.xlane.f32.xlu2 %v13673_v55  ;;  %7736 = vadd.xlane.f32.xlu1 %v13708_v53 }
0x1210   : > { %7720 = vadd.xlane.f32.xlu0 %v13668_v17 }
0x1217   : > { %7740 = vadd.xlane.f32.xlu2 %v13718_v32  ;;  %7724 = vadd.xlane.f32.xlu1 %v13678_v11 }
0x1218   : > { %7738 = vadd.xlane.f32.xlu0 %v13713_v20 }
0x121f   : > { %7728 = vadd.xlane.f32.xlu2 %v13688_v51  ;;  %7742 = vadd.xlane.f32.xlu1 %v13723_v49 }
0x1220   : > { %7726 = vadd.xlane.f32.xlu0 %v13683_v24 }
0x1228   : > { %7744 = vadd.xlane.f32.xlu0 %v13728_v62 }
0x1272   : > { %v7719_v23 = vpop.xlane.xlu2 %7718  ;;  %v7731_v19 = vpop.xlane.xlu1 %7730 }
0x1273   : > { %v7754_v5 = vmul.f32 %v7731_v19, %v14440_v34  ;;  %v7715_v30 = vpop.xlane.xlu0 %7714  ;;  %v7748_v41 = vmul.f32 %v7719_v23, %v14440_v34 }
0x1274   : > { %v7746_v46 = vmul.f32 %v7715_v30, %v14440_v34 }
0x1275   : > { %v13751_v39 = vsub.f32 %v13693_v2, %v7754_v5  ;;  %v13781_v48 = vsub.f32 %v13663_v12, %v7748_v41 }
0x1276   : > { %v13754_v35 = vsub.f32 %v13645_v18, %v7746_v46 }
0x1277   : > { %v7786_v1 = vmul.f32 %v13751_v39, %v13751_v39  ;;  %v7780_v61 = vmul.f32 %v13781_v48, %v13781_v48 }
0x1278   : > { %v7778_v31 = vmul.f32 %v13754_v35, %v13754_v35 }
0x1279   : > { %7810 = vadd.xlane.f32.xlu0 %v7786_v1 }
0x127a   : > { %7794 = vadd.xlane.f32.xlu1 %v7778_v31  ;;  %v7735_v29 = vpop.xlane.xlu2 %7734  ;;  %v7733_v43 = vpop.xlane.xlu1 %7732 }
0x127b   : > { %v7756_v0 = vmul.f32 %v7735_v29, %v14440_v34  ;;  %v7755_v63 = vmul.f32 %v7733_v43, %v14440_v34  ;;  %v7717_v50 = vpop.xlane.xlu0 %7716 }
0x127c   : > { %v7747_v2 = vmul.f32 %v7717_v50, %v14440_v34 }
0x127d   : > { %v13764_v18 = vsub.f32 %v13703_v38, %v7756_v0  ;;  %v13767_v40 = vsub.f32 %v13698_v28, %v7755_v63 }
0x127e   : > { %v13770_v59 = vsub.f32 %v13656_v45, %v7747_v2 }
0x127f   : > { %v7788_v33 = vmul.f32 %v13764_v18, %v13764_v18  ;;  %v7787_v54 = vmul.f32 %v13767_v40, %v13767_v40 }
0x1280   : > { %v7779_v44 = vmul.f32 %v13770_v59, %v13770_v59 }
0x1281   : > { %7814 = vadd.xlane.f32.xlu0 %v7788_v33 }
0x1282   : > { %7812 = vadd.xlane.f32.xlu1 %v7787_v54  ;;  %7796 = vadd.xlane.f32.xlu2 %v7779_v44  ;;  %v7723_v38 = vpop.xlane.xlu2 %7722  ;;  %v7737_v28 = vpop.xlane.xlu1 %7736 }
0x1283   : > { %v7750_v58 = vmul.f32 %v7723_v38, %v14440_v34  ;;  %v7721_v45 = vpop.xlane.xlu0 %7720  ;;  %v7757_v9 = vmul.f32 %v7737_v28, %v14440_v34 }
0x1284   : > { %v7749_v6 = vmul.f32 %v7721_v45, %v14440_v34 }
0x1285   : > { %v13785_v7 = vsub.f32 %v13673_v55, %v7750_v58  ;;  %v13798_v55 = vsub.f32 %v13708_v53, %v7757_v9 }
0x1286   : > { %v13788_v3 = vsub.f32 %v13668_v17, %v7749_v6 }
0x1287   : > { %v7782_v56 = vmul.f32 %v13785_v7, %v13785_v7  ;;  %v7789_v22 = vmul.f32 %v13798_v55, %v13798_v55 }
0x1288   : > { %v7781_v12 = vmul.f32 %v13788_v3, %v13788_v3 }
0x1289   : > { %7802 = vadd.xlane.f32.xlu0 %v7782_v56 }
0x128a   : > { %7798 = vadd.xlane.f32.xlu2 %v7780_v61  ;;  %7800 = vadd.xlane.f32.xlu1 %v7781_v12  ;;  %v7741_v16 = vpop.xlane.xlu2 %7740  ;;  %v7725_v17 = vpop.xlane.xlu1 %7724 }
0x128b   : > { %v7759_v15 = vmul.f32 %v7741_v16, %v14440_v34  ;;  %v7739_v26 = vpop.xlane.xlu0 %7738  ;;  %v7751_v57 = vmul.f32 %v7725_v17, %v14440_v34 }
0x128c   : > { %v7758_v21 = vmul.f32 %v7739_v26, %v14440_v34 }
0x128d   : > { %v13803_v42 = vsub.f32 %v13718_v32, %v7759_v15  ;;  %v13816_v32 = vsub.f32 %v13678_v11, %v7751_v57 }
0x128e   : > { %v13806_v8 = vsub.f32 %v13713_v20, %v7758_v21 }
0x128f   : > { %v7791_v53 = vmul.f32 %v13803_v42, %v13803_v42  ;;  %v7783_v4 = vmul.f32 %v13816_v32, %v13816_v32 }
0x1290   : > { %v7790_v10 = vmul.f32 %v13806_v8, %v13806_v8 }
0x1291   : > { %7820 = vadd.xlane.f32.xlu0 %v7791_v53 }
0x1292   : > { %7816 = vadd.xlane.f32.xlu2 %v7789_v22  ;;  %7818 = vadd.xlane.f32.xlu1 %v7790_v10  ;;  %v7729_v25 = vpop.xlane.xlu2 %7728  ;;  %v7743_v36 = vpop.xlane.xlu1 %7742 }
0x1293   : > { %v7753_v20 = vmul.f32 %v7729_v25, %v14440_v34  ;;  %v7727_v27 = vpop.xlane.xlu0 %7726  ;;  %v7760_v47 = vmul.f32 %v7743_v36, %v14440_v34 }
0x1294   : > { %v7752_v13 = vmul.f32 %v7727_v27, %v14440_v34 }
0x1295   : > { %v13821_v52 = vsub.f32 %v13688_v51, %v7753_v20  ;;  %v13834_v51 = vsub.f32 %v13723_v49, %v7760_v47 }
0x1296   : > { %v13824_v14 = vsub.f32 %v13683_v24, %v7752_v13 }
0x1297   : > { %v7785_v11 = vmul.f32 %v13821_v52, %v13821_v52  ;;  %v7792_v19 = vmul.f32 %v13834_v51, %v13834_v51 }
0x1298   : > { %v7784_v37 = vmul.f32 %v13824_v14, %v13824_v14 }
0x1299   : > { %7808 = vadd.xlane.f32.xlu0 %v7785_v11 }
0x129a   : > { %7804 = vadd.xlane.f32.xlu2 %v7783_v4  ;;  %7806 = vadd.xlane.f32.xlu1 %v7784_v37 }
0x129b   : > { %v7745_v60 = vpop.xlane.xlu0 %7744 }
0x129c   : > { %v7761_v24 = vmul.f32 %v7745_v60, %v14440_v34 }
0x129e   : > { %v13838_v23 = vsub.f32 %v13728_v62, %v7761_v24 }
0x12a0   : > { %v7793_v5 = vmul.f32 %v13838_v23, %v13838_v23 }
0x12a2   : > { %7822 = vadd.xlane.f32.xlu2 %v7792_v19  ;;  %7824 = vadd.xlane.f32.xlu1 %v7793_v5 }
0x12ec   : > { %v7811_v30 = vpop.xlane.xlu0 %7810 }
0x12ed   : > { %v7795_v46 = vpop.xlane.xlu1 %7794  ;;  %v7834_v1 = vmul.f32 %v7811_v30, %v14440_v34 }
0x12ee   : > { %v7826_v49 = vmul.f32 %v7795_v46, %v14440_v34 }
0x12ef   : > { %v7850_v31 = vadd.f32 1e-05, %v7834_v1 }
0x12f0   : > { %v13846_v29 = vadd.f32 1e-05, %v7826_v49 }
0x12f1   : > { %10179 = vrsqrt.f32 %v7850_v31  ;;  %vm7944_vm7 = vweird.f32 %v7850_v31 }
0x12f2   : > { %10181 = vrsqrt.f32 %v13846_v29  ;;  %vm7864_vm6 = vweird.f32 %v13846_v29 }
0x12f4   : > { %v7815_v62 = vpop.xlane.xlu0 %7814 }
0x12f5   : > { %v7813_v43 = vpop.xlane.xlu1 %7812  ;;  %v7797_v0 = vpop.xlane.xlu2 %7796  ;;  %v7836_v63 = vmul.f32 %v7815_v62, %v14440_v34 }
0x12f6   : > { %v7835_v50 = vmul.f32 %v7813_v43, %v14440_v34  ;;  %v7827_v2 = vmul.f32 %v7797_v0, %v14440_v34 }
0x12f7   : > { %v13852_v33 = vpop.eup %10179  ;;  %v13854_v54 = vadd.f32 1e-05, %v7836_v63 }
0x12f8   : > { %v13856_v41 = vpop.eup %10181  ;;  %v7939_v44 = vmul.f32 %v13852_v33, %v7850_v31  ;;  %v13859_v38 = vadd.f32 1e-05, %v7835_v50  ;;  %v13861_v28 = vadd.f32 1e-05, %v7827_v2  ;;  %vm7945_vm4 = vweird.f32 %v13852_v33 }
0x12f9   : > { %v7859_v58 = vmul.f32 %v13856_v41, %v13846_v29  ;;  %10183 = vrsqrt.f32 %v13854_v54  ;;  %vm7865_vm5 = vweird.f32 %v13856_v41  ;;  %vm13905_vm8 = vmor %vm7944_vm7, %vm7945_vm4  ;;  %vm7964_vm10 = vweird.f32 %v13854_v54 }
0x12fa   : > { %v7940_v45 = vmul.f32 %v13852_v33, %v7939_v44  ;;  %10185 = vrsqrt.f32 %v13859_v38  ;;  %vm7954_vm9 = vweird.f32 %v13859_v38  ;;  %vm13913_vm11 = vmor %vm7864_vm6, %vm7865_vm5  ;;  %vm7874_vm14 = vweird.f32 %v13861_v28 }
0x12fb   : > { %v7860_v6 = vmul.f32 %v13856_v41, %v7859_v58  ;;  %10187 = vrsqrt.f32 %v13861_v28 }
0x12fc   : > { %v7803_v9 = vpop.xlane.xlu0 %7802  ;;  %v7941_v12 = vmul.f32 0.5, %v7940_v45 }
0x12fd   : > { %v7799_v56 = vpop.xlane.xlu2 %7798  ;;  %v7801_v61 = vpop.xlane.xlu1 %7800  ;;  %v7830_v15 = vmul.f32 %v7803_v9, %v14440_v34  ;;  %v7861_v21 = vmul.f32 0.5, %v7860_v6 }
0x12fe   : > { %v7828_v16 = vmul.f32 %v7799_v56, %v14440_v34  ;;  %v7829_v17 = vmul.f32 %v7801_v61, %v14440_v34  ;;  %v7942_v27 = vsub.f32 1.5, %v7941_v12 }
0x12ff   : > { %v13873_v26 = vpop.eup %10183  ;;  %v13890_v4 = vadd.f32 1e-05, %v7830_v15  ;;  %v7862_v47 = vsub.f32 1.5, %v7861_v21 }
0x1300   : > { %v13875_v22 = vpop.eup %10185  ;;  %v7959_v57 = vmul.f32 %v13873_v26, %v13854_v54  ;;  %v13879_v53 = vadd.f32 1e-05, %v7828_v16  ;;  %v13885_v20 = vadd.f32 1e-05, %v7829_v17  ;;  %v7943_v5 = vmul.f32 %v13852_v33, %v7942_v27 }
0x1301   : > { %v13881_v10 = vpop.eup %10187  ;;  %v7949_v25 = vmul.f32 %v13875_v22, %v13859_v38  ;;  %v7863_v46 = vmul.f32 %v13856_v41, %v7862_v47  ;;  %vm7955_vm12 = vweird.f32 %v13875_v22  ;;  %vm7965_vm15 = vweird.f32 %v13873_v26 }
0x1302   : > { %v7869_v36 = vmul.f32 %v13881_v10, %v13861_v28  ;;  %v7960_v13 = vmul.f32 %v13873_v26, %v7959_v57  ;;  %10189 = vrsqrt.f32 %v13879_v53  ;;  %v7947_v31 = vsel %vm13905_vm8, %v13852_v33, %v7943_v5  ;;  %vm13950_vm0 = vmor %vm7954_vm9, %vm7955_vm12 }
0x1303   : > { %v7950_v11 = vmul.f32 %v13875_v22, %v7949_v25  ;;  %10191 = vrsqrt.f32 %v13885_v20  ;;  %vm7875_vm13 = vweird.f32 %v13881_v10  ;;  %v7867_v6 = vsel %vm13913_vm11, %v13856_v41, %v7863_v46  ;;  %vm13978_vm3 = vmor %vm7964_vm10, %vm7965_vm15 }
0x1304   : > { %v7870_v37 = vmul.f32 %v13881_v10, %v7869_v36  ;;  %v7961_v24 = vmul.f32 0.5, %v7960_v13  ;;  %10193 = vrsqrt.f32 %v13890_v4  ;;  %v7821_v44 = vpop.xlane.xlu0 %7820  ;;  %v8018_v21 = vmul.f32 %v7867_v6, %v13754_v35  ;;  %v13958_v36 = vld [vmem:[%s14447_s1] ss:$0 sm:$0xff]  ;;  %vm13965_vm1 = vmor %vm7874_vm14, %vm7875_vm13  ;;  %v8123_v6 = vld [vmem:[%s14452_s21 + $0x70] sm:$0xff] }
0x1305   : > { %v7951_v60 = vmul.f32 0.5, %v7950_v11  ;;  %v7817_v19 = vpop.xlane.xlu2 %7816  ;;  %v7819_v43 = vpop.xlane.xlu1 %7818  ;;  %v7839_v17 = vmul.f32 %v7821_v44, %v14440_v34  ;;  %v8026_v57 = vmul.f32 %v7947_v31, %v13751_v39  ;;  %vm7884_vm4 = vweird.f32 %v13879_v53 }
0x1306   : > { %v7871_v30 = vmul.f32 0.5, %v7870_v37  ;;  %v7837_v49 = vmul.f32 %v7817_v19, %v14440_v34  ;;  %v7962_v50 = vsub.f32 1.5, %v7961_v24  ;;  %v7838_v56 = vmul.f32 %v7819_v43, %v14440_v34 }
0x1307   : > { %v7952_v1 = vsub.f32 1.5, %v7951_v60  ;;  %v13982_v60 = vadd.f32 1e-05, %v7839_v17  ;;  %vm7894_vm7 = vweird.f32 %v13885_v20  ;;  %vm7904_vm8 = vweird.f32 %v13890_v4 }
0x1308   : > { %v7872_v62 = vsub.f32 1.5, %v7871_v30  ;;  %v13903_v0 = vpop.eup %10189  ;;  %v13911_v2 = vadd.f32 1e-05, %v7837_v49  ;;  %v7963_v41 = vmul.f32 %v13873_v26, %v7962_v50  ;;  %v13971_v13 = vadd.f32 1e-05, %v7838_v56  ;;  %v8124_v50 = vld [vmem:[%s14452_s21 + $0x78] sm:$0xff] }
0x1309   : > { %v7879_v29 = vmul.f32 %v13903_v0, %v13879_v53  ;;  %v13924_v45 = vpop.eup %10191  ;;  %v7953_v9 = vmul.f32 %v13875_v22, %v7952_v1  ;;  %vm7885_vm2 = vweird.f32 %v13903_v0  ;;  %8129 = vmatpush.msra.mxu0 %v8124_v50 }
0x130a   : > { %10195 = vrsqrt.f32 %v13911_v2  ;;  %v13932_v33 = vpop.eup %10193  ;;  %v7873_v61 = vmul.f32 %v13881_v10, %v7872_v62  ;;  %v7889_v16 = vmul.f32 %v13924_v45, %v13885_v20  ;;  %v7967_v19 = vsel %vm13978_vm3, %v13873_v26, %v7963_v41  ;;  %vm7886_vm5 = vmor %vm7884_vm4, %vm7885_vm2 }
0x130b   : > { %v7880_v12 = vmul.f32 %v13903_v0, %v7879_v29  ;;  %v7899_v15 = vmul.f32 %v13932_v33, %v13890_v4  ;;  %v7957_v39 = vsel %vm13950_vm0, %v13875_v22, %v7953_v9  ;;  %10197 = vrsqrt.f32 %v13971_v13  ;;  %8130 = vmatpush.msra.mxu0 %v8123_v6  ;;  %v8121_v22 = vld [vmem:[%s14452_s21 + $0x60] sm:$0xff] }
0x130c   : > { %v7890_v27 = vmul.f32 %v13924_v45, %v7889_v16  ;;  %v7877_v47 = vsel %vm13965_vm1, %v13881_v10, %v7873_v61  ;;  %v8027_v10 = vmul.f32 %v7957_v39, %v13767_v40  ;;  %v8045_v62 = vmul.f32 %v13958_v36, %v8026_v57  ;;  %v8122_v57 = vld [vmem:[%s14452_s21 + $0x68] sm:$0xff] }
0x130d   : > { %v7881_v28 = vmul.f32 0.5, %v7880_v12  ;;  %v7900_v38 = vmul.f32 %v13932_v33, %v7899_v15  ;;  %v7805_v54 = vpop.xlane.xlu2 %7804  ;;  %v7807_v49 = vpop.xlane.xlu1 %7806  ;;  %v8019_v43 = vmul.f32 %v7877_v47, %v13770_v59  ;;  %10199 = vrsqrt.f32 %v13982_v60  ;;  %v14010_v59 = vld [vmem:[%s14453_s20] ss:$0 sm:$0xff]  ;;  %8131 = vmatpush.msra.mxu0 %v8122_v57 }
0x130e   : > { %v7891_v37 = vmul.f32 0.5, %v7890_v27  ;;  %vm7895_vm6 = vweird.f32 %v13924_v45  ;;  %v8028_v44 = vmul.f32 %v7967_v19, %v13764_v18  ;;  %v8046_v31 = vmul.f32 %v13958_v36, %v8027_v10  ;;  %v7809_v12 = vpop.xlane.xlu0 %7808 }
0x130f   : > { %v7882_v11 = vsub.f32 1.5, %v7881_v28  ;;  %v7901_v5 = vmul.f32 0.5, %v7900_v38  ;;  %vm7905_vm9 = vweird.f32 %v13932_v33  ;;  %v8038_v18 = vmul.f32 %v13958_v36, %v8019_v43  ;;  %vm14027_vm10 = vmor %vm7894_vm7, %vm7895_vm6  ;;  %8132 = vmatpush.msra.mxu0 %v8121_v22 }
0x1310   : > { %v13984_v24 = vpop.eup %10195  ;;  %v7892_v46 = vsub.f32 1.5, %v7891_v37  ;;  %v7832_v61 = vmul.f32 %v7807_v49, %v14440_v34  ;;  %v8037_v16 = vmul.f32 %v13958_v36, %v8018_v21  ;;  %v8064_v28 = vadd.f32 %v14010_v59, %v8045_v62  ;;  %vm14055_vm11 = vmor %vm7904_vm8, %vm7905_vm9 }
0x1311   : > { %v7883_v30 = vmul.f32 %v13903_v0, %v7882_v11  ;;  %v7969_v1 = vmul.f32 %v13984_v24, %v13911_v2  ;;  %v7902_v26 = vsub.f32 1.5, %v7901_v5  ;;  %v14022_v9 = vpop.eup %10197  ;;  %v8047_v27 = vmul.f32 %v13958_v36, %v8028_v44 }
0x1312   : > { %v7893_v40 = vmul.f32 %v13924_v45, %v7892_v46  ;;  %v7979_v15 = vmul.f32 %v14022_v9, %v13971_v13  ;;  %v7833_v47 = vmul.f32 %v7809_v12, %v14440_v34  ;;  %v8057_v11 = vadd.f32 %v14010_v59, %v8038_v18  ;;  %v8117_v18 = vld [vmem:[%s14452_s21 + $0x40] sm:$0xff] }
0x1313   : > { %v7887_v53 = vsel %vm7886_vm5, %v13903_v0, %v7883_v30  ;;  %v7970_v63 = vmul.f32 %v13984_v24, %v7969_v1  ;;  %v7831_v0 = vmul.f32 %v7805_v54, %v14440_v34  ;;  %v7903_v20 = vmul.f32 %v13932_v33, %v7902_v26  ;;  %v14044_v25 = vpop.eup %10199  ;;  %v8120_v54 = vld [vmem:[%s14452_s21 + $0x58] sm:$0xff] }
0x1314   : > { %v8020_v58 = vmul.f32 %v7887_v53, %v13781_v48  ;;  %v7897_v17 = vsel %vm14027_vm10, %v13924_v45, %v7893_v40  ;;  %v8065_v45 = vadd.f32 %v14010_v59, %v8046_v31  ;;  %v7980_v35 = vmul.f32 %v14022_v9, %v7979_v15  ;;  %8133 = vmatpush.msra.mxu0 %v8120_v54  ;;  %v8118_v40 = vld [vmem:[%s14452_s21 + $0x48] sm:$0xff] }
0x1315   : > { %v7971_v29 = vmul.f32 0.5, %v7970_v63  ;;  %v14032_v56 = vadd.f32 1e-05, %v7831_v0  ;;  %v7989_v38 = vmul.f32 %v14044_v25, %v13982_v60  ;;  %v8021_v37 = vmul.f32 %v7897_v17, %v13788_v3  ;;  %v7823_v5 = vpop.xlane.xlu2 %7822  ;;  %v7825_v3 = vpop.xlane.xlu1 %7824 }
0x1316   : > { %v8039_v21 = vmul.f32 %v13958_v36, %v8020_v58  ;;  %v7907_v4 = vsel %vm14055_vm11, %v13932_v33, %v7903_v20  ;;  %v14071_v19 = vadd.f32 1e-05, %v7832_v61  ;;  %vm7975_vm12 = vweird.f32 %v13984_v24  ;;  %v8119_v33 = vld [vmem:[%s14452_s21 + $0x50] sm:$0xff] }
0x1317   : > { %v7972_v41 = vsub.f32 1.5, %v7971_v29  ;;  %10201 = vrsqrt.f32 %v14032_v56  ;;  %v7981_v30 = vmul.f32 0.5, %v7980_v35  ;;  %v7990_v46 = vmul.f32 %v14044_v25, %v7989_v38  ;;  %8134 = vmatpush.msra.mxu0 %v8119_v33 }
0x1318   : > { %v8056_v1 = vadd.f32 %v14010_v59, %v8037_v16  ;;  %v8058_v49 = vadd.f32 %v14010_v59, %v8039_v21  ;;  %vm7974_vm13 = vweird.f32 %v13911_v2  ;;  %10203 = vrsqrt.f32 %v14071_v19  ;;  %v8116_v16 = vld [vmem:[%s14452_s21 + $0x38] sm:$0xff]  ;;  %v8115_v21 = vld [vmem:[%s14452_s21 + $0x30] sm:$0xff] }
0x1319   : > { %v7973_v10 = vmul.f32 %v13984_v24, %v7972_v41  ;;  %v8022_v62 = vmul.f32 %v7907_v4, %v13785_v7  ;;  %v7982_v43 = vsub.f32 1.5, %v7981_v30  ;;  %v14087_v26 = vadd.f32 1e-05, %v7833_v47  ;;  %vm14098_vm14 = vmor %vm7974_vm13, %vm7975_vm12  ;;  %8135 = vmatpush.msra.mxu0 %v8118_v40  ;;  %v8114_v47 = vld [vmem:[%s14452_s21 + $0x28] sm:$0xff] }
0x131a   : > { %v7840_v53 = vmul.f32 %v7823_v5, %v14440_v34  ;;  %v8072_v50 = vadd.f32 %v8057_v11, %v8056_v1  ;;  %v8040_v44 = vmul.f32 %v13958_v36, %v8021_v37  ;;  %v7991_v7 = vmul.f32 0.5, %v7990_v46 }
0x131b   : > { %v7841_v58 = vmul.f32 %v7825_v3, %v14440_v34  ;;  %v8093_v0 = vadd.f32 %v8065_v45, %v8064_v28  ;;  %v8066_v31 = vadd.f32 %v14010_v59, %v8047_v27  ;;  %v7977_v29 = vsel %vm14098_vm14, %v13984_v24, %v7973_v10  ;;  %8136 = vmatpush.msra.mxu0 %v8117_v18  ;;  %v8113_v10 = vld [vmem:[%s14452_s21 + $0x20] sm:$0xff] }
0x131c   : > { %v8073_v48 = vadd.f32 %v8072_v50, %v8058_v49  ;;  %vm7985_vm15 = vweird.f32 %v14022_v9  ;;  %10205 = vrsqrt.f32 %v14087_v26  ;;  %v14114_v34 = vadd.f32 1e-05, %v7840_v53 }
0x131d   : > { %v14093_v63 = vpop.eup %10201  ;;  %v8041_v20 = vmul.f32 %v13958_v36, %v8022_v62  ;;  %v7983_v61 = vmul.f32 %v14022_v9, %v7982_v43  ;;  %v14119_v12 = vadd.f32 1e-05, %v7841_v58  ;;  %v8059_v41 = vadd.f32 %v14010_v59, %v8040_v44  ;;  %8137 = vmatpush.msra.mxu0 %v8116_v16  ;;  %v8112_v62 = vld [vmem:[%s14452_s21 + $0x18] sm:$0xff] }
0x131e   : > { %v7909_v6 = vmul.f32 %v14093_v63, %v14032_v56  ;;  %v14124_v17 = vpop.eup %10203  ;;  %v8029_v15 = vmul.f32 %v7977_v29, %v13798_v55  ;;  %v7992_v57 = vsub.f32 1.5, %v7991_v7  ;;  %10207 = vrsqrt.f32 %v14114_v34  ;;  %v8111_v7 = vld [vmem:[%s14452_s21 + $0x10] sm:$0xff] }
0x131f   : > { %vm7984_vm0 = vweird.f32 %v13971_v13  ;;  %v7919_v27 = vmul.f32 %v14124_v17, %v14071_v19  ;;  %v14135_v45 = vadd.f32 %v8093_v0, %v8066_v31  ;;  %v8074_v39 = vadd.f32 %v8073_v48, %v8059_v41  ;;  %8138 = vmatpush.msra.mxu0 %v8115_v21 }
0x1320   : > { %v7910_v24 = vmul.f32 %v14093_v63, %v7909_v6  ;;  %vm14139_vm1 = vmor %vm7984_vm0, %vm7985_vm15  ;;  %vm7994_vm2 = vweird.f32 %v13982_v60  ;;  %10209 = vrsqrt.f32 %v14119_v12  ;;  %vm7915_vm3 = vweird.f32 %v14093_v63  ;;  %v8110_v6 = vld [vmem:[%s14452_s21 + $0x8] sm:$0xff] }
0x1321   : > { %v7987_v13 = vsel %vm14139_vm1, %v14022_v9, %v7983_v61  ;;  %v7920_v38 = vmul.f32 %v14124_v17, %v7919_v27  ;;  %v8060_v11 = vadd.f32 %v14010_v59, %v8041_v20  ;;  %v8048_v37 = vmul.f32 %v13958_v36, %v8029_v15  ;;  %8139 = vmatpush.msra.mxu0 %v8114_v47 }
0x1322   : > { %v7911_v28 = vmul.f32 0.5, %v7910_v24  ;;  %v14153_v22 = vpop.eup %10205  ;;  %v7993_v4 = vmul.f32 %v14044_v25, %v7992_v57  ;;  %vm7995_vm4 = vweird.f32 %v14044_v25  ;;  %vm7914_vm5 = vweird.f32 %v14032_v56 }
0x1323   : > { %v7921_v5 = vmul.f32 0.5, %v7920_v38  ;;  %v7929_v54 = vmul.f32 %v14153_v22, %v14087_v26  ;;  %v8075_v46 = vadd.f32 %v8074_v39, %v8060_v11  ;;  %v8030_v3 = vmul.f32 %v7987_v13, %v13806_v8  ;;  %vm7916_vm6 = vmor %vm7914_vm5, %vm7915_vm3  ;;  %8140 = vmatpush.msra.mxu0 %v8113_v10 }
0x1324   : > { %v7912_v35 = vsub.f32 1.5, %v7911_v28  ;;  %v14166_v30 = vpop.eup %10207  ;;  %vm7924_vm7 = vweird.f32 %v14071_v19  ;;  %vm7925_vm8 = vweird.f32 %v14124_v17  ;;  %vm14175_vm9 = vmor %vm7994_vm2, %vm7995_vm4  ;;  %v8067_v53 = vadd.f32 %v14010_v59, %v8048_v37 }
0x1325   : > { %v7922_v1 = vsub.f32 1.5, %v7921_v5  ;;  %v7930_v49 = vmul.f32 %v14153_v22, %v7929_v54  ;;  %v7999_v8 = vmul.f32 %v14166_v30, %v14114_v34  ;;  %v7997_v60 = vsel %vm14175_vm9, %v14044_v25, %v7993_v4  ;;  %vm7926_vm10 = vmor %vm7924_vm7, %vm7925_vm8  ;;  %8141 = vmatpush.msra.mxu0 %v8112_v62 }
0x1326   : > { %v7913_v9 = vmul.f32 %v14093_v63, %v7912_v35  ;;  %v10210_v43 = vpop.eup %10209  ;;  %v8049_v58 = vmul.f32 %v13958_v36, %v8030_v3  ;;  %vm7934_vm11 = vweird.f32 %v14087_v26  ;;  %vm7935_vm12 = vweird.f32 %v14153_v22 }
0x1327   : > { %v7931_v50 = vmul.f32 0.5, %v7930_v49  ;;  %v8000_v44 = vmul.f32 %v14166_v30, %v7999_v8  ;;  %v8009_v2 = vmul.f32 %v10210_v43, %v14119_v12  ;;  %v8031_v18 = vmul.f32 %v7997_v60, %v13803_v42  ;;  %8142 = vmatpush.msra.mxu0 %v8111_v7  ;;  %vm7936_vm14 = vmor %vm7934_vm11, %vm7935_vm12 }
0x1328   : > { %v7917_v33 = vsel %vm7916_vm6, %v14093_v63, %v7913_v9  ;;  %v7923_v63 = vmul.f32 %v14124_v17, %v7922_v1  ;;  %v10222_v20 = vmov 64.0   ;;  %vm8005_vm13 = vweird.f32 %v14166_v30 }
0x1329   : > { %v8023_v40 = vmul.f32 %v7917_v33, %v13816_v32  ;;  %v7932_v25 = vsub.f32 1.5, %v7931_v50  ;;  %v8001_v31 = vmul.f32 0.5, %v8000_v44  ;;  %v8010_v29 = vmul.f32 %v10210_v43, %v8009_v2  ;;  %8143 = vmatpush.msra.mxu0 %v8110_v6 }
0x132a   : > { %v7927_v32 = vsel %vm7926_vm10, %v14124_v17, %v7923_v63  ;;  %10211 = vrcp.f32 %v10222_v20  ;;  %v8109_v17 = vld [vmem:[%s14452_s21] sm:$0xff]  ;;  %v8095_v41 = vadd.f32 %v14135_v45, %v8067_v53  ;;  %vm8004_vm15 = vweird.f32 %v14114_v34 }
0x132b   : > { %v8042_v0 = vmul.f32 %v13958_v36, %v8023_v40  ;;  %v8024_v19 = vmul.f32 %v7927_v32, %v13824_v14  ;;  %v7933_v61 = vmul.f32 %v14153_v22, %v7932_v25  ;;  %v8002_v24 = vsub.f32 1.5, %v8001_v31  ;;  %vm8006_vm1 = vmor %vm8004_vm15, %vm8005_vm13  ;;  %8144 = vmatpush.msra.mxu0 %v8109_v17 }
0x132c   : > { %v8011_v16 = vmul.f32 0.5, %v8010_v29  ;;  %vm8015_vm0 = vweird.f32 %v10210_v43  ;;  %v8068_v27 = vadd.f32 %v14010_v59, %v8049_v58  ;;  %v8050_v21 = vmul.f32 %v13958_v36, %v8031_v18  ;;  %v10178_v58 = vld [vmem:[#allocation3] ss:$0 sm:$0xff] }
0x132d   : > { %v8061_v48 = vadd.f32 %v14010_v59, %v8042_v0  ;;  %v8043_v15 = vmul.f32 %v13958_v36, %v8024_v19  ;;  %v7937_v14 = vsel %vm7936_vm14, %v14153_v22, %v7933_v61  ;;  %v8003_v57 = vmul.f32 %v14166_v30, %v8002_v24 }
0x132e   : > { %v8012_v28 = vsub.f32 1.5, %v8011_v16  ;;  %v8025_v39 = vmul.f32 %v7937_v14, %v13821_v52  ;;  %vm8014_vm2 = vweird.f32 %v14119_v12  ;;  %v8096_v13 = vadd.f32 %v8095_v41, %v8068_v27 }
0x132f   : > { %v8076_v42 = vadd.f32 %v8075_v46, %v8061_v48  ;;  %v8062_v45 = vadd.f32 %v14010_v59, %v8043_v15  ;;  %v8007_v26 = vsel %vm8006_vm1, %v14166_v30, %v8003_v57  ;;  %vm8016_vm3 = vmor %vm8014_vm2, %vm8015_vm0  ;;  %v8069_v52 = vadd.f32 %v14010_v59, %v8050_v21 }
0x1330   : > { %v8013_v34 = vmul.f32 %v10210_v43, %v8012_v28  ;;  %v10212_v55 = vpop.eup %10211  ;;  %v8044_v35 = vmul.f32 %v13958_v36, %v8025_v39  ;;  %v8032_v38 = vmul.f32 %v8007_v26, %v13834_v51  ;;  %vm8107_vm5 = vcmask 1040384  }
0x1331   : > { %v8077_v47 = vadd.f32 %v8076_v42, %v8062_v45  ;;  %v8086_v9 = vmul.f32 64.0, %v10212_v55  ;;  %v8097_v5 = vadd.f32 %v8096_v13, %v8069_v52  ;;  %vm8090_vm4 = vweird.f32 %v10212_v55 }
0x1332   : > { %v8017_v22 = vsel %vm8016_vm3, %v10210_v43, %v8013_v34  ;;  %v8063_v11 = vadd.f32 %v14010_v59, %v8044_v35  ;;  %v8051_v37 = vmul.f32 %v13958_v36, %v8032_v38  ;;  %vm8149_vm6 = vcmask 1024  }
0x1333   : > { %v8033_v4 = vmul.f32 %v8017_v22, %v13838_v23  ;;  %v8087_v3 = vsub.f32 1.0, %v8086_v9 }
0x1334   : > { %v8070_v12 = vadd.f32 %v14010_v59, %v8051_v37  ;;  %v8078_v10 = vadd.f32 %v8077_v47, %v8063_v11 }
0x1335   : > { %v8052_v54 = vmul.f32 %v13958_v36, %v8033_v4  ;;  %v8088_v8 = vmul.f32 %v10212_v55, %v8087_v3 }
0x1336   : > { %v8079_v30 = vrot.slane %v8078_v10, 4  ;;  %v8098_v46 = vadd.f32 %v8097_v5, %v8070_v12 }
0x1337   : > { %v8071_v51 = vadd.f32 %v14010_v59, %v8052_v54  ;;  %v8089_v60 = vadd.f32 %v10212_v55, %v8088_v8 }
0x1338   : > { %v8080_v56 = vadd.f32 %v8079_v30, %v8078_v10 }
0x1339   : > { %v8099_v33 = vadd.f32 %v8098_v46, %v8071_v51  ;;  %v8091_v50 = vsel %vm8090_vm4, %v10212_v55, %v8089_v60 }
0x133a   : > { %v8081_v1 = vrot.slane %v8080_v56, 2 }
0x133b   : > { %v8100_v49 = vrot.slane %v8099_v33, 4 }
0x133c   : > { %v8082_v62 = vadd.f32 %v8081_v1, %v8080_v56 }
0x133d   : > { %v8101_v43 = vadd.f32 %v8100_v49, %v8099_v33 }
0x133e   : > { %v8083_v23 = vrot.slane %v8082_v62, 1 }
0x133f   : > { %v8102_v53 = vrot.slane %v8101_v43, 2 }
0x1340   : > { %v8084_v63 = vadd.f32 %v8083_v23, %v8082_v62 }
0x1341   : > { %v8103_v40 = vadd.f32 %v8102_v53, %v8101_v43 }
0x1342   : > { %v8092_v59 = vmul.f32 %v8091_v50, %v8084_v63 }
0x1343   : > { %v8104_v36 = vrot.slane %v8103_v40, 1 }
0x1345   : > { %v8105_v44 = vadd.f32 %v8104_v36, %v8103_v40 }
0x1347   : > { %v8106_v2 = vmul.f32 %v8105_v44, %v8091_v50 }
0x1349   : > { %v8108_v7 = vsel %vm8107_vm5, %v8092_v59, %v8106_v2 }
0x134a   : > { %8145 = vmatmul.f32.vlgmr.msra.gmra.mxu0 %v8108_v7 }
0x13c7   : > { %v8146_v0 = vpop.f32.mrf.mxu0 }
0x13c8   : > { %v8147_v32 = vadd.f32 %v10178_v58, %v8146_v0 }
0x13ca   : > { %8150 = vst.msk [vmem:[%s14464_s5] sm:$0x3] %vm8149_vm6, %v8147_v32 }
0x13cb PF: > { %s14465_s26 = sld [smem:[#allocation4_spill]] }
0x13d1   : > { %s36_s27 = sadd.s32 1, %s14465_s26  }
0x13d2   : > { %p33_p6 = scmp.ge.s32.totalorder %s36_s27, 4  }
0x13d4   :  { %35 = sbr.rel (!%p33_p6) target bundleno = 21 (0x15), region = 222 }

</bundles_post_ra>
